<compile_context>
chip_gen: v7x
topology: tpu7x:2x2x1
jax: 0.10.0
libtpu: 0.0.40
codegen_flags: <defaults>
</compile_context>

<pallas_src>
import math

import jax
import jax.numpy as jnp
from jax.experimental import pallas as pl
from jax.experimental.pallas import tpu as pltpu

# ----- model config (module defaults; small test batch/seq) -----------------
INPUT_DIM = 1          # input_dim=1 (one spectral value per step)
HIDDEN_DIM = 128       # module default hidden_dim=128 (lane-dense gates)
NUM_LAYERS = 2
NUM_DIRECTIONS = 2     # bidirectional=True
OUTPUT_DIM = 3
# batch_norm=False in defaults -> no BN branch.
# TODO(synk): dropout (between LSTM layers and inside fc) is a no-op in eval
# mode, so it is intentionally omitted here.


def _lstm_cell(gates, c_prev, H):
    """One LSTM cell update.  gates: (B, 4H) f32 in PyTorch (i, f, g, o) order."""
    if_act = jax.nn.sigmoid(gates[:, 0:2 * H])      # fused i|f sigmoid (one EUP region)
    i = if_act[:, 0:H]
    f = if_act[:, H:2 * H]
    g = jnp.tanh(gates[:, 2 * H:3 * H])
    o = jax.nn.sigmoid(gates[:, 3 * H:4 * H])
    c = f * c_prev + i * g
    h = o * jnp.tanh(c)
    return h, c


# --------------------- fused 2-layer bidir LSTM + fc kernel -----------------
def fused_lstm_kernel(x_ref, wih1_ref, whh1_ref, b1_ref,
                      wih2_ref, whh2f_ref, b2_ref,
                      fw1_ref, fb1_ref, fw2_ref, fb2_ref,
                      out_ref):
    """x_ref:    (T, B, 1)      f32 time-major input
       wih1_ref: (2, 1, 4H)     f32 layer-1 W_ih^T per direction (VPU broadcast)
       whh1_ref: (2, H, 4H)     bf16 layer-1 W_hh^T per direction
       b1_ref:   (2, 1, 4H)     f32 layer-1 b_ih + b_hh per direction
       wih2_ref: (2, 2H, 4H)    bf16 layer-2 W_ih^T per direction
       whh2f_ref:(H, 4H)        bf16 layer-2 forward W_hh^T (bwd dir runs 1 step)
       b2_ref:   (2, 1, 4H)     f32 layer-2 biases
       fw1/fb1/fw2/fb2: fc head weights (f32, pre-transposed)
       out_ref:  (B, OUTPUT_DIM) f32
    """
    T, B, _ = x_ref.shape
    H = whh1_ref.shape[1]
    f32 = jnp.float32
    bf16 = jnp.bfloat16

    # ---------------- layer 1 (Din = 1): VPU broadcast input projection ----
    x = x_ref[...]                                           # (T, B, 1) f32
    gx1_f = x * wih1_ref[0] + b1_ref[0]                      # (T, B, 4H) f32
    gx1_b = x * wih1_ref[1] + b1_ref[1]

    whh1_f = whh1_ref[0]                                     # (H, 4H) bf16
    whh1_b = whh1_ref[1]

    h_f = jnp.zeros((B, H), f32)
    c_f = jnp.zeros((B, H), f32)
    h_b = jnp.zeros((B, H), f32)
    c_b = jnp.zeros((B, H), f32)
    h1_f_steps = []        # layer-1 fwd hidden per timestep (time order)
    h1_b_steps = []        # layer-1 bwd hidden per loop step (reverse time)
    for t in range(T):     # fully unrolled; two independent chains per step
        g_f = gx1_f[t] + jnp.dot(h_f.astype(bf16), whh1_f,
                                 preferred_element_type=f32)
        g_b = gx1_b[T - 1 - t] + jnp.dot(h_b.astype(bf16), whh1_b,
                                         preferred_element_type=f32)
        h_f, c_f = _lstm_cell(g_f, c_f, H)
        h_b, c_b = _lstm_cell(g_b, c_b, H)
        h1_f_steps.append(h_f.astype(bf16))
        h1_b_steps.append(h_b.astype(bf16))

    # Layer-1 outputs in TIME order as two (T*B, H) bf16 slabs (list reversal
    # for the backward direction is free at trace time — no jnp.flip).
    h1_fwd = jnp.concatenate(h1_f_steps, axis=0)             # (T*B, H)
    h1_bwd = jnp.concatenate(h1_b_steps[::-1], axis=0)       # (T*B, H)

    # ---------------- layer 2: hoisted input projections -------------------
    # Forward direction needs all T steps (it ends at t = T-1):
    gx2_f = (jnp.dot(h1_fwd, wih2_ref[0, 0:H], preferred_element_type=f32)
             + jnp.dot(h1_bwd, wih2_ref[0, H:2 * H], preferred_element_type=f32)
             + b2_ref[0]).reshape(T, B, 4 * H)
    # Top-layer backward direction contributes ONLY its first step (time T-1)
    # to lstm_out[:, -1, :] -> one (B, 4H) projection with h_prev = c_prev = 0.
    g2_b = (jnp.dot(h1_f_steps[T - 1], wih2_ref[1, 0:H],
                    preferred_element_type=f32)
            + jnp.dot(h1_b_steps[0], wih2_ref[1, H:2 * H],
                      preferred_element_type=f32)
            + b2_ref[1])                                     # (B, 4H)
    h2_b, _ = _lstm_cell(g2_b, jnp.zeros((B, H), f32), H)

    whh2_f = whh2f_ref[...]                                  # (H, 4H) bf16
    h2_f = jnp.zeros((B, H), f32)
    c2_f = jnp.zeros((B, H), f32)
    for t in range(T):                                       # fully unrolled
        g = gx2_f[t] + jnp.dot(h2_f.astype(bf16), whh2_f,
                               preferred_element_type=f32)
        h2_f, c2_f = _lstm_cell(g, c2_f, H)

    # ---------------- fc head: Linear(2H->H) -> ReLU -> Linear(H->3) -------
    # last_hidden = [h2_f | h2_b]; split the first Linear instead of concat.
    z = (jnp.dot(h2_f, fw1_ref[0:H], preferred_element_type=f32)
         + jnp.dot(h2_b, fw1_ref[H:2 * H], preferred_element_type=f32)
         + fb1_ref[...])
    z = jnp.maximum(z, 0.0)                                  # ReLU; Dropout = id
    out_ref[...] = (jnp.dot(z, fw2_ref[...], preferred_element_type=f32)
                    + fb2_ref[...])


def fused_forward(x_tbd, params):
    """x_tbd: (T, B_pad, 1) time-major.  Returns (B_pad, OUTPUT_DIM)."""
    (wih1, whh1, b1), (wih2, whh2, b2) = params["lstm"]
    fw1, fb1, fw2, fb2 = params["fc"]
    _, B_pad, _ = x_tbd.shape
    return pl.pallas_call(
        fused_lstm_kernel,
        out_shape=jax.ShapeDtypeStruct((B_pad, OUTPUT_DIM), jnp.float32),
        # No grid: every operand is a whole-array VMEM block (problem is tiny).
    )(x_tbd, wih1, whh1, b1, wih2, whh2[0], b2, fw1, fb1, fw2, fb2)


# ----------------------------- parameter init --------------------------------
def init_params(key):
    """Mirrors _initialize_weights: LSTM weights orthogonal, LSTM biases zero,
    Linear weights kaiming-normal (fan_in, relu), Linear biases zero.
    MXU-bound weights are stored pre-transposed and in bf16."""
    ortho = jax.nn.initializers.orthogonal()
    params = {"lstm": [], "fc": None}
    in_dim = INPUT_DIM
    for _layer in range(NUM_LAYERS):
        wih_dirs, whh_dirs = [], []
        for _d in range(NUM_DIRECTIONS):            # 0 = fwd, 1 = bwd
            key, k1, k2 = jax.random.split(key, 3)
            w_ih = ortho(k1, (4 * HIDDEN_DIM, in_dim), jnp.float32)      # (4H, Din)
            w_hh = ortho(k2, (4 * HIDDEN_DIM, HIDDEN_DIM), jnp.float32)  # (4H, H)
            wih_dirs.append(w_ih.T)                                      # (Din, 4H)
            whh_dirs.append(w_hh.T)                                      # (H, 4H)
        wih = jnp.stack(wih_dirs)                            # (2, Din, 4H)
        if in_dim > 1:
            wih = wih.astype(jnp.bfloat16)                   # layer-2 MXU operand
        whh = jnp.stack(whh_dirs).astype(jnp.bfloat16)       # (2, H, 4H)
        bias = jnp.zeros((NUM_DIRECTIONS, 1, 4 * HIDDEN_DIM), jnp.float32)
        params["lstm"].append((wih, whh, bias))
        in_dim = HIDDEN_DIM * NUM_DIRECTIONS

    key, k1, k2 = jax.random.split(key, 3)
    fan_in1 = HIDDEN_DIM * NUM_DIRECTIONS
    w1 = jax.random.normal(k1, (HIDDEN_DIM, fan_in1), jnp.float32) * math.sqrt(2.0 / fan_in1)
    b1 = jnp.zeros((1, HIDDEN_DIM), jnp.float32)
    w2 = jax.random.normal(k2, (OUTPUT_DIM, HIDDEN_DIM), jnp.float32) * math.sqrt(2.0 / HIDDEN_DIM)
    b2 = jnp.zeros((1, OUTPUT_DIM), jnp.float32)
    params["fc"] = (w1.T, b1, w2.T, b2)                      # (2H,H),(1,H),(H,3),(1,3)
    return params


# ------------------------------- full forward --------------------------------
@jax.jit
def lstm_model_forward(x, params):
    """Matches LSTM.forward for a (B, seq) input: unsqueeze -> 2-layer
    bidirectional LSTM -> lstm_out[:, -1, :] -> fc head (eval mode)."""
    if x.ndim == 2:
        x = x[:, :, None]                            # (B, T, 1), like unsqueeze(2)
    # TODO(synk): the 3-D transpose/reshape input-normalization branches of the
    # PyTorch forward are not needed for the (B, seq) spectral input path.
    B = x.shape[0]

    # Pad batch to a multiple of 16: bf16 MXU LHS packs 16 rows per sublane
    # group.  Padded zero rows stay row-independent and are sliced off.
    B_pad = max(16, -(-B // 16) * 16)
    if B_pad != B:
        x = jnp.pad(x, ((0, B_pad - B), (0, 0), (0, 0)))

    x_tbd = jnp.transpose(x, (1, 0, 2)).astype(jnp.float32)   # (T, B_pad, 1)
    out = fused_forward(x_tbd, params)                        # (B_pad, OUTPUT_DIM)
    return out[:B]


# ----------------------------------- main ------------------------------------
if __name__ == "__main__":
    key = jax.random.PRNGKey(0)
    pkey, xkey = jax.random.split(key)
    params = init_params(pkey)

    B, T = 2, 8
    x = jax.random.normal(xkey, (B, T), jnp.float32)   # (batch, seq), input_dim=1

    out = lstm_model_forward(x, params)
    out = jax.block_until_ready(out)
    assert out.shape == (B, OUTPUT_DIM), out.shape
    assert bool(jnp.all(jnp.isfinite(out)))
    print("KERNEL_OK")
</pallas_src>

<mosaic_0001>
module attributes {stable_mosaic.version = 11 : i64} {
  func.func @fused_lstm_kernel(%arg0: memref<8x16x1xf32, #tpu.memory_space<vmem>>, %arg1: memref<2x1x512xf32, #tpu.memory_space<vmem>>, %arg2: memref<2x128x512xbf16, #tpu.memory_space<vmem>>, %arg3: memref<2x1x512xf32, #tpu.memory_space<vmem>>, %arg4: memref<2x256x512xbf16, #tpu.memory_space<vmem>>, %arg5: memref<128x512xbf16, #tpu.memory_space<vmem>>, %arg6: memref<2x1x512xf32, #tpu.memory_space<vmem>>, %arg7: memref<256x128xf32, #tpu.memory_space<vmem>>, %arg8: memref<1x128xf32, #tpu.memory_space<vmem>>, %arg9: memref<128x3xf32, #tpu.memory_space<vmem>>, %arg10: memref<1x3xf32, #tpu.memory_space<vmem>>, %arg11: memref<16x3xf32, #tpu.memory_space<vmem>>) attributes {dimension_semantics = [], scalar_prefetch = 0 : i64, scratch_operands = 0 : i64, tpu.core_type = #tpu.core_type<tc>} {
    %c0 = arith.constant 0 : index
    %c0_0 = arith.constant 0 : index
    %c0_1 = arith.constant 0 : index
    %0 = vector.load %arg0[%c0, %c0_0, %c0_1] : memref<8x16x1xf32, #tpu.memory_space<vmem>>, vector<8x16x1xf32>
    %c0_2 = arith.constant 0 : index
    %c0_3 = arith.constant 0 : index
    %c0_4 = arith.constant 0 : index
    %1 = vector.load %arg1[%c0_2, %c0_3, %c0_4] : memref<2x1x512xf32, #tpu.memory_space<vmem>>, vector<1x1x512xf32>
    %2 = vector.shape_cast %1 : vector<1x1x512xf32> to vector<1x512xf32>
    %3 = vector.shape_cast %2 : vector<1x512xf32> to vector<1x1x512xf32>
    %4 = vector.broadcast %0 : vector<8x16x1xf32> to vector<8x16x512xf32>
    %5 = vector.broadcast %3 : vector<1x1x512xf32> to vector<8x16x512xf32>
    %6 = arith.mulf %4, %5 : vector<8x16x512xf32>
    %c0_5 = arith.constant 0 : index
    %c0_6 = arith.constant 0 : index
    %c0_7 = arith.constant 0 : index
    %7 = vector.load %arg3[%c0_5, %c0_6, %c0_7] : memref<2x1x512xf32, #tpu.memory_space<vmem>>, vector<1x1x512xf32>
    %8 = vector.shape_cast %7 : vector<1x1x512xf32> to vector<1x512xf32>
    %9 = vector.shape_cast %8 : vector<1x512xf32> to vector<1x1x512xf32>
    %10 = vector.broadcast %9 : vector<1x1x512xf32> to vector<8x16x512xf32>
    %11 = arith.addf %6, %10 : vector<8x16x512xf32>
    %c1 = arith.constant 1 : index
    %c0_8 = arith.constant 0 : index
    %c0_9 = arith.constant 0 : index
    %12 = vector.load %arg1[%c1, %c0_8, %c0_9] : memref<2x1x512xf32, #tpu.memory_space<vmem>>, vector<1x1x512xf32>
    %13 = vector.shape_cast %12 : vector<1x1x512xf32> to vector<1x512xf32>
    %14 = vector.shape_cast %13 : vector<1x512xf32> to vector<1x1x512xf32>
    %15 = vector.broadcast %0 : vector<8x16x1xf32> to vector<8x16x512xf32>
    %16 = vector.broadcast %14 : vector<1x1x512xf32> to vector<8x16x512xf32>
    %17 = arith.mulf %15, %16 : vector<8x16x512xf32>
    %c1_10 = arith.constant 1 : index
    %c0_11 = arith.constant 0 : index
    %c0_12 = arith.constant 0 : index
    %18 = vector.load %arg3[%c1_10, %c0_11, %c0_12] : memref<2x1x512xf32, #tpu.memory_space<vmem>>, vector<1x1x512xf32>
    %19 = vector.shape_cast %18 : vector<1x1x512xf32> to vector<1x512xf32>
    %20 = vector.shape_cast %19 : vector<1x512xf32> to vector<1x1x512xf32>
    %21 = vector.broadcast %20 : vector<1x1x512xf32> to vector<8x16x512xf32>
    %22 = arith.addf %17, %21 : vector<8x16x512xf32>
    %c0_13 = arith.constant 0 : index
    %c0_14 = arith.constant 0 : index
    %c0_15 = arith.constant 0 : index
    %23 = vector.load %arg2[%c0_13, %c0_14, %c0_15] : memref<2x128x512xbf16, #tpu.memory_space<vmem>>, vector<1x128x512xbf16>
    %24 = vector.shape_cast %23 : vector<1x128x512xbf16> to vector<128x512xbf16>
    %c1_16 = arith.constant 1 : index
    %c0_17 = arith.constant 0 : index
    %c0_18 = arith.constant 0 : index
    %25 = vector.load %arg2[%c1_16, %c0_17, %c0_18] : memref<2x128x512xbf16, #tpu.memory_space<vmem>>, vector<1x128x512xbf16>
    %26 = vector.shape_cast %25 : vector<1x128x512xbf16> to vector<128x512xbf16>
    %cst = arith.constant 0.000000e+00 : f32
    %27 = vector.broadcast %cst : f32 to vector<16x128xf32>
    %cst_19 = arith.constant 0.000000e+00 : f32
    %28 = vector.broadcast %cst_19 : f32 to vector<16x128xf32>
    %cst_20 = arith.constant 0.000000e+00 : f32
    %29 = vector.broadcast %cst_20 : f32 to vector<16x128xf32>
    %cst_21 = arith.constant 0.000000e+00 : f32
    %30 = vector.broadcast %cst_21 : f32 to vector<16x128xf32>
    %31 = vector.extract_strided_slice %11 {offsets = [0, 0, 0], sizes = [1, 16, 512], strides = [1, 1, 1]} : vector<8x16x512xf32> to vector<1x16x512xf32>
    %32 = vector.shape_cast %31 : vector<1x16x512xf32> to vector<16x512xf32>
    %33 = arith.truncf %27 : vector<16x128xf32> to vector<16x128xbf16>
    %cst_22 = arith.constant dense<0.000000e+00> : vector<16x512xf32>
    %34 = tpu.matmul %33, %24, %cst_22 {dimension_numbers = #tpu.dot_dimension_numbers<[1], [0], [0], [1], [0, 0, 1, 1], [], []>} : vector<16x128xbf16>, vector<128x512xbf16>, vector<16x512xf32> -> vector<16x512xf32>
    %35 = arith.addf %32, %34 : vector<16x512xf32>
    %36 = vector.extract_strided_slice %22 {offsets = [7, 0, 0], sizes = [1, 16, 512], strides = [1, 1, 1]} : vector<8x16x512xf32> to vector<1x16x512xf32>
    %37 = vector.shape_cast %36 : vector<1x16x512xf32> to vector<16x512xf32>
    %38 = arith.truncf %29 : vector<16x128xf32> to vector<16x128xbf16>
    %cst_23 = arith.constant dense<0.000000e+00> : vector<16x512xf32>
    %39 = tpu.matmul %38, %26, %cst_23 {dimension_numbers = #tpu.dot_dimension_numbers<[1], [0], [0], [1], [0, 0, 1, 1], [], []>} : vector<16x128xbf16>, vector<128x512xbf16>, vector<16x512xf32> -> vector<16x512xf32>
    %40 = arith.addf %37, %39 : vector<16x512xf32>
    %41 = vector.extract_strided_slice %35 {offsets = [0, 0], sizes = [16, 256], strides = [1, 1]} : vector<16x512xf32> to vector<16x256xf32>
    %42 = arith.negf %41 : vector<16x256xf32>
    %43 = math.exp %42 : vector<16x256xf32>
    %cst_24 = arith.constant 1.000000e+00 : f32
    %44 = vector.broadcast %cst_24 : f32 to vector<16x256xf32>
    %45 = arith.addf %44, %43 : vector<16x256xf32>
    %46 = arith.divf %44, %45 : vector<16x256xf32>
    %47 = vector.extract_strided_slice %46 {offsets = [0, 0], sizes = [16, 128], strides = [1, 1]} : vector<16x256xf32> to vector<16x128xf32>
    %48 = vector.extract_strided_slice %46 {offsets = [0, 128], sizes = [16, 128], strides = [1, 1]} : vector<16x256xf32> to vector<16x128xf32>
    %49 = vector.extract_strided_slice %35 {offsets = [0, 256], sizes = [16, 128], strides = [1, 1]} : vector<16x512xf32> to vector<16x128xf32>
    %50 = math.tanh %49 : vector<16x128xf32>
    %51 = vector.extract_strided_slice %35 {offsets = [0, 384], sizes = [16, 128], strides = [1, 1]} : vector<16x512xf32> to vector<16x128xf32>
    %52 = arith.negf %51 : vector<16x128xf32>
    %53 = math.exp %52 : vector<16x128xf32>
    %cst_25 = arith.constant 1.000000e+00 : f32
    %54 = vector.broadcast %cst_25 : f32 to vector<16x128xf32>
    %55 = arith.addf %54, %53 : vector<16x128xf32>
    %56 = arith.divf %54, %55 : vector<16x128xf32>
    %57 = arith.mulf %48, %28 : vector<16x128xf32>
    %58 = arith.mulf %47, %50 : vector<16x128xf32>
    %59 = arith.addf %57, %58 : vector<16x128xf32>
    %60 = math.tanh %59 : vector<16x128xf32>
    %61 = arith.mulf %56, %60 : vector<16x128xf32>
    %62 = vector.extract_strided_slice %40 {offsets = [0, 0], sizes = [16, 256], strides = [1, 1]} : vector<16x512xf32> to vector<16x256xf32>
    %63 = arith.negf %62 : vector<16x256xf32>
    %64 = math.exp %63 : vector<16x256xf32>
    %cst_26 = arith.constant 1.000000e+00 : f32
    %65 = vector.broadcast %cst_26 : f32 to vector<16x256xf32>
    %66 = arith.addf %65, %64 : vector<16x256xf32>
    %67 = arith.divf %65, %66 : vector<16x256xf32>
    %68 = vector.extract_strided_slice %67 {offsets = [0, 0], sizes = [16, 128], strides = [1, 1]} : vector<16x256xf32> to vector<16x128xf32>
    %69 = vector.extract_strided_slice %67 {offsets = [0, 128], sizes = [16, 128], strides = [1, 1]} : vector<16x256xf32> to vector<16x128xf32>
    %70 = vector.extract_strided_slice %40 {offsets = [0, 256], sizes = [16, 128], strides = [1, 1]} : vector<16x512xf32> to vector<16x128xf32>
    %71 = math.tanh %70 : vector<16x128xf32>
    %72 = vector.extract_strided_slice %40 {offsets = [0, 384], sizes = [16, 128], strides = [1, 1]} : vector<16x512xf32> to vector<16x128xf32>
    %73 = arith.negf %72 : vector<16x128xf32>
    %74 = math.exp %73 : vector<16x128xf32>
    %cst_27 = arith.constant 1.000000e+00 : f32
    %75 = vector.broadcast %cst_27 : f32 to vector<16x128xf32>
    %76 = arith.addf %75, %74 : vector<16x128xf32>
    %77 = arith.divf %75, %76 : vector<16x128xf32>
    %78 = arith.mulf %69, %30 : vector<16x128xf32>
    %79 = arith.mulf %68, %71 : vector<16x128xf32>
    %80 = arith.addf %78, %79 : vector<16x128xf32>
    %81 = math.tanh %80 : vector<16x128xf32>
    %82 = arith.mulf %77, %81 : vector<16x128xf32>
    %83 = arith.truncf %61 : vector<16x128xf32> to vector<16x128xbf16>
    %84 = arith.truncf %82 : vector<16x128xf32> to vector<16x128xbf16>
    %85 = vector.extract_strided_slice %11 {offsets = [1, 0, 0], sizes = [1, 16, 512], strides = [1, 1, 1]} : vector<8x16x512xf32> to vector<1x16x512xf32>
    %86 = vector.shape_cast %85 : vector<1x16x512xf32> to vector<16x512xf32>
    %87 = arith.truncf %61 : vector<16x128xf32> to vector<16x128xbf16>
    %cst_28 = arith.constant dense<0.000000e+00> : vector<16x512xf32>
    %88 = tpu.matmul %87, %24, %cst_28 {dimension_numbers = #tpu.dot_dimension_numbers<[1], [0], [0], [1], [0, 0, 1, 1], [], []>} : vector<16x128xbf16>, vector<128x512xbf16>, vector<16x512xf32> -> vector<16x512xf32>
    %89 = arith.addf %86, %88 : vector<16x512xf32>
    %90 = vector.extract_strided_slice %22 {offsets = [6, 0, 0], sizes = [1, 16, 512], strides = [1, 1, 1]} : vector<8x16x512xf32> to vector<1x16x512xf32>
    %91 = vector.shape_cast %90 : vector<1x16x512xf32> to vector<16x512xf32>
    %92 = arith.truncf %82 : vector<16x128xf32> to vector<16x128xbf16>
    %cst_29 = arith.constant dense<0.000000e+00> : vector<16x512xf32>
    %93 = tpu.matmul %92, %26, %cst_29 {dimension_numbers = #tpu.dot_dimension_numbers<[1], [0], [0], [1], [0, 0, 1, 1], [], []>} : vector<16x128xbf16>, vector<128x512xbf16>, vector<16x512xf32> -> vector<16x512xf32>
    %94 = arith.addf %91, %93 : vector<16x512xf32>
    %95 = vector.extract_strided_slice %89 {offsets = [0, 0], sizes = [16, 256], strides = [1, 1]} : vector<16x512xf32> to vector<16x256xf32>
    %96 = arith.negf %95 : vector<16x256xf32>
    %97 = math.exp %96 : vector<16x256xf32>
    %cst_30 = arith.constant 1.000000e+00 : f32
    %98 = vector.broadcast %cst_30 : f32 to vector<16x256xf32>
    %99 = arith.addf %98, %97 : vector<16x256xf32>
    %100 = arith.divf %98, %99 : vector<16x256xf32>
    %101 = vector.extract_strided_slice %100 {offsets = [0, 0], sizes = [16, 128], strides = [1, 1]} : vector<16x256xf32> to vector<16x128xf32>
    %102 = vector.extract_strided_slice %100 {offsets = [0, 128], sizes = [16, 128], strides = [1, 1]} : vector<16x256xf32> to vector<16x128xf32>
    %103 = vector.extract_strided_slice %89 {offsets = [0, 256], sizes = [16, 128], strides = [1, 1]} : vector<16x512xf32> to vector<16x128xf32>
    %104 = math.tanh %103 : vector<16x128xf32>
    %105 = vector.extract_strided_slice %89 {offsets = [0, 384], sizes = [16, 128], strides = [1, 1]} : vector<16x512xf32> to vector<16x128xf32>
    %106 = arith.negf %105 : vector<16x128xf32>
    %107 = math.exp %106 : vector<16x128xf32>
    %cst_31 = arith.constant 1.000000e+00 : f32
    %108 = vector.broadcast %cst_31 : f32 to vector<16x128xf32>
    %109 = arith.addf %108, %107 : vector<16x128xf32>
    %110 = arith.divf %108, %109 : vector<16x128xf32>
    %111 = arith.mulf %102, %59 : vector<16x128xf32>
    %112 = arith.mulf %101, %104 : vector<16x128xf32>
    %113 = arith.addf %111, %112 : vector<16x128xf32>
    %114 = math.tanh %113 : vector<16x128xf32>
    %115 = arith.mulf %110, %114 : vector<16x128xf32>
    %116 = vector.extract_strided_slice %94 {offsets = [0, 0], sizes = [16, 256], strides = [1, 1]} : vector<16x512xf32> to vector<16x256xf32>
    %117 = arith.negf %116 : vector<16x256xf32>
    %118 = math.exp %117 : vector<16x256xf32>
    %cst_32 = arith.constant 1.000000e+00 : f32
    %119 = vector.broadcast %cst_32 : f32 to vector<16x256xf32>
    %120 = arith.addf %119, %118 : vector<16x256xf32>
    %121 = arith.divf %119, %120 : vector<16x256xf32>
    %122 = vector.extract_strided_slice %121 {offsets = [0, 0], sizes = [16, 128], strides = [1, 1]} : vector<16x256xf32> to vector<16x128xf32>
    %123 = vector.extract_strided_slice %121 {offsets = [0, 128], sizes = [16, 128], strides = [1, 1]} : vector<16x256xf32> to vector<16x128xf32>
    %124 = vector.extract_strided_slice %94 {offsets = [0, 256], sizes = [16, 128], strides = [1, 1]} : vector<16x512xf32> to vector<16x128xf32>
    %125 = math.tanh %124 : vector<16x128xf32>
    %126 = vector.extract_strided_slice %94 {offsets = [0, 384], sizes = [16, 128], strides = [1, 1]} : vector<16x512xf32> to vector<16x128xf32>
    %127 = arith.negf %126 : vector<16x128xf32>
    %128 = math.exp %127 : vector<16x128xf32>
    %cst_33 = arith.constant 1.000000e+00 : f32
    %129 = vector.broadcast %cst_33 : f32 to vector<16x128xf32>
    %130 = arith.addf %129, %128 : vector<16x128xf32>
    %131 = arith.divf %129, %130 : vector<16x128xf32>
    %132 = arith.mulf %123, %80 : vector<16x128xf32>
    %133 = arith.mulf %122, %125 : vector<16x128xf32>
    %134 = arith.addf %132, %133 : vector<16x128xf32>
    %135 = math.tanh %134 : vector<16x128xf32>
    %136 = arith.mulf %131, %135 : vector<16x128xf32>
    %137 = arith.truncf %115 : vector<16x128xf32> to vector<16x128xbf16>
    %138 = arith.truncf %136 : vector<16x128xf32> to vector<16x128xbf16>
    %139 = vector.extract_strided_slice %11 {offsets = [2, 0, 0], sizes = [1, 16, 512], strides = [1, 1, 1]} : vector<8x16x512xf32> to vector<1x16x512xf32>
    %140 = vector.shape_cast %139 : vector<1x16x512xf32> to vector<16x512xf32>
    %141 = arith.truncf %115 : vector<16x128xf32> to vector<16x128xbf16>
    %cst_34 = arith.constant dense<0.000000e+00> : vector<16x512xf32>
    %142 = tpu.matmul %141, %24, %cst_34 {dimension_numbers = #tpu.dot_dimension_numbers<[1], [0], [0], [1], [0, 0, 1, 1], [], []>} : vector<16x128xbf16>, vector<128x512xbf16>, vector<16x512xf32> -> vector<16x512xf32>
    %143 = arith.addf %140, %142 : vector<16x512xf32>
    %144 = vector.extract_strided_slice %22 {offsets = [5, 0, 0], sizes = [1, 16, 512], strides = [1, 1, 1]} : vector<8x16x512xf32> to vector<1x16x512xf32>
    %145 = vector.shape_cast %144 : vector<1x16x512xf32> to vector<16x512xf32>
    %146 = arith.truncf %136 : vector<16x128xf32> to vector<16x128xbf16>
    %cst_35 = arith.constant dense<0.000000e+00> : vector<16x512xf32>
    %147 = tpu.matmul %146, %26, %cst_35 {dimension_numbers = #tpu.dot_dimension_numbers<[1], [0], [0], [1], [0, 0, 1, 1], [], []>} : vector<16x128xbf16>, vector<128x512xbf16>, vector<16x512xf32> -> vector<16x512xf32>
    %148 = arith.addf %145, %147 : vector<16x512xf32>
    %149 = vector.extract_strided_slice %143 {offsets = [0, 0], sizes = [16, 256], strides = [1, 1]} : vector<16x512xf32> to vector<16x256xf32>
    %150 = arith.negf %149 : vector<16x256xf32>
    %151 = math.exp %150 : vector<16x256xf32>
    %cst_36 = arith.constant 1.000000e+00 : f32
    %152 = vector.broadcast %cst_36 : f32 to vector<16x256xf32>
    %153 = arith.addf %152, %151 : vector<16x256xf32>
    %154 = arith.divf %152, %153 : vector<16x256xf32>
    %155 = vector.extract_strided_slice %154 {offsets = [0, 0], sizes = [16, 128], strides = [1, 1]} : vector<16x256xf32> to vector<16x128xf32>
    %156 = vector.extract_strided_slice %154 {offsets = [0, 128], sizes = [16, 128], strides = [1, 1]} : vector<16x256xf32> to vector<16x128xf32>
    %157 = vector.extract_strided_slice %143 {offsets = [0, 256], sizes = [16, 128], strides = [1, 1]} : vector<16x512xf32> to vector<16x128xf32>
    %158 = math.tanh %157 : vector<16x128xf32>
    %159 = vector.extract_strided_slice %143 {offsets = [0, 384], sizes = [16, 128], strides = [1, 1]} : vector<16x512xf32> to vector<16x128xf32>
    %160 = arith.negf %159 : vector<16x128xf32>
    %161 = math.exp %160 : vector<16x128xf32>
    %cst_37 = arith.constant 1.000000e+00 : f32
    %162 = vector.broadcast %cst_37 : f32 to vector<16x128xf32>
    %163 = arith.addf %162, %161 : vector<16x128xf32>
    %164 = arith.divf %162, %163 : vector<16x128xf32>
    %165 = arith.mulf %156, %113 : vector<16x128xf32>
    %166 = arith.mulf %155, %158 : vector<16x128xf32>
    %167 = arith.addf %165, %166 : vector<16x128xf32>
    %168 = math.tanh %167 : vector<16x128xf32>
    %169 = arith.mulf %164, %168 : vector<16x128xf32>
    %170 = vector.extract_strided_slice %148 {offsets = [0, 0], sizes = [16, 256], strides = [1, 1]} : vector<16x512xf32> to vector<16x256xf32>
    %171 = arith.negf %170 : vector<16x256xf32>
    %172 = math.exp %171 : vector<16x256xf32>
    %cst_38 = arith.constant 1.000000e+00 : f32
    %173 = vector.broadcast %cst_38 : f32 to vector<16x256xf32>
    %174 = arith.addf %173, %172 : vector<16x256xf32>
    %175 = arith.divf %173, %174 : vector<16x256xf32>
    %176 = vector.extract_strided_slice %175 {offsets = [0, 0], sizes = [16, 128], strides = [1, 1]} : vector<16x256xf32> to vector<16x128xf32>
    %177 = vector.extract_strided_slice %175 {offsets = [0, 128], sizes = [16, 128], strides = [1, 1]} : vector<16x256xf32> to vector<16x128xf32>
    %178 = vector.extract_strided_slice %148 {offsets = [0, 256], sizes = [16, 128], strides = [1, 1]} : vector<16x512xf32> to vector<16x128xf32>
    %179 = math.tanh %178 : vector<16x128xf32>
    %180 = vector.extract_strided_slice %148 {offsets = [0, 384], sizes = [16, 128], strides = [1, 1]} : vector<16x512xf32> to vector<16x128xf32>
    %181 = arith.negf %180 : vector<16x128xf32>
    %182 = math.exp %181 : vector<16x128xf32>
    %cst_39 = arith.constant 1.000000e+00 : f32
    %183 = vector.broadcast %cst_39 : f32 to vector<16x128xf32>
    %184 = arith.addf %183, %182 : vector<16x128xf32>
    %185 = arith.divf %183, %184 : vector<16x128xf32>
    %186 = arith.mulf %177, %134 : vector<16x128xf32>
    %187 = arith.mulf %176, %179 : vector<16x128xf32>
    %188 = arith.addf %186, %187 : vector<16x128xf32>
    %189 = math.tanh %188 : vector<16x128xf32>
    %190 = arith.mulf %185, %189 : vector<16x128xf32>
    %191 = arith.truncf %169 : vector<16x128xf32> to vector<16x128xbf16>
    %192 = arith.truncf %190 : vector<16x128xf32> to vector<16x128xbf16>
    %193 = vector.extract_strided_slice %11 {offsets = [3, 0, 0], sizes = [1, 16, 512], strides = [1, 1, 1]} : vector<8x16x512xf32> to vector<1x16x512xf32>
    %194 = vector.shape_cast %193 : vector<1x16x512xf32> to vector<16x512xf32>
    %195 = arith.truncf %169 : vector<16x128xf32> to vector<16x128xbf16>
    %cst_40 = arith.constant dense<0.000000e+00> : vector<16x512xf32>
    %196 = tpu.matmul %195, %24, %cst_40 {dimension_numbers = #tpu.dot_dimension_numbers<[1], [0], [0], [1], [0, 0, 1, 1], [], []>} : vector<16x128xbf16>, vector<128x512xbf16>, vector<16x512xf32> -> vector<16x512xf32>
    %197 = arith.addf %194, %196 : vector<16x512xf32>
    %198 = vector.extract_strided_slice %22 {offsets = [4, 0, 0], sizes = [1, 16, 512], strides = [1, 1, 1]} : vector<8x16x512xf32> to vector<1x16x512xf32>
    %199 = vector.shape_cast %198 : vector<1x16x512xf32> to vector<16x512xf32>
    %200 = arith.truncf %190 : vector<16x128xf32> to vector<16x128xbf16>
    %cst_41 = arith.constant dense<0.000000e+00> : vector<16x512xf32>
    %201 = tpu.matmul %200, %26, %cst_41 {dimension_numbers = #tpu.dot_dimension_numbers<[1], [0], [0], [1], [0, 0, 1, 1], [], []>} : vector<16x128xbf16>, vector<128x512xbf16>, vector<16x512xf32> -> vector<16x512xf32>
    %202 = arith.addf %199, %201 : vector<16x512xf32>
    %203 = vector.extract_strided_slice %197 {offsets = [0, 0], sizes = [16, 256], strides = [1, 1]} : vector<16x512xf32> to vector<16x256xf32>
    %204 = arith.negf %203 : vector<16x256xf32>
    %205 = math.exp %204 : vector<16x256xf32>
    %cst_42 = arith.constant 1.000000e+00 : f32
    %206 = vector.broadcast %cst_42 : f32 to vector<16x256xf32>
    %207 = arith.addf %206, %205 : vector<16x256xf32>
    %208 = arith.divf %206, %207 : vector<16x256xf32>
    %209 = vector.extract_strided_slice %208 {offsets = [0, 0], sizes = [16, 128], strides = [1, 1]} : vector<16x256xf32> to vector<16x128xf32>
    %210 = vector.extract_strided_slice %208 {offsets = [0, 128], sizes = [16, 128], strides = [1, 1]} : vector<16x256xf32> to vector<16x128xf32>
    %211 = vector.extract_strided_slice %197 {offsets = [0, 256], sizes = [16, 128], strides = [1, 1]} : vector<16x512xf32> to vector<16x128xf32>
    %212 = math.tanh %211 : vector<16x128xf32>
    %213 = vector.extract_strided_slice %197 {offsets = [0, 384], sizes = [16, 128], strides = [1, 1]} : vector<16x512xf32> to vector<16x128xf32>
    %214 = arith.negf %213 : vector<16x128xf32>
    %215 = math.exp %214 : vector<16x128xf32>
    %cst_43 = arith.constant 1.000000e+00 : f32
    %216 = vector.broadcast %cst_43 : f32 to vector<16x128xf32>
    %217 = arith.addf %216, %215 : vector<16x128xf32>
    %218 = arith.divf %216, %217 : vector<16x128xf32>
    %219 = arith.mulf %210, %167 : vector<16x128xf32>
    %220 = arith.mulf %209, %212 : vector<16x128xf32>
    %221 = arith.addf %219, %220 : vector<16x128xf32>
    %222 = math.tanh %221 : vector<16x128xf32>
    %223 = arith.mulf %218, %222 : vector<16x128xf32>
    %224 = vector.extract_strided_slice %202 {offsets = [0, 0], sizes = [16, 256], strides = [1, 1]} : vector<16x512xf32> to vector<16x256xf32>
    %225 = arith.negf %224 : vector<16x256xf32>
    %226 = math.exp %225 : vector<16x256xf32>
    %cst_44 = arith.constant 1.000000e+00 : f32
    %227 = vector.broadcast %cst_44 : f32 to vector<16x256xf32>
    %228 = arith.addf %227, %226 : vector<16x256xf32>
    %229 = arith.divf %227, %228 : vector<16x256xf32>
    %230 = vector.extract_strided_slice %229 {offsets = [0, 0], sizes = [16, 128], strides = [1, 1]} : vector<16x256xf32> to vector<16x128xf32>
    %231 = vector.extract_strided_slice %229 {offsets = [0, 128], sizes = [16, 128], strides = [1, 1]} : vector<16x256xf32> to vector<16x128xf32>
    %232 = vector.extract_strided_slice %202 {offsets = [0, 256], sizes = [16, 128], strides = [1, 1]} : vector<16x512xf32> to vector<16x128xf32>
    %233 = math.tanh %232 : vector<16x128xf32>
    %234 = vector.extract_strided_slice %202 {offsets = [0, 384], sizes = [16, 128], strides = [1, 1]} : vector<16x512xf32> to vector<16x128xf32>
    %235 = arith.negf %234 : vector<16x128xf32>
    %236 = math.exp %235 : vector<16x128xf32>
    %cst_45 = arith.constant 1.000000e+00 : f32
    %237 = vector.broadcast %cst_45 : f32 to vector<16x128xf32>
    %238 = arith.addf %237, %236 : vector<16x128xf32>
    %239 = arith.divf %237, %238 : vector<16x128xf32>
    %240 = arith.mulf %231, %188 : vector<16x128xf32>
    %241 = arith.mulf %230, %233 : vector<16x128xf32>
    %242 = arith.addf %240, %241 : vector<16x128xf32>
    %243 = math.tanh %242 : vector<16x128xf32>
    %244 = arith.mulf %239, %243 : vector<16x128xf32>
    %245 = arith.truncf %223 : vector<16x128xf32> to vector<16x128xbf16>
    %246 = arith.truncf %244 : vector<16x128xf32> to vector<16x128xbf16>
    %247 = vector.extract_strided_slice %11 {offsets = [4, 0, 0], sizes = [1, 16, 512], strides = [1, 1, 1]} : vector<8x16x512xf32> to vector<1x16x512xf32>
    %248 = vector.shape_cast %247 : vector<1x16x512xf32> to vector<16x512xf32>
    %249 = arith.truncf %223 : vector<16x128xf32> to vector<16x128xbf16>
    %cst_46 = arith.constant dense<0.000000e+00> : vector<16x512xf32>
    %250 = tpu.matmul %249, %24, %cst_46 {dimension_numbers = #tpu.dot_dimension_numbers<[1], [0], [0], [1], [0, 0, 1, 1], [], []>} : vector<16x128xbf16>, vector<128x512xbf16>, vector<16x512xf32> -> vector<16x512xf32>
    %251 = arith.addf %248, %250 : vector<16x512xf32>
    %252 = vector.extract_strided_slice %22 {offsets = [3, 0, 0], sizes = [1, 16, 512], strides = [1, 1, 1]} : vector<8x16x512xf32> to vector<1x16x512xf32>
    %253 = vector.shape_cast %252 : vector<1x16x512xf32> to vector<16x512xf32>
    %254 = arith.truncf %244 : vector<16x128xf32> to vector<16x128xbf16>
    %cst_47 = arith.constant dense<0.000000e+00> : vector<16x512xf32>
    %255 = tpu.matmul %254, %26, %cst_47 {dimension_numbers = #tpu.dot_dimension_numbers<[1], [0], [0], [1], [0, 0, 1, 1], [], []>} : vector<16x128xbf16>, vector<128x512xbf16>, vector<16x512xf32> -> vector<16x512xf32>
    %256 = arith.addf %253, %255 : vector<16x512xf32>
    %257 = vector.extract_strided_slice %251 {offsets = [0, 0], sizes = [16, 256], strides = [1, 1]} : vector<16x512xf32> to vector<16x256xf32>
    %258 = arith.negf %257 : vector<16x256xf32>
    %259 = math.exp %258 : vector<16x256xf32>
    %cst_48 = arith.constant 1.000000e+00 : f32
    %260 = vector.broadcast %cst_48 : f32 to vector<16x256xf32>
    %261 = arith.addf %260, %259 : vector<16x256xf32>
    %262 = arith.divf %260, %261 : vector<16x256xf32>
    %263 = vector.extract_strided_slice %262 {offsets = [0, 0], sizes = [16, 128], strides = [1, 1]} : vector<16x256xf32> to vector<16x128xf32>
    %264 = vector.extract_strided_slice %262 {offsets = [0, 128], sizes = [16, 128], strides = [1, 1]} : vector<16x256xf32> to vector<16x128xf32>
    %265 = vector.extract_strided_slice %251 {offsets = [0, 256], sizes = [16, 128], strides = [1, 1]} : vector<16x512xf32> to vector<16x128xf32>
    %266 = math.tanh %265 : vector<16x128xf32>
    %267 = vector.extract_strided_slice %251 {offsets = [0, 384], sizes = [16, 128], strides = [1, 1]} : vector<16x512xf32> to vector<16x128xf32>
    %268 = arith.negf %267 : vector<16x128xf32>
    %269 = math.exp %268 : vector<16x128xf32>
    %cst_49 = arith.constant 1.000000e+00 : f32
    %270 = vector.broadcast %cst_49 : f32 to vector<16x128xf32>
    %271 = arith.addf %270, %269 : vector<16x128xf32>
    %272 = arith.divf %270, %271 : vector<16x128xf32>
    %273 = arith.mulf %264, %221 : vector<16x128xf32>
    %274 = arith.mulf %263, %266 : vector<16x128xf32>
    %275 = arith.addf %273, %274 : vector<16x128xf32>
    %276 = math.tanh %275 : vector<16x128xf32>
    %277 = arith.mulf %272, %276 : vector<16x128xf32>
    %278 = vector.extract_strided_slice %256 {offsets = [0, 0], sizes = [16, 256], strides = [1, 1]} : vector<16x512xf32> to vector<16x256xf32>
    %279 = arith.negf %278 : vector<16x256xf32>
    %280 = math.exp %279 : vector<16x256xf32>
    %cst_50 = arith.constant 1.000000e+00 : f32
    %281 = vector.broadcast %cst_50 : f32 to vector<16x256xf32>
    %282 = arith.addf %281, %280 : vector<16x256xf32>
    %283 = arith.divf %281, %282 : vector<16x256xf32>
    %284 = vector.extract_strided_slice %283 {offsets = [0, 0], sizes = [16, 128], strides = [1, 1]} : vector<16x256xf32> to vector<16x128xf32>
    %285 = vector.extract_strided_slice %283 {offsets = [0, 128], sizes = [16, 128], strides = [1, 1]} : vector<16x256xf32> to vector<16x128xf32>
    %286 = vector.extract_strided_slice %256 {offsets = [0, 256], sizes = [16, 128], strides = [1, 1]} : vector<16x512xf32> to vector<16x128xf32>
    %287 = math.tanh %286 : vector<16x128xf32>
    %288 = vector.extract_strided_slice %256 {offsets = [0, 384], sizes = [16, 128], strides = [1, 1]} : vector<16x512xf32> to vector<16x128xf32>
    %289 = arith.negf %288 : vector<16x128xf32>
    %290 = math.exp %289 : vector<16x128xf32>
    %cst_51 = arith.constant 1.000000e+00 : f32
    %291 = vector.broadcast %cst_51 : f32 to vector<16x128xf32>
    %292 = arith.addf %291, %290 : vector<16x128xf32>
    %293 = arith.divf %291, %292 : vector<16x128xf32>
    %294 = arith.mulf %285, %242 : vector<16x128xf32>
    %295 = arith.mulf %284, %287 : vector<16x128xf32>
    %296 = arith.addf %294, %295 : vector<16x128xf32>
    %297 = math.tanh %296 : vector<16x128xf32>
    %298 = arith.mulf %293, %297 : vector<16x128xf32>
    %299 = arith.truncf %277 : vector<16x128xf32> to vector<16x128xbf16>
    %300 = arith.truncf %298 : vector<16x128xf32> to vector<16x128xbf16>
    %301 = vector.extract_strided_slice %11 {offsets = [5, 0, 0], sizes = [1, 16, 512], strides = [1, 1, 1]} : vector<8x16x512xf32> to vector<1x16x512xf32>
    %302 = vector.shape_cast %301 : vector<1x16x512xf32> to vector<16x512xf32>
    %303 = arith.truncf %277 : vector<16x128xf32> to vector<16x128xbf16>
    %cst_52 = arith.constant dense<0.000000e+00> : vector<16x512xf32>
    %304 = tpu.matmul %303, %24, %cst_52 {dimension_numbers = #tpu.dot_dimension_numbers<[1], [0], [0], [1], [0, 0, 1, 1], [], []>} : vector<16x128xbf16>, vector<128x512xbf16>, vector<16x512xf32> -> vector<16x512xf32>
    %305 = arith.addf %302, %304 : vector<16x512xf32>
    %306 = vector.extract_strided_slice %22 {offsets = [2, 0, 0], sizes = [1, 16, 512], strides = [1, 1, 1]} : vector<8x16x512xf32> to vector<1x16x512xf32>
    %307 = vector.shape_cast %306 : vector<1x16x512xf32> to vector<16x512xf32>
    %308 = arith.truncf %298 : vector<16x128xf32> to vector<16x128xbf16>
    %cst_53 = arith.constant dense<0.000000e+00> : vector<16x512xf32>
    %309 = tpu.matmul %308, %26, %cst_53 {dimension_numbers = #tpu.dot_dimension_numbers<[1], [0], [0], [1], [0, 0, 1, 1], [], []>} : vector<16x128xbf16>, vector<128x512xbf16>, vector<16x512xf32> -> vector<16x512xf32>
    %310 = arith.addf %307, %309 : vector<16x512xf32>
    %311 = vector.extract_strided_slice %305 {offsets = [0, 0], sizes = [16, 256], strides = [1, 1]} : vector<16x512xf32> to vector<16x256xf32>
    %312 = arith.negf %311 : vector<16x256xf32>
    %313 = math.exp %312 : vector<16x256xf32>
    %cst_54 = arith.constant 1.000000e+00 : f32
    %314 = vector.broadcast %cst_54 : f32 to vector<16x256xf32>
    %315 = arith.addf %314, %313 : vector<16x256xf32>
    %316 = arith.divf %314, %315 : vector<16x256xf32>
    %317 = vector.extract_strided_slice %316 {offsets = [0, 0], sizes = [16, 128], strides = [1, 1]} : vector<16x256xf32> to vector<16x128xf32>
    %318 = vector.extract_strided_slice %316 {offsets = [0, 128], sizes = [16, 128], strides = [1, 1]} : vector<16x256xf32> to vector<16x128xf32>
    %319 = vector.extract_strided_slice %305 {offsets = [0, 256], sizes = [16, 128], strides = [1, 1]} : vector<16x512xf32> to vector<16x128xf32>
    %320 = math.tanh %319 : vector<16x128xf32>
    %321 = vector.extract_strided_slice %305 {offsets = [0, 384], sizes = [16, 128], strides = [1, 1]} : vector<16x512xf32> to vector<16x128xf32>
    %322 = arith.negf %321 : vector<16x128xf32>
    %323 = math.exp %322 : vector<16x128xf32>
    %cst_55 = arith.constant 1.000000e+00 : f32
    %324 = vector.broadcast %cst_55 : f32 to vector<16x128xf32>
    %325 = arith.addf %324, %323 : vector<16x128xf32>
    %326 = arith.divf %324, %325 : vector<16x128xf32>
    %327 = arith.mulf %318, %275 : vector<16x128xf32>
    %328 = arith.mulf %317, %320 : vector<16x128xf32>
    %329 = arith.addf %327, %328 : vector<16x128xf32>
    %330 = math.tanh %329 : vector<16x128xf32>
    %331 = arith.mulf %326, %330 : vector<16x128xf32>
    %332 = vector.extract_strided_slice %310 {offsets = [0, 0], sizes = [16, 256], strides = [1, 1]} : vector<16x512xf32> to vector<16x256xf32>
    %333 = arith.negf %332 : vector<16x256xf32>
    %334 = math.exp %333 : vector<16x256xf32>
    %cst_56 = arith.constant 1.000000e+00 : f32
    %335 = vector.broadcast %cst_56 : f32 to vector<16x256xf32>
    %336 = arith.addf %335, %334 : vector<16x256xf32>
    %337 = arith.divf %335, %336 : vector<16x256xf32>
    %338 = vector.extract_strided_slice %337 {offsets = [0, 0], sizes = [16, 128], strides = [1, 1]} : vector<16x256xf32> to vector<16x128xf32>
    %339 = vector.extract_strided_slice %337 {offsets = [0, 128], sizes = [16, 128], strides = [1, 1]} : vector<16x256xf32> to vector<16x128xf32>
    %340 = vector.extract_strided_slice %310 {offsets = [0, 256], sizes = [16, 128], strides = [1, 1]} : vector<16x512xf32> to vector<16x128xf32>
    %341 = math.tanh %340 : vector<16x128xf32>
    %342 = vector.extract_strided_slice %310 {offsets = [0, 384], sizes = [16, 128], strides = [1, 1]} : vector<16x512xf32> to vector<16x128xf32>
    %343 = arith.negf %342 : vector<16x128xf32>
    %344 = math.exp %343 : vector<16x128xf32>
    %cst_57 = arith.constant 1.000000e+00 : f32
    %345 = vector.broadcast %cst_57 : f32 to vector<16x128xf32>
    %346 = arith.addf %345, %344 : vector<16x128xf32>
    %347 = arith.divf %345, %346 : vector<16x128xf32>
    %348 = arith.mulf %339, %296 : vector<16x128xf32>
    %349 = arith.mulf %338, %341 : vector<16x128xf32>
    %350 = arith.addf %348, %349 : vector<16x128xf32>
    %351 = math.tanh %350 : vector<16x128xf32>
    %352 = arith.mulf %347, %351 : vector<16x128xf32>
    %353 = arith.truncf %331 : vector<16x128xf32> to vector<16x128xbf16>
    %354 = arith.truncf %352 : vector<16x128xf32> to vector<16x128xbf16>
    %355 = vector.extract_strided_slice %11 {offsets = [6, 0, 0], sizes = [1, 16, 512], strides = [1, 1, 1]} : vector<8x16x512xf32> to vector<1x16x512xf32>
    %356 = vector.shape_cast %355 : vector<1x16x512xf32> to vector<16x512xf32>
    %357 = arith.truncf %331 : vector<16x128xf32> to vector<16x128xbf16>
    %cst_58 = arith.constant dense<0.000000e+00> : vector<16x512xf32>
    %358 = tpu.matmul %357, %24, %cst_58 {dimension_numbers = #tpu.dot_dimension_numbers<[1], [0], [0], [1], [0, 0, 1, 1], [], []>} : vector<16x128xbf16>, vector<128x512xbf16>, vector<16x512xf32> -> vector<16x512xf32>
    %359 = arith.addf %356, %358 : vector<16x512xf32>
    %360 = vector.extract_strided_slice %22 {offsets = [1, 0, 0], sizes = [1, 16, 512], strides = [1, 1, 1]} : vector<8x16x512xf32> to vector<1x16x512xf32>
    %361 = vector.shape_cast %360 : vector<1x16x512xf32> to vector<16x512xf32>
    %362 = arith.truncf %352 : vector<16x128xf32> to vector<16x128xbf16>
    %cst_59 = arith.constant dense<0.000000e+00> : vector<16x512xf32>
    %363 = tpu.matmul %362, %26, %cst_59 {dimension_numbers = #tpu.dot_dimension_numbers<[1], [0], [0], [1], [0, 0, 1, 1], [], []>} : vector<16x128xbf16>, vector<128x512xbf16>, vector<16x512xf32> -> vector<16x512xf32>
    %364 = arith.addf %361, %363 : vector<16x512xf32>
    %365 = vector.extract_strided_slice %359 {offsets = [0, 0], sizes = [16, 256], strides = [1, 1]} : vector<16x512xf32> to vector<16x256xf32>
    %366 = arith.negf %365 : vector<16x256xf32>
    %367 = math.exp %366 : vector<16x256xf32>
    %cst_60 = arith.constant 1.000000e+00 : f32
    %368 = vector.broadcast %cst_60 : f32 to vector<16x256xf32>
    %369 = arith.addf %368, %367 : vector<16x256xf32>
    %370 = arith.divf %368, %369 : vector<16x256xf32>
    %371 = vector.extract_strided_slice %370 {offsets = [0, 0], sizes = [16, 128], strides = [1, 1]} : vector<16x256xf32> to vector<16x128xf32>
    %372 = vector.extract_strided_slice %370 {offsets = [0, 128], sizes = [16, 128], strides = [1, 1]} : vector<16x256xf32> to vector<16x128xf32>
    %373 = vector.extract_strided_slice %359 {offsets = [0, 256], sizes = [16, 128], strides = [1, 1]} : vector<16x512xf32> to vector<16x128xf32>
    %374 = math.tanh %373 : vector<16x128xf32>
    %375 = vector.extract_strided_slice %359 {offsets = [0, 384], sizes = [16, 128], strides = [1, 1]} : vector<16x512xf32> to vector<16x128xf32>
    %376 = arith.negf %375 : vector<16x128xf32>
    %377 = math.exp %376 : vector<16x128xf32>
    %cst_61 = arith.constant 1.000000e+00 : f32
    %378 = vector.broadcast %cst_61 : f32 to vector<16x128xf32>
    %379 = arith.addf %378, %377 : vector<16x128xf32>
    %380 = arith.divf %378, %379 : vector<16x128xf32>
    %381 = arith.mulf %372, %329 : vector<16x128xf32>
    %382 = arith.mulf %371, %374 : vector<16x128xf32>
    %383 = arith.addf %381, %382 : vector<16x128xf32>
    %384 = math.tanh %383 : vector<16x128xf32>
    %385 = arith.mulf %380, %384 : vector<16x128xf32>
    %386 = vector.extract_strided_slice %364 {offsets = [0, 0], sizes = [16, 256], strides = [1, 1]} : vector<16x512xf32> to vector<16x256xf32>
    %387 = arith.negf %386 : vector<16x256xf32>
    %388 = math.exp %387 : vector<16x256xf32>
    %cst_62 = arith.constant 1.000000e+00 : f32
    %389 = vector.broadcast %cst_62 : f32 to vector<16x256xf32>
    %390 = arith.addf %389, %388 : vector<16x256xf32>
    %391 = arith.divf %389, %390 : vector<16x256xf32>
    %392 = vector.extract_strided_slice %391 {offsets = [0, 0], sizes = [16, 128], strides = [1, 1]} : vector<16x256xf32> to vector<16x128xf32>
    %393 = vector.extract_strided_slice %391 {offsets = [0, 128], sizes = [16, 128], strides = [1, 1]} : vector<16x256xf32> to vector<16x128xf32>
    %394 = vector.extract_strided_slice %364 {offsets = [0, 256], sizes = [16, 128], strides = [1, 1]} : vector<16x512xf32> to vector<16x128xf32>
    %395 = math.tanh %394 : vector<16x128xf32>
    %396 = vector.extract_strided_slice %364 {offsets = [0, 384], sizes = [16, 128], strides = [1, 1]} : vector<16x512xf32> to vector<16x128xf32>
    %397 = arith.negf %396 : vector<16x128xf32>
    %398 = math.exp %397 : vector<16x128xf32>
    %cst_63 = arith.constant 1.000000e+00 : f32
    %399 = vector.broadcast %cst_63 : f32 to vector<16x128xf32>
    %400 = arith.addf %399, %398 : vector<16x128xf32>
    %401 = arith.divf %399, %400 : vector<16x128xf32>
    %402 = arith.mulf %393, %350 : vector<16x128xf32>
    %403 = arith.mulf %392, %395 : vector<16x128xf32>
    %404 = arith.addf %402, %403 : vector<16x128xf32>
    %405 = math.tanh %404 : vector<16x128xf32>
    %406 = arith.mulf %401, %405 : vector<16x128xf32>
    %407 = arith.truncf %385 : vector<16x128xf32> to vector<16x128xbf16>
    %408 = arith.truncf %406 : vector<16x128xf32> to vector<16x128xbf16>
    %409 = vector.extract_strided_slice %11 {offsets = [7, 0, 0], sizes = [1, 16, 512], strides = [1, 1, 1]} : vector<8x16x512xf32> to vector<1x16x512xf32>
    %410 = vector.shape_cast %409 : vector<1x16x512xf32> to vector<16x512xf32>
    %411 = arith.truncf %385 : vector<16x128xf32> to vector<16x128xbf16>
    %cst_64 = arith.constant dense<0.000000e+00> : vector<16x512xf32>
    %412 = tpu.matmul %411, %24, %cst_64 {dimension_numbers = #tpu.dot_dimension_numbers<[1], [0], [0], [1], [0, 0, 1, 1], [], []>} : vector<16x128xbf16>, vector<128x512xbf16>, vector<16x512xf32> -> vector<16x512xf32>
    %413 = arith.addf %410, %412 : vector<16x512xf32>
    %414 = vector.extract_strided_slice %22 {offsets = [0, 0, 0], sizes = [1, 16, 512], strides = [1, 1, 1]} : vector<8x16x512xf32> to vector<1x16x512xf32>
    %415 = vector.shape_cast %414 : vector<1x16x512xf32> to vector<16x512xf32>
    %416 = arith.truncf %406 : vector<16x128xf32> to vector<16x128xbf16>
    %cst_65 = arith.constant dense<0.000000e+00> : vector<16x512xf32>
    %417 = tpu.matmul %416, %26, %cst_65 {dimension_numbers = #tpu.dot_dimension_numbers<[1], [0], [0], [1], [0, 0, 1, 1], [], []>} : vector<16x128xbf16>, vector<128x512xbf16>, vector<16x512xf32> -> vector<16x512xf32>
    %418 = arith.addf %415, %417 : vector<16x512xf32>
    %419 = vector.extract_strided_slice %413 {offsets = [0, 0], sizes = [16, 256], strides = [1, 1]} : vector<16x512xf32> to vector<16x256xf32>
    %420 = arith.negf %419 : vector<16x256xf32>
    %421 = math.exp %420 : vector<16x256xf32>
    %cst_66 = arith.constant 1.000000e+00 : f32
    %422 = vector.broadcast %cst_66 : f32 to vector<16x256xf32>
    %423 = arith.addf %422, %421 : vector<16x256xf32>
    %424 = arith.divf %422, %423 : vector<16x256xf32>
    %425 = vector.extract_strided_slice %424 {offsets = [0, 0], sizes = [16, 128], strides = [1, 1]} : vector<16x256xf32> to vector<16x128xf32>
    %426 = vector.extract_strided_slice %424 {offsets = [0, 128], sizes = [16, 128], strides = [1, 1]} : vector<16x256xf32> to vector<16x128xf32>
    %427 = vector.extract_strided_slice %413 {offsets = [0, 256], sizes = [16, 128], strides = [1, 1]} : vector<16x512xf32> to vector<16x128xf32>
    %428 = math.tanh %427 : vector<16x128xf32>
    %429 = vector.extract_strided_slice %413 {offsets = [0, 384], sizes = [16, 128], strides = [1, 1]} : vector<16x512xf32> to vector<16x128xf32>
    %430 = arith.negf %429 : vector<16x128xf32>
    %431 = math.exp %430 : vector<16x128xf32>
    %cst_67 = arith.constant 1.000000e+00 : f32
    %432 = vector.broadcast %cst_67 : f32 to vector<16x128xf32>
    %433 = arith.addf %432, %431 : vector<16x128xf32>
    %434 = arith.divf %432, %433 : vector<16x128xf32>
    %435 = arith.mulf %426, %383 : vector<16x128xf32>
    %436 = arith.mulf %425, %428 : vector<16x128xf32>
    %437 = arith.addf %435, %436 : vector<16x128xf32>
    %438 = math.tanh %437 : vector<16x128xf32>
    %439 = arith.mulf %434, %438 : vector<16x128xf32>
    %440 = vector.extract_strided_slice %418 {offsets = [0, 0], sizes = [16, 256], strides = [1, 1]} : vector<16x512xf32> to vector<16x256xf32>
    %441 = arith.negf %440 : vector<16x256xf32>
    %442 = math.exp %441 : vector<16x256xf32>
    %cst_68 = arith.constant 1.000000e+00 : f32
    %443 = vector.broadcast %cst_68 : f32 to vector<16x256xf32>
    %444 = arith.addf %443, %442 : vector<16x256xf32>
    %445 = arith.divf %443, %444 : vector<16x256xf32>
    %446 = vector.extract_strided_slice %445 {offsets = [0, 0], sizes = [16, 128], strides = [1, 1]} : vector<16x256xf32> to vector<16x128xf32>
    %447 = vector.extract_strided_slice %445 {offsets = [0, 128], sizes = [16, 128], strides = [1, 1]} : vector<16x256xf32> to vector<16x128xf32>
    %448 = vector.extract_strided_slice %418 {offsets = [0, 256], sizes = [16, 128], strides = [1, 1]} : vector<16x512xf32> to vector<16x128xf32>
    %449 = math.tanh %448 : vector<16x128xf32>
    %450 = vector.extract_strided_slice %418 {offsets = [0, 384], sizes = [16, 128], strides = [1, 1]} : vector<16x512xf32> to vector<16x128xf32>
    %451 = arith.negf %450 : vector<16x128xf32>
    %452 = math.exp %451 : vector<16x128xf32>
    %cst_69 = arith.constant 1.000000e+00 : f32
    %453 = vector.broadcast %cst_69 : f32 to vector<16x128xf32>
    %454 = arith.addf %453, %452 : vector<16x128xf32>
    %455 = arith.divf %453, %454 : vector<16x128xf32>
    %456 = arith.mulf %447, %404 : vector<16x128xf32>
    %457 = arith.mulf %446, %449 : vector<16x128xf32>
    %458 = arith.addf %456, %457 : vector<16x128xf32>
    %459 = math.tanh %458 : vector<16x128xf32>
    %460 = arith.mulf %455, %459 : vector<16x128xf32>
    %461 = arith.truncf %439 : vector<16x128xf32> to vector<16x128xbf16>
    %462 = arith.truncf %460 : vector<16x128xf32> to vector<16x128xbf16>
    %463 = tpu.concatenate %83, %137, %191, %245, %299, %353, %407, %461 in 0 : vector<16x128xbf16>, vector<16x128xbf16>, vector<16x128xbf16>, vector<16x128xbf16>, vector<16x128xbf16>, vector<16x128xbf16>, vector<16x128xbf16>, vector<16x128xbf16> -> vector<128x128xbf16>
    %464 = tpu.concatenate %462, %408, %354, %300, %246, %192, %138, %84 in 0 : vector<16x128xbf16>, vector<16x128xbf16>, vector<16x128xbf16>, vector<16x128xbf16>, vector<16x128xbf16>, vector<16x128xbf16>, vector<16x128xbf16>, vector<16x128xbf16> -> vector<128x128xbf16>
    %c0_70 = arith.constant 0 : index
    %c0_71 = arith.constant 0 : index
    %c0_72 = arith.constant 0 : index
    %465 = vector.load %arg4[%c0_70, %c0_71, %c0_72] : memref<2x256x512xbf16, #tpu.memory_space<vmem>>, vector<1x128x512xbf16>
    %466 = vector.shape_cast %465 : vector<1x128x512xbf16> to vector<128x512xbf16>
    %cst_73 = arith.constant dense<0.000000e+00> : vector<128x512xf32>
    %467 = tpu.matmul %463, %466, %cst_73 {dimension_numbers = #tpu.dot_dimension_numbers<[1], [0], [0], [1], [0, 0, 1, 1], [], []>} : vector<128x128xbf16>, vector<128x512xbf16>, vector<128x512xf32> -> vector<128x512xf32>
    %c0_74 = arith.constant 0 : index
    %c128 = arith.constant 128 : index
    %c0_75 = arith.constant 0 : index
    %468 = vector.load %arg4[%c0_74, %c128, %c0_75] : memref<2x256x512xbf16, #tpu.memory_space<vmem>>, vector<1x128x512xbf16>
    %469 = vector.shape_cast %468 : vector<1x128x512xbf16> to vector<128x512xbf16>
    %cst_76 = arith.constant dense<0.000000e+00> : vector<128x512xf32>
    %470 = tpu.matmul %464, %469, %cst_76 {dimension_numbers = #tpu.dot_dimension_numbers<[1], [0], [0], [1], [0, 0, 1, 1], [], []>} : vector<128x128xbf16>, vector<128x512xbf16>, vector<128x512xf32> -> vector<128x512xf32>
    %471 = arith.addf %467, %470 : vector<128x512xf32>
    %c0_77 = arith.constant 0 : index
    %c0_78 = arith.constant 0 : index
    %c0_79 = arith.constant 0 : index
    %472 = vector.load %arg6[%c0_77, %c0_78, %c0_79] : memref<2x1x512xf32, #tpu.memory_space<vmem>>, vector<1x1x512xf32>
    %473 = vector.shape_cast %472 : vector<1x1x512xf32> to vector<1x512xf32>
    %474 = vector.broadcast %473 : vector<1x512xf32> to vector<128x512xf32>
    %475 = arith.addf %471, %474 : vector<128x512xf32>
    %476 = vector.shape_cast %475 : vector<128x512xf32> to vector<8x16x512xf32>
    %c1_80 = arith.constant 1 : index
    %c0_81 = arith.constant 0 : index
    %c0_82 = arith.constant 0 : index
    %477 = vector.load %arg4[%c1_80, %c0_81, %c0_82] : memref<2x256x512xbf16, #tpu.memory_space<vmem>>, vector<1x128x512xbf16>
    %478 = vector.shape_cast %477 : vector<1x128x512xbf16> to vector<128x512xbf16>
    %cst_83 = arith.constant dense<0.000000e+00> : vector<16x512xf32>
    %479 = tpu.matmul %461, %478, %cst_83 {dimension_numbers = #tpu.dot_dimension_numbers<[1], [0], [0], [1], [0, 0, 1, 1], [], []>} : vector<16x128xbf16>, vector<128x512xbf16>, vector<16x512xf32> -> vector<16x512xf32>
    %c1_84 = arith.constant 1 : index
    %c128_85 = arith.constant 128 : index
    %c0_86 = arith.constant 0 : index
    %480 = vector.load %arg4[%c1_84, %c128_85, %c0_86] : memref<2x256x512xbf16, #tpu.memory_space<vmem>>, vector<1x128x512xbf16>
    %481 = vector.shape_cast %480 : vector<1x128x512xbf16> to vector<128x512xbf16>
    %cst_87 = arith.constant dense<0.000000e+00> : vector<16x512xf32>
    %482 = tpu.matmul %84, %481, %cst_87 {dimension_numbers = #tpu.dot_dimension_numbers<[1], [0], [0], [1], [0, 0, 1, 1], [], []>} : vector<16x128xbf16>, vector<128x512xbf16>, vector<16x512xf32> -> vector<16x512xf32>
    %483 = arith.addf %479, %482 : vector<16x512xf32>
    %c1_88 = arith.constant 1 : index
    %c0_89 = arith.constant 0 : index
    %c0_90 = arith.constant 0 : index
    %484 = vector.load %arg6[%c1_88, %c0_89, %c0_90] : memref<2x1x512xf32, #tpu.memory_space<vmem>>, vector<1x1x512xf32>
    %485 = vector.shape_cast %484 : vector<1x1x512xf32> to vector<1x512xf32>
    %486 = vector.broadcast %485 : vector<1x512xf32> to vector<16x512xf32>
    %487 = arith.addf %483, %486 : vector<16x512xf32>
    %cst_91 = arith.constant 0.000000e+00 : f32
    %488 = vector.broadcast %cst_91 : f32 to vector<16x128xf32>
    %489 = vector.extract_strided_slice %487 {offsets = [0, 0], sizes = [16, 256], strides = [1, 1]} : vector<16x512xf32> to vector<16x256xf32>
    %490 = arith.negf %489 : vector<16x256xf32>
    %491 = math.exp %490 : vector<16x256xf32>
    %cst_92 = arith.constant 1.000000e+00 : f32
    %492 = vector.broadcast %cst_92 : f32 to vector<16x256xf32>
    %493 = arith.addf %492, %491 : vector<16x256xf32>
    %494 = arith.divf %492, %493 : vector<16x256xf32>
    %495 = vector.extract_strided_slice %494 {offsets = [0, 0], sizes = [16, 128], strides = [1, 1]} : vector<16x256xf32> to vector<16x128xf32>
    %496 = vector.extract_strided_slice %494 {offsets = [0, 128], sizes = [16, 128], strides = [1, 1]} : vector<16x256xf32> to vector<16x128xf32>
    %497 = vector.extract_strided_slice %487 {offsets = [0, 256], sizes = [16, 128], strides = [1, 1]} : vector<16x512xf32> to vector<16x128xf32>
    %498 = math.tanh %497 : vector<16x128xf32>
    %499 = vector.extract_strided_slice %487 {offsets = [0, 384], sizes = [16, 128], strides = [1, 1]} : vector<16x512xf32> to vector<16x128xf32>
    %500 = arith.negf %499 : vector<16x128xf32>
    %501 = math.exp %500 : vector<16x128xf32>
    %cst_93 = arith.constant 1.000000e+00 : f32
    %502 = vector.broadcast %cst_93 : f32 to vector<16x128xf32>
    %503 = arith.addf %502, %501 : vector<16x128xf32>
    %504 = arith.divf %502, %503 : vector<16x128xf32>
    %505 = arith.mulf %496, %488 : vector<16x128xf32>
    %506 = arith.mulf %495, %498 : vector<16x128xf32>
    %507 = arith.addf %505, %506 : vector<16x128xf32>
    %508 = math.tanh %507 : vector<16x128xf32>
    %509 = arith.mulf %504, %508 : vector<16x128xf32>
    %c0_94 = arith.constant 0 : index
    %c0_95 = arith.constant 0 : index
    %510 = vector.load %arg5[%c0_94, %c0_95] : memref<128x512xbf16, #tpu.memory_space<vmem>>, vector<128x512xbf16>
    %cst_96 = arith.constant 0.000000e+00 : f32
    %511 = vector.broadcast %cst_96 : f32 to vector<16x128xf32>
    %cst_97 = arith.constant 0.000000e+00 : f32
    %512 = vector.broadcast %cst_97 : f32 to vector<16x128xf32>
    %513 = vector.extract_strided_slice %476 {offsets = [0, 0, 0], sizes = [1, 16, 512], strides = [1, 1, 1]} : vector<8x16x512xf32> to vector<1x16x512xf32>
    %514 = vector.shape_cast %513 : vector<1x16x512xf32> to vector<16x512xf32>
    %515 = arith.truncf %511 : vector<16x128xf32> to vector<16x128xbf16>
    %cst_98 = arith.constant dense<0.000000e+00> : vector<16x512xf32>
    %516 = tpu.matmul %515, %510, %cst_98 {dimension_numbers = #tpu.dot_dimension_numbers<[1], [0], [0], [1], [0, 0, 1, 1], [], []>} : vector<16x128xbf16>, vector<128x512xbf16>, vector<16x512xf32> -> vector<16x512xf32>
    %517 = arith.addf %514, %516 : vector<16x512xf32>
    %518 = vector.extract_strided_slice %517 {offsets = [0, 0], sizes = [16, 256], strides = [1, 1]} : vector<16x512xf32> to vector<16x256xf32>
    %519 = arith.negf %518 : vector<16x256xf32>
    %520 = math.exp %519 : vector<16x256xf32>
    %cst_99 = arith.constant 1.000000e+00 : f32
    %521 = vector.broadcast %cst_99 : f32 to vector<16x256xf32>
    %522 = arith.addf %521, %520 : vector<16x256xf32>
    %523 = arith.divf %521, %522 : vector<16x256xf32>
    %524 = vector.extract_strided_slice %523 {offsets = [0, 0], sizes = [16, 128], strides = [1, 1]} : vector<16x256xf32> to vector<16x128xf32>
    %525 = vector.extract_strided_slice %523 {offsets = [0, 128], sizes = [16, 128], strides = [1, 1]} : vector<16x256xf32> to vector<16x128xf32>
    %526 = vector.extract_strided_slice %517 {offsets = [0, 256], sizes = [16, 128], strides = [1, 1]} : vector<16x512xf32> to vector<16x128xf32>
    %527 = math.tanh %526 : vector<16x128xf32>
    %528 = vector.extract_strided_slice %517 {offsets = [0, 384], sizes = [16, 128], strides = [1, 1]} : vector<16x512xf32> to vector<16x128xf32>
    %529 = arith.negf %528 : vector<16x128xf32>
    %530 = math.exp %529 : vector<16x128xf32>
    %cst_100 = arith.constant 1.000000e+00 : f32
    %531 = vector.broadcast %cst_100 : f32 to vector<16x128xf32>
    %532 = arith.addf %531, %530 : vector<16x128xf32>
    %533 = arith.divf %531, %532 : vector<16x128xf32>
    %534 = arith.mulf %525, %512 : vector<16x128xf32>
    %535 = arith.mulf %524, %527 : vector<16x128xf32>
    %536 = arith.addf %534, %535 : vector<16x128xf32>
    %537 = math.tanh %536 : vector<16x128xf32>
    %538 = arith.mulf %533, %537 : vector<16x128xf32>
    %539 = vector.extract_strided_slice %476 {offsets = [1, 0, 0], sizes = [1, 16, 512], strides = [1, 1, 1]} : vector<8x16x512xf32> to vector<1x16x512xf32>
    %540 = vector.shape_cast %539 : vector<1x16x512xf32> to vector<16x512xf32>
    %541 = arith.truncf %538 : vector<16x128xf32> to vector<16x128xbf16>
    %cst_101 = arith.constant dense<0.000000e+00> : vector<16x512xf32>
    %542 = tpu.matmul %541, %510, %cst_101 {dimension_numbers = #tpu.dot_dimension_numbers<[1], [0], [0], [1], [0, 0, 1, 1], [], []>} : vector<16x128xbf16>, vector<128x512xbf16>, vector<16x512xf32> -> vector<16x512xf32>
    %543 = arith.addf %540, %542 : vector<16x512xf32>
    %544 = vector.extract_strided_slice %543 {offsets = [0, 0], sizes = [16, 256], strides = [1, 1]} : vector<16x512xf32> to vector<16x256xf32>
    %545 = arith.negf %544 : vector<16x256xf32>
    %546 = math.exp %545 : vector<16x256xf32>
    %cst_102 = arith.constant 1.000000e+00 : f32
    %547 = vector.broadcast %cst_102 : f32 to vector<16x256xf32>
    %548 = arith.addf %547, %546 : vector<16x256xf32>
    %549 = arith.divf %547, %548 : vector<16x256xf32>
    %550 = vector.extract_strided_slice %549 {offsets = [0, 0], sizes = [16, 128], strides = [1, 1]} : vector<16x256xf32> to vector<16x128xf32>
    %551 = vector.extract_strided_slice %549 {offsets = [0, 128], sizes = [16, 128], strides = [1, 1]} : vector<16x256xf32> to vector<16x128xf32>
    %552 = vector.extract_strided_slice %543 {offsets = [0, 256], sizes = [16, 128], strides = [1, 1]} : vector<16x512xf32> to vector<16x128xf32>
    %553 = math.tanh %552 : vector<16x128xf32>
    %554 = vector.extract_strided_slice %543 {offsets = [0, 384], sizes = [16, 128], strides = [1, 1]} : vector<16x512xf32> to vector<16x128xf32>
    %555 = arith.negf %554 : vector<16x128xf32>
    %556 = math.exp %555 : vector<16x128xf32>
    %cst_103 = arith.constant 1.000000e+00 : f32
    %557 = vector.broadcast %cst_103 : f32 to vector<16x128xf32>
    %558 = arith.addf %557, %556 : vector<16x128xf32>
    %559 = arith.divf %557, %558 : vector<16x128xf32>
    %560 = arith.mulf %551, %536 : vector<16x128xf32>
    %561 = arith.mulf %550, %553 : vector<16x128xf32>
    %562 = arith.addf %560, %561 : vector<16x128xf32>
    %563 = math.tanh %562 : vector<16x128xf32>
    %564 = arith.mulf %559, %563 : vector<16x128xf32>
    %565 = vector.extract_strided_slice %476 {offsets = [2, 0, 0], sizes = [1, 16, 512], strides = [1, 1, 1]} : vector<8x16x512xf32> to vector<1x16x512xf32>
    %566 = vector.shape_cast %565 : vector<1x16x512xf32> to vector<16x512xf32>
    %567 = arith.truncf %564 : vector<16x128xf32> to vector<16x128xbf16>
    %cst_104 = arith.constant dense<0.000000e+00> : vector<16x512xf32>
    %568 = tpu.matmul %567, %510, %cst_104 {dimension_numbers = #tpu.dot_dimension_numbers<[1], [0], [0], [1], [0, 0, 1, 1], [], []>} : vector<16x128xbf16>, vector<128x512xbf16>, vector<16x512xf32> -> vector<16x512xf32>
    %569 = arith.addf %566, %568 : vector<16x512xf32>
    %570 = vector.extract_strided_slice %569 {offsets = [0, 0], sizes = [16, 256], strides = [1, 1]} : vector<16x512xf32> to vector<16x256xf32>
    %571 = arith.negf %570 : vector<16x256xf32>
    %572 = math.exp %571 : vector<16x256xf32>
    %cst_105 = arith.constant 1.000000e+00 : f32
    %573 = vector.broadcast %cst_105 : f32 to vector<16x256xf32>
    %574 = arith.addf %573, %572 : vector<16x256xf32>
    %575 = arith.divf %573, %574 : vector<16x256xf32>
    %576 = vector.extract_strided_slice %575 {offsets = [0, 0], sizes = [16, 128], strides = [1, 1]} : vector<16x256xf32> to vector<16x128xf32>
    %577 = vector.extract_strided_slice %575 {offsets = [0, 128], sizes = [16, 128], strides = [1, 1]} : vector<16x256xf32> to vector<16x128xf32>
    %578 = vector.extract_strided_slice %569 {offsets = [0, 256], sizes = [16, 128], strides = [1, 1]} : vector<16x512xf32> to vector<16x128xf32>
    %579 = math.tanh %578 : vector<16x128xf32>
    %580 = vector.extract_strided_slice %569 {offsets = [0, 384], sizes = [16, 128], strides = [1, 1]} : vector<16x512xf32> to vector<16x128xf32>
    %581 = arith.negf %580 : vector<16x128xf32>
    %582 = math.exp %581 : vector<16x128xf32>
    %cst_106 = arith.constant 1.000000e+00 : f32
    %583 = vector.broadcast %cst_106 : f32 to vector<16x128xf32>
    %584 = arith.addf %583, %582 : vector<16x128xf32>
    %585 = arith.divf %583, %584 : vector<16x128xf32>
    %586 = arith.mulf %577, %562 : vector<16x128xf32>
    %587 = arith.mulf %576, %579 : vector<16x128xf32>
    %588 = arith.addf %586, %587 : vector<16x128xf32>
    %589 = math.tanh %588 : vector<16x128xf32>
    %590 = arith.mulf %585, %589 : vector<16x128xf32>
    %591 = vector.extract_strided_slice %476 {offsets = [3, 0, 0], sizes = [1, 16, 512], strides = [1, 1, 1]} : vector<8x16x512xf32> to vector<1x16x512xf32>
    %592 = vector.shape_cast %591 : vector<1x16x512xf32> to vector<16x512xf32>
    %593 = arith.truncf %590 : vector<16x128xf32> to vector<16x128xbf16>
    %cst_107 = arith.constant dense<0.000000e+00> : vector<16x512xf32>
    %594 = tpu.matmul %593, %510, %cst_107 {dimension_numbers = #tpu.dot_dimension_numbers<[1], [0], [0], [1], [0, 0, 1, 1], [], []>} : vector<16x128xbf16>, vector<128x512xbf16>, vector<16x512xf32> -> vector<16x512xf32>
    %595 = arith.addf %592, %594 : vector<16x512xf32>
    %596 = vector.extract_strided_slice %595 {offsets = [0, 0], sizes = [16, 256], strides = [1, 1]} : vector<16x512xf32> to vector<16x256xf32>
    %597 = arith.negf %596 : vector<16x256xf32>
    %598 = math.exp %597 : vector<16x256xf32>
    %cst_108 = arith.constant 1.000000e+00 : f32
    %599 = vector.broadcast %cst_108 : f32 to vector<16x256xf32>
    %600 = arith.addf %599, %598 : vector<16x256xf32>
    %601 = arith.divf %599, %600 : vector<16x256xf32>
    %602 = vector.extract_strided_slice %601 {offsets = [0, 0], sizes = [16, 128], strides = [1, 1]} : vector<16x256xf32> to vector<16x128xf32>
    %603 = vector.extract_strided_slice %601 {offsets = [0, 128], sizes = [16, 128], strides = [1, 1]} : vector<16x256xf32> to vector<16x128xf32>
    %604 = vector.extract_strided_slice %595 {offsets = [0, 256], sizes = [16, 128], strides = [1, 1]} : vector<16x512xf32> to vector<16x128xf32>
    %605 = math.tanh %604 : vector<16x128xf32>
    %606 = vector.extract_strided_slice %595 {offsets = [0, 384], sizes = [16, 128], strides = [1, 1]} : vector<16x512xf32> to vector<16x128xf32>
    %607 = arith.negf %606 : vector<16x128xf32>
    %608 = math.exp %607 : vector<16x128xf32>
    %cst_109 = arith.constant 1.000000e+00 : f32
    %609 = vector.broadcast %cst_109 : f32 to vector<16x128xf32>
    %610 = arith.addf %609, %608 : vector<16x128xf32>
    %611 = arith.divf %609, %610 : vector<16x128xf32>
    %612 = arith.mulf %603, %588 : vector<16x128xf32>
    %613 = arith.mulf %602, %605 : vector<16x128xf32>
    %614 = arith.addf %612, %613 : vector<16x128xf32>
    %615 = math.tanh %614 : vector<16x128xf32>
    %616 = arith.mulf %611, %615 : vector<16x128xf32>
    %617 = vector.extract_strided_slice %476 {offsets = [4, 0, 0], sizes = [1, 16, 512], strides = [1, 1, 1]} : vector<8x16x512xf32> to vector<1x16x512xf32>
    %618 = vector.shape_cast %617 : vector<1x16x512xf32> to vector<16x512xf32>
    %619 = arith.truncf %616 : vector<16x128xf32> to vector<16x128xbf16>
    %cst_110 = arith.constant dense<0.000000e+00> : vector<16x512xf32>
    %620 = tpu.matmul %619, %510, %cst_110 {dimension_numbers = #tpu.dot_dimension_numbers<[1], [0], [0], [1], [0, 0, 1, 1], [], []>} : vector<16x128xbf16>, vector<128x512xbf16>, vector<16x512xf32> -> vector<16x512xf32>
    %621 = arith.addf %618, %620 : vector<16x512xf32>
    %622 = vector.extract_strided_slice %621 {offsets = [0, 0], sizes = [16, 256], strides = [1, 1]} : vector<16x512xf32> to vector<16x256xf32>
    %623 = arith.negf %622 : vector<16x256xf32>
    %624 = math.exp %623 : vector<16x256xf32>
    %cst_111 = arith.constant 1.000000e+00 : f32
    %625 = vector.broadcast %cst_111 : f32 to vector<16x256xf32>
    %626 = arith.addf %625, %624 : vector<16x256xf32>
    %627 = arith.divf %625, %626 : vector<16x256xf32>
    %628 = vector.extract_strided_slice %627 {offsets = [0, 0], sizes = [16, 128], strides = [1, 1]} : vector<16x256xf32> to vector<16x128xf32>
    %629 = vector.extract_strided_slice %627 {offsets = [0, 128], sizes = [16, 128], strides = [1, 1]} : vector<16x256xf32> to vector<16x128xf32>
    %630 = vector.extract_strided_slice %621 {offsets = [0, 256], sizes = [16, 128], strides = [1, 1]} : vector<16x512xf32> to vector<16x128xf32>
    %631 = math.tanh %630 : vector<16x128xf32>
    %632 = vector.extract_strided_slice %621 {offsets = [0, 384], sizes = [16, 128], strides = [1, 1]} : vector<16x512xf32> to vector<16x128xf32>
    %633 = arith.negf %632 : vector<16x128xf32>
    %634 = math.exp %633 : vector<16x128xf32>
    %cst_112 = arith.constant 1.000000e+00 : f32
    %635 = vector.broadcast %cst_112 : f32 to vector<16x128xf32>
    %636 = arith.addf %635, %634 : vector<16x128xf32>
    %637 = arith.divf %635, %636 : vector<16x128xf32>
    %638 = arith.mulf %629, %614 : vector<16x128xf32>
    %639 = arith.mulf %628, %631 : vector<16x128xf32>
    %640 = arith.addf %638, %639 : vector<16x128xf32>
    %641 = math.tanh %640 : vector<16x128xf32>
    %642 = arith.mulf %637, %641 : vector<16x128xf32>
    %643 = vector.extract_strided_slice %476 {offsets = [5, 0, 0], sizes = [1, 16, 512], strides = [1, 1, 1]} : vector<8x16x512xf32> to vector<1x16x512xf32>
    %644 = vector.shape_cast %643 : vector<1x16x512xf32> to vector<16x512xf32>
    %645 = arith.truncf %642 : vector<16x128xf32> to vector<16x128xbf16>
    %cst_113 = arith.constant dense<0.000000e+00> : vector<16x512xf32>
    %646 = tpu.matmul %645, %510, %cst_113 {dimension_numbers = #tpu.dot_dimension_numbers<[1], [0], [0], [1], [0, 0, 1, 1], [], []>} : vector<16x128xbf16>, vector<128x512xbf16>, vector<16x512xf32> -> vector<16x512xf32>
    %647 = arith.addf %644, %646 : vector<16x512xf32>
    %648 = vector.extract_strided_slice %647 {offsets = [0, 0], sizes = [16, 256], strides = [1, 1]} : vector<16x512xf32> to vector<16x256xf32>
    %649 = arith.negf %648 : vector<16x256xf32>
    %650 = math.exp %649 : vector<16x256xf32>
    %cst_114 = arith.constant 1.000000e+00 : f32
    %651 = vector.broadcast %cst_114 : f32 to vector<16x256xf32>
    %652 = arith.addf %651, %650 : vector<16x256xf32>
    %653 = arith.divf %651, %652 : vector<16x256xf32>
    %654 = vector.extract_strided_slice %653 {offsets = [0, 0], sizes = [16, 128], strides = [1, 1]} : vector<16x256xf32> to vector<16x128xf32>
    %655 = vector.extract_strided_slice %653 {offsets = [0, 128], sizes = [16, 128], strides = [1, 1]} : vector<16x256xf32> to vector<16x128xf32>
    %656 = vector.extract_strided_slice %647 {offsets = [0, 256], sizes = [16, 128], strides = [1, 1]} : vector<16x512xf32> to vector<16x128xf32>
    %657 = math.tanh %656 : vector<16x128xf32>
    %658 = vector.extract_strided_slice %647 {offsets = [0, 384], sizes = [16, 128], strides = [1, 1]} : vector<16x512xf32> to vector<16x128xf32>
    %659 = arith.negf %658 : vector<16x128xf32>
    %660 = math.exp %659 : vector<16x128xf32>
    %cst_115 = arith.constant 1.000000e+00 : f32
    %661 = vector.broadcast %cst_115 : f32 to vector<16x128xf32>
    %662 = arith.addf %661, %660 : vector<16x128xf32>
    %663 = arith.divf %661, %662 : vector<16x128xf32>
    %664 = arith.mulf %655, %640 : vector<16x128xf32>
    %665 = arith.mulf %654, %657 : vector<16x128xf32>
    %666 = arith.addf %664, %665 : vector<16x128xf32>
    %667 = math.tanh %666 : vector<16x128xf32>
    %668 = arith.mulf %663, %667 : vector<16x128xf32>
    %669 = vector.extract_strided_slice %476 {offsets = [6, 0, 0], sizes = [1, 16, 512], strides = [1, 1, 1]} : vector<8x16x512xf32> to vector<1x16x512xf32>
    %670 = vector.shape_cast %669 : vector<1x16x512xf32> to vector<16x512xf32>
    %671 = arith.truncf %668 : vector<16x128xf32> to vector<16x128xbf16>
    %cst_116 = arith.constant dense<0.000000e+00> : vector<16x512xf32>
    %672 = tpu.matmul %671, %510, %cst_116 {dimension_numbers = #tpu.dot_dimension_numbers<[1], [0], [0], [1], [0, 0, 1, 1], [], []>} : vector<16x128xbf16>, vector<128x512xbf16>, vector<16x512xf32> -> vector<16x512xf32>
    %673 = arith.addf %670, %672 : vector<16x512xf32>
    %674 = vector.extract_strided_slice %673 {offsets = [0, 0], sizes = [16, 256], strides = [1, 1]} : vector<16x512xf32> to vector<16x256xf32>
    %675 = arith.negf %674 : vector<16x256xf32>
    %676 = math.exp %675 : vector<16x256xf32>
    %cst_117 = arith.constant 1.000000e+00 : f32
    %677 = vector.broadcast %cst_117 : f32 to vector<16x256xf32>
    %678 = arith.addf %677, %676 : vector<16x256xf32>
    %679 = arith.divf %677, %678 : vector<16x256xf32>
    %680 = vector.extract_strided_slice %679 {offsets = [0, 0], sizes = [16, 128], strides = [1, 1]} : vector<16x256xf32> to vector<16x128xf32>
    %681 = vector.extract_strided_slice %679 {offsets = [0, 128], sizes = [16, 128], strides = [1, 1]} : vector<16x256xf32> to vector<16x128xf32>
    %682 = vector.extract_strided_slice %673 {offsets = [0, 256], sizes = [16, 128], strides = [1, 1]} : vector<16x512xf32> to vector<16x128xf32>
    %683 = math.tanh %682 : vector<16x128xf32>
    %684 = vector.extract_strided_slice %673 {offsets = [0, 384], sizes = [16, 128], strides = [1, 1]} : vector<16x512xf32> to vector<16x128xf32>
    %685 = arith.negf %684 : vector<16x128xf32>
    %686 = math.exp %685 : vector<16x128xf32>
    %cst_118 = arith.constant 1.000000e+00 : f32
    %687 = vector.broadcast %cst_118 : f32 to vector<16x128xf32>
    %688 = arith.addf %687, %686 : vector<16x128xf32>
    %689 = arith.divf %687, %688 : vector<16x128xf32>
    %690 = arith.mulf %681, %666 : vector<16x128xf32>
    %691 = arith.mulf %680, %683 : vector<16x128xf32>
    %692 = arith.addf %690, %691 : vector<16x128xf32>
    %693 = math.tanh %692 : vector<16x128xf32>
    %694 = arith.mulf %689, %693 : vector<16x128xf32>
    %695 = vector.extract_strided_slice %476 {offsets = [7, 0, 0], sizes = [1, 16, 512], strides = [1, 1, 1]} : vector<8x16x512xf32> to vector<1x16x512xf32>
    %696 = vector.shape_cast %695 : vector<1x16x512xf32> to vector<16x512xf32>
    %697 = arith.truncf %694 : vector<16x128xf32> to vector<16x128xbf16>
    %cst_119 = arith.constant dense<0.000000e+00> : vector<16x512xf32>
    %698 = tpu.matmul %697, %510, %cst_119 {dimension_numbers = #tpu.dot_dimension_numbers<[1], [0], [0], [1], [0, 0, 1, 1], [], []>} : vector<16x128xbf16>, vector<128x512xbf16>, vector<16x512xf32> -> vector<16x512xf32>
    %699 = arith.addf %696, %698 : vector<16x512xf32>
    %700 = vector.extract_strided_slice %699 {offsets = [0, 0], sizes = [16, 256], strides = [1, 1]} : vector<16x512xf32> to vector<16x256xf32>
    %701 = arith.negf %700 : vector<16x256xf32>
    %702 = math.exp %701 : vector<16x256xf32>
    %cst_120 = arith.constant 1.000000e+00 : f32
    %703 = vector.broadcast %cst_120 : f32 to vector<16x256xf32>
    %704 = arith.addf %703, %702 : vector<16x256xf32>
    %705 = arith.divf %703, %704 : vector<16x256xf32>
    %706 = vector.extract_strided_slice %705 {offsets = [0, 0], sizes = [16, 128], strides = [1, 1]} : vector<16x256xf32> to vector<16x128xf32>
    %707 = vector.extract_strided_slice %705 {offsets = [0, 128], sizes = [16, 128], strides = [1, 1]} : vector<16x256xf32> to vector<16x128xf32>
    %708 = vector.extract_strided_slice %699 {offsets = [0, 256], sizes = [16, 128], strides = [1, 1]} : vector<16x512xf32> to vector<16x128xf32>
    %709 = math.tanh %708 : vector<16x128xf32>
    %710 = vector.extract_strided_slice %699 {offsets = [0, 384], sizes = [16, 128], strides = [1, 1]} : vector<16x512xf32> to vector<16x128xf32>
    %711 = arith.negf %710 : vector<16x128xf32>
    %712 = math.exp %711 : vector<16x128xf32>
    %cst_121 = arith.constant 1.000000e+00 : f32
    %713 = vector.broadcast %cst_121 : f32 to vector<16x128xf32>
    %714 = arith.addf %713, %712 : vector<16x128xf32>
    %715 = arith.divf %713, %714 : vector<16x128xf32>
    %716 = arith.mulf %707, %692 : vector<16x128xf32>
    %717 = arith.mulf %706, %709 : vector<16x128xf32>
    %718 = arith.addf %716, %717 : vector<16x128xf32>
    %719 = math.tanh %718 : vector<16x128xf32>
    %720 = arith.mulf %715, %719 : vector<16x128xf32>
    %c0_122 = arith.constant 0 : index
    %c0_123 = arith.constant 0 : index
    %721 = vector.load %arg7[%c0_122, %c0_123] : memref<256x128xf32, #tpu.memory_space<vmem>>, vector<128x128xf32>
    %cst_124 = arith.constant dense<0.000000e+00> : vector<16x128xf32>
    %722 = tpu.matmul %720, %721, %cst_124 {dimension_numbers = #tpu.dot_dimension_numbers<[1], [0], [0], [1], [0, 0, 1, 1], [], []>} : vector<16x128xf32>, vector<128x128xf32>, vector<16x128xf32> -> vector<16x128xf32>
    %c128_125 = arith.constant 128 : index
    %c0_126 = arith.constant 0 : index
    %723 = vector.load %arg7[%c128_125, %c0_126] : memref<256x128xf32, #tpu.memory_space<vmem>>, vector<128x128xf32>
    %cst_127 = arith.constant dense<0.000000e+00> : vector<16x128xf32>
    %724 = tpu.matmul %509, %723, %cst_127 {dimension_numbers = #tpu.dot_dimension_numbers<[1], [0], [0], [1], [0, 0, 1, 1], [], []>} : vector<16x128xf32>, vector<128x128xf32>, vector<16x128xf32> -> vector<16x128xf32>
    %725 = arith.addf %722, %724 : vector<16x128xf32>
    %c0_128 = arith.constant 0 : index
    %c0_129 = arith.constant 0 : index
    %726 = vector.load %arg8[%c0_128, %c0_129] : memref<1x128xf32, #tpu.memory_space<vmem>>, vector<1x128xf32>
    %727 = vector.broadcast %726 : vector<1x128xf32> to vector<16x128xf32>
    %728 = arith.addf %725, %727 : vector<16x128xf32>
    %cst_130 = arith.constant 0.000000e+00 : f32
    %729 = vector.broadcast %cst_130 : f32 to vector<16x128xf32>
    %730 = arith.maximumf %728, %729 : vector<16x128xf32>
    %c0_131 = arith.constant 0 : index
    %c0_132 = arith.constant 0 : index
    %731 = vector.load %arg9[%c0_131, %c0_132] : memref<128x3xf32, #tpu.memory_space<vmem>>, vector<128x3xf32>
    %cst_133 = arith.constant dense<0.000000e+00> : vector<16x3xf32>
    %732 = tpu.matmul %730, %731, %cst_133 {dimension_numbers = #tpu.dot_dimension_numbers<[1], [0], [0], [1], [0, 0, 1, 1], [], []>} : vector<16x128xf32>, vector<128x3xf32>, vector<16x3xf32> -> vector<16x3xf32>
    %c0_134 = arith.constant 0 : index
    %c0_135 = arith.constant 0 : index
    %733 = vector.load %arg10[%c0_134, %c0_135] : memref<1x3xf32, #tpu.memory_space<vmem>>, vector<1x3xf32>
    %734 = vector.broadcast %733 : vector<1x3xf32> to vector<16x3xf32>
    %735 = arith.addf %732, %734 : vector<16x3xf32>
    %c0_136 = arith.constant 0 : index
    %c0_137 = arith.constant 0 : index
    %736 = vector.load %arg11[%c0_136, %c0_137] : memref<16x3xf32, #tpu.memory_space<vmem>>, vector<16x3xf32>
    tpu.vector_store %arg11[%c0_136, %c0_137], %735 {strides = array<i32>} : memref<16x3xf32, #tpu.memory_space<vmem>>, vector<16x3xf32>,
    return
  }
}

</mosaic_0001>

<bundles_post_ra>
// kernel: lstm_model_forward.1
= control target key start
LH: loop header
LB: loop body
LE: loop exit
PB: predicated region body
PF: predicated region fallthrough
CT: control target
= control target key end

     0   :  { %16 = vsyncpa [#allocation3], 0  ;;  %s8584_s17 = smov [#allocation2]   ;;  %s12134_s0 = inlined_call_operand.vmem [shape: f32[8,16,1], index: 0, kind: input, shape index: {}]   ;;  %s12135_s1 = inlined_call_operand.vmem [shape: f32[2,1,512], index: 1, kind: input, shape index: {}]   ;;  %s12136_s2 = inlined_call_operand.vmem [shape: bf16[2,128,512], index: 2, kind: input, shape index: {}]   ;;  %s12137_s3 = inlined_call_operand.vmem [shape: f32[2,1,512], index: 3, kind: input, shape index: {}]   ;;  %s12138_s4 = inlined_call_operand.hbm [shape: bf16[2,256,512], index: 4, kind: input, shape index: {}]   ;;  %s12139_s5 = inlined_call_operand.vmem [shape: bf16[128,512], index: 5, kind: input, shape index: {}]   ;;  %s12140_s6 = inlined_call_operand.vmem [shape: f32[2,1,512], index: 6, kind: input, shape index: {}]   ;;  %s12141_s7 = inlined_call_operand.vmem [shape: f32[256,128], index: 7, kind: input, shape index: {}]   ;;  %s12142_s8 = inlined_call_operand.vmem [shape: f32[1,128], index: 8, kind: input, shape index: {}]   ;;  %s12143_s9 = inlined_call_operand.vmem [shape: f32[128,3], index: 9, kind: input, shape index: {}]   ;;  %s12144_s10 = inlined_call_operand.vmem [shape: f32[1,3], index: 10, kind: input, shape index: {}]   ;;  %s12145_s11 = inlined_call_operand.vmem [shape: f32[16,3], index: 11, kind: output, shape index: {}]  }
   0x1   :  { %s30_s18 = sshll.u32 %s8584_s17, 4  ;;  %s8560_s21 = scalar_lea.hbm %s12138_s4, 16384  ;;  %s31_s18 = int_to_ptr.vmem [resolvable:$true] %s30_s18 }
   0x2   :  { %p8561_p0 = scmp.ne.s32.totalorder %s12138_s4, %s8560_s21  ;;  %p8564_p1 = scmp.lt.u32.totalorder %s8560_s21, %s12138_s4 }
   0x4   :  { %p8566_p2 = pnand %p8564_p1, %p8561_p0 }
   0x6   :  { %8569 = shalt.err (!%p8566_p2)
}
   0x7   :  { %s8570_s26 = scalar_lea.vmem %s31_s18, 16384  ;;  %p8575_p4 = scmp.lt.s32.totalorder %s31_s18, %s31_s18 }
   0x8   :  { %p8571_p3 = scmp.ne.s32.totalorder %s31_s18, %s8570_s26  ;;  %p8576_p5 = scmp.lt.s32.totalorder %s8570_s26, %s8570_s26 }
   0xa   :  { %p8577_p6 = por %p8576_p5, %p8575_p4 }
   0xc   :  { %p8578_p7 = pnand %p8577_p6, %p8571_p3 }
   0xe   :  { %8581 = shalt.err (!%p8578_p7)
}
   0xf   :  { %s8585_s27 = smov 256   ;;  %s8586_s28 = smov 16  }
  0x10   :  { %36 = dma.hbm_to_vmem [thread:$0]  %s12138_s4, 16384, %s31_s18, [#allocation3], %s8585_s27, %s8585_s27, %s8586_s28  }
  0x11   :  { %8582 = dma.done.wait [#allocation3], 16384  }
  0x12   :  { %8583 = vsyncadd [#allocation3], 4294950912  ;;  %v12146_v0 = vmov 0   ;;  %v8667_v1 = vld [vmem:[%s12136_s2 + $0x4] ss:$16 sps:$4 sm:$0xff]   ;;  %v54_v50 = vld [vmem:[%s12134_s0 + $0x8] sm:$0xff] }
  0x13   :  { %752 = vmatprep.mubr.bf16.mxu0 %v12146_v0  ;;  %795 = vmatprep.mubr.bf16.mxu1 %v12146_v0  ;;  %v8672_v2 = vld [vmem:[%s12136_s2 + $0xc] ss:$16 sps:$4 sm:$0xff]   ;;  %v8678_v3 = vld [vmem:[%s12136_s2] ss:$16 sps:$4 sm:$0xff]   ;;  %v8683_v4 = vld [vmem:[%s12136_s2 + $0x8] ss:$16 sps:$4 sm:$0xff]  }
  0x14   :  { %7232 = vset.pattern.permute.xlu0 %v12146_v0  ;;  %7233 = vset.pattern.permute.xlu1 %v12146_v0  ;;  %v8689_v5 = vld [vmem:[%s12136_s2 + $0x24] ss:$16 sps:$4 sm:$0xff]   ;;  %v8696_v6 = vld [vmem:[%s12136_s2 + $0x2c] ss:$16 sps:$4 sm:$0xff]   ;;  %v8701_v7 = vld [vmem:[%s12136_s2 + $0x20] ss:$16 sps:$4 sm:$0xff]  }
  0x15   :  { %720 = vmatprep.subr.bf16.mxu0 %v8667_v1  ;;  %763 = vmatprep.subr.bf16.mxu1 %v8672_v2  ;;  %v8707_v8 = vld [vmem:[%s12136_s2 + $0x28] ss:$16 sps:$4 sm:$0xff]   ;;  %v8713_v9 = vld [vmem:[%s12136_s2 + $0x44] ss:$16 sps:$4 sm:$0xff]   ;;  %v8718_v10 = vld [vmem:[%s12136_s2 + $0x4c] ss:$16 sps:$4 sm:$0xff]  }
  0x16   :  { %721 = vmatpush1.bf16.msra.mxu0 %v8678_v3  ;;  %764 = vmatpush1.bf16.msra.mxu1 %v8683_v4  ;;  %v8723_v11 = vld [vmem:[%s12136_s2 + $0x40] ss:$16 sps:$4 sm:$0xff]   ;;  %v8728_v12 = vld [vmem:[%s12136_s2 + $0x48] ss:$16 sps:$4 sm:$0xff]   ;;  %v8735_v13 = vld [vmem:[%s12136_s2 + $0x64] ss:$16 sps:$4 sm:$0xff]  }
  0x17   :  { %722 = vmatprep.subr.bf16.mxu0 %v8689_v5  ;;  %765 = vmatprep.subr.bf16.mxu1 %v8696_v6  ;;  %v8742_v14 = vld [vmem:[%s12136_s2 + $0x6c] ss:$16 sps:$4 sm:$0xff]   ;;  %v8747_v15 = vld [vmem:[%s12136_s2 + $0x60] ss:$16 sps:$4 sm:$0xff]   ;;  %v8754_v16 = vld [vmem:[%s12136_s2 + $0x68] ss:$16 sps:$4 sm:$0xff]  }
  0x18   :  { %v8759_v17 = vld [vmem:[%s12136_s2 + $0x84] ss:$16 sps:$4 sm:$0xff]   ;;  %v8766_v18 = vld [vmem:[%s12136_s2 + $0x8c] ss:$16 sps:$4 sm:$0xff]   ;;  %v8771_v19 = vld [vmem:[%s12136_s2 + $0x80] ss:$16 sps:$4 sm:$0xff]  }
  0x19   :  { %v8776_v20 = vld [vmem:[%s12136_s2 + $0x88] ss:$16 sps:$4 sm:$0xff]   ;;  %v8783_v21 = vld [vmem:[%s12136_s2 + $0xa4] ss:$16 sps:$4 sm:$0xff]   ;;  %v8790_v22 = vld [vmem:[%s12136_s2 + $0xac] ss:$16 sps:$4 sm:$0xff]  }
  0x1a   :  { %723 = vmatpush1.bf16.msra.mxu0 %v8701_v7  ;;  %766 = vmatpush1.bf16.msra.mxu1 %v8707_v8  ;;  %v8795_v23 = vld [vmem:[%s12136_s2 + $0xa0] ss:$16 sps:$4 sm:$0xff]   ;;  %v8802_v24 = vld [vmem:[%s12136_s2 + $0xa8] ss:$16 sps:$4 sm:$0xff]   ;;  %v8807_v25 = vld [vmem:[%s12136_s2 + $0xc4] ss:$16 sps:$4 sm:$0xff]  }
  0x1b   :  { %724 = vmatprep.subr.bf16.mxu0 %v8713_v9  ;;  %767 = vmatprep.subr.bf16.mxu1 %v8718_v10  ;;  %v8814_v26 = vld [vmem:[%s12136_s2 + $0xcc] ss:$16 sps:$4 sm:$0xff]   ;;  %v8819_v27 = vld [vmem:[%s12136_s2 + $0xc0] ss:$16 sps:$4 sm:$0xff]   ;;  %v8824_v28 = vld [vmem:[%s12136_s2 + $0xc8] ss:$16 sps:$4 sm:$0xff]  }
  0x1c   :  { %v8831_v29 = vld [vmem:[%s12136_s2 + $0xe4] ss:$16 sps:$4 sm:$0xff]   ;;  %v8838_v30 = vld [vmem:[%s12136_s2 + $0xec] ss:$16 sps:$4 sm:$0xff]   ;;  %v8843_v31 = vld [vmem:[%s12136_s2 + $0xe0] ss:$16 sps:$4 sm:$0xff]  }
  0x1d   :  { %v8850_v32 = vld [vmem:[%s12136_s2 + $0xe8] ss:$16 sps:$4 sm:$0xff]   ;;  %v8855_v33 = vld [vmem:[%s12136_s2 + $0x104] ss:$16 sps:$4 sm:$0xff]   ;;  %v8862_v34 = vld [vmem:[%s12136_s2 + $0x10c] ss:$16 sps:$4 sm:$0xff]  }
  0x1e   :  { %725 = vmatpush1.bf16.msra.mxu0 %v8723_v11  ;;  %768 = vmatpush1.bf16.msra.mxu1 %v8728_v12  ;;  %v7286_v35 = vld [vmem:[%s12136_s2 + $0x100] ss:$16 sps:$4 sm:$0xff]   ;;  %v7287_v36 = vld [vmem:[%s12136_s2 + $0x108] ss:$16 sps:$4 sm:$0xff]   ;;  %v7288_v37 = vld [vmem:[%s12136_s2 + $0x124] ss:$16 sps:$4 sm:$0xff]  }
  0x1f   :  { %726 = vmatprep.subr.bf16.mxu0 %v8735_v13  ;;  %769 = vmatprep.subr.bf16.mxu1 %v8742_v14  ;;  %v7290_v38 = vld [vmem:[%s12136_s2 + $0x12c] ss:$16 sps:$4 sm:$0xff]   ;;  %v7292_v39 = vld [vmem:[%s12136_s2 + $0x120] ss:$16 sps:$4 sm:$0xff]   ;;  %v7293_v40 = vld [vmem:[%s12136_s2 + $0x128] ss:$16 sps:$4 sm:$0xff]  }
  0x20   :  { %v7294_v41 = vld [vmem:[%s12136_s2 + $0x144] ss:$16 sps:$4 sm:$0xff]   ;;  %v7296_v42 = vld [vmem:[%s12136_s2 + $0x14c] ss:$16 sps:$4 sm:$0xff]   ;;  %v7298_v43 = vld [vmem:[%s12136_s2 + $0x140] ss:$16 sps:$4 sm:$0xff]  }
  0x21   :  { %v7299_v44 = vld [vmem:[%s12136_s2 + $0x148] ss:$16 sps:$4 sm:$0xff]   ;;  %v7300_v45 = vld [vmem:[%s12136_s2 + $0x164] ss:$16 sps:$4 sm:$0xff]   ;;  %v7302_v46 = vld [vmem:[%s12136_s2 + $0x16c] ss:$16 sps:$4 sm:$0xff]  }
  0x22   :  { %727 = vmatpush1.bf16.msra.mxu0 %v8747_v15  ;;  %770 = vmatpush1.bf16.msra.mxu1 %v8754_v16  ;;  %v53_v47 = vld [vmem:[%s12134_s0] sm:$0xff]  ;;  %v7305_v49 = vld [vmem:[%s12136_s2 + $0x168] ss:$16 sps:$4 sm:$0xff]   ;;  %v7308_v52 = vld [vmem:[%s12136_s2 + $0x18c] ss:$16 sps:$4 sm:$0xff]   ;;  %vm6352_vm0 = vcmask 23552  }
  0x23   :  { %728 = vmatprep.subr.bf16.mxu0 %v8759_v17  ;;  %771 = vmatprep.subr.bf16.mxu1 %v8766_v18  ;;  %v7304_v48 = vld [vmem:[%s12136_s2 + $0x160] ss:$16 sps:$4 sm:$0xff]   ;;  %v7306_v51 = vld [vmem:[%s12136_s2 + $0x184] ss:$16 sps:$4 sm:$0xff]   ;;  %v7311_v55 = vld [vmem:[%s12136_s2 + $0x188] ss:$16 sps:$4 sm:$0xff]  }
  0x24   :  { %72 = vperm.xlu0 %7232, %v53_v47   ;;  %v67_v53 = vld [vmem:[%s12134_s0 + $0x70] sm:$0xff]  ;;  %v7314_v57 = vld [vmem:[%s12136_s2 + $0x1ac] ss:$16 sps:$4 sm:$0xff]   ;;  %v7317_v62 = vld [vmem:[%s12136_s2 + $0x1a8] ss:$16 sps:$4 sm:$0xff]  }
  0x25   :  { %v7310_v54 = vld [vmem:[%s12136_s2 + $0x180] ss:$16 sps:$4 sm:$0xff]   ;;  %142 = vperm.xlu1 %7233, %v67_v53   ;;  %v7312_v56 = vld [vmem:[%s12136_s2 + $0x1a4] ss:$16 sps:$4 sm:$0xff]   ;;  %v68_v59 = vld [vmem:[%s12134_s0 + $0x78] sm:$0xff] }
  0x26   :  { %729 = vmatpush1.bf16.msra.mxu0 %v8771_v19  ;;  %772 = vmatpush1.bf16.msra.mxu1 %v8776_v20  ;;  %v55_v58 = vld [vmem:[%s12134_s0 + $0x10] sm:$0xff]  ;;  %v56_v60 = vld [vmem:[%s12134_s0 + $0x18] sm:$0xff]  ;;  %v65_v63 = vld [vmem:[%s12134_s0 + $0x60] sm:$0xff] }
  0x27   :  { %730 = vmatprep.subr.bf16.mxu0 %v8783_v21  ;;  %773 = vmatprep.subr.bf16.mxu1 %v8790_v22  ;;  %v7316_v61 = vld [vmem:[%s12136_s2 + $0x1a0] ss:$16 sps:$4 sm:$0xff]   ;;  %v64_v47 = vld [vmem:[%s12134_s0 + $0x58] sm:$0xff] }
  0x28   :  { %77 = vperm.xlu0 %7232, %v54_v50   ;;  %v61_v50 = vld [vmem:[%s12134_s0 + $0x40] sm:$0xff] }
  0x29   :  { %147 = vperm.xlu1 %7233, %v68_v59  }
  0x2a   :  { %731 = vmatpush1.bf16.msra.mxu0 %v8795_v23  ;;  %774 = vmatpush1.bf16.msra.mxu1 %v8802_v24 }
  0x2b   :  { %732 = vmatprep.subr.bf16.mxu0 %v8807_v25  ;;  %775 = vmatprep.subr.bf16.mxu1 %v8814_v26 }
  0x2c   :  { %82 = vperm.xlu0 %7232, %v55_v58  }
  0x2d   :  { %87 = vperm.xlu1 %7233, %v56_v60  }
  0x2e   :  { %733 = vmatpush1.bf16.msra.mxu0 %v8819_v27  ;;  %776 = vmatpush1.bf16.msra.mxu1 %v8824_v28 }
  0x2f   :  { %734 = vmatprep.subr.bf16.mxu0 %v8831_v29  ;;  %777 = vmatprep.subr.bf16.mxu1 %v8838_v30 }
  0x30   :  { %132 = vperm.xlu0 %7232, %v65_v63  }
  0x32   :  { %735 = vmatpush1.bf16.msra.mxu0 %v8843_v31  ;;  %778 = vmatpush1.bf16.msra.mxu1 %v8850_v32 }
  0x33   :  { %974 = vmatprep.subr.bf16.mxu0 %v8855_v33  ;;  %1017 = vmatprep.subr.bf16.mxu1 %v8862_v34 }
  0x35   :  { %753 = vmatmul.mubr.bf16.vlgmr.msra.gmra.mrb[0].mxu0 %v12146_v0  ;;  %796 = vmatmul.mubr.bf16.vlgmr.msra.gmra.mrb[0].mxu1 %v12146_v0 }
  0x36   :  { %975 = vmatpush1.bf16.msra.mxu0 %v7286_v35  ;;  %1018 = vmatpush1.bf16.msra.mxu1 %v7287_v36  ;;  %v7318_v35 = vld [vmem:[%s12136_s2 + $0x1c4] ss:$16 sps:$4 sm:$0xff]   ;;  %v7320_v36 = vld [vmem:[%s12136_s2 + $0x1cc] ss:$16 sps:$4 sm:$0xff]  }
  0x37   :  { %976 = vmatprep.subr.bf16.mxu0 %v7288_v37  ;;  %1019 = vmatprep.subr.bf16.mxu1 %v7290_v38  ;;  %v66_v37 = vld [vmem:[%s12134_s0 + $0x68] sm:$0xff]  ;;  %v7322_v38 = vld [vmem:[%s12136_s2 + $0x1c0] ss:$16 sps:$4 sm:$0xff]  }
  0x38   :  { %1006 = vmatprep.mubr.bf16.mxu0 %v12146_v0  ;;  %1049 = vmatprep.mubr.bf16.mxu1 %v12146_v0 }
  0x39   :  { %137 = vperm.xlu1 %7233, %v66_v37  }
  0x3a   :  { %977 = vmatpush1.bf16.msra.mxu0 %v7292_v39  ;;  %1020 = vmatpush1.bf16.msra.mxu1 %v7293_v40  ;;  %v7323_v39 = vld [vmem:[%s12136_s2 + $0x1c8] ss:$16 sps:$4 sm:$0xff]   ;;  %v57_v40 = vld [vmem:[%s12134_s0 + $0x20] sm:$0xff] }
  0x3b   :  { %978 = vmatprep.subr.bf16.mxu0 %v7294_v41  ;;  %1021 = vmatprep.subr.bf16.mxu1 %v7296_v42  ;;  %v7324_v41 = vld [vmem:[%s12136_s2 + $0x1e4] ss:$16 sps:$4 sm:$0xff]   ;;  %v7326_v42 = vld [vmem:[%s12136_s2 + $0x1ec] ss:$16 sps:$4 sm:$0xff]  }
  0x3c   :  { %92 = vperm.xlu0 %7232, %v57_v40  }
  0x3e   :  { %979 = vmatpush1.bf16.msra.mxu0 %v7298_v43  ;;  %1022 = vmatpush1.bf16.msra.mxu1 %v7299_v44  ;;  %v58_v43 = vld [vmem:[%s12134_s0 + $0x28] sm:$0xff]  ;;  %v7328_v44 = vld [vmem:[%s12136_s2 + $0x1e0] ss:$16 sps:$4 sm:$0xff]  }
  0x3f   :  { %980 = vmatprep.subr.bf16.mxu0 %v7300_v45  ;;  %1023 = vmatprep.subr.bf16.mxu1 %v7302_v46  ;;  %v7329_v45 = vld [vmem:[%s12136_s2 + $0x1e8] ss:$16 sps:$4 sm:$0xff]   ;;  %v63_v46 = vld [vmem:[%s12134_s0 + $0x50] sm:$0xff] }
  0x40   :  { %97 = vperm.xlu1 %7233, %v58_v43   ;;  %122 = vperm.xlu0 %7232, %v63_v46  }
  0x42   :  { %981 = vmatpush1.bf16.msra.mxu0 %v7304_v48  ;;  %1024 = vmatpush1.bf16.msra.mxu1 %v7305_v49  ;;  %v59_v48 = vld [vmem:[%s12134_s0 + $0x30] sm:$0xff]  ;;  %v60_v49 = vld [vmem:[%s12134_s0 + $0x38] sm:$0xff] }
  0x43   :  { %982 = vmatprep.subr.bf16.mxu0 %v7306_v51  ;;  %1025 = vmatprep.subr.bf16.mxu1 %v7308_v52 }
  0x44   :  { %127 = vperm.xlu1 %7233, %v64_v47   ;;  %102 = vperm.xlu0 %7232, %v59_v48  }
  0x46   :  { %983 = vmatpush1.bf16.msra.mxu0 %v7310_v54  ;;  %1026 = vmatpush1.bf16.msra.mxu1 %v7311_v55 }
  0x47   :  { %984 = vmatprep.subr.bf16.mxu0 %v7312_v56  ;;  %1027 = vmatprep.subr.bf16.mxu1 %v7314_v57 }
  0x48   :  { %107 = vperm.xlu1 %7233, %v60_v49   ;;  %112 = vperm.xlu0 %7232, %v61_v50  }
  0x4a   :  { %985 = vmatpush1.bf16.msra.mxu0 %v7316_v61  ;;  %1028 = vmatpush1.bf16.msra.mxu1 %v7317_v62 }
  0x4b   :  { %986 = vmatprep.subr.bf16.mxu0 %v7318_v35  ;;  %1029 = vmatprep.subr.bf16.mxu1 %v7320_v36 }
  0x4e   :  { %987 = vmatpush1.bf16.msra.mxu0 %v7322_v38  ;;  %1030 = vmatpush1.bf16.msra.mxu1 %v7323_v39 }
  0x4f   :  { %988 = vmatprep.subr.bf16.mxu0 %v7324_v41  ;;  %1031 = vmatprep.subr.bf16.mxu1 %v7326_v42 }
  0x52   :  { %989 = vmatpush1.bf16.msra.mxu0 %v7328_v44  ;;  %1032 = vmatpush1.bf16.msra.mxu1 %v7329_v45 }
  0x53   :  { %1166 = vmatprep.subr.bf16.mxu0 %v8667_v1  ;;  %1209 = vmatprep.subr.bf16.mxu1 %v8672_v2  ;;  %v62_v1 = vld [vmem:[%s12134_s0 + $0x48] sm:$0xff]  ;;  %v151_v2 = vlaneseq }
  0x54   :  { %117 = vperm.xlu1 %7233, %v62_v1  }
  0x55   :  { %1007 = vmatmul.mubr.bf16.vlgmr.msra.gmra.mrb[4].mxu0 %v12146_v0  ;;  %1050 = vmatmul.mubr.bf16.vlgmr.msra.gmra.mrb[4].mxu1 %v12146_v0 }
  0x56   :  { %1167 = vmatpush1.bf16.msra.mxu0 %v8678_v3  ;;  %1210 = vmatpush1.bf16.msra.mxu1 %v8683_v4  ;;  %v152_v3 = vshrl.u32 %v151_v2, 7 }
  0x57   :  { %1168 = vmatprep.subr.bf16.mxu0 %v8689_v5  ;;  %1211 = vmatprep.subr.bf16.mxu1 %v8696_v6 }
  0x58   :  { %1198 = vmatprep.mubr.bf16.mxu0 %v12146_v0  ;;  %1241 = vmatprep.mubr.bf16.mxu1 %v12146_v0  ;;  %v9048_v4 = vsub.s32 0, %v152_v3  ;;  %v9050_v5 = vsub.s32 2, %v152_v3  ;;  %v9052_v6 = vsub.s32 1, %v152_v3 }
  0x5a   :  { %1169 = vmatpush1.bf16.msra.mxu0 %v8701_v7  ;;  %1212 = vmatpush1.bf16.msra.mxu1 %v8707_v8  ;;  %12298 = vst [vmem:[#allocation5_spill] sm:$0xff] %v9048_v4  ;;  %12299 = vst [vmem:[#allocation6_spill] sm:$0xff] %v9050_v5  ;;  %v9054_v7 = vsub.s32 3, %v152_v3  ;;  %v6360_v8 = vld [vmem:[%s12135_s1 + $0x4] sm:$0xf] }
  0x5b   :  { %1170 = vmatprep.subr.bf16.mxu0 %v8713_v9  ;;  %1213 = vmatprep.subr.bf16.mxu1 %v8718_v10  ;;  %12300 = vst [vmem:[#allocation7_spill] sm:$0xff] %v9052_v6  ;;  %v9060_v9 = vrot.slane %v6360_v8, %v9048_v4  ;;  %v9063_v10 = vrot.slane %v6360_v8, %v9050_v5 }
  0x5c   :  { %12301 = vst [vmem:[#allocation8_spill] sm:$0xff] %v9054_v7 }
  0x5e   :  { %1171 = vmatpush1.bf16.msra.mxu0 %v8723_v11  ;;  %1214 = vmatpush1.bf16.msra.mxu1 %v8728_v12  ;;  %v9066_v11 = vrot.slane %v6360_v8, %v9052_v6  ;;  %v9069_v12 = vrot.slane %v6360_v8, %v9054_v7 }
  0x5f   :  { %1172 = vmatprep.subr.bf16.mxu0 %v8735_v13  ;;  %1215 = vmatprep.subr.bf16.mxu1 %v8742_v14  ;;  %v69_v14 = vld [vmem:[%s12135_s1] sm:$0xf] }
  0x62   :  { %1173 = vmatpush1.bf16.msra.mxu0 %v8747_v15  ;;  %1216 = vmatpush1.bf16.msra.mxu1 %v8754_v16 }
  0x63   :  { %1174 = vmatprep.subr.bf16.mxu0 %v8759_v17  ;;  %1217 = vmatprep.subr.bf16.mxu1 %v8766_v18 }
  0x66   :  { %1175 = vmatpush1.bf16.msra.mxu0 %v8771_v19  ;;  %1218 = vmatpush1.bf16.msra.mxu1 %v8776_v20 }
  0x67   :  { %1176 = vmatprep.subr.bf16.mxu0 %v8783_v21  ;;  %1219 = vmatprep.subr.bf16.mxu1 %v8790_v22  ;;  %v235_v21 = vld [vmem:[%s12137_s3] sm:$0xf]  ;;  %v9100_v22 = vrot.slane %v69_v14, %v9048_v4 }
  0x6a   :  { %1177 = vmatpush1.bf16.msra.mxu0 %v8795_v23  ;;  %1220 = vmatpush1.bf16.msra.mxu1 %v8802_v24  ;;  %v9103_v23 = vrot.slane %v69_v14, %v9050_v5  ;;  %v9106_v24 = vrot.slane %v69_v14, %v9052_v6 }
  0x6b   :  { %1178 = vmatprep.subr.bf16.mxu0 %v8807_v25  ;;  %1221 = vmatprep.subr.bf16.mxu1 %v8814_v26  ;;  %v9109_v25 = vrot.slane %v69_v14, %v9054_v7  ;;  %v9112_v26 = vrot.slane %v235_v21, %v9048_v4 }
  0x6e   :  { %1179 = vmatpush1.bf16.msra.mxu0 %v8819_v27  ;;  %1222 = vmatpush1.bf16.msra.mxu1 %v8824_v28  ;;  %v9115_v27 = vrot.slane %v235_v21, %v9050_v5  ;;  %v9118_v28 = vrot.slane %v235_v21, %v9052_v6 }
  0x6f   :  { %1180 = vmatprep.subr.bf16.mxu0 %v8831_v29  ;;  %1223 = vmatprep.subr.bf16.mxu1 %v8838_v30  ;;  %v9121_v29 = vrot.slane %v235_v21, %v9054_v7 }
  0x72   :  { %1181 = vmatpush1.bf16.msra.mxu0 %v8843_v31  ;;  %1224 = vmatpush1.bf16.msra.mxu1 %v8850_v32  ;;  %v6361_v31 = vld [vmem:[%s12137_s3 + $0x4] sm:$0xf] }
  0x73   :  { %1260 = vmatprep.subr.bf16.mxu0 %v8855_v33  ;;  %1303 = vmatprep.subr.bf16.mxu1 %v8862_v34  ;;  %v9139_v53 = vrot.slane %v6361_v31, %v9048_v4  ;;  %v9142_v54 = vrot.slane %v6361_v31, %v9050_v5  ;;  %v9145_v55 = vrot.slane %v6361_v31, %v9052_v6 }
  0x74   :  { %v9148_v56 = vrot.slane %v6361_v31, %v9054_v7 }
  0xa3   :  { %v9071_v13 = vpop.permute.xlu0 %72 }
  0xa4   :  { %v9078_v15 = vmul.f32 %v9060_v9, %v9071_v13  ;;  %v9082_v16 = vmul.f32 %v9063_v10, %v9071_v13  ;;  %v9086_v17 = vmul.f32 %v9066_v11, %v9071_v13  ;;  %v9090_v18 = vmul.f32 %v9069_v12, %v9071_v13  ;;  %v9092_v19 = vpop.permute.xlu1 %142 }
  0xa7   :  { %v9094_v20 = vpop.permute.xlu0 %77 }
  0xa8   :  { %v9123_v30 = vpop.permute.xlu1 %147 }
  0xab   :  { %v9128_v32 = vpop.permute.xlu0 %82 }
  0xac   :  { %v179_v33 = vmul.f32 %v9100_v22, %v9128_v32  ;;  %v181_v34 = vmul.f32 %v9103_v23, %v9128_v32  ;;  %v180_v51 = vmul.f32 %v9106_v24, %v9128_v32  ;;  %v182_v52 = vmul.f32 %v9109_v25, %v9128_v32  ;;  %v9150_v57 = vpop.permute.xlu1 %87 }
  0xad   :  { %v183_v63 = vmul.f32 %v9100_v22, %v9150_v57  ;;  %v185_v35 = vmul.f32 %v9103_v23, %v9150_v57  ;;  %v184_v36 = vmul.f32 %v9106_v24, %v9150_v57  ;;  %v186_v37 = vmul.f32 %v9109_v25, %v9150_v57 }
  0xae   :  { %v9153_v58 = vadd.f32 %v9112_v26, %v179_v33  ;;  %v9156_v59 = vadd.f32 %v9115_v27, %v181_v34  ;;  %v9159_v60 = vadd.f32 %v9118_v28, %v180_v51  ;;  %v9162_v61 = vadd.f32 %v9121_v29, %v182_v52 }
  0xaf   :  { %v9164_v62 = vpop.permute.xlu0 %132  ;;  %v9183_v42 = vadd.f32 %v9112_v26, %v183_v63  ;;  %v9186_v43 = vadd.f32 %v9115_v27, %v185_v35  ;;  %v9189_v44 = vadd.f32 %v9118_v28, %v184_v36  ;;  %v9192_v45 = vadd.f32 %v9121_v29, %v186_v37 }
  0xb0   :  { %v392_v38 = vmul.f32 %v9060_v9, %v9164_v62  ;;  %v394_v39 = vmul.f32 %v9063_v10, %v9164_v62  ;;  %v393_v40 = vmul.f32 %v9066_v11, %v9164_v62  ;;  %v395_v41 = vmul.f32 %v9069_v12, %v9164_v62 }
  0xb2   :  { %v9197_v47 = vadd.f32 %v9139_v53, %v392_v38  ;;  %v9200_v48 = vadd.f32 %v9142_v54, %v394_v39  ;;  %v9203_v49 = vadd.f32 %v9145_v55, %v393_v40  ;;  %v9206_v50 = vadd.f32 %v9148_v56, %v395_v41 }
  0xb4   :  { %12302 = vst [vmem:[#allocation9_spill] sm:$0xff] %v9203_v49  ;;  %12303 = vst [vmem:[#allocation10_spill] sm:$0xff] %v9206_v50 }
  0xb8   :  { %v9194_v46 = vpop.permute.xlu1 %137 }
  0xb9   :  { %v396_v2 = vmul.f32 %v9060_v9, %v9194_v46  ;;  %v398_v3 = vmul.f32 %v9063_v10, %v9194_v46  ;;  %v397_v8 = vmul.f32 %v9066_v11, %v9194_v46  ;;  %v399_v14 = vmul.f32 %v9069_v12, %v9194_v46 }
  0xbb   :  { %v9208_v1 = vpop.permute.xlu0 %92  ;;  %v9227_v51 = vadd.f32 %v9139_v53, %v396_v2  ;;  %v9230_v52 = vadd.f32 %v9142_v54, %v398_v3  ;;  %v9233_v63 = vadd.f32 %v9145_v55, %v397_v8  ;;  %v9236_v35 = vadd.f32 %v9148_v56, %v399_v14 }
  0xbc   :  { %v187_v21 = vmul.f32 %v9100_v22, %v9208_v1  ;;  %v189_v31 = vmul.f32 %v9103_v23, %v9208_v1  ;;  %v188_v33 = vmul.f32 %v9106_v24, %v9208_v1  ;;  %v190_v34 = vmul.f32 %v9109_v25, %v9208_v1 }
  0xbd   :  { %12304 = vst [vmem:[#allocation11_spill] sm:$0xff] %v9227_v51  ;;  %12305 = vst [vmem:[#allocation12_spill] sm:$0xff] %v9230_v52 }
  0xbe   :  { %12306 = vst [vmem:[#allocation13_spill] sm:$0xff] %v9233_v63  ;;  %12307 = vst [vmem:[#allocation14_spill] sm:$0xff] %v9236_v35  ;;  %v9241_v37 = vadd.f32 %v9112_v26, %v187_v21  ;;  %v9244_v38 = vadd.f32 %v9115_v27, %v189_v31  ;;  %v9247_v39 = vadd.f32 %v9118_v28, %v188_v33 }
  0xbf   :  { %v9238_v36 = vpop.permute.xlu1 %97  ;;  %v9250_v40 = vadd.f32 %v9121_v29, %v190_v34  ;;  %v123_v41 = vpop.permute.xlu0 %122 }
  0xc0   :  { %12308 = vst [vmem:[#allocation15_spill] sm:$0xff] %v9241_v37  ;;  %12309 = vst [vmem:[#allocation16_spill] sm:$0xff] %v9244_v38  ;;  %v191_v2 = vmul.f32 %v9100_v22, %v9238_v36  ;;  %v193_v3 = vmul.f32 %v9103_v23, %v9238_v36  ;;  %v192_v8 = vmul.f32 %v9106_v24, %v9238_v36 }
  0xc1   :  { %12310 = vst [vmem:[#allocation17_spill] sm:$0xff] %v9247_v39  ;;  %12311 = vst [vmem:[#allocation18_spill] sm:$0xff] %v9250_v40  ;;  %v194_v14 = vmul.f32 %v9109_v25, %v9238_v36  ;;  %v384_v21 = vmul.f32 %v9060_v9, %v123_v41  ;;  %v386_v31 = vmul.f32 %v9063_v10, %v123_v41 }
  0xc2   :  { %v385_v33 = vmul.f32 %v9066_v11, %v123_v41  ;;  %v387_v34 = vmul.f32 %v9069_v12, %v123_v41  ;;  %v9265_v0 = vadd.f32 %v9112_v26, %v191_v2  ;;  %v9268_v5 = vadd.f32 %v9115_v27, %v193_v3 }
  0xc3   :  { %v9271_v7 = vadd.f32 %v9118_v28, %v192_v8  ;;  %v9274_v6 = vadd.f32 %v9121_v29, %v194_v14  ;;  %v9276_v4 = vpop.permute.xlu1 %127  ;;  %v9279_v40 = vadd.f32 %v9139_v53, %v384_v21  ;;  %v9282_v39 = vadd.f32 %v9142_v54, %v386_v31  ;;  %v9298_v31 = vpop.permute.xlu0 %102 }
  0xc4   :  { %12312 = vst [vmem:[#allocation19_spill] sm:$0xff] %v9265_v0  ;;  %12313 = vst [vmem:[#allocation20_spill] sm:$0xff] %v9268_v5  ;;  %v9285_v2 = vadd.f32 %v9145_v55, %v385_v33  ;;  %v9288_v3 = vadd.f32 %v9148_v56, %v387_v34  ;;  %v388_v8 = vmul.f32 %v9060_v9, %v9276_v4 }
  0xc5   :  { %12314 = vst [vmem:[#allocation21_spill] sm:$0xff] %v9271_v7  ;;  %12315 = vst [vmem:[#allocation22_spill] sm:$0xff] %v9274_v6  ;;  %v390_v14 = vmul.f32 %v9063_v10, %v9276_v4  ;;  %v389_v6 = vmul.f32 %v9066_v11, %v9276_v4  ;;  %v391_v21 = vmul.f32 %v9069_v12, %v9276_v4 }
  0xc6   :  { %12316 = vst [vmem:[#allocation23_spill] sm:$0xff] %v9279_v40  ;;  %12317 = vst [vmem:[#allocation24_spill] sm:$0xff] %v9282_v39  ;;  %v9301_v33 = vmul.f32 %v9100_v22, %v123_v41  ;;  %v9304_v34 = vmul.f32 %v9103_v23, %v123_v41  ;;  %v9313_v39 = vadd.f32 %v9139_v53, %v388_v8 }
  0xc7   :  { %12318 = vst [vmem:[#allocation25_spill] sm:$0xff] %v9285_v2  ;;  %12319 = vst [vmem:[#allocation26_spill] sm:$0xff] %v9288_v3  ;;  %v9307_v3 = vmul.f32 %v9106_v24, %v123_v41  ;;  %v9310_v2 = vmul.f32 %v9109_v25, %v123_v41  ;;  %v9316_v40 = vadd.f32 %v9142_v54, %v390_v14  ;;  %v108_v0 = vpop.permute.xlu1 %107 }
  0xc8   :  { %12320 = vst [vmem:[#allocation27_spill] sm:$0xff] %v9313_v39  ;;  %v9319_v7 = vadd.f32 %v9145_v55, %v389_v6  ;;  %v9322_v5 = vadd.f32 %v9148_v56, %v391_v21  ;;  %v195_v38 = vmul.f32 %v9100_v22, %v9298_v31  ;;  %v197_v41 = vmul.f32 %v9103_v23, %v9298_v31 }
  0xc9   :  { %12321 = vst [vmem:[#allocation28_spill] sm:$0xff] %v9316_v40  ;;  %v196_v8 = vmul.f32 %v9106_v24, %v9298_v31  ;;  %v198_v14 = vmul.f32 %v9109_v25, %v9298_v31  ;;  %v199_v40 = vmul.f32 %v9100_v22, %v108_v0  ;;  %v201_v6 = vmul.f32 %v9103_v23, %v108_v0 }
  0xca   :  { %12322 = vst [vmem:[#allocation29_spill] sm:$0xff] %v9319_v7  ;;  %12323 = vst [vmem:[#allocation30_spill] sm:$0xff] %v9322_v5  ;;  %v200_v21 = vmul.f32 %v9106_v24, %v108_v0  ;;  %v202_v5 = vmul.f32 %v9109_v25, %v108_v0  ;;  %v113_v7 = vpop.permute.xlu0 %112  ;;  %v9337_v39 = vadd.f32 %v9112_v26, %v195_v38 }
  0xcb   :  { %v9340_v37 = vadd.f32 %v9115_v27, %v197_v41  ;;  %v9343_v35 = vadd.f32 %v9118_v28, %v196_v8  ;;  %v9346_v63 = vadd.f32 %v9121_v29, %v198_v14  ;;  %v9349_v52 = vadd.f32 %v9112_v26, %v199_v40 }
  0xcc   :  { %12324 = vst [vmem:[#allocation31_spill] sm:$0xff] %v9337_v39  ;;  %v9352_v51 = vadd.f32 %v9115_v27, %v201_v6  ;;  %v9355_v50 = vadd.f32 %v9118_v28, %v200_v21  ;;  %v9358_v38 = vadd.f32 %v9121_v29, %v202_v5  ;;  %v378_v8 = vmul.f32 %v9063_v10, %v113_v7 }
  0xcd   :  { %12325 = vst [vmem:[#allocation32_spill] sm:$0xff] %v9340_v37  ;;  %12326 = vst [vmem:[#allocation33_spill] sm:$0xff] %v9343_v35  ;;  %v376_v37 = vmul.f32 %v9060_v9, %v113_v7  ;;  %v377_v14 = vmul.f32 %v9066_v11, %v113_v7 }
  0xce   :  { %12327 = vst [vmem:[#allocation34_spill] sm:$0xff] %v9346_v63  ;;  %12328 = vst [vmem:[#allocation35_spill] sm:$0xff] %v9349_v52  ;;  %v379_v63 = vmul.f32 %v9069_v12, %v113_v7 }
  0xcf   :  { %12329 = vst [vmem:[#allocation36_spill] sm:$0xff] %v9352_v51  ;;  %12330 = vst [vmem:[#allocation37_spill] sm:$0xff] %v9355_v50  ;;  %v9369_v5 = vadd.f32 %v9139_v53, %v376_v37  ;;  %v9375_v50 = vadd.f32 %v9145_v55, %v377_v14  ;;  %v205_v14 = vmul.f32 %v9103_v23, %v113_v7 }
  0xd0   :  { %12331 = vst [vmem:[#allocation38_spill] sm:$0xff] %v9358_v38  ;;  %v9372_v38 = vadd.f32 %v9142_v54, %v378_v8  ;;  %v9378_v52 = vadd.f32 %v9148_v56, %v379_v63  ;;  %v203_v8 = vmul.f32 %v9100_v22, %v113_v7  ;;  %v206_v63 = vmul.f32 %v9109_v25, %v113_v7 }
  0xd1   :  { %12332 = vst [vmem:[#allocation39_spill] sm:$0xff] %v9369_v5  ;;  %12334 = vst [vmem:[#allocation41_spill] sm:$0xff] %v9375_v50  ;;  %v204_v50 = vmul.f32 %v9106_v24, %v113_v7  ;;  %v10055_v5 = vld [vmem:[%s12136_s2 + $0x80] ss:$16 sps:$4 sm:$0xff]  }
  0xd2   :  { %12333 = vst [vmem:[#allocation40_spill] sm:$0xff] %v9372_v38  ;;  %12335 = vst [vmem:[#allocation42_spill] sm:$0xff] %v9378_v52  ;;  %v10049_v38 = vld [vmem:[%s12136_s2 + $0x8c] ss:$16 sps:$4 sm:$0xff]  }
  0xd3   :  { %v118_v41 = vpop.permute.xlu1 %117  ;;  %12421 = vst [vmem:[#allocation127_spill] sm:$0xff] %v10049_v38  ;;  %12422 = vst [vmem:[#allocation128_spill] sm:$0xff] %v10055_v5 }
  0xd4   :  { %v380_v40 = vmul.f32 %v9060_v9, %v118_v41  ;;  %v382_v6 = vmul.f32 %v9063_v10, %v118_v41  ;;  %v381_v51 = vmul.f32 %v9066_v11, %v118_v41  ;;  %v383_v21 = vmul.f32 %v9069_v12, %v118_v41 }
  0xd6   :  { %v9381_v35 = vadd.f32 %v9139_v53, %v380_v40  ;;  %v9384_v39 = vadd.f32 %v9142_v54, %v382_v6  ;;  %v9387_v49 = vadd.f32 %v9145_v55, %v381_v51  ;;  %v9390_v37 = vadd.f32 %v9148_v56, %v383_v21 }
  0xd7   :  { %v207_v40 = vmul.f32 %v9100_v22, %v118_v41  ;;  %v208_v6 = vmul.f32 %v9106_v24, %v118_v41  ;;  %v210_v51 = vmul.f32 %v9109_v25, %v118_v41  ;;  %v9404_v21 = vadd.f32 %v9115_v27, %v205_v14 }
  0xd8   :  { %12336 = vst [vmem:[#allocation43_spill] sm:$0xff] %v9381_v35  ;;  %12337 = vst [vmem:[#allocation44_spill] sm:$0xff] %v9384_v39  ;;  %v209_v35 = vmul.f32 %v9103_v23, %v118_v41  ;;  %v9410_v39 = vadd.f32 %v9121_v29, %v206_v63  ;;  %v368_v14 = vmul.f32 %v9060_v9, %v9298_v31 }
  0xd9   :  { %12338 = vst [vmem:[#allocation45_spill] sm:$0xff] %v9387_v49  ;;  %12339 = vst [vmem:[#allocation46_spill] sm:$0xff] %v9390_v37  ;;  %v9401_v49 = vadd.f32 %v9112_v26, %v203_v8  ;;  %v9407_v37 = vadd.f32 %v9118_v28, %v204_v50  ;;  %v9413_v7 = vadd.f32 %v9112_v26, %v207_v40 }
  0xda   :  { %12341 = vst [vmem:[#allocation48_spill] sm:$0xff] %v9404_v21  ;;  %12343 = vst [vmem:[#allocation50_spill] sm:$0xff] %v9410_v39  ;;  %v9416_v52 = vadd.f32 %v9115_v27, %v209_v35  ;;  %v9419_v41 = vadd.f32 %v9118_v28, %v208_v6  ;;  %v9422_v8 = vadd.f32 %v9121_v29, %v210_v51  ;;  %v10037_v21 = vld [vmem:[%s12136_s2 + $0x68] ss:$16 sps:$4 sm:$0xff]  }
  0xdb   :  { %12340 = vst [vmem:[#allocation47_spill] sm:$0xff] %v9401_v49  ;;  %12342 = vst [vmem:[#allocation49_spill] sm:$0xff] %v9407_v37  ;;  %v370_v50 = vmul.f32 %v9063_v10, %v9298_v31  ;;  %v369_v63 = vmul.f32 %v9066_v11, %v9298_v31  ;;  %v371_v40 = vmul.f32 %v9069_v12, %v9298_v31  ;;  %v10043_v49 = vld [vmem:[%s12136_s2 + $0x84] ss:$16 sps:$4 sm:$0xff]  }
  0xdc   :  { %12344 = vst [vmem:[#allocation51_spill] sm:$0xff] %v9413_v7  ;;  %12345 = vst [vmem:[#allocation52_spill] sm:$0xff] %v9416_v52  ;;  %v372_v35 = vmul.f32 %v9060_v9, %v108_v0  ;;  %v374_v6 = vmul.f32 %v9063_v10, %v108_v0  ;;  %v375_v51 = vmul.f32 %v9069_v12, %v108_v0 }
  0xdd   :  { %12346 = vst [vmem:[#allocation53_spill] sm:$0xff] %v9419_v41  ;;  %12347 = vst [vmem:[#allocation54_spill] sm:$0xff] %v9422_v8  ;;  %v373_v41 = vmul.f32 %v9066_v11, %v108_v0  ;;  %v9437_v8 = vadd.f32 %v9139_v53, %v368_v14  ;;  %v9440_v52 = vadd.f32 %v9142_v54, %v370_v50 }
  0xde   :  { %v9443_v7 = vadd.f32 %v9145_v55, %v369_v63  ;;  %v9446_v39 = vadd.f32 %v9148_v56, %v371_v40  ;;  %v9449_v31 = vadd.f32 %v9139_v53, %v372_v35  ;;  %v9452_v37 = vadd.f32 %v9142_v54, %v374_v6  ;;  %12419 = vst [vmem:[#allocation125_spill] sm:$0xff] %v10037_v21 }
  0xdf   :  { %12348 = vst [vmem:[#allocation55_spill] sm:$0xff] %v9437_v8  ;;  %12349 = vst [vmem:[#allocation56_spill] sm:$0xff] %v9440_v52  ;;  %v9455_v0 = vadd.f32 %v9145_v55, %v373_v41  ;;  %v9458_v14 = vadd.f32 %v9148_v56, %v375_v51  ;;  %v9462_v50 = vadd.f32 %v9112_v26, %v9301_v33  ;;  %v10025_v52 = vld [vmem:[%s12136_s2 + $0x6c] ss:$16 sps:$4 sm:$0xff]   ;;  %v10031_v8 = vld [vmem:[%s12136_s2 + $0x60] ss:$16 sps:$4 sm:$0xff]  }
  0xe0   :  { %12350 = vst [vmem:[#allocation57_spill] sm:$0xff] %v9443_v7  ;;  %12351 = vst [vmem:[#allocation58_spill] sm:$0xff] %v9446_v39  ;;  %v9466_v63 = vadd.f32 %v9115_v27, %v9304_v34  ;;  %v9470_v40 = vadd.f32 %v9118_v28, %v9307_v3  ;;  %v9474_v35 = vadd.f32 %v9121_v29, %v9310_v2  ;;  %v10013_v39 = vld [vmem:[%s12136_s2 + $0x48] ss:$16 sps:$4 sm:$0xff]   ;;  %v10019_v7 = vld [vmem:[%s12136_s2 + $0x64] ss:$16 sps:$4 sm:$0xff]  }
  0xe1   :  { %12352 = vst [vmem:[#allocation59_spill] sm:$0xff] %v9449_v31  ;;  %12353 = vst [vmem:[#allocation60_spill] sm:$0xff] %v9452_v37  ;;  %v215_v41 = vmul.f32 %v9100_v22, %v9276_v4  ;;  %v217_v6 = vmul.f32 %v9103_v23, %v9276_v4  ;;  %v216_v33 = vmul.f32 %v9106_v24, %v9276_v4  ;;  %v10001_v37 = vld [vmem:[%s12136_s2 + $0x4c] ss:$16 sps:$4 sm:$0xff]   ;;  %v10007_v31 = vld [vmem:[%s12136_s2 + $0x40] ss:$16 sps:$4 sm:$0xff]  }
  0xe2   :  { %12354 = vst [vmem:[#allocation61_spill] sm:$0xff] %v9455_v0  ;;  %12355 = vst [vmem:[#allocation62_spill] sm:$0xff] %v9458_v14  ;;  %v218_v34 = vmul.f32 %v9109_v25, %v9276_v4  ;;  %v360_v3 = vmul.f32 %v9060_v9, %v9208_v1  ;;  %v362_v51 = vmul.f32 %v9063_v10, %v9208_v1 }
  0xe3   :  { %12356 = vst [vmem:[#allocation63_spill] sm:$0xff] %v9462_v50  ;;  %12357 = vst [vmem:[#allocation64_spill] sm:$0xff] %v9466_v63  ;;  %v361_v2 = vmul.f32 %v9066_v11, %v9208_v1  ;;  %v9496_v63 = vadd.f32 %v9115_v27, %v217_v6  ;;  %v9499_v4 = vadd.f32 %v9118_v28, %v216_v33 }
  0xe4   :  { %12358 = vst [vmem:[#allocation65_spill] sm:$0xff] %v9470_v40  ;;  %12359 = vst [vmem:[#allocation66_spill] sm:$0xff] %v9474_v35  ;;  %v363_v35 = vmul.f32 %v9069_v12, %v9208_v1  ;;  %v9493_v40 = vadd.f32 %v9112_v26, %v215_v41  ;;  %v9502_v50 = vadd.f32 %v9121_v29, %v218_v34 }
  0xe5   :  { %12361 = vst [vmem:[#allocation68_spill] sm:$0xff] %v9496_v63  ;;  %12362 = vst [vmem:[#allocation69_spill] sm:$0xff] %v9499_v4  ;;  %v9505_v14 = vadd.f32 %v9139_v53, %v360_v3  ;;  %v9508_v0 = vadd.f32 %v9142_v54, %v362_v51  ;;  %v9511_v1 = vadd.f32 %v9145_v55, %v361_v2  ;;  %v9989_v63 = vld [vmem:[%s12136_s2 + $0x28] ss:$16 sps:$4 sm:$0xff]  }
  0xe6   :  { %12360 = vst [vmem:[#allocation67_spill] sm:$0xff] %v9493_v40  ;;  %12363 = vst [vmem:[#allocation70_spill] sm:$0xff] %v9502_v50  ;;  %v9514_v41 = vadd.f32 %v9148_v56, %v363_v35  ;;  %v364_v6 = vmul.f32 %v9060_v9, %v9238_v36  ;;  %v366_v33 = vmul.f32 %v9063_v10, %v9238_v36  ;;  %v9995_v40 = vld [vmem:[%s12136_s2 + $0x44] ss:$16 sps:$4 sm:$0xff]  }
  0xe7   :  { %12364 = vst [vmem:[#allocation71_spill] sm:$0xff] %v9505_v14  ;;  %12365 = vst [vmem:[#allocation72_spill] sm:$0xff] %v9508_v0  ;;  %v365_v34 = vmul.f32 %v9066_v11, %v9238_v36  ;;  %v367_v3 = vmul.f32 %v9069_v12, %v9238_v36  ;;  %v219_v51 = vmul.f32 %v9100_v22, %v9164_v62 }
  0xe8   :  { %12366 = vst [vmem:[#allocation73_spill] sm:$0xff] %v9511_v1  ;;  %12367 = vst [vmem:[#allocation74_spill] sm:$0xff] %v9514_v41  ;;  %v221_v2 = vmul.f32 %v9103_v23, %v9164_v62  ;;  %v220_v35 = vmul.f32 %v9106_v24, %v9164_v62  ;;  %v222_v41 = vmul.f32 %v9109_v25, %v9164_v62 }
  0xe9   :  { %v9533_v1 = vadd.f32 %v9139_v53, %v364_v6  ;;  %v9536_v0 = vadd.f32 %v9142_v54, %v366_v33  ;;  %v9539_v36 = vadd.f32 %v9145_v55, %v365_v34  ;;  %v9542_v14 = vadd.f32 %v9148_v56, %v367_v3  ;;  %12411 = vst [vmem:[#allocation117_spill] sm:$0xff] %v9989_v63 }
  0xea   :  { %v9545_v50 = vadd.f32 %v9112_v26, %v219_v51  ;;  %v9548_v4 = vadd.f32 %v9115_v27, %v221_v2  ;;  %v9551_v62 = vadd.f32 %v9118_v28, %v220_v35  ;;  %v9554_v6 = vadd.f32 %v9121_v29, %v222_v41  ;;  %12412 = vst [vmem:[#allocation118_spill] sm:$0xff] %v9995_v40 }
  0xeb   :  { %12368 = vst [vmem:[#allocation75_spill] sm:$0xff] %v9533_v1  ;;  %12369 = vst [vmem:[#allocation76_spill] sm:$0xff] %v9536_v0  ;;  %v223_v33 = vmul.f32 %v9100_v22, %v9194_v46  ;;  %v225_v34 = vmul.f32 %v9103_v23, %v9194_v46  ;;  %v224_v3 = vmul.f32 %v9106_v24, %v9194_v46  ;;  %v9935_v0 = vld [vmem:[%s12136_s2 + $0x1e8] ss:$16 sps:$4 sm:$0xff]   ;;  %v9941_v1 = vld [vmem:[%s12136_s2 + $0x4] ss:$16 sps:$4 sm:$0xff]  }
  0xec   :  { %12370 = vst [vmem:[#allocation77_spill] sm:$0xff] %v9539_v36  ;;  %12371 = vst [vmem:[#allocation78_spill] sm:$0xff] %v9542_v14  ;;  %v226_v51 = vmul.f32 %v9109_v25, %v9194_v46  ;;  %v352_v2 = vmul.f32 %v9060_v9, %v9128_v32  ;;  %v354_v35 = vmul.f32 %v9063_v10, %v9128_v32 }
  0xed   :  { %12372 = vst [vmem:[#allocation79_spill] sm:$0xff] %v9545_v50  ;;  %12373 = vst [vmem:[#allocation80_spill] sm:$0xff] %v9548_v4  ;;  %v353_v41 = vmul.f32 %v9066_v11, %v9128_v32  ;;  %v9576_v4 = vadd.f32 %v9115_v27, %v225_v34  ;;  %v9579_v46 = vadd.f32 %v9118_v28, %v224_v3 }
  0xee   :  { %12374 = vst [vmem:[#allocation81_spill] sm:$0xff] %v9551_v62  ;;  %12375 = vst [vmem:[#allocation82_spill] sm:$0xff] %v9554_v6  ;;  %v355_v6 = vmul.f32 %v9069_v12, %v9128_v32  ;;  %v9573_v62 = vadd.f32 %v9112_v26, %v223_v33  ;;  %v9582_v50 = vadd.f32 %v9121_v29, %v226_v51 }
  0xef   :  { %12377 = vst [vmem:[#allocation84_spill] sm:$0xff] %v9576_v4  ;;  %12378 = vst [vmem:[#allocation85_spill] sm:$0xff] %v9579_v46  ;;  %v9585_v14 = vadd.f32 %v9139_v53, %v352_v2  ;;  %v9588_v36 = vadd.f32 %v9142_v54, %v354_v35  ;;  %v9591_v32 = vadd.f32 %v9145_v55, %v353_v41 }
  0xf0   :  { %12376 = vst [vmem:[#allocation83_spill] sm:$0xff] %v9573_v62  ;;  %12379 = vst [vmem:[#allocation86_spill] sm:$0xff] %v9582_v50  ;;  %v9594_v33 = vadd.f32 %v9148_v56, %v355_v6  ;;  %v356_v34 = vmul.f32 %v9060_v9, %v9150_v57  ;;  %v358_v3 = vmul.f32 %v9063_v10, %v9150_v57 }
  0xf1   :  { %12380 = vst [vmem:[#allocation87_spill] sm:$0xff] %v9585_v14  ;;  %12381 = vst [vmem:[#allocation88_spill] sm:$0xff] %v9588_v36  ;;  %v357_v51 = vmul.f32 %v9066_v11, %v9150_v57  ;;  %v359_v2 = vmul.f32 %v9069_v12, %v9150_v57  ;;  %v227_v35 = vmul.f32 %v9100_v22, %v9092_v19 }
  0xf2   :  { %12382 = vst [vmem:[#allocation89_spill] sm:$0xff] %v9591_v32  ;;  %12383 = vst [vmem:[#allocation90_spill] sm:$0xff] %v9594_v33  ;;  %v229_v41 = vmul.f32 %v9103_v23, %v9092_v19  ;;  %v228_v6 = vmul.f32 %v9106_v24, %v9092_v19  ;;  %v230_v33 = vmul.f32 %v9109_v25, %v9092_v19 }
  0xf3   :  { %v9613_v32 = vadd.f32 %v9139_v53, %v356_v34  ;;  %v9616_v36 = vadd.f32 %v9142_v54, %v358_v3  ;;  %v9619_v57 = vadd.f32 %v9145_v55, %v357_v51  ;;  %v9622_v14 = vadd.f32 %v9148_v56, %v359_v2  ;;  %12413 = vst [vmem:[#allocation119_spill] sm:$0xff] %v10001_v37 }
  0xf4   :  { %v9625_v50 = vadd.f32 %v9112_v26, %v227_v35  ;;  %v9628_v46 = vadd.f32 %v9115_v27, %v229_v41  ;;  %v9631_v4 = vadd.f32 %v9118_v28, %v228_v6  ;;  %v9634_v34 = vadd.f32 %v9121_v29, %v230_v33  ;;  %12414 = vst [vmem:[#allocation120_spill] sm:$0xff] %v10007_v31 }
  0xf5   :  { %12384 = vst [vmem:[#allocation91_spill] sm:$0xff] %v9613_v32  ;;  %12385 = vst [vmem:[#allocation92_spill] sm:$0xff] %v9616_v36  ;;  %v231_v3 = vmul.f32 %v9100_v22, %v9123_v30  ;;  %v233_v51 = vmul.f32 %v9103_v23, %v9123_v30  ;;  %v232_v2 = vmul.f32 %v9106_v24, %v9123_v30 }
  0xf6   :  { %12386 = vst [vmem:[#allocation93_spill] sm:$0xff] %v9619_v57  ;;  %12387 = vst [vmem:[#allocation94_spill] sm:$0xff] %v9622_v14  ;;  %v234_v35 = vmul.f32 %v9109_v25, %v9123_v30  ;;  %v9646_v41 = vadd.f32 %v9139_v53, %v9078_v15  ;;  %v9650_v33 = vadd.f32 %v9142_v54, %v9082_v16 }
  0xf7   :  { %12388 = vst [vmem:[#allocation95_spill] sm:$0xff] %v9625_v50  ;;  %12389 = vst [vmem:[#allocation96_spill] sm:$0xff] %v9628_v46  ;;  %v9654_v6 = vadd.f32 %v9145_v55, %v9086_v17  ;;  %v9664_v46 = vadd.f32 %v9115_v27, %v233_v51  ;;  %v9667_v15 = vadd.f32 %v9118_v28, %v232_v2 }
  0xf8   :  { %12390 = vst [vmem:[#allocation97_spill] sm:$0xff] %v9631_v4  ;;  %12391 = vst [vmem:[#allocation98_spill] sm:$0xff] %v9634_v34  ;;  %v9658_v34 = vadd.f32 %v9148_v56, %v9090_v18  ;;  %v9661_v4 = vadd.f32 %v9112_v26, %v231_v3  ;;  %v9670_v16 = vadd.f32 %v9121_v29, %v234_v35 }
  0xf9   :  { %12392 = vst [vmem:[#allocation99_spill] sm:$0xff] %v9646_v41  ;;  %12393 = vst [vmem:[#allocation100_spill] sm:$0xff] %v9650_v33  ;;  %v348_v17 = vmul.f32 %v9060_v9, %v9094_v20  ;;  %v349_v18 = vmul.f32 %v9066_v11, %v9094_v20  ;;  %v351_v3 = vmul.f32 %v9069_v12, %v9094_v20 }
  0xfa   :  { %12394 = vst [vmem:[#allocation101_spill] sm:$0xff] %v9654_v6  ;;  %12395 = vst [vmem:[#allocation102_spill] sm:$0xff] %v9658_v34  ;;  %v350_v6 = vmul.f32 %v9063_v10, %v9094_v20  ;;  %v171_v33 = vmul.f32 %v9100_v22, %v9071_v13  ;;  %v172_v41 = vmul.f32 %v9106_v24, %v9071_v13 }
  0xfb   :  { %12396 = vst [vmem:[#allocation103_spill] sm:$0xff] %v9661_v4  ;;  %12397 = vst [vmem:[#allocation104_spill] sm:$0xff] %v9664_v46  ;;  %v9681_v51 = vadd.f32 %v9139_v53, %v348_v17  ;;  %v9687_v35 = vadd.f32 %v9145_v55, %v349_v18  ;;  %v9690_v34 = vadd.f32 %v9148_v56, %v351_v3 }
  0xfc   :  { %12398 = vst [vmem:[#allocation105_spill] sm:$0xff] %v9667_v15  ;;  %12399 = vst [vmem:[#allocation106_spill] sm:$0xff] %v9670_v16  ;;  %v9684_v2 = vadd.f32 %v9142_v54, %v350_v6  ;;  %v257_v16 = vadd.f32 %v9112_v26, %v171_v33  ;;  %v175_v17 = vmul.f32 %v9100_v22, %v9094_v20 }
  0xfd   :  { %12400 = vst [vmem:[#allocation107_spill] sm:$0xff] %v9681_v51  ;;  %12402 = vst [vmem:[#allocation109_spill] sm:$0xff] %v9687_v35  ;;  %v258_v6 = vadd.f32 %v9118_v28, %v172_v41  ;;  %v176_v18 = vmul.f32 %v9106_v24, %v9094_v20  ;;  %v174_v3 = vmul.f32 %v9109_v25, %v9071_v13 }
  0xfe   :  { %12401 = vst [vmem:[#allocation108_spill] sm:$0xff] %v9684_v2  ;;  %12403 = vst [vmem:[#allocation110_spill] sm:$0xff] %v9690_v34  ;;  %v261_v46 = vadd.f32 %v9112_v26, %v175_v17  ;;  %v173_v41 = vmul.f32 %v9103_v23, %v9071_v13  ;;  %v178_v36 = vmul.f32 %v9109_v25, %v9094_v20 }
  0xff   :  { %v262_v22 = vadd.f32 %v9118_v28, %v176_v18  ;;  %12415 = vst [vmem:[#allocation121_spill] sm:$0xff] %v10013_v39  ;;  %12416 = vst [vmem:[#allocation122_spill] sm:$0xff] %v10019_v7 }
 0x100   :  { %v259_v28 = vadd.f32 %v9115_v27, %v173_v41  ;;  %12417 = vst [vmem:[#allocation123_spill] sm:$0xff] %v10025_v52  ;;  %12418 = vst [vmem:[#allocation124_spill] sm:$0xff] %v10031_v8 }
 0x101   :  { %12420 = vst [vmem:[#allocation126_spill] sm:$0xff] %v10043_v49 }
 0x108   :  { %v754_v35 = vpop.f32.mrb[0].mxu0  ;;  %v797_v2 = vpop.f32.mrb[0].mxu1 }
 0x109   :  { %v806_v34 = vadd.f32 %v754_v35, %v257_v16  ;;  %v756_v51 = vpop.f32.mrb[1].mxu0  ;;  %v799_v15 = vpop.f32.mrb[1].mxu1  ;;  %v260_v35 = vadd.f32 %v9121_v29, %v174_v3  ;;  %v808_v25 = vadd.f32 %v797_v2, %v259_v28 }
 0x10a   :  { %v807_v4 = vadd.f32 %v756_v51, %v258_v6  ;;  %v758_v33 = vpop.f32.mrb[2].mxu0  ;;  %v801_v50 = vpop.f32.mrb[2].mxu1 }
 0x10b   :  { %v6458_v14 = vmul.f32 -1.442695, %v806_v34  ;;  %v810_v24 = vadd.f32 %v758_v33, %v261_v46  ;;  %v760_v57 = vpop.f32.mrb[3].mxu0  ;;  %v803_v32 = vpop.f32.mrb[3].mxu1  ;;  %v264_v34 = vadd.f32 %v9121_v29, %v178_v36  ;;  %v809_v17 = vadd.f32 %v799_v15, %v260_v35 }
 0x10c   :  { %v6459_v16 = vmul.f32 -1.442695, %v807_v4  ;;  %v811_v62 = vadd.f32 %v760_v57, %v262_v22  ;;  %v177_v46 = vmul.f32 %v9103_v23, %v9094_v20  ;;  %v404_v35 = vmul.f32 %v9060_v9, %v9123_v30 }
 0x10d   :  { %7570 = vpow2.f32 %v6458_v14  ;;  %v6460_v26 = vmul.f32 -1.442695, %v810_v24  ;;  %v813_v13 = vadd.f32 %v803_v32, %v264_v34  ;;  %v6462_v4 = vmul.f32 -1.442695, %v809_v17 }
 0x10e   :  { %7572 = vpow2.f32 %v6459_v16  ;;  %v6461_v51 = vmul.f32 -1.442695, %v811_v62  ;;  %v263_v57 = vadd.f32 %v9115_v27, %v177_v46  ;;  %v400_v27 = vmul.f32 %v9060_v9, %v9092_v19 }
 0x10f   :  { %7574 = vpow2.f32 %v6460_v26  ;;  %v6463_v6 = vmul.f32 -1.442695, %v813_v13  ;;  %v405_v34 = vmul.f32 %v9066_v11, %v9123_v30  ;;  %v402_v9 = vmul.f32 %v9063_v10, %v9092_v19 }
 0x110   :  { %7576 = vpow2.f32 %v6461_v51  ;;  %v812_v3 = vadd.f32 %v801_v50, %v263_v57  ;;  %v401_v50 = vmul.f32 %v9066_v11, %v9092_v19  ;;  %v487_v16 = vadd.f32 %v9139_v53, %v400_v27 }
 0x111   :  { %7578 = vtanh.f32 %v808_v25  ;;  %v403_v27 = vmul.f32 %v9069_v12, %v9092_v19  ;;  %v407_v19 = vmul.f32 %v9069_v12, %v9123_v30 }
 0x112   :  { %7580 = vpow2.f32 %v6462_v4  ;;  %v488_v57 = vadd.f32 %v9145_v55, %v401_v50 }
 0x113   :  { %7582 = vpow2.f32 %v6463_v6 }
 0x117   :  { %v7571_v14 = vpop.eup %7570 }
 0x118   :  { %v7573_v18 = vpop.eup %7572  ;;  %v1080_v62 = vadd.f32 1.0, %v7571_v14 }
 0x119   :  { %v1081_v33 = vadd.f32 1.0, %v7573_v18  ;;  %v7575_v29 = vpop.eup %7574 }
 0x11a   :  { %7584 = vrcp.f32 %v1080_v62  ;;  %v1082_v36 = vadd.f32 1.0, %v7575_v29  ;;  %v7577_v32 = vpop.eup %7576 }
 0x11b   :  { %7586 = vrcp.f32 %v1081_v33  ;;  %v1083_v20 = vadd.f32 1.0, %v7577_v32  ;;  %v7579_v23 = vpop.eup %7578  ;;  %v491_v33 = vadd.f32 %v9139_v53, %v404_v35  ;;  %v489_v35 = vadd.f32 %v9142_v54, %v402_v9 }
 0x11c   :  { %7588 = vtanh.f32 %v812_v3  ;;  %v7581_v15 = vpop.eup %7580 }
 0x11d   :  { %7590 = vrcp.f32 %v1082_v36  ;;  %v7583_v2 = vpop.eup %7582  ;;  %v1100_v28 = vadd.f32 1.0, %v7581_v15 }
 0x11e   :  { %7592 = vrcp.f32 %v1083_v20  ;;  %v1101_v13 = vadd.f32 1.0, %v7583_v2  ;;  %v492_v20 = vadd.f32 %v9145_v55, %v405_v34  ;;  %v490_v55 = vadd.f32 %v9148_v56, %v403_v27  ;;  %v9771_v27 = vld [vmem:[%s12136_s2 + $0x12c] ss:$16 sps:$4 sm:$0xff]  }
 0x11f   :  { %7594 = vrcp.f32 %v1100_v28  ;;  %v494_v28 = vadd.f32 %v9148_v56, %v407_v19 }
 0x120   :  { %7596 = vrcp.f32 %v1101_v13 }
 0x124   :  { %v7585_v22 = vpop.eup %7584 }
 0x125   :  { %v7587_v41 = vpop.eup %7586  ;;  %v1108_v24 = vmul.f32 %v7585_v22, %v7579_v23 }
 0x126   :  { %v7589_v26 = vpop.eup %7588  ;;  %v1106_v51 = vmul.f32 0.0, %v7587_v41 }
 0x127   :  { %v7591_v17 = vpop.eup %7590 }
 0x128   :  { %v9725_v46 = vadd.f32 %v1108_v24, %v1106_v51  ;;  %v1109_v25 = vmul.f32 %v7591_v17, %v7589_v26  ;;  %v1008_v4 = vpop.f32.mrb[4].mxu0  ;;  %v1051_v6 = vpop.f32.mrb[4].mxu1  ;;  %v406_v51 = vmul.f32 %v9063_v10, %v9123_v30 }
 0x129   :  { %v7593_v14 = vpop.eup %7592  ;;  %v1060_v18 = vadd.f32 %v1008_v4, %v487_v16  ;;  %v1010_v62 = vpop.f32.mrb[5].mxu0  ;;  %v1062_v17 = vadd.f32 %v1051_v6, %v489_v35 }
 0x12a   :  { %v1053_v3 = vpop.f32.mrb[5].mxu1  ;;  %v1107_v11 = vmul.f32 0.0, %v7593_v14  ;;  %v1061_v29 = vadd.f32 %v1010_v62, %v488_v57  ;;  %v1012_v36 = vpop.f32.mrb[6].mxu0  ;;  %7598 = vtanh.f32 %v9725_v46  ;;  %v493_v4 = vadd.f32 %v9142_v54, %v406_v51  ;;  %v9803_v51 = vld [vmem:[%s12136_s2 + $0x140] ss:$16 sps:$4 sm:$0xff]  }
 0x12b   :  { %v1055_v32 = vpop.f32.mrb[6].mxu1  ;;  %v6464_v23 = vmul.f32 -1.442695, %v1060_v18  ;;  %v1064_v15 = vadd.f32 %v1012_v36, %v491_v33  ;;  %v1014_v2 = vpop.f32.mrb[7].mxu0  ;;  %v1063_v26 = vadd.f32 %v1053_v3, %v490_v55  ;;  %v9797_v55 = vld [vmem:[%s12136_s2 + $0x14c] ss:$16 sps:$4 sm:$0xff]  }
 0x12c   :  { %v1057_v22 = vpop.f32.mrb[7].mxu1  ;;  %v9735_v50 = vadd.f32 %v1109_v25, %v1107_v11  ;;  %v6465_v53 = vmul.f32 -1.442695, %v1061_v29  ;;  %v1065_v41 = vadd.f32 %v1014_v2, %v492_v20  ;;  %v7595_v34 = vpop.eup %7594  ;;  %v1066_v12 = vadd.f32 %v1055_v32, %v493_v4  ;;  %v9753_v32 = vld [vmem:[%s12136_s2 + $0x100] ss:$16 sps:$4 sm:$0xff]  }
 0x12d   :  { %7600 = vpow2.f32 %v6464_v23  ;;  %v6466_v24 = vmul.f32 -1.442695, %v1064_v15  ;;  %v7597_v13 = vpop.eup %7596  ;;  %v6468_v25 = vmul.f32 -1.442695, %v1063_v26  ;;  %v1067_v57 = vadd.f32 %v1057_v22, %v494_v28  ;;  %v9759_v20 = vld [vmem:[%s12136_s2 + $0x108] ss:$16 sps:$4 sm:$0xff]  }
 0x12e   :  { %7602 = vtanh.f32 %v9735_v50  ;;  %v6467_v16 = vmul.f32 -1.442695, %v1065_v41  ;;  %v9765_v23 = vld [vmem:[%s12136_s2 + $0x124] ss:$16 sps:$4 sm:$0xff]   ;;  %v12405_v15 = vmov 0  }
 0x12f   :  { %7604 = vpow2.f32 %v6465_v53  ;;  %v6469_v33 = vmul.f32 -1.442695, %v1067_v57  ;;  %v9779_v22 = vld [vmem:[%s12136_s2 + $0x120] ss:$16 sps:$4 sm:$0xff]   ;;  %v9785_v53 = vld [vmem:[%s12136_s2 + $0x128] ss:$16 sps:$4 sm:$0xff]  }
 0x130   :  { %7606 = vpow2.f32 %v6466_v24  ;;  %v9791_v24 = vld [vmem:[%s12136_s2 + $0x144] ss:$16 sps:$4 sm:$0xff]   ;;  %v9809_v28 = vld [vmem:[%s12136_s2 + $0x148] ss:$16 sps:$4 sm:$0xff]  }
 0x131   :  { %7608 = vpow2.f32 %v6467_v16 }
 0x132   :  { %7610 = vtanh.f32 %v1062_v17 }
 0x133   :  { %7612 = vpow2.f32 %v6468_v25  ;;  %v9821_v25 = vld [vmem:[%s12136_s2 + $0x16c] ss:$16 sps:$4 sm:$0xff]  }
 0x134   :  { %v7599_v14 = vpop.eup %7598 }
 0x135   :  { %v1114_v10 = vmul.f32 %v7599_v14, %v7595_v34 }
 0x137   :  { %v7601_v18 = vpop.eup %7600 }
 0x138   :  { %v7603_v62 = vpop.eup %7602  ;;  %v1128_v9 = vadd.f32 1.0, %v7601_v18 }
 0x139   :  { %v7605_v3 = vpop.eup %7604  ;;  %v1115_v30 = vmul.f32 %v7603_v62, %v7597_v13  ;;  %v9815_v13 = vld [vmem:[%s12136_s2 + $0x164] ss:$16 sps:$4 sm:$0xff]  }
 0x13a   :  { %7614 = vrcp.f32 %v1128_v9  ;;  %v1129_v56 = vadd.f32 1.0, %v7605_v3  ;;  %v7607_v11 = vpop.eup %7606  ;;  %v9829_v9 = vld [vmem:[%s12136_s2 + $0x160] ss:$16 sps:$4 sm:$0xff]   ;;  %v9835_v3 = vld [vmem:[%s12136_s2 + $0x168] ss:$16 sps:$4 sm:$0xff]  }
 0x13b   :  { %7616 = vtanh.f32 %v1066_v12  ;;  %v9746_v6 = vpack.c.bf16 %v1115_v30, %v1114_v10  ;;  %v1130_v54 = vadd.f32 1.0, %v7607_v11  ;;  %v7609_v29 = vpop.eup %7608  ;;  %v9841_v10 = vld [vmem:[%s12136_s2 + $0x184] ss:$16 sps:$4 sm:$0xff]   ;;  %v9847_v30 = vld [vmem:[%s12136_s2 + $0x18c] ss:$16 sps:$4 sm:$0xff]  }
 0x13c   :  { %7618 = vrcp.f32 %v1129_v56  ;;  %v1131_v36 = vadd.f32 1.0, %v7609_v29  ;;  %v7611_v2 = vpop.eup %7610  ;;  %v9856_v11 = vld [vmem:[%s12136_s2 + $0x180] ss:$16 sps:$4 sm:$0xff]   ;;  %v9869_v29 = vld [vmem:[%s12136_s2 + $0x1a4] ss:$16 sps:$4 sm:$0xff]  }
 0x13d   :  { %12404 = vst [vmem:[#allocation111_spill] sm:$0xff] %v9746_v6  ;;  %7620 = vpow2.f32 %v6469_v33  ;;  %1199 = vmatmul.mubr.bf16.vlgmr.msra.gmra.mrb[8].mxu0 %v9746_v6  ;;  %1242 = vmatmul.mubr.bf16.vlgmr.msra.gmra.mrb[8].mxu1 %v9746_v6  ;;  %v7613_v41 = vpop.eup %7612  ;;  %v9929_v6 = vld [vmem:[%s12136_s2 + $0x1e0] ss:$16 sps:$4 sm:$0xff]  }
 0x13e   :  { %7622 = vrcp.f32 %v1130_v54  ;;  %1261 = vmatpush1.bf16.msra.mxu0 %v9753_v32  ;;  %1304 = vmatpush1.bf16.msra.mxu1 %v9759_v20  ;;  %v1148_v57 = vadd.f32 1.0, %v7613_v41  ;;  %v9862_v54 = vld [vmem:[%s12136_s2 + $0x188] ss:$16 sps:$4 sm:$0xff]  }
 0x13f   :  { %1262 = vmatprep.subr.bf16.mxu0 %v9765_v23  ;;  %1305 = vmatprep.subr.bf16.mxu1 %v9771_v27  ;;  %7624 = vrcp.f32 %v1131_v36  ;;  %v9875_v36 = vld [vmem:[%s12136_s2 + $0x1ac] ss:$16 sps:$4 sm:$0xff]   ;;  %v9887_v41 = vld [vmem:[%s12136_s2 + $0x1a8] ss:$16 sps:$4 sm:$0xff]  }
 0x140   :  { %1292 = vmatprep.mubr.bf16.mxu0 %v12405_v15  ;;  %1335 = vmatprep.mubr.bf16.mxu1 %v12405_v15  ;;  %7626 = vrcp.f32 %v1148_v57  ;;  %v9923_v57 = vld [vmem:[%s12136_s2 + $0x1ec] ss:$16 sps:$4 sm:$0xff]  }
 0x142   :  { %1263 = vmatpush1.bf16.msra.mxu0 %v9779_v22  ;;  %1306 = vmatpush1.bf16.msra.mxu1 %v9785_v53 }
 0x143   :  { %1264 = vmatprep.subr.bf16.mxu0 %v9791_v24  ;;  %1307 = vmatprep.subr.bf16.mxu1 %v9797_v55 }
 0x144   :  { %v7615_v16 = vpop.eup %7614 }
 0x145   :  { %v7617_v19 = vpop.eup %7616  ;;  %v1156_v35 = vmul.f32 %v7615_v16, %v7611_v2  ;;  %v9881_v2 = vld [vmem:[%s12136_s2 + $0x1a0] ss:$16 sps:$4 sm:$0xff]   ;;  %v9893_v16 = vld [vmem:[%s12136_s2 + $0x1c4] ss:$16 sps:$4 sm:$0xff]  }
 0x146   :  { %v7619_v26 = vpop.eup %7618  ;;  %1265 = vmatpush1.bf16.msra.mxu0 %v9803_v51  ;;  %1308 = vmatpush1.bf16.msra.mxu1 %v9809_v28 }
 0x147   :  { %v7621_v34 = vpop.eup %7620  ;;  %v1154_v17 = vmul.f32 0.0, %v7619_v26  ;;  %1266 = vmatprep.subr.bf16.mxu0 %v9815_v13  ;;  %1309 = vmatprep.subr.bf16.mxu1 %v9821_v25  ;;  %v9905_v26 = vld [vmem:[%s12136_s2 + $0x1c0] ss:$16 sps:$4 sm:$0xff]  }
 0x148   :  { %v7623_v4 = vpop.eup %7622  ;;  %v1149_v62 = vadd.f32 1.0, %v7621_v34  ;;  %v9911_v34 = vld [vmem:[%s12136_s2 + $0x1c8] ss:$16 sps:$4 sm:$0xff]  }
 0x149   :  { %v9824_v14 = vadd.f32 %v1156_v35, %v1154_v17  ;;  %v1157_v18 = vmul.f32 %v7623_v4, %v7617_v19  ;;  %v7625_v12 = vpop.eup %7624  ;;  %v9899_v19 = vld [vmem:[%s12136_s2 + $0x1cc] ss:$16 sps:$4 sm:$0xff]   ;;  %v9917_v4 = vld [vmem:[%s12136_s2 + $0x1e4] ss:$16 sps:$4 sm:$0xff]  }
 0x14a   :  { %1267 = vmatpush1.bf16.msra.mxu0 %v9829_v9  ;;  %1310 = vmatpush1.bf16.msra.mxu1 %v9835_v3  ;;  %v1155_v33 = vmul.f32 0.0, %v7625_v12  ;;  %v7627_v35 = vpop.eup %7626 }
 0x14b   :  { %1268 = vmatprep.subr.bf16.mxu0 %v9841_v10  ;;  %1311 = vmatprep.subr.bf16.mxu1 %v9847_v30  ;;  %7628 = vtanh.f32 %v9824_v14 }
 0x14c   :  { %v9851_v56 = vadd.f32 %v1157_v18, %v1155_v33  ;;  %7630 = vrcp.f32 %v1149_v62 }
 0x14e   :  { %1269 = vmatpush1.bf16.msra.mxu0 %v9856_v11  ;;  %1312 = vmatpush1.bf16.msra.mxu1 %v9862_v54  ;;  %7632 = vtanh.f32 %v9851_v56 }
 0x14f   :  { %1270 = vmatprep.subr.bf16.mxu0 %v9869_v29  ;;  %1313 = vmatprep.subr.bf16.mxu1 %v9875_v36 }
 0x152   :  { %1271 = vmatpush1.bf16.msra.mxu0 %v9881_v2  ;;  %1314 = vmatpush1.bf16.msra.mxu1 %v9887_v41 }
 0x153   :  { %1272 = vmatprep.subr.bf16.mxu0 %v9893_v16  ;;  %1315 = vmatprep.subr.bf16.mxu1 %v9899_v19 }
 0x155   :  { %v7629_v17 = vpop.eup %7628 }
 0x156   :  { %1273 = vmatpush1.bf16.msra.mxu0 %v9905_v26  ;;  %1316 = vmatpush1.bf16.msra.mxu1 %v9911_v34  ;;  %v7631_v18 = vpop.eup %7630  ;;  %v1162_v62 = vmul.f32 %v7629_v17, %v7627_v35  ;;  %v9947_v35 = vld [vmem:[%s12136_s2 + $0xc] ss:$16 sps:$4 sm:$0xff]  }
 0x157   :  { %1274 = vmatprep.subr.bf16.mxu0 %v9917_v4  ;;  %1317 = vmatprep.subr.bf16.mxu1 %v9923_v57 }
 0x158   :  { %v7633_v12 = vpop.eup %7632 }
 0x159   :  { %v1163_v33 = vmul.f32 %v7633_v12, %v7631_v18  ;;  %v9957_v18 = vld [vmem:[%s12136_s2] ss:$16 sps:$4 sm:$0xff]   ;;  %v9963_v12 = vld [vmem:[%s12136_s2 + $0x8] ss:$16 sps:$4 sm:$0xff]  }
 0x15a   :  { %1275 = vmatpush1.bf16.msra.mxu0 %v9929_v6  ;;  %1318 = vmatpush1.bf16.msra.mxu1 %v9935_v0  ;;  %12407 = vst [vmem:[#allocation113_spill] sm:$0xff] %v9963_v12 }
 0x15b   :  { %1452 = vmatprep.subr.bf16.mxu0 %v9941_v1  ;;  %1495 = vmatprep.subr.bf16.mxu1 %v9947_v35  ;;  %v9950_v17 = vpack.c.bf16 %v1163_v33, %v1162_v62  ;;  %v9969_v62 = vld [vmem:[%s12136_s2 + $0x24] ss:$16 sps:$4 sm:$0xff]   ;;  %v9975_v33 = vld [vmem:[%s12136_s2 + $0x2c] ss:$16 sps:$4 sm:$0xff]  }
 0x15c   :  { %12408 = vst [vmem:[#allocation114_spill] sm:$0xff] %v9969_v62  ;;  %12409 = vst [vmem:[#allocation115_spill] sm:$0xff] %v9975_v33 }
 0x15d   :  { %12406 = vst [vmem:[#allocation112_spill] sm:$0xff] %v9950_v17  ;;  %1293 = vmatmul.mubr.bf16.vlgmr.msra.gmra.mrb[12].mxu0 %v9950_v17  ;;  %1336 = vmatmul.mubr.bf16.vlgmr.msra.gmra.mrb[12].mxu1 %v9950_v17  ;;  %v9983_v17 = vld [vmem:[%s12136_s2 + $0x20] ss:$16 sps:$4 sm:$0xff]  }
 0x15e   :  { %1453 = vmatpush1.bf16.msra.mxu0 %v9957_v18  ;;  %1496 = vmatpush1.bf16.msra.mxu1 %v9963_v12  ;;  %12410 = vst [vmem:[#allocation116_spill] sm:$0xff] %v9983_v17 }
 0x15f   :  { %1454 = vmatprep.subr.bf16.mxu0 %v9969_v62  ;;  %1497 = vmatprep.subr.bf16.mxu1 %v9975_v33 }
 0x160   :  { %1484 = vmatprep.mubr.bf16.mxu0 %v12405_v15  ;;  %1527 = vmatprep.mubr.bf16.mxu1 %v12405_v15 }
 0x162   :  { %1455 = vmatpush1.bf16.msra.mxu0 %v9983_v17  ;;  %1498 = vmatpush1.bf16.msra.mxu1 %v9989_v63 }
 0x163   :  { %1456 = vmatprep.subr.bf16.mxu0 %v9995_v40  ;;  %1499 = vmatprep.subr.bf16.mxu1 %v10001_v37 }
 0x166   :  { %1457 = vmatpush1.bf16.msra.mxu0 %v10007_v31  ;;  %1500 = vmatpush1.bf16.msra.mxu1 %v10013_v39 }
 0x167   :  { %1458 = vmatprep.subr.bf16.mxu0 %v10019_v7  ;;  %1501 = vmatprep.subr.bf16.mxu1 %v10025_v52 }
 0x16a   :  { %1459 = vmatpush1.bf16.msra.mxu0 %v10031_v8  ;;  %1502 = vmatpush1.bf16.msra.mxu1 %v10037_v21  ;;  %v10061_v21 = vld [vmem:[%s12136_s2 + $0x88] ss:$16 sps:$4 sm:$0xff]  }
 0x16b   :  { %1460 = vmatprep.subr.bf16.mxu0 %v10043_v49  ;;  %1503 = vmatprep.subr.bf16.mxu1 %v10049_v38  ;;  %12423 = vst [vmem:[#allocation129_spill] sm:$0xff] %v10061_v21  ;;  %v10067_v49 = vld [vmem:[%s12136_s2 + $0xa4] ss:$16 sps:$4 sm:$0xff]   ;;  %v10073_v38 = vld [vmem:[%s12136_s2 + $0xac] ss:$16 sps:$4 sm:$0xff]  }
 0x16c   :  { %12424 = vst [vmem:[#allocation130_spill] sm:$0xff] %v10067_v49  ;;  %12425 = vst [vmem:[#allocation131_spill] sm:$0xff] %v10073_v38 }
 0x16e   :  { %1461 = vmatpush1.bf16.msra.mxu0 %v10055_v5  ;;  %1504 = vmatpush1.bf16.msra.mxu1 %v10061_v21  ;;  %v10079_v5 = vld [vmem:[%s12136_s2 + $0xa0] ss:$16 sps:$4 sm:$0xff]   ;;  %v10085_v21 = vld [vmem:[%s12136_s2 + $0xa8] ss:$16 sps:$4 sm:$0xff]  }
 0x16f   :  { %1462 = vmatprep.subr.bf16.mxu0 %v10067_v49  ;;  %1505 = vmatprep.subr.bf16.mxu1 %v10073_v38  ;;  %12426 = vst [vmem:[#allocation132_spill] sm:$0xff] %v10079_v5  ;;  %12427 = vst [vmem:[#allocation133_spill] sm:$0xff] %v10085_v21  ;;  %v10091_v49 = vld [vmem:[%s12136_s2 + $0xc4] ss:$16 sps:$4 sm:$0xff]   ;;  %v10097_v38 = vld [vmem:[%s12136_s2 + $0xcc] ss:$16 sps:$4 sm:$0xff]  }
 0x170   :  { %12428 = vst [vmem:[#allocation134_spill] sm:$0xff] %v10091_v49  ;;  %12429 = vst [vmem:[#allocation135_spill] sm:$0xff] %v10097_v38 }
 0x172   :  { %1463 = vmatpush1.bf16.msra.mxu0 %v10079_v5  ;;  %1506 = vmatpush1.bf16.msra.mxu1 %v10085_v21  ;;  %v10103_v5 = vld [vmem:[%s12136_s2 + $0xc0] ss:$16 sps:$4 sm:$0xff]   ;;  %v10109_v21 = vld [vmem:[%s12136_s2 + $0xc8] ss:$16 sps:$4 sm:$0xff]  }
 0x173   :  { %1464 = vmatprep.subr.bf16.mxu0 %v10091_v49  ;;  %1507 = vmatprep.subr.bf16.mxu1 %v10097_v38  ;;  %12430 = vst [vmem:[#allocation136_spill] sm:$0xff] %v10103_v5  ;;  %12431 = vst [vmem:[#allocation137_spill] sm:$0xff] %v10109_v21  ;;  %v10115_v49 = vld [vmem:[%s12136_s2 + $0xe4] ss:$16 sps:$4 sm:$0xff]   ;;  %v10121_v38 = vld [vmem:[%s12136_s2 + $0xec] ss:$16 sps:$4 sm:$0xff]  }
 0x174   :  { %12432 = vst [vmem:[#allocation138_spill] sm:$0xff] %v10115_v49  ;;  %12433 = vst [vmem:[#allocation139_spill] sm:$0xff] %v10121_v38 }
 0x176   :  { %1465 = vmatpush1.bf16.msra.mxu0 %v10103_v5  ;;  %1508 = vmatpush1.bf16.msra.mxu1 %v10109_v21  ;;  %v10127_v5 = vld [vmem:[%s12136_s2 + $0xe0] ss:$16 sps:$4 sm:$0xff]   ;;  %v10133_v21 = vld [vmem:[%s12136_s2 + $0xe8] ss:$16 sps:$4 sm:$0xff]  }
 0x177   :  { %1466 = vmatprep.subr.bf16.mxu0 %v10115_v49  ;;  %1509 = vmatprep.subr.bf16.mxu1 %v10121_v38  ;;  %12434 = vst [vmem:[#allocation140_spill] sm:$0xff] %v10127_v5  ;;  %12435 = vst [vmem:[#allocation141_spill] sm:$0xff] %v10133_v21  ;;  %v10139_v49 = vld [vmem:[%s12136_s2 + $0x104] ss:$16 sps:$4 sm:$0xff]   ;;  %v10145_v38 = vld [vmem:[%s12136_s2 + $0x10c] ss:$16 sps:$4 sm:$0xff]  }
 0x178   :  { %12436 = vst [vmem:[#allocation142_spill] sm:$0xff] %v10139_v49  ;;  %12437 = vst [vmem:[#allocation143_spill] sm:$0xff] %v10145_v38 }
 0x17a   :  { %1467 = vmatpush1.bf16.msra.mxu0 %v10127_v5  ;;  %1510 = vmatpush1.bf16.msra.mxu1 %v10133_v21 }
 0x17b   :  { %1546 = vmatprep.subr.bf16.mxu0 %v10139_v49  ;;  %1589 = vmatprep.subr.bf16.mxu1 %v10145_v38 }
 0x210   :  { %v1200_v5 = vpop.f32.mrb[8].mxu0  ;;  %v1243_v8 = vpop.f32.mrb[8].mxu1 }
 0x211   :  { %v1252_v52 = vadd.f32 %v1200_v5, %v9153_v58  ;;  %v1254_v21 = vadd.f32 %v1243_v8, %v9156_v59  ;;  %v1202_v7 = vpop.f32.mrb[9].mxu0  ;;  %v1245_v39 = vpop.f32.mrb[9].mxu1 }
 0x212   :  { %v1253_v31 = vadd.f32 %v1202_v7, %v9159_v60  ;;  %v1255_v37 = vadd.f32 %v1245_v39, %v9162_v61  ;;  %v1204_v49 = vpop.f32.mrb[10].mxu0  ;;  %v1247_v40 = vpop.f32.mrb[10].mxu1 }
 0x213   :  { %v6470_v63 = vmul.f32 -1.442695, %v1252_v52  ;;  %v1256_v17 = vadd.f32 %v1204_v49, %v9183_v42  ;;  %v1258_v33 = vadd.f32 %v1247_v40, %v9186_v43  ;;  %v1206_v38 = vpop.f32.mrb[11].mxu0  ;;  %v1249_v62 = vpop.f32.mrb[11].mxu1 }
 0x214   :  { %v6471_v12 = vmul.f32 -1.442695, %v1253_v31  ;;  %v1257_v58 = vadd.f32 %v1206_v38, %v9189_v44  ;;  %v1259_v59 = vadd.f32 %v1249_v62, %v9192_v45  ;;  %v6474_v61 = vmul.f32 -1.442695, %v1255_v37 }
 0x215   :  { %7634 = vpow2.f32 %v6470_v63  ;;  %v6472_v5 = vmul.f32 -1.442695, %v1256_v17 }
 0x216   :  { %7636 = vpow2.f32 %v6471_v12  ;;  %v6473_v60 = vmul.f32 -1.442695, %v1257_v58  ;;  %v6475_v43 = vmul.f32 -1.442695, %v1259_v59 }
 0x217   :  { %7638 = vpow2.f32 %v6472_v5 }
 0x218   :  { %7640 = vpow2.f32 %v6473_v60 }
 0x219   :  { %7642 = vtanh.f32 %v1254_v21 }
 0x21a   :  { %7644 = vpow2.f32 %v6474_v61 }
 0x21b   :  { %7646 = vtanh.f32 %v1258_v33 }
 0x21f   :  { %v7635_v39 = vpop.eup %7634 }
 0x220   :  { %v7637_v52 = vpop.eup %7636  ;;  %v1366_v42 = vadd.f32 1.0, %v7635_v39 }
 0x221   :  { %v1367_v49 = vadd.f32 1.0, %v7637_v52  ;;  %v7639_v7 = vpop.eup %7638 }
 0x222   :  { %7648 = vrcp.f32 %v1366_v42  ;;  %v1368_v44 = vadd.f32 1.0, %v7639_v7  ;;  %v7641_v45 = vpop.eup %7640 }
 0x223   :  { %7650 = vrcp.f32 %v1367_v49  ;;  %v1369_v38 = vadd.f32 1.0, %v7641_v45  ;;  %v7643_v8 = vpop.eup %7642  ;;  %v12439_v45 = vld [vmem:[#allocation10_spill] sm:$0xff] }
 0x224   :  { %7652 = vpow2.f32 %v6475_v43  ;;  %v7645_v31 = vpop.eup %7644 }
 0x225   :  { %7654 = vrcp.f32 %v1368_v44  ;;  %v7647_v37 = vpop.eup %7646  ;;  %v1386_v33 = vadd.f32 1.0, %v7645_v31  ;;  %v12438_v44 = vld [vmem:[#allocation9_spill] sm:$0xff] }
 0x226   :  { %7656 = vrcp.f32 %v1369_v38 }
 0x227   :  { %7658 = vrcp.f32 %v1386_v33 }
 0x22c   :  { %v7649_v63 = vpop.eup %7648 }
 0x22d   :  { %v7651_v21 = vpop.eup %7650  ;;  %v1394_v40 = vmul.f32 %v7649_v63, %v7643_v8 }
 0x22e   :  { %v7653_v17 = vpop.eup %7652  ;;  %v1392_v12 = vmul.f32 %v7651_v21, %v9725_v46  ;;  %v12440_v21 = vld [vmem:[#allocation11_spill] sm:$0xff] }
 0x22f   :  { %v7655_v62 = vpop.eup %7654  ;;  %v1387_v60 = vadd.f32 1.0, %v7653_v17  ;;  %v12441_v17 = vld [vmem:[#allocation12_spill] sm:$0xff] }
 0x230   :  { %v10157_v58 = vadd.f32 %v1394_v40, %v1392_v12  ;;  %v1395_v59 = vmul.f32 %v7655_v62, %v7647_v37  ;;  %v7657_v5 = vpop.eup %7656  ;;  %v1294_v61 = vpop.f32.mrb[12].mxu0  ;;  %v12442_v62 = vld [vmem:[#allocation13_spill] sm:$0xff] }
 0x231   :  { %v1337_v39 = vpop.f32.mrb[12].mxu1  ;;  %v1393_v52 = vmul.f32 %v7657_v5, %v9735_v50  ;;  %v1346_v42 = vadd.f32 %v1294_v61, %v9197_v47  ;;  %v1296_v49 = vpop.f32.mrb[13].mxu0  ;;  %v12443_v61 = vld [vmem:[#allocation14_spill] sm:$0xff] }
 0x232   :  { %v1348_v43 = vadd.f32 %v1337_v39, %v9200_v48  ;;  %v1339_v7 = vpop.f32.mrb[13].mxu1  ;;  %v1347_v46 = vadd.f32 %v1296_v49, %v12438_v44  ;;  %v1298_v8 = vpop.f32.mrb[14].mxu0  ;;  %7660 = vtanh.f32 %v10157_v58 }
 0x233   :  { %v1349_v38 = vadd.f32 %v1339_v7, %v12439_v45  ;;  %v1341_v31 = vpop.f32.mrb[14].mxu1  ;;  %v10165_v37 = vadd.f32 %v1395_v59, %v1393_v52  ;;  %v6476_v63 = vmul.f32 -1.442695, %v1346_v42  ;;  %v1350_v50 = vadd.f32 %v1298_v8, %v12440_v21  ;;  %v1300_v40 = vpop.f32.mrb[15].mxu0 }
 0x234   :  { %v1343_v47 = vpop.f32.mrb[15].mxu1  ;;  %7662 = vrcp.f32 %v1387_v60  ;;  %v6477_v48 = vmul.f32 -1.442695, %v1347_v46  ;;  %v1352_v12 = vadd.f32 %v1341_v31, %v12441_v17  ;;  %v1351_v33 = vadd.f32 %v1300_v40, %v12442_v62  ;;  %v7659_v52 = vpop.eup %7658 }
 0x235   :  { %7664 = vtanh.f32 %v10165_v37  ;;  %v6478_v5 = vmul.f32 -1.442695, %v1350_v50  ;;  %v1353_v39 = vadd.f32 %v1343_v47, %v12443_v61  ;;  %v6480_v49 = vmul.f32 -1.442695, %v1349_v38 }
 0x236   :  { %7666 = vpow2.f32 %v6476_v63  ;;  %v6479_v59 = vmul.f32 -1.442695, %v1351_v33 }
 0x237   :  { %7668 = vpow2.f32 %v6477_v48  ;;  %v6481_v21 = vmul.f32 -1.442695, %v1353_v39 }
 0x238   :  { %7670 = vpow2.f32 %v6478_v5 }
 0x239   :  { %7672 = vpow2.f32 %v6479_v59 }
 0x23a   :  { %7674 = vtanh.f32 %v1348_v43 }
 0x23b   :  { %7676 = vpow2.f32 %v6480_v49 }
 0x23c   :  { %v7661_v42 = vpop.eup %7660  ;;  %7678 = vtanh.f32 %v1352_v12 }
 0x23d   :  { %v1400_v46 = vmul.f32 %v7661_v42, %v7659_v52 }
 0x23e   :  { %v7663_v7 = vpop.eup %7662 }
 0x23f   :  { %v7665_v60 = vpop.eup %7664 }
 0x240   :  { %v7667_v44 = vpop.eup %7666  ;;  %v1401_v45 = vmul.f32 %v7665_v60, %v7663_v7 }
 0x241   :  { %v7669_v8 = vpop.eup %7668  ;;  %v1414_v31 = vadd.f32 1.0, %v7667_v44 }
 0x242   :  { %v1415_v50 = vadd.f32 1.0, %v7669_v8  ;;  %v10172_v63 = vpack.c.bf16 %v1401_v45, %v1400_v46  ;;  %v7671_v40 = vpop.eup %7670 }
 0x243   :  { %7680 = vrcp.f32 %v1414_v31  ;;  %v1416_v47 = vadd.f32 1.0, %v7671_v40  ;;  %v7673_v38 = vpop.eup %7672  ;;  %v12446_v40 = vld [vmem:[#allocation113_spill] sm:$0xff] }
 0x244   :  { %12444 = vst [vmem:[#allocation9_spill] sm:$0xff] %v10172_v63  ;;  %7682 = vrcp.f32 %v1415_v50  ;;  %1485 = vmatmul.mubr.bf16.vlgmr.msra.gmra.mrb[16].mxu0 %v10172_v63  ;;  %1528 = vmatmul.mubr.bf16.vlgmr.msra.gmra.mrb[16].mxu1 %v10172_v63  ;;  %v1417_v43 = vadd.f32 1.0, %v7673_v38  ;;  %v7675_v48 = vpop.eup %7674  ;;  %v12448_v38 = vld [vmem:[#allocation115_spill] sm:$0xff]  ;;  %v12470_v63 = vld [vmem:[#allocation137_spill] sm:$0xff] }
 0x245   :  { %7684 = vpow2.f32 %v6481_v21  ;;  %1547 = vmatpush1.bf16.msra.mxu0 %v9753_v32  ;;  %1590 = vmatpush1.bf16.msra.mxu1 %v9759_v20  ;;  %v7677_v17 = vpop.eup %7676 }
 0x246   :  { %7686 = vrcp.f32 %v1416_v47  ;;  %1548 = vmatprep.subr.bf16.mxu0 %v9765_v23  ;;  %1591 = vmatprep.subr.bf16.mxu1 %v9771_v27  ;;  %v7679_v12 = vpop.eup %7678  ;;  %v1434_v52 = vadd.f32 1.0, %v7677_v17  ;;  %v12447_v47 = vld [vmem:[#allocation114_spill] sm:$0xff] }
 0x247   :  { %1578 = vmatprep.mubr.bf16.mxu0 %v12405_v15  ;;  %1621 = vmatprep.mubr.bf16.mxu1 %v12405_v15  ;;  %7688 = vrcp.f32 %v1417_v43  ;;  %v12449_v43 = vld [vmem:[#allocation116_spill] sm:$0xff]  ;;  %v12451_v17 = vld [vmem:[#allocation118_spill] sm:$0xff] }
 0x248   :  { %7690 = vrcp.f32 %v1434_v52  ;;  %v12459_v52 = vld [vmem:[#allocation126_spill] sm:$0xff] }
 0x249   :  { %1549 = vmatpush1.bf16.msra.mxu0 %v9779_v22  ;;  %1592 = vmatpush1.bf16.msra.mxu1 %v9785_v53 }
 0x24a   :  { %1550 = vmatprep.subr.bf16.mxu0 %v9791_v24  ;;  %1593 = vmatprep.subr.bf16.mxu1 %v9797_v55 }
 0x24d   :  { %v7681_v62 = vpop.eup %7680  ;;  %1551 = vmatpush1.bf16.msra.mxu0 %v9803_v51  ;;  %1594 = vmatpush1.bf16.msra.mxu1 %v9809_v28 }
 0x24e   :  { %v7683_v33 = vpop.eup %7682  ;;  %v1442_v5 = vmul.f32 %v7681_v62, %v7675_v48  ;;  %1552 = vmatprep.subr.bf16.mxu0 %v9815_v13  ;;  %1595 = vmatprep.subr.bf16.mxu1 %v9821_v25  ;;  %v12450_v48 = vld [vmem:[#allocation117_spill] sm:$0xff]  ;;  %v12453_v62 = vld [vmem:[#allocation120_spill] sm:$0xff] }
 0x24f   :  { %v7685_v61 = vpop.eup %7684  ;;  %v1440_v39 = vmul.f32 %v7683_v33, %v9824_v14  ;;  %v12454_v33 = vld [vmem:[#allocation121_spill] sm:$0xff] }
 0x250   :  { %v7687_v59 = vpop.eup %7686  ;;  %v1435_v60 = vadd.f32 1.0, %v7685_v61  ;;  %v12456_v61 = vld [vmem:[#allocation123_spill] sm:$0xff] }
 0x251   :  { %v10191_v42 = vadd.f32 %v1442_v5, %v1440_v39  ;;  %v1443_v49 = vmul.f32 %v7687_v59, %v7679_v12  ;;  %1553 = vmatpush1.bf16.msra.mxu0 %v9829_v9  ;;  %1596 = vmatpush1.bf16.msra.mxu1 %v9835_v3  ;;  %v7689_v7 = vpop.eup %7688  ;;  %v12452_v12 = vld [vmem:[#allocation119_spill] sm:$0xff]  ;;  %v12455_v5 = vld [vmem:[#allocation122_spill] sm:$0xff]  ;;  %v12457_v39 = vld [vmem:[#allocation124_spill] sm:$0xff] }
 0x252   :  { %1554 = vmatprep.subr.bf16.mxu0 %v9841_v10  ;;  %1597 = vmatprep.subr.bf16.mxu1 %v9847_v30  ;;  %v1441_v44 = vmul.f32 %v7689_v7, %v9851_v56  ;;  %v7691_v56 = vpop.eup %7690  ;;  %v12458_v59 = vld [vmem:[#allocation125_spill] sm:$0xff]  ;;  %v12461_v7 = vld [vmem:[#allocation128_spill] sm:$0xff] }
 0x253   :  { %7692 = vtanh.f32 %v10191_v42 }
 0x254   :  { %v10199_v14 = vadd.f32 %v1443_v49, %v1441_v44  ;;  %7694 = vrcp.f32 %v1435_v60  ;;  %v12460_v49 = vld [vmem:[#allocation127_spill] sm:$0xff]  ;;  %v12462_v60 = vld [vmem:[#allocation129_spill] sm:$0xff]  ;;  %v12463_v44 = vld [vmem:[#allocation130_spill] sm:$0xff] }
 0x255   :  { %1555 = vmatpush1.bf16.msra.mxu0 %v9856_v11  ;;  %1598 = vmatpush1.bf16.msra.mxu1 %v9862_v54 }
 0x256   :  { %1556 = vmatprep.subr.bf16.mxu0 %v9869_v29  ;;  %1599 = vmatprep.subr.bf16.mxu1 %v9875_v36  ;;  %7696 = vtanh.f32 %v10199_v14 }
 0x259   :  { %1557 = vmatpush1.bf16.msra.mxu0 %v9881_v2  ;;  %1600 = vmatpush1.bf16.msra.mxu1 %v9887_v41 }
 0x25a   :  { %1558 = vmatprep.subr.bf16.mxu0 %v9893_v16  ;;  %1601 = vmatprep.subr.bf16.mxu1 %v9899_v19 }
 0x25d   :  { %1559 = vmatpush1.bf16.msra.mxu0 %v9905_v26  ;;  %1602 = vmatpush1.bf16.msra.mxu1 %v9911_v34  ;;  %v7693_v46 = vpop.eup %7692 }
 0x25e   :  { %1560 = vmatprep.subr.bf16.mxu0 %v9917_v4  ;;  %1603 = vmatprep.subr.bf16.mxu1 %v9923_v57  ;;  %v7695_v45 = vpop.eup %7694  ;;  %v1448_v31 = vmul.f32 %v7693_v46, %v7691_v56  ;;  %v12464_v56 = vld [vmem:[#allocation131_spill] sm:$0xff]  ;;  %v12465_v46 = vld [vmem:[#allocation132_spill] sm:$0xff] }
 0x260   :  { %v7697_v8 = vpop.eup %7696 }
 0x261   :  { %1561 = vmatpush1.bf16.msra.mxu0 %v9929_v6  ;;  %1604 = vmatpush1.bf16.msra.mxu1 %v9935_v0  ;;  %v1449_v21 = vmul.f32 %v7697_v8, %v7695_v45  ;;  %v12466_v45 = vld [vmem:[#allocation133_spill] sm:$0xff]  ;;  %v12467_v8 = vld [vmem:[#allocation134_spill] sm:$0xff] }
 0x262   :  { %1738 = vmatprep.subr.bf16.mxu0 %v9941_v1  ;;  %1781 = vmatprep.subr.bf16.mxu1 %v9947_v35 }
 0x263   :  { %v10218_v50 = vpack.c.bf16 %v1449_v21, %v1448_v31  ;;  %v12468_v31 = vld [vmem:[#allocation135_spill] sm:$0xff]  ;;  %v12469_v21 = vld [vmem:[#allocation136_spill] sm:$0xff] }
 0x265   :  { %12445 = vst [vmem:[#allocation10_spill] sm:$0xff] %v10218_v50  ;;  %1579 = vmatmul.mubr.bf16.vlgmr.msra.gmra.mrb[20].mxu0 %v10218_v50  ;;  %1622 = vmatmul.mubr.bf16.vlgmr.msra.gmra.mrb[20].mxu1 %v10218_v50  ;;  %v12471_v50 = vld [vmem:[#allocation138_spill] sm:$0xff] }
 0x266   :  { %1739 = vmatpush1.bf16.msra.mxu0 %v9957_v18  ;;  %1782 = vmatpush1.bf16.msra.mxu1 %v12446_v40 }
 0x267   :  { %1740 = vmatprep.subr.bf16.mxu0 %v12447_v47  ;;  %1783 = vmatprep.subr.bf16.mxu1 %v12448_v38 }
 0x268   :  { %1770 = vmatprep.mubr.bf16.mxu0 %v12405_v15  ;;  %1813 = vmatprep.mubr.bf16.mxu1 %v12405_v15 }
 0x26a   :  { %1741 = vmatpush1.bf16.msra.mxu0 %v12449_v43  ;;  %1784 = vmatpush1.bf16.msra.mxu1 %v12450_v48  ;;  %v12483_v43 = vld [vmem:[#allocation21_spill] sm:$0xff] }
 0x26b   :  { %1742 = vmatprep.subr.bf16.mxu0 %v12451_v17  ;;  %1785 = vmatprep.subr.bf16.mxu1 %v12452_v12 }
 0x26e   :  { %1743 = vmatpush1.bf16.msra.mxu0 %v12453_v62  ;;  %1786 = vmatpush1.bf16.msra.mxu1 %v12454_v33 }
 0x26f   :  { %1744 = vmatprep.subr.bf16.mxu0 %v12455_v5  ;;  %1787 = vmatprep.subr.bf16.mxu1 %v12456_v61  ;;  %v12480_v61 = vld [vmem:[#allocation18_spill] sm:$0xff] }
 0x272   :  { %1745 = vmatpush1.bf16.msra.mxu0 %v12457_v39  ;;  %1788 = vmatpush1.bf16.msra.mxu1 %v12458_v59  ;;  %v12479_v39 = vld [vmem:[#allocation17_spill] sm:$0xff] }
 0x273   :  { %1746 = vmatprep.subr.bf16.mxu0 %v12459_v52  ;;  %1789 = vmatprep.subr.bf16.mxu1 %v12460_v49  ;;  %v12477_v49 = vld [vmem:[#allocation15_spill] sm:$0xff]  ;;  %v12478_v52 = vld [vmem:[#allocation16_spill] sm:$0xff] }
 0x276   :  { %1747 = vmatpush1.bf16.msra.mxu0 %v12461_v7  ;;  %1790 = vmatpush1.bf16.msra.mxu1 %v12462_v60  ;;  %v12472_v7 = vld [vmem:[#allocation139_spill] sm:$0xff]  ;;  %v12473_v60 = vld [vmem:[#allocation140_spill] sm:$0xff] }
 0x277   :  { %1748 = vmatprep.subr.bf16.mxu0 %v12463_v44  ;;  %1791 = vmatprep.subr.bf16.mxu1 %v12464_v56  ;;  %v12474_v44 = vld [vmem:[#allocation141_spill] sm:$0xff]  ;;  %v12475_v56 = vld [vmem:[#allocation142_spill] sm:$0xff] }
 0x27a   :  { %1749 = vmatpush1.bf16.msra.mxu0 %v12465_v46  ;;  %1792 = vmatpush1.bf16.msra.mxu1 %v12466_v45  ;;  %v12476_v46 = vld [vmem:[#allocation143_spill] sm:$0xff] }
 0x27b   :  { %1750 = vmatprep.subr.bf16.mxu0 %v12467_v8  ;;  %1793 = vmatprep.subr.bf16.mxu1 %v12468_v31 }
 0x27e   :  { %1751 = vmatpush1.bf16.msra.mxu0 %v12469_v21  ;;  %1794 = vmatpush1.bf16.msra.mxu1 %v12470_v63 }
 0x27f   :  { %1752 = vmatprep.subr.bf16.mxu0 %v12471_v50  ;;  %1795 = vmatprep.subr.bf16.mxu1 %v12472_v7 }
 0x282   :  { %1753 = vmatpush1.bf16.msra.mxu0 %v12473_v60  ;;  %1796 = vmatpush1.bf16.msra.mxu1 %v12474_v44  ;;  %v12481_v44 = vld [vmem:[#allocation19_spill] sm:$0xff] }
 0x283   :  { %1832 = vmatprep.subr.bf16.mxu0 %v12475_v56  ;;  %1875 = vmatprep.subr.bf16.mxu1 %v12476_v46  ;;  %v12482_v56 = vld [vmem:[#allocation20_spill] sm:$0xff] }
 0x317   :  { %v1486_v45 = vpop.f32.mrb[16].mxu0  ;;  %v1529_v8 = vpop.f32.mrb[16].mxu1 }
 0x318   :  { %v1538_v31 = vadd.f32 %v1486_v45, %v12477_v49  ;;  %v1540_v21 = vadd.f32 %v1529_v8, %v12478_v52  ;;  %v1488_v59 = vpop.f32.mrb[17].mxu0  ;;  %v1531_v63 = vpop.f32.mrb[17].mxu1  ;;  %v12484_v45 = vld [vmem:[#allocation22_spill] sm:$0xff] }
 0x319   :  { %v1539_v50 = vadd.f32 %v1488_v59, %v12479_v39  ;;  %v1541_v7 = vadd.f32 %v1531_v63, %v12480_v61  ;;  %v1490_v5 = vpop.f32.mrb[18].mxu0  ;;  %v1533_v60 = vpop.f32.mrb[18].mxu1 }
 0x31a   :  { %v6482_v33 = vmul.f32 -1.442695, %v1538_v31  ;;  %v1542_v62 = vadd.f32 %v1490_v5, %v12481_v44  ;;  %v1544_v12 = vadd.f32 %v1533_v60, %v12482_v56  ;;  %v1492_v46 = vpop.f32.mrb[19].mxu0  ;;  %v1535_v17 = vpop.f32.mrb[19].mxu1 }
 0x31b   :  { %v6483_v48 = vmul.f32 -1.442695, %v1539_v50  ;;  %v1543_v49 = vadd.f32 %v1492_v46, %v12483_v43  ;;  %v1545_v52 = vadd.f32 %v1535_v17, %v12484_v45  ;;  %v6486_v63 = vmul.f32 -1.442695, %v1541_v7 }
 0x31c   :  { %7698 = vpow2.f32 %v6482_v33  ;;  %v6484_v8 = vmul.f32 -1.442695, %v1542_v62 }
 0x31d   :  { %7700 = vpow2.f32 %v6483_v48  ;;  %v6485_v39 = vmul.f32 -1.442695, %v1543_v49  ;;  %v6487_v60 = vmul.f32 -1.442695, %v1545_v52 }
 0x31e   :  { %7702 = vpow2.f32 %v6484_v8 }
 0x31f   :  { %7704 = vpow2.f32 %v6485_v39 }
 0x320   :  { %7706 = vtanh.f32 %v1540_v21 }
 0x321   :  { %7708 = vpow2.f32 %v6486_v63 }
 0x322   :  { %7710 = vtanh.f32 %v1544_v12 }
 0x326   :  { %v7699_v61 = vpop.eup %7698 }
 0x327   :  { %v7701_v59 = vpop.eup %7700  ;;  %v1652_v5 = vadd.f32 1.0, %v7699_v61 }
 0x328   :  { %v1653_v44 = vadd.f32 1.0, %v7701_v59  ;;  %v7703_v50 = vpop.eup %7702 }
 0x329   :  { %7712 = vrcp.f32 %v1652_v5  ;;  %v1654_v43 = vadd.f32 1.0, %v7703_v50  ;;  %v7705_v17 = vpop.eup %7704  ;;  %v12486_v50 = vld [vmem:[#allocation24_spill] sm:$0xff] }
 0x32a   :  { %7714 = vrcp.f32 %v1653_v44  ;;  %v1655_v48 = vadd.f32 1.0, %v7705_v17  ;;  %v7707_v62 = vpop.eup %7706 }
 0x32b   :  { %7716 = vpow2.f32 %v6487_v60  ;;  %v7709_v33 = vpop.eup %7708  ;;  %v12485_v60 = vld [vmem:[#allocation23_spill] sm:$0xff] }
 0x32c   :  { %7718 = vrcp.f32 %v1654_v43  ;;  %v7711_v7 = vpop.eup %7710  ;;  %v1672_v12 = vadd.f32 1.0, %v7709_v33 }
 0x32d   :  { %7720 = vrcp.f32 %v1655_v48 }
 0x32e   :  { %7722 = vrcp.f32 %v1672_v12 }
 0x333   :  { %v7713_v56 = vpop.eup %7712 }
 0x334   :  { %v7715_v46 = vpop.eup %7714  ;;  %v1680_v31 = vmul.f32 %v7713_v56, %v7707_v62  ;;  %v12488_v62 = vld [vmem:[#allocation25_spill] sm:$0xff] }
 0x335   :  { %v7717_v21 = vpop.eup %7716  ;;  %v1678_v49 = vmul.f32 %v7715_v46, %v10157_v58 }
 0x336   :  { %v7719_v45 = vpop.eup %7718  ;;  %v1673_v63 = vadd.f32 1.0, %v7717_v21  ;;  %v12490_v21 = vld [vmem:[#allocation27_spill] sm:$0xff] }
 0x337   :  { %v10265_v52 = vadd.f32 %v1680_v31, %v1678_v49  ;;  %v1681_v8 = vmul.f32 %v7719_v45, %v7711_v7  ;;  %v7721_v39 = vpop.eup %7720  ;;  %v12489_v7 = vld [vmem:[#allocation26_spill] sm:$0xff]  ;;  %v12491_v45 = vld [vmem:[#allocation28_spill] sm:$0xff] }
 0x338   :  { %v1679_v61 = vmul.f32 %v7721_v39, %v10165_v37  ;;  %v1580_v59 = vpop.f32.mrb[20].mxu0  ;;  %v1623_v5 = vpop.f32.mrb[20].mxu1 }
 0x339   :  { %v1632_v44 = vadd.f32 %v1580_v59, %v12485_v60  ;;  %v1634_v43 = vadd.f32 %v1623_v5, %v12486_v50  ;;  %v1582_v17 = vpop.f32.mrb[21].mxu0  ;;  %v1625_v48 = vpop.f32.mrb[21].mxu1  ;;  %7724 = vtanh.f32 %v10265_v52  ;;  %v12492_v60 = vld [vmem:[#allocation29_spill] sm:$0xff]  ;;  %v12493_v50 = vld [vmem:[#allocation30_spill] sm:$0xff] }
 0x33a   :  { %v10271_v58 = vadd.f32 %v1681_v8, %v1679_v61  ;;  %v1633_v33 = vadd.f32 %v1582_v17, %v12488_v62  ;;  %v1635_v56 = vadd.f32 %v1625_v48, %v12489_v7  ;;  %v1584_v46 = vpop.f32.mrb[22].mxu0  ;;  %v1627_v31 = vpop.f32.mrb[22].mxu1  ;;  %7726 = vrcp.f32 %v1673_v63 }
 0x33b   :  { %v6488_v37 = vmul.f32 -1.442695, %v1632_v44  ;;  %v1636_v49 = vadd.f32 %v1584_v46, %v12490_v21  ;;  %v1638_v12 = vadd.f32 %v1627_v31, %v12491_v45  ;;  %v1586_v39 = vpop.f32.mrb[23].mxu0  ;;  %v1629_v59 = vpop.f32.mrb[23].mxu1 }
 0x33c   :  { %12487 = vst [vmem:[#allocation11_spill] sm:$0xff] %v10271_v58  ;;  %7728 = vtanh.f32 %v10271_v58  ;;  %v6489_v5 = vmul.f32 -1.442695, %v1633_v33  ;;  %v1637_v8 = vadd.f32 %v1586_v39, %v12492_v60  ;;  %v1639_v17 = vadd.f32 %v1629_v59, %v12493_v50  ;;  %v7723_v63 = vpop.eup %7722  ;;  %v12516_v50 = vld [vmem:[#allocation136_spill] sm:$0xff] }
 0x33d   :  { %7730 = vpow2.f32 %v6488_v37  ;;  %v6490_v61 = vmul.f32 -1.442695, %v1636_v49  ;;  %v6492_v62 = vmul.f32 -1.442695, %v1635_v56 }
 0x33e   :  { %7732 = vpow2.f32 %v6489_v5  ;;  %v6491_v48 = vmul.f32 -1.442695, %v1637_v8  ;;  %v6493_v37 = vmul.f32 -1.442695, %v1639_v17  ;;  %v12517_v17 = vld [vmem:[#allocation137_spill] sm:$0xff] }
 0x33f   :  { %7734 = vpow2.f32 %v6490_v61  ;;  %v12515_v61 = vld [vmem:[#allocation135_spill] sm:$0xff] }
 0x340   :  { %7736 = vpow2.f32 %v6491_v48  ;;  %v12518_v48 = vld [vmem:[#allocation138_spill] sm:$0xff] }
 0x341   :  { %7738 = vtanh.f32 %v1634_v43 }
 0x342   :  { %7740 = vpow2.f32 %v6492_v62  ;;  %v12521_v62 = vld [vmem:[#allocation141_spill] sm:$0xff] }
 0x343   :  { %v7725_v44 = vpop.eup %7724  ;;  %7742 = vtanh.f32 %v1638_v12 }
 0x344   :  { %v7727_v7 = vpop.eup %7726  ;;  %v1686_v21 = vmul.f32 %v7725_v44, %v7723_v63  ;;  %v12519_v63 = vld [vmem:[#allocation139_spill] sm:$0xff]  ;;  %v12520_v44 = vld [vmem:[#allocation140_spill] sm:$0xff] }
 0x346   :  { %v7729_v46 = vpop.eup %7728 }
 0x347   :  { %v7731_v31 = vpop.eup %7730  ;;  %v1687_v45 = vmul.f32 %v7729_v46, %v7727_v7  ;;  %v12522_v7 = vld [vmem:[#allocation142_spill] sm:$0xff]  ;;  %v12523_v46 = vld [vmem:[#allocation143_spill] sm:$0xff] }
 0x348   :  { %v7733_v33 = vpop.eup %7732  ;;  %v1700_v58 = vadd.f32 1.0, %v7731_v31 }
 0x349   :  { %v1701_v49 = vadd.f32 1.0, %v7733_v33  ;;  %v10280_v39 = vpack.c.bf16 %v1687_v45, %v1686_v21  ;;  %v7735_v59 = vpop.eup %7734  ;;  %v12524_v45 = vld [vmem:[#allocation31_spill] sm:$0xff] }
 0x34a   :  { %7744 = vrcp.f32 %v1700_v58  ;;  %v1702_v5 = vadd.f32 1.0, %v7735_v59  ;;  %v7737_v56 = vpop.eup %7736 }
 0x34b   :  { %12494 = vst [vmem:[#allocation12_spill] sm:$0xff] %v10280_v39  ;;  %7746 = vrcp.f32 %v1701_v49  ;;  %1771 = vmatmul.mubr.bf16.vlgmr.msra.gmra.mrb[24].mxu0 %v10280_v39  ;;  %1814 = vmatmul.mubr.bf16.vlgmr.msra.gmra.mrb[24].mxu1 %v10280_v39  ;;  %v1703_v43 = vadd.f32 1.0, %v7737_v56  ;;  %v7739_v58 = vpop.eup %7738  ;;  %v12526_v56 = vld [vmem:[#allocation33_spill] sm:$0xff] }
 0x34c   :  { %7748 = vpow2.f32 %v6493_v37  ;;  %1833 = vmatpush1.bf16.msra.mxu0 %v9753_v32  ;;  %1876 = vmatpush1.bf16.msra.mxu1 %v9759_v20  ;;  %v7741_v32 = vpop.eup %7740  ;;  %v12525_v37 = vld [vmem:[#allocation32_spill] sm:$0xff]  ;;  %v10747_v39 = vld [vmem:[%s12136_s2 + $0xc0] ss:$16 sps:$4 sm:$0xff]  }
 0x34d   :  { %7750 = vrcp.f32 %v1702_v5  ;;  %1834 = vmatprep.subr.bf16.mxu0 %v9765_v23  ;;  %1877 = vmatprep.subr.bf16.mxu1 %v9771_v27  ;;  %v7743_v20 = vpop.eup %7742 }
 0x34e   :  { %1864 = vmatprep.mubr.bf16.mxu0 %v12405_v15  ;;  %1907 = vmatprep.mubr.bf16.mxu1 %v12405_v15  ;;  %7752 = vrcp.f32 %v1703_v43 }
 0x350   :  { %1835 = vmatpush1.bf16.msra.mxu0 %v9779_v22  ;;  %1878 = vmatpush1.bf16.msra.mxu1 %v9785_v53 }
 0x351   :  { %1836 = vmatprep.subr.bf16.mxu0 %v9791_v24  ;;  %1879 = vmatprep.subr.bf16.mxu1 %v9797_v55  ;;  %v1720_v24 = vadd.f32 1.0, %v7741_v32 }
 0x353   :  { %7754 = vrcp.f32 %v1720_v24 }
 0x354   :  { %v7745_v12 = vpop.eup %7744  ;;  %1837 = vmatpush1.bf16.msra.mxu0 %v9803_v51  ;;  %1880 = vmatpush1.bf16.msra.mxu1 %v9809_v28 }
 0x355   :  { %v7747_v23 = vpop.eup %7746  ;;  %v1728_v27 = vmul.f32 %v7745_v12, %v7739_v58  ;;  %1838 = vmatprep.subr.bf16.mxu0 %v9815_v13  ;;  %1881 = vmatprep.subr.bf16.mxu1 %v9821_v25  ;;  %v12527_v58 = vld [vmem:[#allocation34_spill] sm:$0xff] }
 0x356   :  { %v7749_v22 = vpop.eup %7748  ;;  %v1726_v53 = vmul.f32 %v7747_v23, %v10191_v42  ;;  %v12510_v42 = vld [vmem:[#allocation130_spill] sm:$0xff] }
 0x357   :  { %v7751_v60 = vpop.eup %7750  ;;  %v1721_v28 = vadd.f32 1.0, %v7749_v22 }
 0x358   :  { %v10299_v8 = vadd.f32 %v1728_v27, %v1726_v53  ;;  %v1729_v55 = vmul.f32 %v7751_v60, %v7743_v20  ;;  %1839 = vmatpush1.bf16.msra.mxu0 %v9829_v9  ;;  %1882 = vmatpush1.bf16.msra.mxu1 %v9835_v3  ;;  %v7753_v51 = vpop.eup %7752  ;;  %v12528_v27 = vld [vmem:[#allocation35_spill] sm:$0xff]  ;;  %v12529_v53 = vld [vmem:[#allocation36_spill] sm:$0xff] }
 0x359   :  { %1840 = vmatprep.subr.bf16.mxu0 %v9841_v10  ;;  %1883 = vmatprep.subr.bf16.mxu1 %v9847_v30  ;;  %v1727_v13 = vmul.f32 %v7753_v51, %v10199_v14  ;;  %v12511_v14 = vld [vmem:[#allocation131_spill] sm:$0xff] }
 0x35a   :  { %7756 = vtanh.f32 %v10299_v8 }
 0x35b   :  { %v10307_v25 = vadd.f32 %v1729_v55, %v1727_v13  ;;  %7758 = vrcp.f32 %v1721_v28  ;;  %v12530_v28 = vld [vmem:[#allocation37_spill] sm:$0xff] }
 0x35c   :  { %1841 = vmatpush1.bf16.msra.mxu0 %v9856_v11  ;;  %1884 = vmatpush1.bf16.msra.mxu1 %v9862_v54 }
 0x35d   :  { %1842 = vmatprep.subr.bf16.mxu0 %v9869_v29  ;;  %1885 = vmatprep.subr.bf16.mxu1 %v9875_v36  ;;  %7760 = vtanh.f32 %v10307_v25  ;;  %v7755_v9 = vpop.eup %7754  ;;  %v12499_v36 = vld [vmem:[#allocation119_spill] sm:$0xff] }
 0x360   :  { %1843 = vmatpush1.bf16.msra.mxu0 %v9881_v2  ;;  %1886 = vmatpush1.bf16.msra.mxu1 %v9887_v41  ;;  %v12500_v2 = vld [vmem:[#allocation120_spill] sm:$0xff]  ;;  %v12501_v41 = vld [vmem:[#allocation121_spill] sm:$0xff] }
 0x361   :  { %1844 = vmatprep.subr.bf16.mxu0 %v9893_v16  ;;  %1887 = vmatprep.subr.bf16.mxu1 %v9899_v19  ;;  %v12502_v16 = vld [vmem:[#allocation122_spill] sm:$0xff]  ;;  %v12503_v19 = vld [vmem:[#allocation123_spill] sm:$0xff] }
 0x364   :  { %1845 = vmatpush1.bf16.msra.mxu0 %v9905_v26  ;;  %1888 = vmatpush1.bf16.msra.mxu1 %v9911_v34  ;;  %v7757_v3 = vpop.eup %7756  ;;  %v12504_v26 = vld [vmem:[#allocation124_spill] sm:$0xff]  ;;  %v12505_v34 = vld [vmem:[#allocation125_spill] sm:$0xff] }
 0x365   :  { %1846 = vmatprep.subr.bf16.mxu0 %v9917_v4  ;;  %1889 = vmatprep.subr.bf16.mxu1 %v9923_v57  ;;  %v7759_v10 = vpop.eup %7758  ;;  %v1734_v11 = vmul.f32 %v7757_v3, %v7755_v9  ;;  %v12506_v4 = vld [vmem:[#allocation126_spill] sm:$0xff]  ;;  %v12507_v57 = vld [vmem:[#allocation127_spill] sm:$0xff] }
 0x366   :  { %v12531_v9 = vld [vmem:[#allocation38_spill] sm:$0xff] }
 0x367   :  { %v7761_v30 = vpop.eup %7760 }
 0x368   :  { %1847 = vmatpush1.bf16.msra.mxu0 %v9929_v6  ;;  %1890 = vmatpush1.bf16.msra.mxu1 %v9935_v0  ;;  %v1735_v54 = vmul.f32 %v7761_v30, %v7759_v10  ;;  %v12496_v0 = vld [vmem:[#allocation116_spill] sm:$0xff]  ;;  %v12498_v6 = vld [vmem:[#allocation118_spill] sm:$0xff] }
 0x369   :  { %2024 = vmatprep.subr.bf16.mxu0 %v9941_v1  ;;  %2067 = vmatprep.subr.bf16.mxu1 %v9947_v35  ;;  %v12497_v1 = vld [vmem:[#allocation117_spill] sm:$0xff]  ;;  %v12508_v35 = vld [vmem:[#allocation128_spill] sm:$0xff]  ;;  %12563 = vst [vmem:[#allocation118_spill] sm:$0xff] %v10747_v39 }
 0x36a   :  { %v10326_v29 = vpack.c.bf16 %v1735_v54, %v1734_v11 }
 0x36c   :  { %12495 = vst [vmem:[#allocation13_spill] sm:$0xff] %v10326_v29  ;;  %1865 = vmatmul.mubr.bf16.vlgmr.msra.gmra.mrb[28].mxu0 %v10326_v29  ;;  %1908 = vmatmul.mubr.bf16.vlgmr.msra.gmra.mrb[28].mxu1 %v10326_v29  ;;  %v10753_v29 = vld [vmem:[%s12136_s2 + $0xc8] ss:$16 sps:$4 sm:$0xff]  }
 0x36d   :  { %2025 = vmatpush1.bf16.msra.mxu0 %v9957_v18  ;;  %2068 = vmatpush1.bf16.msra.mxu1 %v12446_v40  ;;  %v12509_v18 = vld [vmem:[#allocation129_spill] sm:$0xff]  ;;  %v12512_v40 = vld [vmem:[#allocation132_spill] sm:$0xff]  ;;  %12564 = vst [vmem:[#allocation119_spill] sm:$0xff] %v10753_v29 }
 0x36e   :  { %2026 = vmatprep.subr.bf16.mxu0 %v12447_v47  ;;  %2069 = vmatprep.subr.bf16.mxu1 %v12448_v38  ;;  %v12513_v47 = vld [vmem:[#allocation133_spill] sm:$0xff]  ;;  %v12514_v38 = vld [vmem:[#allocation134_spill] sm:$0xff] }
 0x36f   :  { %2056 = vmatprep.mubr.bf16.mxu0 %v12405_v15  ;;  %2099 = vmatprep.mubr.bf16.mxu1 %v12405_v15 }
 0x371   :  { %2027 = vmatpush1.bf16.msra.mxu0 %v12496_v0  ;;  %2070 = vmatpush1.bf16.msra.mxu1 %v12497_v1 }
 0x372   :  { %2028 = vmatprep.subr.bf16.mxu0 %v12498_v6  ;;  %2071 = vmatprep.subr.bf16.mxu1 %v12499_v36 }
 0x375   :  { %2029 = vmatpush1.bf16.msra.mxu0 %v12500_v2  ;;  %2072 = vmatpush1.bf16.msra.mxu1 %v12501_v41 }
 0x376   :  { %2030 = vmatprep.subr.bf16.mxu0 %v12502_v16  ;;  %2073 = vmatprep.subr.bf16.mxu1 %v12503_v19 }
 0x379   :  { %2031 = vmatpush1.bf16.msra.mxu0 %v12504_v26  ;;  %2074 = vmatpush1.bf16.msra.mxu1 %v12505_v34 }
 0x37a   :  { %2032 = vmatprep.subr.bf16.mxu0 %v12506_v4  ;;  %2075 = vmatprep.subr.bf16.mxu1 %v12507_v57 }
 0x37d   :  { %2033 = vmatpush1.bf16.msra.mxu0 %v12508_v35  ;;  %2076 = vmatpush1.bf16.msra.mxu1 %v12509_v18 }
 0x37e   :  { %2034 = vmatprep.subr.bf16.mxu0 %v12510_v42  ;;  %2077 = vmatprep.subr.bf16.mxu1 %v12511_v14 }
 0x381   :  { %2035 = vmatpush1.bf16.msra.mxu0 %v12512_v40  ;;  %2078 = vmatpush1.bf16.msra.mxu1 %v12513_v47 }
 0x382   :  { %2036 = vmatprep.subr.bf16.mxu0 %v12514_v38  ;;  %2079 = vmatprep.subr.bf16.mxu1 %v12515_v61 }
 0x385   :  { %2037 = vmatpush1.bf16.msra.mxu0 %v12516_v50  ;;  %2080 = vmatpush1.bf16.msra.mxu1 %v12517_v17 }
 0x386   :  { %2038 = vmatprep.subr.bf16.mxu0 %v12518_v48  ;;  %2081 = vmatprep.subr.bf16.mxu1 %v12519_v63  ;;  %v12532_v48 = vld [vmem:[#allocation11_spill] sm:$0xff] }
 0x389   :  { %2039 = vmatpush1.bf16.msra.mxu0 %v12520_v44  ;;  %2082 = vmatpush1.bf16.msra.mxu1 %v12521_v62 }
 0x38a   :  { %2118 = vmatprep.subr.bf16.mxu0 %v12522_v7  ;;  %2161 = vmatprep.subr.bf16.mxu1 %v12523_v46  ;;  %v12533_v7 = vld [vmem:[#allocation39_spill] sm:$0xff] }
 0x41e   :  { %v1772_v31 = vpop.f32.mrb[24].mxu0  ;;  %v1815_v21 = vpop.f32.mrb[24].mxu1 }
 0x41f   :  { %v1824_v33 = vadd.f32 %v1772_v31, %v12524_v45  ;;  %v1826_v49 = vadd.f32 %v1815_v21, %v12525_v37  ;;  %v1774_v59 = vpop.f32.mrb[25].mxu0  ;;  %v1817_v5 = vpop.f32.mrb[25].mxu1  ;;  %v12534_v31 = vld [vmem:[#allocation40_spill] sm:$0xff]  ;;  %v12535_v37 = vld [vmem:[#allocation41_spill] sm:$0xff] }
 0x420   :  { %v1825_v43 = vadd.f32 %v1774_v59, %v12526_v56  ;;  %v1827_v32 = vadd.f32 %v1817_v5, %v12527_v58  ;;  %v1776_v20 = vpop.f32.mrb[26].mxu0  ;;  %v1819_v12 = vpop.f32.mrb[26].mxu1  ;;  %v12536_v59 = vld [vmem:[#allocation42_spill] sm:$0xff] }
 0x421   :  { %v6494_v23 = vmul.f32 -1.442695, %v1824_v33  ;;  %v1828_v22 = vadd.f32 %v1776_v20, %v12528_v27  ;;  %v1830_v60 = vadd.f32 %v1819_v12, %v12529_v53  ;;  %v1778_v24 = vpop.f32.mrb[27].mxu0  ;;  %v1821_v55 = vpop.f32.mrb[27].mxu1  ;;  %v12538_v12 = vld [vmem:[#allocation44_spill] sm:$0xff] }
 0x422   :  { %v6495_v51 = vmul.f32 -1.442695, %v1825_v43  ;;  %v1829_v13 = vadd.f32 %v1778_v24, %v12530_v28  ;;  %v1831_v3 = vadd.f32 %v1821_v55, %v12531_v9  ;;  %v6498_v11 = vmul.f32 -1.442695, %v1827_v32  ;;  %v12537_v32 = vld [vmem:[#allocation43_spill] sm:$0xff] }
 0x423   :  { %7762 = vpow2.f32 %v6494_v23  ;;  %v6496_v10 = vmul.f32 -1.442695, %v1828_v22 }
 0x424   :  { %7764 = vpow2.f32 %v6495_v51  ;;  %v6497_v30 = vmul.f32 -1.442695, %v1829_v13  ;;  %v6499_v6 = vmul.f32 -1.442695, %v1831_v3  ;;  %v12540_v51 = vld [vmem:[#allocation46_spill] sm:$0xff] }
 0x425   :  { %7766 = vpow2.f32 %v6496_v10 }
 0x426   :  { %7768 = vpow2.f32 %v6497_v30 }
 0x427   :  { %7770 = vtanh.f32 %v1826_v49 }
 0x428   :  { %7772 = vpow2.f32 %v6498_v11 }
 0x429   :  { %7774 = vtanh.f32 %v1830_v60  ;;  %v12539_v60 = vld [vmem:[#allocation45_spill] sm:$0xff] }
 0x42d   :  { %v7763_v54 = vpop.eup %7762 }
 0x42e   :  { %v7765_v0 = vpop.eup %7764  ;;  %v1938_v1 = vadd.f32 1.0, %v7763_v54 }
 0x42f   :  { %v1939_v36 = vadd.f32 1.0, %v7765_v0  ;;  %v7767_v2 = vpop.eup %7766 }
 0x430   :  { %7776 = vrcp.f32 %v1938_v1  ;;  %v1940_v41 = vadd.f32 1.0, %v7767_v2  ;;  %v7769_v16 = vpop.eup %7768 }
 0x431   :  { %7778 = vrcp.f32 %v1939_v36  ;;  %v1941_v19 = vadd.f32 1.0, %v7769_v16  ;;  %v7771_v26 = vpop.eup %7770 }
 0x432   :  { %7780 = vpow2.f32 %v6499_v6  ;;  %v7773_v34 = vpop.eup %7772 }
 0x433   :  { %7782 = vrcp.f32 %v1940_v41  ;;  %v7775_v4 = vpop.eup %7774  ;;  %v1958_v47 = vadd.f32 1.0, %v7773_v34 }
 0x434   :  { %7784 = vrcp.f32 %v1941_v19 }
 0x435   :  { %7786 = vrcp.f32 %v1958_v47 }
 0x43a   :  { %v7777_v57 = vpop.eup %7776 }
 0x43b   :  { %v7779_v35 = vpop.eup %7778  ;;  %v1966_v18 = vmul.f32 %v7777_v57, %v7771_v26  ;;  %v10401_v57 = vld [vmem:[%s12136_s2 + $0x108] ss:$16 sps:$4 sm:$0xff]  }
 0x43c   :  { %v7781_v42 = vpop.eup %7780  ;;  %v1964_v14 = vmul.f32 %v7779_v35, %v10265_v52 }
 0x43d   :  { %v7783_v40 = vpop.eup %7782  ;;  %v1959_v17 = vadd.f32 1.0, %v7781_v42  ;;  %v10413_v42 = vld [vmem:[%s12136_s2 + $0x12c] ss:$16 sps:$4 sm:$0xff]  }
 0x43e   :  { %v10373_v38 = vadd.f32 %v1966_v18, %v1964_v14  ;;  %v1967_v61 = vmul.f32 %v7783_v40, %v7775_v4  ;;  %v7785_v50 = vpop.eup %7784  ;;  %v10395_v4 = vld [vmem:[%s12136_s2 + $0x100] ss:$16 sps:$4 sm:$0xff]   ;;  %v10407_v18 = vld [vmem:[%s12136_s2 + $0x124] ss:$16 sps:$4 sm:$0xff]   ;;  %v10427_v40 = vld [vmem:[%s12136_s2 + $0x128] ss:$16 sps:$4 sm:$0xff]  }
 0x43f   :  { %v1965_v63 = vmul.f32 %v7785_v50, %v12532_v48  ;;  %v1866_v44 = vpop.f32.mrb[28].mxu0  ;;  %v1909_v62 = vpop.f32.mrb[28].mxu1  ;;  %v10421_v14 = vld [vmem:[%s12136_s2 + $0x120] ss:$16 sps:$4 sm:$0xff]   ;;  %v10439_v50 = vld [vmem:[%s12136_s2 + $0x14c] ss:$16 sps:$4 sm:$0xff]  }
 0x440   :  { %v1918_v46 = vadd.f32 %v1866_v44, %v12533_v7  ;;  %v1920_v21 = vadd.f32 %v1909_v62, %v12534_v31  ;;  %v1868_v45 = vpop.f32.mrb[29].mxu0  ;;  %v1911_v33 = vpop.f32.mrb[29].mxu1  ;;  %7788 = vtanh.f32 %v10373_v38  ;;  %v10445_v44 = vld [vmem:[%s12136_s2 + $0x140] ss:$16 sps:$4 sm:$0xff]   ;;  %v10451_v62 = vld [vmem:[%s12136_s2 + $0x148] ss:$16 sps:$4 sm:$0xff]  }
 0x441   :  { %v10379_v52 = vadd.f32 %v1967_v61, %v1965_v63  ;;  %v1919_v49 = vadd.f32 %v1868_v45, %v12535_v37  ;;  %v1921_v5 = vadd.f32 %v1911_v33, %v12536_v59  ;;  %v1870_v56 = vpop.f32.mrb[30].mxu0  ;;  %v1913_v43 = vpop.f32.mrb[30].mxu1  ;;  %7790 = vrcp.f32 %v1959_v17  ;;  %v10433_v61 = vld [vmem:[%s12136_s2 + $0x144] ss:$16 sps:$4 sm:$0xff]  }
 0x442   :  { %v6500_v58 = vmul.f32 -1.442695, %v1918_v46  ;;  %v1922_v20 = vadd.f32 %v1870_v56, %v12537_v32  ;;  %v1924_v23 = vadd.f32 %v1913_v43, %v12538_v12  ;;  %v1872_v27 = vpop.f32.mrb[31].mxu0  ;;  %v1915_v22 = vpop.f32.mrb[31].mxu1  ;;  %v10457_v31 = vld [vmem:[%s12136_s2 + $0x164] ss:$16 sps:$4 sm:$0xff]  }
 0x443   :  { %7792 = vtanh.f32 %v10379_v52  ;;  %v6501_v53 = vmul.f32 -1.442695, %v1919_v49  ;;  %v1923_v24 = vadd.f32 %v1872_v27, %v12539_v60  ;;  %v1925_v28 = vadd.f32 %v1915_v22, %v12540_v51  ;;  %v7787_v9 = vpop.eup %7786  ;;  %v10472_v56 = vld [vmem:[%s12136_s2 + $0x160] ss:$16 sps:$4 sm:$0xff]   ;;  %v10478_v43 = vld [vmem:[%s12136_s2 + $0x168] ss:$16 sps:$4 sm:$0xff]  }
 0x444   :  { %7794 = vpow2.f32 %v6500_v58  ;;  %v6502_v55 = vmul.f32 -1.442695, %v1922_v20  ;;  %v6504_v10 = vmul.f32 -1.442695, %v1921_v5  ;;  %v10484_v32 = vld [vmem:[%s12136_s2 + $0x184] ss:$16 sps:$4 sm:$0xff]  }
 0x445   :  { %7796 = vpow2.f32 %v6501_v53  ;;  %v6503_v13 = vmul.f32 -1.442695, %v1923_v24  ;;  %v6505_v2 = vmul.f32 -1.442695, %v1925_v28  ;;  %v10490_v20 = vld [vmem:[%s12136_s2 + $0x18c] ss:$16 sps:$4 sm:$0xff]  }
 0x446   :  { %7798 = vpow2.f32 %v6502_v55  ;;  %v10500_v27 = vld [vmem:[%s12136_s2 + $0x180] ss:$16 sps:$4 sm:$0xff]   ;;  %v10506_v22 = vld [vmem:[%s12136_s2 + $0x188] ss:$16 sps:$4 sm:$0xff]   ;;  %v10518_v53 = vld [vmem:[%s12136_s2 + $0x1ac] ss:$16 sps:$4 sm:$0xff]  }
 0x447   :  { %7800 = vpow2.f32 %v6503_v13  ;;  %v10525_v60 = vld [vmem:[%s12136_s2 + $0x1a0] ss:$16 sps:$4 sm:$0xff]   ;;  %v10531_v24 = vld [vmem:[%s12136_s2 + $0x1a8] ss:$16 sps:$4 sm:$0xff]   ;;  %v10537_v55 = vld [vmem:[%s12136_s2 + $0x1c4] ss:$16 sps:$4 sm:$0xff]  }
 0x448   :  { %7802 = vtanh.f32 %v1920_v21  ;;  %v10463_v21 = vld [vmem:[%s12136_s2 + $0x16c] ss:$16 sps:$4 sm:$0xff]   ;;  %v10549_v28 = vld [vmem:[%s12136_s2 + $0x1c0] ss:$16 sps:$4 sm:$0xff]   ;;  %v10555_v13 = vld [vmem:[%s12136_s2 + $0x1c8] ss:$16 sps:$4 sm:$0xff]  }
 0x449   :  { %7804 = vpow2.f32 %v6504_v10  ;;  %v10543_v51 = vld [vmem:[%s12136_s2 + $0x1cc] ss:$16 sps:$4 sm:$0xff]  }
 0x44a   :  { %v7789_v3 = vpop.eup %7788  ;;  %7806 = vtanh.f32 %v1924_v23  ;;  %v10567_v10 = vld [vmem:[%s12136_s2 + $0x1ec] ss:$16 sps:$4 sm:$0xff]  }
 0x44b   :  { %v7791_v30 = vpop.eup %7790  ;;  %v1972_v0 = vmul.f32 %v7789_v3, %v7787_v9  ;;  %v10561_v3 = vld [vmem:[%s12136_s2 + $0x1e4] ss:$16 sps:$4 sm:$0xff]  }
 0x44d   :  { %v7793_v11 = vpop.eup %7792 }
 0x44e   :  { %v7795_v54 = vpop.eup %7794  ;;  %v1973_v1 = vmul.f32 %v7793_v11, %v7791_v30 }
 0x44f   :  { %v7797_v6 = vpop.eup %7796  ;;  %v1986_v36 = vadd.f32 1.0, %v7795_v54 }
 0x450   :  { %v1987_v41 = vadd.f32 1.0, %v7797_v6  ;;  %v10388_v16 = vpack.c.bf16 %v1973_v1, %v1972_v0  ;;  %v7799_v19 = vpop.eup %7798  ;;  %v10573_v0 = vld [vmem:[%s12136_s2 + $0x1e0] ss:$16 sps:$4 sm:$0xff]   ;;  %v10579_v1 = vld [vmem:[%s12136_s2 + $0x1e8] ss:$16 sps:$4 sm:$0xff]  }
 0x451   :  { %7808 = vrcp.f32 %v1986_v36  ;;  %v1988_v26 = vadd.f32 1.0, %v7799_v19  ;;  %v7801_v34 = vpop.eup %7800 }
 0x452   :  { %12541 = vst [vmem:[#allocation14_spill] sm:$0xff] %v10388_v16  ;;  %7810 = vrcp.f32 %v1987_v41  ;;  %2057 = vmatmul.mubr.bf16.vlgmr.msra.gmra.mrb[32].mxu0 %v10388_v16  ;;  %2100 = vmatmul.mubr.bf16.vlgmr.msra.gmra.mrb[32].mxu1 %v10388_v16  ;;  %v1989_v35 = vadd.f32 1.0, %v7801_v34  ;;  %v7803_v47 = vpop.eup %7802  ;;  %v10591_v41 = vld [vmem:[%s12136_s2 + $0xc] ss:$16 sps:$4 sm:$0xff]   ;;  %v10607_v34 = vld [vmem:[%s12136_s2 + $0x8] ss:$16 sps:$4 sm:$0xff]  }
 0x453   :  { %7812 = vpow2.f32 %v6505_v2  ;;  %2119 = vmatpush1.bf16.msra.mxu0 %v10395_v4  ;;  %2162 = vmatpush1.bf16.msra.mxu1 %v10401_v57  ;;  %v7805_v17 = vpop.eup %7804  ;;  %v10585_v2 = vld [vmem:[%s12136_s2 + $0x4] ss:$16 sps:$4 sm:$0xff]   ;;  %v10741_v16 = vld [vmem:[%s12136_s2 + $0xcc] ss:$16 sps:$4 sm:$0xff]  }
 0x454   :  { %7814 = vrcp.f32 %v1988_v26  ;;  %2120 = vmatprep.subr.bf16.mxu0 %v10407_v18  ;;  %2163 = vmatprep.subr.bf16.mxu1 %v10413_v42  ;;  %v7807_v48 = vpop.eup %7806  ;;  %v2006_v49 = vadd.f32 1.0, %v7805_v17  ;;  %v10601_v26 = vld [vmem:[%s12136_s2] ss:$16 sps:$4 sm:$0xff]   ;;  %12562 = vst [vmem:[#allocation117_spill] sm:$0xff] %v10741_v16 }
 0x455   :  { %2150 = vmatprep.mubr.bf16.mxu0 %v12405_v15  ;;  %2193 = vmatprep.mubr.bf16.mxu1 %v12405_v15  ;;  %7816 = vrcp.f32 %v1989_v35  ;;  %v10613_v35 = vld [vmem:[%s12136_s2 + $0x24] ss:$16 sps:$4 sm:$0xff]   ;;  %v10627_v17 = vld [vmem:[%s12136_s2 + $0x20] ss:$16 sps:$4 sm:$0xff]  }
 0x456   :  { %7818 = vrcp.f32 %v2006_v49  ;;  %12543 = vst [vmem:[#allocation114_spill] sm:$0xff] %v10627_v17  ;;  %v10675_v49 = vld [vmem:[%s12136_s2 + $0x60] ss:$16 sps:$4 sm:$0xff]  }
 0x457   :  { %2121 = vmatpush1.bf16.msra.mxu0 %v10421_v14  ;;  %2164 = vmatpush1.bf16.msra.mxu1 %v10427_v40  ;;  %12551 = vst [vmem:[#allocation21_spill] sm:$0xff] %v10675_v49 }
 0x458   :  { %2122 = vmatprep.subr.bf16.mxu0 %v10433_v61  ;;  %2165 = vmatprep.subr.bf16.mxu1 %v10439_v50 }
 0x45b   :  { %v7809_v63 = vpop.eup %7808  ;;  %2123 = vmatpush1.bf16.msra.mxu0 %v10445_v44  ;;  %2166 = vmatpush1.bf16.msra.mxu1 %v10451_v62 }
 0x45c   :  { %v7811_v7 = vpop.eup %7810  ;;  %v2014_v46 = vmul.f32 %v7809_v63, %v7803_v47  ;;  %2124 = vmatprep.subr.bf16.mxu0 %v10457_v31  ;;  %2167 = vmatprep.subr.bf16.mxu1 %v10463_v21  ;;  %v10619_v47 = vld [vmem:[%s12136_s2 + $0x2c] ss:$16 sps:$4 sm:$0xff]   ;;  %v10639_v63 = vld [vmem:[%s12136_s2 + $0x44] ss:$16 sps:$4 sm:$0xff]  }
 0x45d   :  { %v7813_v45 = vpop.eup %7812  ;;  %v2012_v33 = vmul.f32 %v7811_v7, %v10299_v8  ;;  %12545 = vst [vmem:[#allocation15_spill] sm:$0xff] %v10639_v63  ;;  %v10645_v7 = vld [vmem:[%s12136_s2 + $0x4c] ss:$16 sps:$4 sm:$0xff]  }
 0x45e   :  { %v7815_v37 = vpop.eup %7814  ;;  %v2007_v58 = vadd.f32 1.0, %v7813_v45  ;;  %12546 = vst [vmem:[#allocation16_spill] sm:$0xff] %v10645_v7  ;;  %v10657_v45 = vld [vmem:[%s12136_s2 + $0x48] ss:$16 sps:$4 sm:$0xff]  }
 0x45f   :  { %v10467_v59 = vadd.f32 %v2014_v46, %v2012_v33  ;;  %v2015_v5 = vmul.f32 %v7815_v37, %v7807_v48  ;;  %2125 = vmatpush1.bf16.msra.mxu0 %v10472_v56  ;;  %2168 = vmatpush1.bf16.msra.mxu1 %v10478_v43  ;;  %v7817_v8 = vpop.eup %7816  ;;  %v10633_v48 = vld [vmem:[%s12136_s2 + $0x28] ss:$16 sps:$4 sm:$0xff]   ;;  %v10651_v46 = vld [vmem:[%s12136_s2 + $0x40] ss:$16 sps:$4 sm:$0xff]   ;;  %12548 = vst [vmem:[#allocation18_spill] sm:$0xff] %v10657_v45 }
 0x460   :  { %2126 = vmatprep.subr.bf16.mxu0 %v10484_v32  ;;  %2169 = vmatprep.subr.bf16.mxu1 %v10490_v20  ;;  %v2013_v12 = vmul.f32 %v7817_v8, %v10307_v25  ;;  %v10512_v25 = vld [vmem:[%s12136_s2 + $0x1a4] ss:$16 sps:$4 sm:$0xff]   ;;  %v7819_v9 = vpop.eup %7818  ;;  %12544 = vst [vmem:[#allocation115_spill] sm:$0xff] %v10633_v48  ;;  %12547 = vst [vmem:[#allocation17_spill] sm:$0xff] %v10651_v46  ;;  %v10669_v37 = vld [vmem:[%s12136_s2 + $0x6c] ss:$16 sps:$4 sm:$0xff]  }
 0x461   :  { %7820 = vtanh.f32 %v10467_v59  ;;  %v10663_v33 = vld [vmem:[%s12136_s2 + $0x64] ss:$16 sps:$4 sm:$0xff]   ;;  %12550 = vst [vmem:[#allocation20_spill] sm:$0xff] %v10669_v37 }
 0x462   :  { %v10495_v23 = vadd.f32 %v2015_v5, %v2013_v12  ;;  %7822 = vrcp.f32 %v2007_v58  ;;  %12549 = vst [vmem:[#allocation19_spill] sm:$0xff] %v10663_v33  ;;  %v10681_v5 = vld [vmem:[%s12136_s2 + $0x68] ss:$16 sps:$4 sm:$0xff]   ;;  %v10687_v8 = vld [vmem:[%s12136_s2 + $0x84] ss:$16 sps:$4 sm:$0xff]  }
 0x463   :  { %2127 = vmatpush1.bf16.msra.mxu0 %v10500_v27  ;;  %2170 = vmatpush1.bf16.msra.mxu1 %v10506_v22  ;;  %12552 = vst [vmem:[#allocation22_spill] sm:$0xff] %v10681_v5  ;;  %12553 = vst [vmem:[#allocation23_spill] sm:$0xff] %v10687_v8  ;;  %v10693_v58 = vld [vmem:[%s12136_s2 + $0x8c] ss:$16 sps:$4 sm:$0xff]   ;;  %v10699_v12 = vld [vmem:[%s12136_s2 + $0x80] ss:$16 sps:$4 sm:$0xff]  }
 0x464   :  { %2128 = vmatprep.subr.bf16.mxu0 %v10512_v25  ;;  %2171 = vmatprep.subr.bf16.mxu1 %v10518_v53  ;;  %7824 = vtanh.f32 %v10495_v23  ;;  %12554 = vst [vmem:[#allocation24_spill] sm:$0xff] %v10693_v58  ;;  %12555 = vst [vmem:[#allocation25_spill] sm:$0xff] %v10699_v12 }
 0x467   :  { %2129 = vmatpush1.bf16.msra.mxu0 %v10525_v60  ;;  %2172 = vmatpush1.bf16.msra.mxu1 %v10531_v24 }
 0x468   :  { %2130 = vmatprep.subr.bf16.mxu0 %v10537_v55  ;;  %2173 = vmatprep.subr.bf16.mxu1 %v10543_v51 }
 0x46b   :  { %2131 = vmatpush1.bf16.msra.mxu0 %v10549_v28  ;;  %2174 = vmatpush1.bf16.msra.mxu1 %v10555_v13  ;;  %v7821_v30 = vpop.eup %7820 }
 0x46c   :  { %2132 = vmatprep.subr.bf16.mxu0 %v10561_v3  ;;  %2175 = vmatprep.subr.bf16.mxu1 %v10567_v10  ;;  %v7823_v11 = vpop.eup %7822  ;;  %v2020_v6 = vmul.f32 %v7821_v30, %v7819_v9  ;;  %v10705_v9 = vld [vmem:[%s12136_s2 + $0x88] ss:$16 sps:$4 sm:$0xff]   ;;  %v10711_v30 = vld [vmem:[%s12136_s2 + $0xa4] ss:$16 sps:$4 sm:$0xff]  }
 0x46d   :  { %12556 = vst [vmem:[#allocation26_spill] sm:$0xff] %v10705_v9  ;;  %12557 = vst [vmem:[#allocation27_spill] sm:$0xff] %v10711_v30 }
 0x46e   :  { %v7825_v54 = vpop.eup %7824 }
 0x46f   :  { %2133 = vmatpush1.bf16.msra.mxu0 %v10573_v0  ;;  %2176 = vmatpush1.bf16.msra.mxu1 %v10579_v1  ;;  %v2021_v36 = vmul.f32 %v7825_v54, %v7823_v11  ;;  %v10717_v11 = vld [vmem:[%s12136_s2 + $0xac] ss:$16 sps:$4 sm:$0xff]   ;;  %v10723_v54 = vld [vmem:[%s12136_s2 + $0xa0] ss:$16 sps:$4 sm:$0xff]  }
 0x470   :  { %2310 = vmatprep.subr.bf16.mxu0 %v10585_v2  ;;  %2353 = vmatprep.subr.bf16.mxu1 %v10591_v41  ;;  %12558 = vst [vmem:[#allocation28_spill] sm:$0xff] %v10717_v11  ;;  %12559 = vst [vmem:[#allocation29_spill] sm:$0xff] %v10723_v54 }
 0x471   :  { %v10594_v19 = vpack.c.bf16 %v2021_v36, %v2020_v6  ;;  %v10729_v6 = vld [vmem:[%s12136_s2 + $0xa8] ss:$16 sps:$4 sm:$0xff]   ;;  %v10735_v36 = vld [vmem:[%s12136_s2 + $0xc4] ss:$16 sps:$4 sm:$0xff]  }
 0x472   :  { %12560 = vst [vmem:[#allocation30_spill] sm:$0xff] %v10729_v6  ;;  %12561 = vst [vmem:[#allocation116_spill] sm:$0xff] %v10735_v36 }
 0x473   :  { %12542 = vst [vmem:[#allocation113_spill] sm:$0xff] %v10594_v19  ;;  %2151 = vmatmul.mubr.bf16.vlgmr.msra.gmra.mrb[36].mxu0 %v10594_v19  ;;  %2194 = vmatmul.mubr.bf16.vlgmr.msra.gmra.mrb[36].mxu1 %v10594_v19  ;;  %v10759_v19 = vld [vmem:[%s12136_s2 + $0xe4] ss:$16 sps:$4 sm:$0xff]  }
 0x474   :  { %2311 = vmatpush1.bf16.msra.mxu0 %v10601_v26  ;;  %2354 = vmatpush1.bf16.msra.mxu1 %v10607_v34  ;;  %12565 = vst [vmem:[#allocation120_spill] sm:$0xff] %v10759_v19 }
 0x475   :  { %2312 = vmatprep.subr.bf16.mxu0 %v10613_v35  ;;  %2355 = vmatprep.subr.bf16.mxu1 %v10619_v47 }
 0x476   :  { %2342 = vmatprep.mubr.bf16.mxu0 %v12405_v15  ;;  %2385 = vmatprep.mubr.bf16.mxu1 %v12405_v15 }
 0x478   :  { %2313 = vmatpush1.bf16.msra.mxu0 %v10627_v17  ;;  %2356 = vmatpush1.bf16.msra.mxu1 %v10633_v48  ;;  %v12577_v17 = vld [vmem:[#allocation53_spill] sm:$0xff] }
 0x479   :  { %2314 = vmatprep.subr.bf16.mxu0 %v10639_v63  ;;  %2357 = vmatprep.subr.bf16.mxu1 %v10645_v7 }
 0x47c   :  { %2315 = vmatpush1.bf16.msra.mxu0 %v10651_v46  ;;  %2358 = vmatpush1.bf16.msra.mxu1 %v10657_v45  ;;  %v12576_v46 = vld [vmem:[#allocation52_spill] sm:$0xff] }
 0x47d   :  { %2316 = vmatprep.subr.bf16.mxu0 %v10663_v33  ;;  %2359 = vmatprep.subr.bf16.mxu1 %v10669_v37  ;;  %v12575_v33 = vld [vmem:[#allocation51_spill] sm:$0xff] }
 0x480   :  { %2317 = vmatpush1.bf16.msra.mxu0 %v10675_v49  ;;  %2360 = vmatpush1.bf16.msra.mxu1 %v10681_v5 }
 0x481   :  { %2318 = vmatprep.subr.bf16.mxu0 %v10687_v8  ;;  %2361 = vmatprep.subr.bf16.mxu1 %v10693_v58  ;;  %v12574_v8 = vld [vmem:[#allocation50_spill] sm:$0xff] }
 0x484   :  { %2319 = vmatpush1.bf16.msra.mxu0 %v10699_v12  ;;  %2362 = vmatpush1.bf16.msra.mxu1 %v10705_v9  ;;  %v12573_v12 = vld [vmem:[#allocation49_spill] sm:$0xff] }
 0x485   :  { %2320 = vmatprep.subr.bf16.mxu0 %v10711_v30  ;;  %2363 = vmatprep.subr.bf16.mxu1 %v10717_v11  ;;  %v12572_v11 = vld [vmem:[#allocation48_spill] sm:$0xff] }
 0x488   :  { %2321 = vmatpush1.bf16.msra.mxu0 %v10723_v54  ;;  %2364 = vmatpush1.bf16.msra.mxu1 %v10729_v6  ;;  %v12571_v6 = vld [vmem:[#allocation47_spill] sm:$0xff] }
 0x489   :  { %2322 = vmatprep.subr.bf16.mxu0 %v10735_v36  ;;  %2365 = vmatprep.subr.bf16.mxu1 %v10741_v16  ;;  %v10765_v16 = vld [vmem:[%s12136_s2 + $0xec] ss:$16 sps:$4 sm:$0xff]  }
 0x48a   :  { %12566 = vst [vmem:[#allocation121_spill] sm:$0xff] %v10765_v16 }
 0x48c   :  { %2323 = vmatpush1.bf16.msra.mxu0 %v10747_v39  ;;  %2366 = vmatpush1.bf16.msra.mxu1 %v10753_v29  ;;  %v10771_v39 = vld [vmem:[%s12136_s2 + $0xe0] ss:$16 sps:$4 sm:$0xff]   ;;  %v10777_v29 = vld [vmem:[%s12136_s2 + $0xe8] ss:$16 sps:$4 sm:$0xff]  }
 0x48d   :  { %2324 = vmatprep.subr.bf16.mxu0 %v10759_v19  ;;  %2367 = vmatprep.subr.bf16.mxu1 %v10765_v16  ;;  %12567 = vst [vmem:[#allocation122_spill] sm:$0xff] %v10771_v39  ;;  %12568 = vst [vmem:[#allocation123_spill] sm:$0xff] %v10777_v29  ;;  %v10783_v19 = vld [vmem:[%s12136_s2 + $0x104] ss:$16 sps:$4 sm:$0xff]   ;;  %v10789_v16 = vld [vmem:[%s12136_s2 + $0x10c] ss:$16 sps:$4 sm:$0xff]  }
 0x48e   :  { %12569 = vst [vmem:[#allocation124_spill] sm:$0xff] %v10783_v19  ;;  %12570 = vst [vmem:[#allocation125_spill] sm:$0xff] %v10789_v16 }
 0x490   :  { %2325 = vmatpush1.bf16.msra.mxu0 %v10771_v39  ;;  %2368 = vmatpush1.bf16.msra.mxu1 %v10777_v29 }
 0x491   :  { %2404 = vmatprep.subr.bf16.mxu0 %v10783_v19  ;;  %2447 = vmatprep.subr.bf16.mxu1 %v10789_v16 }
 0x525   :  { %v2058_v39 = vpop.f32.mrb[32].mxu0  ;;  %v2101_v36 = vpop.f32.mrb[32].mxu1 }
 0x526   :  { %v2110_v54 = vadd.f32 %v2058_v39, %v12571_v6  ;;  %v2112_v29 = vadd.f32 %v2101_v36, %v12572_v11  ;;  %v2060_v30 = vpop.f32.mrb[33].mxu0  ;;  %v2103_v9 = vpop.f32.mrb[33].mxu1  ;;  %v12578_v6 = vld [vmem:[#allocation54_spill] sm:$0xff] }
 0x527   :  { %v2111_v58 = vadd.f32 %v2060_v30, %v12573_v12  ;;  %v2113_v5 = vadd.f32 %v2103_v9, %v12574_v8  ;;  %v2062_v19 = vpop.f32.mrb[34].mxu0  ;;  %v2105_v49 = vpop.f32.mrb[34].mxu1 }
 0x528   :  { %v6506_v37 = vmul.f32 -1.442695, %v2110_v54  ;;  %v2114_v45 = vadd.f32 %v2062_v19, %v12575_v33  ;;  %v2116_v7 = vadd.f32 %v2105_v49, %v12576_v46  ;;  %v2064_v16 = vpop.f32.mrb[35].mxu0  ;;  %v2107_v63 = vpop.f32.mrb[35].mxu1 }
 0x529   :  { %v6507_v48 = vmul.f32 -1.442695, %v2111_v58  ;;  %v2115_v39 = vadd.f32 %v2064_v16, %v12577_v17  ;;  %v2117_v11 = vadd.f32 %v2107_v63, %v12578_v6  ;;  %v6510_v8 = vmul.f32 -1.442695, %v2113_v5 }
 0x52a   :  { %7826 = vpow2.f32 %v6506_v37  ;;  %v6508_v36 = vmul.f32 -1.442695, %v2114_v45 }
 0x52b   :  { %7828 = vpow2.f32 %v6507_v48  ;;  %v6509_v12 = vmul.f32 -1.442695, %v2115_v39  ;;  %v6511_v46 = vmul.f32 -1.442695, %v2117_v11 }
 0x52c   :  { %7830 = vpow2.f32 %v6508_v36 }
 0x52d   :  { %7832 = vpow2.f32 %v6509_v12 }
 0x52e   :  { %7834 = vtanh.f32 %v2112_v29 }
 0x52f   :  { %7836 = vpow2.f32 %v6510_v8 }
 0x530   :  { %7838 = vtanh.f32 %v2116_v7 }
 0x534   :  { %v7827_v9 = vpop.eup %7826 }
 0x535   :  { %v7829_v30 = vpop.eup %7828  ;;  %v2224_v19 = vadd.f32 1.0, %v7827_v9 }
 0x536   :  { %v2225_v33 = vadd.f32 1.0, %v7829_v30  ;;  %v7831_v49 = vpop.eup %7830 }
 0x537   :  { %7840 = vrcp.f32 %v2224_v19  ;;  %v2226_v16 = vadd.f32 1.0, %v7831_v49  ;;  %v7833_v17 = vpop.eup %7832  ;;  %v12580_v49 = vld [vmem:[#allocation56_spill] sm:$0xff] }
 0x538   :  { %7842 = vrcp.f32 %v2225_v33  ;;  %v2227_v48 = vadd.f32 1.0, %v7833_v17  ;;  %v7835_v63 = vpop.eup %7834 }
 0x539   :  { %7844 = vpow2.f32 %v6511_v46  ;;  %v7837_v45 = vpop.eup %7836  ;;  %v12579_v46 = vld [vmem:[#allocation55_spill] sm:$0xff] }
 0x53a   :  { %7846 = vrcp.f32 %v2226_v16  ;;  %v7839_v37 = vpop.eup %7838  ;;  %v2244_v7 = vadd.f32 1.0, %v7837_v45 }
 0x53b   :  { %7848 = vrcp.f32 %v2227_v48 }
 0x53c   :  { %7850 = vrcp.f32 %v2244_v7 }
 0x541   :  { %v7841_v5 = vpop.eup %7840 }
 0x542   :  { %v7843_v29 = vpop.eup %7842  ;;  %v2252_v58 = vmul.f32 %v7841_v5, %v7835_v63  ;;  %v12582_v63 = vld [vmem:[#allocation57_spill] sm:$0xff] }
 0x543   :  { %v7845_v54 = vpop.eup %7844  ;;  %v2250_v39 = vmul.f32 %v7843_v29, %v10373_v38 }
 0x544   :  { %v7847_v6 = vpop.eup %7846  ;;  %v2245_v8 = vadd.f32 1.0, %v7845_v54  ;;  %v12584_v54 = vld [vmem:[#allocation59_spill] sm:$0xff] }
 0x545   :  { %v10801_v11 = vadd.f32 %v2252_v58, %v2250_v39  ;;  %v2253_v36 = vmul.f32 %v7847_v6, %v7839_v37  ;;  %v7849_v12 = vpop.eup %7848  ;;  %v12583_v37 = vld [vmem:[#allocation58_spill] sm:$0xff]  ;;  %v12585_v6 = vld [vmem:[#allocation60_spill] sm:$0xff] }
 0x546   :  { %v2251_v9 = vmul.f32 %v7849_v12, %v10379_v52  ;;  %v2152_v30 = vpop.f32.mrb[36].mxu0  ;;  %v2195_v19 = vpop.f32.mrb[36].mxu1 }
 0x547   :  { %v2204_v33 = vadd.f32 %v2152_v30, %v12579_v46  ;;  %v2206_v16 = vadd.f32 %v2195_v19, %v12580_v49  ;;  %v2154_v17 = vpop.f32.mrb[37].mxu0  ;;  %v2197_v48 = vpop.f32.mrb[37].mxu1  ;;  %7852 = vtanh.f32 %v10801_v11  ;;  %v12586_v46 = vld [vmem:[#allocation61_spill] sm:$0xff]  ;;  %v12587_v49 = vld [vmem:[#allocation62_spill] sm:$0xff] }
 0x548   :  { %v10807_v38 = vadd.f32 %v2253_v36, %v2251_v9  ;;  %v2205_v45 = vadd.f32 %v2154_v17, %v12582_v63  ;;  %v2207_v5 = vadd.f32 %v2197_v48, %v12583_v37  ;;  %v2156_v29 = vpop.f32.mrb[38].mxu0  ;;  %v2199_v58 = vpop.f32.mrb[38].mxu1  ;;  %7854 = vrcp.f32 %v2245_v8 }
 0x549   :  { %v6512_v52 = vmul.f32 -1.442695, %v2204_v33  ;;  %v2208_v39 = vadd.f32 %v2156_v29, %v12584_v54  ;;  %v2210_v7 = vadd.f32 %v2199_v58, %v12585_v6  ;;  %v2158_v12 = vpop.f32.mrb[39].mxu0  ;;  %v2201_v30 = vpop.f32.mrb[39].mxu1 }
 0x54a   :  { %12581 = vst [vmem:[#allocation126_spill] sm:$0xff] %v10807_v38  ;;  %7856 = vtanh.f32 %v10807_v38  ;;  %v6513_v19 = vmul.f32 -1.442695, %v2205_v45  ;;  %v2209_v36 = vadd.f32 %v2158_v12, %v12586_v46  ;;  %v2211_v17 = vadd.f32 %v2201_v30, %v12587_v49  ;;  %v7851_v8 = vpop.eup %7850 }
 0x54b   :  { %7858 = vpow2.f32 %v6512_v52  ;;  %v6514_v9 = vmul.f32 -1.442695, %v2208_v39  ;;  %v6516_v63 = vmul.f32 -1.442695, %v2207_v5 }
 0x54c   :  { %7860 = vpow2.f32 %v6513_v19  ;;  %v6515_v48 = vmul.f32 -1.442695, %v2209_v36  ;;  %v6517_v52 = vmul.f32 -1.442695, %v2211_v17 }
 0x54d   :  { %7862 = vpow2.f32 %v6514_v9 }
 0x54e   :  { %7864 = vpow2.f32 %v6515_v48 }
 0x54f   :  { %7866 = vtanh.f32 %v2206_v16 }
 0x550   :  { %7868 = vpow2.f32 %v6516_v63 }
 0x551   :  { %v7853_v33 = vpop.eup %7852  ;;  %7870 = vtanh.f32 %v2210_v7 }
 0x552   :  { %v7855_v37 = vpop.eup %7854  ;;  %v2258_v54 = vmul.f32 %v7853_v33, %v7851_v8 }
 0x554   :  { %v7857_v29 = vpop.eup %7856 }
 0x555   :  { %v7859_v58 = vpop.eup %7858  ;;  %v2259_v6 = vmul.f32 %v7857_v29, %v7855_v37 }
 0x556   :  { %v7861_v45 = vpop.eup %7860  ;;  %v2272_v38 = vadd.f32 1.0, %v7859_v58 }
 0x557   :  { %v2273_v39 = vadd.f32 1.0, %v7861_v45  ;;  %v10816_v12 = vpack.c.bf16 %v2259_v6, %v2258_v54  ;;  %v7863_v30 = vpop.eup %7862 }
 0x558   :  { %7872 = vrcp.f32 %v2272_v38  ;;  %v2274_v19 = vadd.f32 1.0, %v7863_v30  ;;  %v7865_v5 = vpop.eup %7864 }
 0x559   :  { %12588 = vst [vmem:[#allocation127_spill] sm:$0xff] %v10816_v12  ;;  %7874 = vrcp.f32 %v2273_v39  ;;  %2343 = vmatmul.mubr.bf16.vlgmr.msra.gmra.mrb[40].mxu0 %v10816_v12  ;;  %2386 = vmatmul.mubr.bf16.vlgmr.msra.gmra.mrb[40].mxu1 %v10816_v12  ;;  %v2275_v16 = vadd.f32 1.0, %v7865_v5  ;;  %v7867_v38 = vpop.eup %7866  ;;  %v12590_v5 = vld [vmem:[#allocation114_spill] sm:$0xff]  ;;  %v12612_v12 = vld [vmem:[#allocation120_spill] sm:$0xff] }
 0x55a   :  { %7876 = vpow2.f32 %v6517_v52  ;;  %2405 = vmatpush1.bf16.msra.mxu0 %v10395_v4  ;;  %2448 = vmatpush1.bf16.msra.mxu1 %v10401_v57  ;;  %v7869_v7 = vpop.eup %7868 }
 0x55b   :  { %7878 = vrcp.f32 %v2274_v19  ;;  %2406 = vmatprep.subr.bf16.mxu0 %v10407_v18  ;;  %2449 = vmatprep.subr.bf16.mxu1 %v10413_v42  ;;  %v7871_v46 = vpop.eup %7870  ;;  %v2292_v33 = vadd.f32 1.0, %v7869_v7  ;;  %v12593_v7 = vld [vmem:[#allocation16_spill] sm:$0xff] }
 0x55c   :  { %2436 = vmatprep.mubr.bf16.mxu0 %v12405_v15  ;;  %2479 = vmatprep.mubr.bf16.mxu1 %v12405_v15  ;;  %7880 = vrcp.f32 %v2275_v16  ;;  %v12591_v16 = vld [vmem:[#allocation115_spill] sm:$0xff] }
 0x55d   :  { %7882 = vrcp.f32 %v2292_v33  ;;  %v12601_v33 = vld [vmem:[#allocation24_spill] sm:$0xff] }
 0x55e   :  { %2407 = vmatpush1.bf16.msra.mxu0 %v10421_v14  ;;  %2450 = vmatpush1.bf16.msra.mxu1 %v10427_v40 }
 0x55f   :  { %2408 = vmatprep.subr.bf16.mxu0 %v10433_v61  ;;  %2451 = vmatprep.subr.bf16.mxu1 %v10439_v50 }
 0x562   :  { %v7873_v36 = vpop.eup %7872  ;;  %2409 = vmatpush1.bf16.msra.mxu0 %v10445_v44  ;;  %2452 = vmatpush1.bf16.msra.mxu1 %v10451_v62 }
 0x563   :  { %v7875_v9 = vpop.eup %7874  ;;  %v2300_v49 = vmul.f32 %v7873_v36, %v7867_v38  ;;  %2410 = vmatprep.subr.bf16.mxu0 %v10457_v31  ;;  %2453 = vmatprep.subr.bf16.mxu1 %v10463_v21  ;;  %v12592_v38 = vld [vmem:[#allocation15_spill] sm:$0xff]  ;;  %v12595_v36 = vld [vmem:[#allocation18_spill] sm:$0xff] }
 0x564   :  { %v7877_v17 = vpop.eup %7876  ;;  %v2298_v48 = vmul.f32 %v7875_v9, %v10467_v59  ;;  %v12596_v9 = vld [vmem:[#allocation19_spill] sm:$0xff] }
 0x565   :  { %v7879_v8 = vpop.eup %7878  ;;  %v2293_v58 = vadd.f32 1.0, %v7877_v17  ;;  %v12598_v17 = vld [vmem:[#allocation21_spill] sm:$0xff] }
 0x566   :  { %v10835_v63 = vadd.f32 %v2300_v49, %v2298_v48  ;;  %v2301_v37 = vmul.f32 %v7879_v8, %v7871_v46  ;;  %2411 = vmatpush1.bf16.msra.mxu0 %v10472_v56  ;;  %2454 = vmatpush1.bf16.msra.mxu1 %v10478_v43  ;;  %v7881_v29 = vpop.eup %7880  ;;  %v12594_v46 = vld [vmem:[#allocation17_spill] sm:$0xff]  ;;  %v12597_v49 = vld [vmem:[#allocation20_spill] sm:$0xff]  ;;  %v12599_v48 = vld [vmem:[#allocation22_spill] sm:$0xff] }
 0x567   :  { %2412 = vmatprep.subr.bf16.mxu0 %v10484_v32  ;;  %2455 = vmatprep.subr.bf16.mxu1 %v10490_v20  ;;  %v2299_v54 = vmul.f32 %v7881_v29, %v10495_v23  ;;  %v7883_v23 = vpop.eup %7882  ;;  %v12600_v8 = vld [vmem:[#allocation23_spill] sm:$0xff]  ;;  %v12603_v29 = vld [vmem:[#allocation26_spill] sm:$0xff] }
 0x568   :  { %7884 = vtanh.f32 %v10835_v63 }
 0x569   :  { %v10843_v59 = vadd.f32 %v2301_v37, %v2299_v54  ;;  %7886 = vrcp.f32 %v2293_v58  ;;  %v12602_v37 = vld [vmem:[#allocation25_spill] sm:$0xff]  ;;  %v12604_v58 = vld [vmem:[#allocation27_spill] sm:$0xff]  ;;  %v12605_v54 = vld [vmem:[#allocation28_spill] sm:$0xff] }
 0x56a   :  { %2413 = vmatpush1.bf16.msra.mxu0 %v10500_v27  ;;  %2456 = vmatpush1.bf16.msra.mxu1 %v10506_v22 }
 0x56b   :  { %2414 = vmatprep.subr.bf16.mxu0 %v10512_v25  ;;  %2457 = vmatprep.subr.bf16.mxu1 %v10518_v53  ;;  %7888 = vtanh.f32 %v10843_v59 }
 0x56e   :  { %2415 = vmatpush1.bf16.msra.mxu0 %v10525_v60  ;;  %2458 = vmatpush1.bf16.msra.mxu1 %v10531_v24 }
 0x56f   :  { %2416 = vmatprep.subr.bf16.mxu0 %v10537_v55  ;;  %2459 = vmatprep.subr.bf16.mxu1 %v10543_v51 }
 0x572   :  { %2417 = vmatpush1.bf16.msra.mxu0 %v10549_v28  ;;  %2460 = vmatpush1.bf16.msra.mxu1 %v10555_v13  ;;  %v7885_v6 = vpop.eup %7884 }
 0x573   :  { %2418 = vmatprep.subr.bf16.mxu0 %v10561_v3  ;;  %2461 = vmatprep.subr.bf16.mxu1 %v10567_v10  ;;  %v7887_v45 = vpop.eup %7886  ;;  %v2306_v39 = vmul.f32 %v7885_v6, %v7883_v23  ;;  %v12606_v23 = vld [vmem:[#allocation29_spill] sm:$0xff]  ;;  %v12607_v6 = vld [vmem:[#allocation30_spill] sm:$0xff] }
 0x575   :  { %v7889_v52 = vpop.eup %7888 }
 0x576   :  { %2419 = vmatpush1.bf16.msra.mxu0 %v10573_v0  ;;  %2462 = vmatpush1.bf16.msra.mxu1 %v10579_v1  ;;  %v2307_v30 = vmul.f32 %v7889_v52, %v7887_v45  ;;  %v12608_v45 = vld [vmem:[#allocation116_spill] sm:$0xff]  ;;  %v12609_v52 = vld [vmem:[#allocation117_spill] sm:$0xff] }
 0x577   :  { %2596 = vmatprep.subr.bf16.mxu0 %v10585_v2  ;;  %2639 = vmatprep.subr.bf16.mxu1 %v10591_v41 }
 0x578   :  { %v10862_v19 = vpack.c.bf16 %v2307_v30, %v2306_v39  ;;  %v12610_v39 = vld [vmem:[#allocation118_spill] sm:$0xff]  ;;  %v12611_v30 = vld [vmem:[#allocation119_spill] sm:$0xff] }
 0x57a   :  { %12589 = vst [vmem:[#allocation128_spill] sm:$0xff] %v10862_v19  ;;  %2437 = vmatmul.mubr.bf16.vlgmr.msra.gmra.mrb[44].mxu0 %v10862_v19  ;;  %2480 = vmatmul.mubr.bf16.vlgmr.msra.gmra.mrb[44].mxu1 %v10862_v19  ;;  %v12613_v19 = vld [vmem:[#allocation121_spill] sm:$0xff] }
 0x57b   :  { %2597 = vmatpush1.bf16.msra.mxu0 %v10601_v26  ;;  %2640 = vmatpush1.bf16.msra.mxu1 %v10607_v34 }
 0x57c   :  { %2598 = vmatprep.subr.bf16.mxu0 %v10613_v35  ;;  %2641 = vmatprep.subr.bf16.mxu1 %v10619_v47 }
 0x57d   :  { %2628 = vmatprep.mubr.bf16.mxu0 %v12405_v15  ;;  %2671 = vmatprep.mubr.bf16.mxu1 %v12405_v15 }
 0x57f   :  { %2599 = vmatpush1.bf16.msra.mxu0 %v12590_v5  ;;  %2642 = vmatpush1.bf16.msra.mxu1 %v12591_v16  ;;  %v12624_v16 = vld [vmem:[#allocation69_spill] sm:$0xff] }
 0x580   :  { %2600 = vmatprep.subr.bf16.mxu0 %v12592_v38  ;;  %2643 = vmatprep.subr.bf16.mxu1 %v12593_v7 }
 0x583   :  { %2601 = vmatpush1.bf16.msra.mxu0 %v12594_v46  ;;  %2644 = vmatpush1.bf16.msra.mxu1 %v12595_v36 }
 0x584   :  { %2602 = vmatprep.subr.bf16.mxu0 %v12596_v9  ;;  %2645 = vmatprep.subr.bf16.mxu1 %v12597_v49 }
 0x587   :  { %2603 = vmatpush1.bf16.msra.mxu0 %v12598_v17  ;;  %2646 = vmatpush1.bf16.msra.mxu1 %v12599_v48  ;;  %v12620_v48 = vld [vmem:[#allocation65_spill] sm:$0xff]  ;;  %v12621_v17 = vld [vmem:[#allocation66_spill] sm:$0xff] }
 0x588   :  { %2604 = vmatprep.subr.bf16.mxu0 %v12600_v8  ;;  %2647 = vmatprep.subr.bf16.mxu1 %v12601_v33  ;;  %v12619_v33 = vld [vmem:[#allocation64_spill] sm:$0xff] }
 0x58b   :  { %2605 = vmatpush1.bf16.msra.mxu0 %v12602_v37  ;;  %2648 = vmatpush1.bf16.msra.mxu1 %v12603_v29  ;;  %v12614_v29 = vld [vmem:[#allocation122_spill] sm:$0xff]  ;;  %v12618_v37 = vld [vmem:[#allocation63_spill] sm:$0xff] }
 0x58c   :  { %2606 = vmatprep.subr.bf16.mxu0 %v12604_v58  ;;  %2649 = vmatprep.subr.bf16.mxu1 %v12605_v54  ;;  %v12615_v58 = vld [vmem:[#allocation123_spill] sm:$0xff]  ;;  %v12616_v54 = vld [vmem:[#allocation124_spill] sm:$0xff] }
 0x58f   :  { %2607 = vmatpush1.bf16.msra.mxu0 %v12606_v23  ;;  %2650 = vmatpush1.bf16.msra.mxu1 %v12607_v6  ;;  %v12617_v23 = vld [vmem:[#allocation125_spill] sm:$0xff] }
 0x590   :  { %2608 = vmatprep.subr.bf16.mxu0 %v12608_v45  ;;  %2651 = vmatprep.subr.bf16.mxu1 %v12609_v52 }
 0x593   :  { %2609 = vmatpush1.bf16.msra.mxu0 %v12610_v39  ;;  %2652 = vmatpush1.bf16.msra.mxu1 %v12611_v30 }
 0x594   :  { %2610 = vmatprep.subr.bf16.mxu0 %v12612_v12  ;;  %2653 = vmatprep.subr.bf16.mxu1 %v12613_v19 }
 0x597   :  { %2611 = vmatpush1.bf16.msra.mxu0 %v12614_v29  ;;  %2654 = vmatpush1.bf16.msra.mxu1 %v12615_v58  ;;  %v12622_v58 = vld [vmem:[#allocation67_spill] sm:$0xff] }
 0x598   :  { %2690 = vmatprep.subr.bf16.mxu0 %v12616_v54  ;;  %2733 = vmatprep.subr.bf16.mxu1 %v12617_v23  ;;  %v12623_v54 = vld [vmem:[#allocation68_spill] sm:$0xff] }
 0x62c   :  { %v2344_v6 = vpop.f32.mrb[40].mxu0  ;;  %v2387_v45 = vpop.f32.mrb[40].mxu1 }
 0x62d   :  { %v2396_v52 = vadd.f32 %v2344_v6, %v12618_v37  ;;  %v2398_v39 = vadd.f32 %v2387_v45, %v12619_v33  ;;  %v2346_v8 = vpop.f32.mrb[41].mxu0  ;;  %v2389_v30 = vpop.f32.mrb[41].mxu1  ;;  %v12625_v6 = vld [vmem:[#allocation70_spill] sm:$0xff] }
 0x62e   :  { %v2397_v12 = vadd.f32 %v2346_v8, %v12620_v48  ;;  %v2399_v19 = vadd.f32 %v2389_v30, %v12621_v17  ;;  %v2348_v49 = vpop.f32.mrb[42].mxu0  ;;  %v2391_v29 = vpop.f32.mrb[42].mxu1 }
 0x62f   :  { %v6518_v9 = vmul.f32 -1.442695, %v2396_v52  ;;  %v2400_v36 = vadd.f32 %v2348_v49, %v12622_v58  ;;  %v2402_v46 = vadd.f32 %v2391_v29, %v12623_v54  ;;  %v2350_v23 = vpop.f32.mrb[43].mxu0  ;;  %v2393_v7 = vpop.f32.mrb[43].mxu1 }
 0x630   :  { %v6519_v38 = vmul.f32 -1.442695, %v2397_v12  ;;  %v2401_v37 = vadd.f32 %v2350_v23, %v12624_v16  ;;  %v2403_v33 = vadd.f32 %v2393_v7, %v12625_v6  ;;  %v6522_v17 = vmul.f32 -1.442695, %v2399_v19 }
 0x631   :  { %7890 = vpow2.f32 %v6518_v9  ;;  %v6520_v45 = vmul.f32 -1.442695, %v2400_v36 }
 0x632   :  { %7892 = vpow2.f32 %v6519_v38  ;;  %v6521_v48 = vmul.f32 -1.442695, %v2401_v37  ;;  %v6523_v29 = vmul.f32 -1.442695, %v2403_v33 }
 0x633   :  { %7894 = vpow2.f32 %v6520_v45 }
 0x634   :  { %7896 = vpow2.f32 %v6521_v48 }
 0x635   :  { %7898 = vtanh.f32 %v2398_v39 }
 0x636   :  { %7900 = vpow2.f32 %v6522_v17 }
 0x637   :  { %7902 = vtanh.f32 %v2402_v46 }
 0x63b   :  { %v7891_v8 = vpop.eup %7890 }
 0x63c   :  { %v7893_v52 = vpop.eup %7892  ;;  %v2510_v49 = vadd.f32 1.0, %v7891_v8  ;;  %v12627_v8 = vld [vmem:[#allocation126_spill] sm:$0xff] }
 0x63d   :  { %v2511_v58 = vadd.f32 1.0, %v7893_v52  ;;  %v7895_v12 = vpop.eup %7894 }
 0x63e   :  { %7904 = vrcp.f32 %v2510_v49  ;;  %v2512_v16 = vadd.f32 1.0, %v7895_v12  ;;  %v7897_v7 = vpop.eup %7896 }
 0x63f   :  { %7906 = vrcp.f32 %v2511_v58  ;;  %v2513_v38 = vadd.f32 1.0, %v7897_v7  ;;  %v7899_v36 = vpop.eup %7898  ;;  %v12628_v58 = vld [vmem:[#allocation71_spill] sm:$0xff] }
 0x640   :  { %7908 = vpow2.f32 %v6523_v29  ;;  %v7901_v9 = vpop.eup %7900 }
 0x641   :  { %7910 = vrcp.f32 %v2512_v16  ;;  %v7903_v19 = vpop.eup %7902  ;;  %v2530_v46 = vadd.f32 1.0, %v7901_v9  ;;  %v12629_v16 = vld [vmem:[#allocation72_spill] sm:$0xff]  ;;  %v12631_v9 = vld [vmem:[#allocation73_spill] sm:$0xff] }
 0x642   :  { %7912 = vrcp.f32 %v2513_v38 }
 0x643   :  { %7914 = vrcp.f32 %v2530_v46 }
 0x648   :  { %v7905_v54 = vpop.eup %7904 }
 0x649   :  { %v7907_v23 = vpop.eup %7906  ;;  %v2538_v39 = vmul.f32 %v7905_v54, %v7899_v36 }
 0x64a   :  { %v7909_v30 = vpop.eup %7908  ;;  %v2536_v37 = vmul.f32 %v7907_v23, %v10801_v11 }
 0x64b   :  { %v7911_v6 = vpop.eup %7910  ;;  %v2531_v17 = vadd.f32 1.0, %v7909_v30 }
 0x64c   :  { %v10909_v33 = vadd.f32 %v2538_v39, %v2536_v37  ;;  %v2539_v45 = vmul.f32 %v7911_v6, %v7903_v19  ;;  %v7913_v48 = vpop.eup %7912  ;;  %v12632_v19 = vld [vmem:[#allocation74_spill] sm:$0xff]  ;;  %v12633_v6 = vld [vmem:[#allocation75_spill] sm:$0xff] }
 0x64d   :  { %v2537_v52 = vmul.f32 %v7913_v48, %v12627_v8  ;;  %v2438_v49 = vpop.f32.mrb[44].mxu0  ;;  %v2481_v29 = vpop.f32.mrb[44].mxu1  ;;  %v12634_v48 = vld [vmem:[#allocation76_spill] sm:$0xff] }
 0x64e   :  { %12626 = vst [vmem:[#allocation129_spill] sm:$0xff] %v10909_v33  ;;  %v2490_v12 = vadd.f32 %v2438_v49, %v12628_v58  ;;  %v2492_v7 = vadd.f32 %v2481_v29, %v12629_v16  ;;  %v2440_v38 = vpop.f32.mrb[45].mxu0  ;;  %v2483_v36 = vpop.f32.mrb[45].mxu1  ;;  %7916 = vtanh.f32 %v10909_v33  ;;  %v12635_v16 = vld [vmem:[#allocation77_spill] sm:$0xff] }
 0x64f   :  { %v10915_v11 = vadd.f32 %v2539_v45, %v2537_v52  ;;  %v2491_v54 = vadd.f32 %v2440_v38, %v12631_v9  ;;  %v2493_v23 = vadd.f32 %v2483_v36, %v12632_v19  ;;  %v2442_v39 = vpop.f32.mrb[46].mxu0  ;;  %v2485_v30 = vpop.f32.mrb[46].mxu1  ;;  %7918 = vrcp.f32 %v2531_v17  ;;  %v12636_v38 = vld [vmem:[#allocation78_spill] sm:$0xff] }
 0x650   :  { %v6524_v37 = vmul.f32 -1.442695, %v2490_v12  ;;  %v2494_v46 = vadd.f32 %v2442_v39, %v12633_v6  ;;  %v2496_v8 = vadd.f32 %v2485_v30, %v12634_v48  ;;  %v2444_v49 = vpop.f32.mrb[47].mxu0  ;;  %v2487_v29 = vpop.f32.mrb[47].mxu1 }
 0x651   :  { %12630 = vst [vmem:[#allocation130_spill] sm:$0xff] %v10915_v11  ;;  %7920 = vtanh.f32 %v10915_v11  ;;  %v6525_v58 = vmul.f32 -1.442695, %v2491_v54  ;;  %v2495_v45 = vadd.f32 %v2444_v49, %v12635_v16  ;;  %v2497_v9 = vadd.f32 %v2487_v29, %v12636_v38  ;;  %v7915_v17 = vpop.eup %7914  ;;  %v12659_v38 = vld [vmem:[#allocation121_spill] sm:$0xff] }
 0x652   :  { %7922 = vpow2.f32 %v6524_v37  ;;  %v6526_v52 = vmul.f32 -1.442695, %v2494_v46  ;;  %v6528_v19 = vmul.f32 -1.442695, %v2493_v23 }
 0x653   :  { %7924 = vpow2.f32 %v6525_v58  ;;  %v6527_v36 = vmul.f32 -1.442695, %v2495_v45  ;;  %v6529_v37 = vmul.f32 -1.442695, %v2497_v9  ;;  %v12657_v45 = vld [vmem:[#allocation119_spill] sm:$0xff]  ;;  %v12660_v9 = vld [vmem:[#allocation122_spill] sm:$0xff] }
 0x654   :  { %7926 = vpow2.f32 %v6526_v52  ;;  %v12658_v52 = vld [vmem:[#allocation120_spill] sm:$0xff] }
 0x655   :  { %7928 = vpow2.f32 %v6527_v36  ;;  %v12661_v36 = vld [vmem:[#allocation123_spill] sm:$0xff] }
 0x656   :  { %7930 = vtanh.f32 %v2492_v7 }
 0x657   :  { %7932 = vpow2.f32 %v6528_v19 }
 0x658   :  { %v7917_v12 = vpop.eup %7916  ;;  %7934 = vtanh.f32 %v2496_v8 }
 0x659   :  { %v7919_v39 = vpop.eup %7918  ;;  %v2544_v48 = vmul.f32 %v7917_v12, %v7915_v17  ;;  %v12662_v17 = vld [vmem:[#allocation124_spill] sm:$0xff]  ;;  %v12663_v12 = vld [vmem:[#allocation125_spill] sm:$0xff] }
 0x65b   :  { %v7921_v30 = vpop.eup %7920 }
 0x65c   :  { %v7923_v6 = vpop.eup %7922  ;;  %v2545_v11 = vmul.f32 %v7921_v30, %v7919_v39  ;;  %v12664_v30 = vld [vmem:[#allocation79_spill] sm:$0xff] }
 0x65d   :  { %v7925_v54 = vpop.eup %7924  ;;  %v2558_v33 = vadd.f32 1.0, %v7923_v6 }
 0x65e   :  { %v2559_v46 = vadd.f32 1.0, %v7925_v54  ;;  %v10924_v49 = vpack.c.bf16 %v2545_v11, %v2544_v48  ;;  %v7927_v29 = vpop.eup %7926  ;;  %v12665_v48 = vld [vmem:[#allocation80_spill] sm:$0xff] }
 0x65f   :  { %7936 = vrcp.f32 %v2558_v33  ;;  %v2560_v58 = vadd.f32 1.0, %v7927_v29  ;;  %v7929_v23 = vpop.eup %7928  ;;  %v12666_v29 = vld [vmem:[#allocation81_spill] sm:$0xff] }
 0x660   :  { %7938 = vrcp.f32 %v2559_v46  ;;  %2629 = vmatmul.mubr.bf16.vlgmr.msra.gmra.mrb[48].mxu0 %v10924_v49  ;;  %2672 = vmatmul.mubr.bf16.vlgmr.msra.gmra.mrb[48].mxu1 %v10924_v49  ;;  %v2561_v7 = vadd.f32 1.0, %v7929_v23  ;;  %v7931_v33 = vpop.eup %7930  ;;  %v12667_v23 = vld [vmem:[#allocation82_spill] sm:$0xff] }
 0x661   :  { %7940 = vpow2.f32 %v6529_v37  ;;  %2691 = vmatpush1.bf16.msra.mxu0 %v10395_v4  ;;  %2734 = vmatpush1.bf16.msra.mxu1 %v10401_v57  ;;  %v7933_v4 = vpop.eup %7932 }
 0x662   :  { %7942 = vrcp.f32 %v2560_v58  ;;  %2692 = vmatprep.subr.bf16.mxu0 %v10407_v18  ;;  %2735 = vmatprep.subr.bf16.mxu1 %v10413_v42  ;;  %v7935_v57 = vpop.eup %7934 }
 0x663   :  { %2722 = vmatprep.mubr.bf16.mxu0 %v12405_v15  ;;  %2765 = vmatprep.mubr.bf16.mxu1 %v12405_v15  ;;  %7944 = vrcp.f32 %v2561_v7 }
 0x665   :  { %2693 = vmatpush1.bf16.msra.mxu0 %v10421_v14  ;;  %2736 = vmatpush1.bf16.msra.mxu1 %v10427_v40 }
 0x666   :  { %2694 = vmatprep.subr.bf16.mxu0 %v10433_v61  ;;  %2737 = vmatprep.subr.bf16.mxu1 %v10439_v50  ;;  %v2578_v61 = vadd.f32 1.0, %v7933_v4 }
 0x668   :  { %7946 = vrcp.f32 %v2578_v61 }
 0x669   :  { %v7937_v11 = vpop.eup %7936  ;;  %2695 = vmatpush1.bf16.msra.mxu0 %v10445_v44  ;;  %2738 = vmatpush1.bf16.msra.mxu1 %v10451_v62 }
 0x66a   :  { %v7939_v18 = vpop.eup %7938  ;;  %v2586_v42 = vmul.f32 %v7937_v11, %v7931_v33  ;;  %2696 = vmatprep.subr.bf16.mxu0 %v10457_v31  ;;  %2739 = vmatprep.subr.bf16.mxu1 %v10463_v21  ;;  %v12668_v11 = vld [vmem:[#allocation83_spill] sm:$0xff] }
 0x66b   :  { %v7941_v14 = vpop.eup %7940  ;;  %v2584_v40 = vmul.f32 %v7939_v18, %v10835_v63  ;;  %v12654_v63 = vld [vmem:[#allocation116_spill] sm:$0xff] }
 0x66c   :  { %v7943_v8 = vpop.eup %7942  ;;  %v2579_v62 = vadd.f32 1.0, %v7941_v14 }
 0x66d   :  { %v10943_v16 = vadd.f32 %v2586_v42, %v2584_v40  ;;  %v2587_v50 = vmul.f32 %v7943_v8, %v7935_v57  ;;  %2697 = vmatpush1.bf16.msra.mxu0 %v10472_v56  ;;  %2740 = vmatpush1.bf16.msra.mxu1 %v10478_v43  ;;  %v7945_v44 = vpop.eup %7944  ;;  %v12669_v42 = vld [vmem:[#allocation84_spill] sm:$0xff] }
 0x66e   :  { %2698 = vmatprep.subr.bf16.mxu0 %v10484_v32  ;;  %2741 = vmatprep.subr.bf16.mxu1 %v10490_v20  ;;  %v2585_v31 = vmul.f32 %v7945_v44, %v10843_v59  ;;  %v12655_v59 = vld [vmem:[#allocation117_spill] sm:$0xff] }
 0x66f   :  { %7948 = vtanh.f32 %v10943_v16 }
 0x670   :  { %v10951_v21 = vadd.f32 %v2587_v50, %v2585_v31  ;;  %7950 = vrcp.f32 %v2579_v62  ;;  %v12670_v50 = vld [vmem:[#allocation85_spill] sm:$0xff]  ;;  %v12671_v62 = vld [vmem:[#allocation86_spill] sm:$0xff] }
 0x671   :  { %2699 = vmatpush1.bf16.msra.mxu0 %v10500_v27  ;;  %2742 = vmatpush1.bf16.msra.mxu1 %v10506_v22 }
 0x672   :  { %2700 = vmatprep.subr.bf16.mxu0 %v10512_v25  ;;  %2743 = vmatprep.subr.bf16.mxu1 %v10518_v53  ;;  %7952 = vtanh.f32 %v10951_v21  ;;  %v7947_v56 = vpop.eup %7946  ;;  %v12637_v53 = vld [vmem:[#allocation115_spill] sm:$0xff] }
 0x675   :  { %2701 = vmatpush1.bf16.msra.mxu0 %v10525_v60  ;;  %2744 = vmatpush1.bf16.msra.mxu1 %v10531_v24  ;;  %v12638_v60 = vld [vmem:[#allocation15_spill] sm:$0xff]  ;;  %v12639_v24 = vld [vmem:[#allocation16_spill] sm:$0xff] }
 0x676   :  { %2702 = vmatprep.subr.bf16.mxu0 %v10537_v55  ;;  %2745 = vmatprep.subr.bf16.mxu1 %v10543_v51  ;;  %v12640_v55 = vld [vmem:[#allocation17_spill] sm:$0xff]  ;;  %v12641_v51 = vld [vmem:[#allocation18_spill] sm:$0xff] }
 0x679   :  { %2703 = vmatpush1.bf16.msra.mxu0 %v10549_v28  ;;  %2746 = vmatpush1.bf16.msra.mxu1 %v10555_v13  ;;  %v7949_v43 = vpop.eup %7948  ;;  %v12642_v28 = vld [vmem:[#allocation19_spill] sm:$0xff]  ;;  %v12643_v13 = vld [vmem:[#allocation20_spill] sm:$0xff] }
 0x67a   :  { %2704 = vmatprep.subr.bf16.mxu0 %v10561_v3  ;;  %2747 = vmatprep.subr.bf16.mxu1 %v10567_v10  ;;  %v7951_v32 = vpop.eup %7950  ;;  %v2592_v27 = vmul.f32 %v7949_v43, %v7947_v56  ;;  %v12644_v3 = vld [vmem:[#allocation21_spill] sm:$0xff]  ;;  %v12645_v10 = vld [vmem:[#allocation22_spill] sm:$0xff] }
 0x67c   :  { %v7953_v20 = vpop.eup %7952 }
 0x67d   :  { %2705 = vmatpush1.bf16.msra.mxu0 %v10573_v0  ;;  %2748 = vmatpush1.bf16.msra.mxu1 %v10579_v1  ;;  %v2593_v22 = vmul.f32 %v7953_v20, %v7951_v32  ;;  %v12646_v0 = vld [vmem:[#allocation23_spill] sm:$0xff]  ;;  %v12647_v1 = vld [vmem:[#allocation24_spill] sm:$0xff] }
 0x67e   :  { %2882 = vmatprep.subr.bf16.mxu0 %v10585_v2  ;;  %2925 = vmatprep.subr.bf16.mxu1 %v10591_v41  ;;  %v12648_v2 = vld [vmem:[#allocation25_spill] sm:$0xff]  ;;  %v12649_v41 = vld [vmem:[#allocation26_spill] sm:$0xff] }
 0x67f   :  { %v10970_v25 = vpack.c.bf16 %v2593_v22, %v2592_v27 }
 0x681   :  { %2723 = vmatmul.mubr.bf16.vlgmr.msra.gmra.mrb[52].mxu0 %v10970_v25  ;;  %2766 = vmatmul.mubr.bf16.vlgmr.msra.gmra.mrb[52].mxu1 %v10970_v25 }
 0x682   :  { %2883 = vmatpush1.bf16.msra.mxu0 %v10601_v26  ;;  %2926 = vmatpush1.bf16.msra.mxu1 %v10607_v34  ;;  %v12650_v26 = vld [vmem:[#allocation27_spill] sm:$0xff]  ;;  %v12651_v34 = vld [vmem:[#allocation28_spill] sm:$0xff] }
 0x683   :  { %2884 = vmatprep.subr.bf16.mxu0 %v10613_v35  ;;  %2927 = vmatprep.subr.bf16.mxu1 %v10619_v47  ;;  %v12652_v35 = vld [vmem:[#allocation29_spill] sm:$0xff]  ;;  %v12653_v47 = vld [vmem:[#allocation30_spill] sm:$0xff] }
 0x684   :  { %2914 = vmatprep.mubr.bf16.mxu0 %v12405_v15  ;;  %2957 = vmatprep.mubr.bf16.mxu1 %v12405_v15 }
 0x686   :  { %2885 = vmatpush1.bf16.msra.mxu0 %v12590_v5  ;;  %2928 = vmatpush1.bf16.msra.mxu1 %v12637_v53  ;;  %v12656_v5 = vld [vmem:[#allocation118_spill] sm:$0xff] }
 0x687   :  { %2886 = vmatprep.subr.bf16.mxu0 %v12638_v60  ;;  %2929 = vmatprep.subr.bf16.mxu1 %v12639_v24 }
 0x68a   :  { %2887 = vmatpush1.bf16.msra.mxu0 %v12640_v55  ;;  %2930 = vmatpush1.bf16.msra.mxu1 %v12641_v51 }
 0x68b   :  { %2888 = vmatprep.subr.bf16.mxu0 %v12642_v28  ;;  %2931 = vmatprep.subr.bf16.mxu1 %v12643_v13 }
 0x68e   :  { %2889 = vmatpush1.bf16.msra.mxu0 %v12644_v3  ;;  %2932 = vmatpush1.bf16.msra.mxu1 %v12645_v10 }
 0x68f   :  { %2890 = vmatprep.subr.bf16.mxu0 %v12646_v0  ;;  %2933 = vmatprep.subr.bf16.mxu1 %v12647_v1 }
 0x692   :  { %2891 = vmatpush1.bf16.msra.mxu0 %v12648_v2  ;;  %2934 = vmatpush1.bf16.msra.mxu1 %v12649_v41 }
 0x693   :  { %2892 = vmatprep.subr.bf16.mxu0 %v12650_v26  ;;  %2935 = vmatprep.subr.bf16.mxu1 %v12651_v34  ;;  %v12672_v26 = vld [vmem:[#allocation129_spill] sm:$0xff] }
 0x696   :  { %2893 = vmatpush1.bf16.msra.mxu0 %v12652_v35  ;;  %2936 = vmatpush1.bf16.msra.mxu1 %v12653_v47 }
 0x697   :  { %2894 = vmatprep.subr.bf16.mxu0 %v12654_v63  ;;  %2937 = vmatprep.subr.bf16.mxu1 %v12655_v59 }
 0x69a   :  { %2895 = vmatpush1.bf16.msra.mxu0 %v12656_v5  ;;  %2938 = vmatpush1.bf16.msra.mxu1 %v12657_v45 }
 0x69b   :  { %2896 = vmatprep.subr.bf16.mxu0 %v12658_v52  ;;  %2939 = vmatprep.subr.bf16.mxu1 %v12659_v38  ;;  %v12673_v52 = vld [vmem:[#allocation130_spill] sm:$0xff] }
 0x69e   :  { %2897 = vmatpush1.bf16.msra.mxu0 %v12660_v9  ;;  %2940 = vmatpush1.bf16.msra.mxu1 %v12661_v36 }
 0x69f   :  { %2976 = vmatprep.subr.bf16.mxu0 %v12662_v17  ;;  %3019 = vmatprep.subr.bf16.mxu1 %v12663_v12  ;;  %v12674_v17 = vld [vmem:[#allocation87_spill] sm:$0xff] }
 0x733   :  { %v2630_v19 = vpop.f32.mrb[48].mxu0  ;;  %v2673_v39 = vpop.f32.mrb[48].mxu1 }
 0x734   :  { %v2682_v6 = vadd.f32 %v2630_v19, %v12664_v30  ;;  %v2684_v54 = vadd.f32 %v2673_v39, %v12665_v48  ;;  %v2632_v37 = vpop.f32.mrb[49].mxu0  ;;  %v2675_v46 = vpop.f32.mrb[49].mxu1  ;;  %v12675_v19 = vld [vmem:[#allocation88_spill] sm:$0xff] }
 0x735   :  { %v2683_v58 = vadd.f32 %v2632_v37, %v12666_v29  ;;  %v2685_v7 = vadd.f32 %v2675_v46, %v12667_v23  ;;  %v2634_v33 = vpop.f32.mrb[50].mxu0  ;;  %v2677_v4 = vpop.f32.mrb[50].mxu1  ;;  %v12677_v46 = vld [vmem:[#allocation90_spill] sm:$0xff] }
 0x736   :  { %v6530_v57 = vmul.f32 -1.442695, %v2682_v6  ;;  %v2686_v18 = vadd.f32 %v2634_v33, %v12668_v11  ;;  %v2688_v14 = vadd.f32 %v2677_v4, %v12669_v42  ;;  %v2636_v40 = vpop.f32.mrb[51].mxu0  ;;  %v2679_v8 = vpop.f32.mrb[51].mxu1  ;;  %v12678_v33 = vld [vmem:[#allocation91_spill] sm:$0xff] }
 0x737   :  { %v6531_v61 = vmul.f32 -1.442695, %v2683_v58  ;;  %v2687_v44 = vadd.f32 %v2636_v40, %v12670_v50  ;;  %v2689_v31 = vadd.f32 %v2679_v8, %v12671_v62  ;;  %v6534_v32 = vmul.f32 -1.442695, %v2685_v7  ;;  %v12680_v40 = vld [vmem:[#allocation93_spill] sm:$0xff]  ;;  %v12681_v50 = vld [vmem:[#allocation94_spill] sm:$0xff] }
 0x738   :  { %7954 = vpow2.f32 %v6530_v57  ;;  %v6532_v56 = vmul.f32 -1.442695, %v2686_v18  ;;  %v12679_v57 = vld [vmem:[#allocation92_spill] sm:$0xff] }
 0x739   :  { %7956 = vpow2.f32 %v6531_v61  ;;  %v6533_v43 = vmul.f32 -1.442695, %v2687_v44  ;;  %v6535_v53 = vmul.f32 -1.442695, %v2689_v31 }
 0x73a   :  { %7958 = vpow2.f32 %v6532_v56 }
 0x73b   :  { %7960 = vpow2.f32 %v6533_v43 }
 0x73c   :  { %7962 = vtanh.f32 %v2684_v54  ;;  %v12676_v54 = vld [vmem:[#allocation89_spill] sm:$0xff] }
 0x73d   :  { %7964 = vpow2.f32 %v6534_v32 }
 0x73e   :  { %7966 = vtanh.f32 %v2688_v14 }
 0x742   :  { %v7955_v20 = vpop.eup %7954 }
 0x743   :  { %v7957_v27 = vpop.eup %7956  ;;  %v2796_v22 = vadd.f32 1.0, %v7955_v20 }
 0x744   :  { %v2797_v60 = vadd.f32 1.0, %v7957_v27  ;;  %v7959_v24 = vpop.eup %7958 }
 0x745   :  { %7968 = vrcp.f32 %v2796_v22  ;;  %v2798_v55 = vadd.f32 1.0, %v7959_v24  ;;  %v7961_v51 = vpop.eup %7960 }
 0x746   :  { %7970 = vrcp.f32 %v2797_v60  ;;  %v2799_v28 = vadd.f32 1.0, %v7961_v51  ;;  %v7963_v13 = vpop.eup %7962 }
 0x747   :  { %7972 = vpow2.f32 %v6535_v53  ;;  %v7965_v3 = vpop.eup %7964 }
 0x748   :  { %7974 = vrcp.f32 %v2798_v55  ;;  %v7967_v10 = vpop.eup %7966  ;;  %v2816_v47 = vadd.f32 1.0, %v7965_v3 }
 0x749   :  { %7976 = vrcp.f32 %v2799_v28 }
 0x74a   :  { %7978 = vrcp.f32 %v2816_v47 }
 0x74f   :  { %v7969_v0 = vpop.eup %7968 }
 0x750   :  { %v7971_v1 = vpop.eup %7970  ;;  %v2824_v2 = vmul.f32 %v7969_v0, %v7963_v13  ;;  %v8498_v0 = vld [vmem:[%s12136_s2 + $0x100] ss:$16 sps:$4 sm:$0xff]  }
 0x751   :  { %v7973_v41 = vpop.eup %7972  ;;  %v2822_v34 = vmul.f32 %v7971_v1, %v12672_v26  ;;  %v8499_v1 = vld [vmem:[%s12136_s2 + $0x108] ss:$16 sps:$4 sm:$0xff]   ;;  %v8501_v26 = vld [vmem:[%s12136_s2 + $0x12c] ss:$16 sps:$4 sm:$0xff]  }
 0x752   :  { %v7975_v35 = vpop.eup %7974  ;;  %v2817_v45 = vadd.f32 1.0, %v7973_v41  ;;  %v8500_v41 = vld [vmem:[%s12136_s2 + $0x124] ss:$16 sps:$4 sm:$0xff]  }
 0x753   :  { %v11017_v63 = vadd.f32 %v2824_v2, %v2822_v34  ;;  %v2825_v59 = vmul.f32 %v7975_v35, %v7967_v10  ;;  %v7977_v5 = vpop.eup %7976  ;;  %v8502_v34 = vld [vmem:[%s12136_s2 + $0x120] ss:$16 sps:$4 sm:$0xff]   ;;  %v8503_v35 = vld [vmem:[%s12136_s2 + $0x128] ss:$16 sps:$4 sm:$0xff]  }
 0x754   :  { %v2823_v38 = vmul.f32 %v7977_v5, %v12673_v52  ;;  %v2724_v9 = vpop.f32.mrb[52].mxu0  ;;  %v2767_v36 = vpop.f32.mrb[52].mxu1  ;;  %v8505_v5 = vld [vmem:[%s12136_s2 + $0x14c] ss:$16 sps:$4 sm:$0xff]  }
 0x755   :  { %v2776_v12 = vadd.f32 %v2724_v9, %v12674_v17  ;;  %v2778_v39 = vadd.f32 %v2767_v36, %v12675_v19  ;;  %v2726_v30 = vpop.f32.mrb[53].mxu0  ;;  %v2769_v6 = vpop.f32.mrb[53].mxu1  ;;  %7980 = vtanh.f32 %v11017_v63  ;;  %v8506_v9 = vld [vmem:[%s12136_s2 + $0x140] ss:$16 sps:$4 sm:$0xff]   ;;  %v8507_v36 = vld [vmem:[%s12136_s2 + $0x148] ss:$16 sps:$4 sm:$0xff]  }
 0x756   :  { %v11023_v48 = vadd.f32 %v2825_v59, %v2823_v38  ;;  %v2777_v37 = vadd.f32 %v2726_v30, %v12676_v54  ;;  %v2779_v29 = vadd.f32 %v2769_v6, %v12677_v46  ;;  %v2728_v58 = vpop.f32.mrb[54].mxu0  ;;  %v2771_v23 = vpop.f32.mrb[54].mxu1  ;;  %7982 = vrcp.f32 %v2817_v45  ;;  %v8504_v59 = vld [vmem:[%s12136_s2 + $0x144] ss:$16 sps:$4 sm:$0xff]  }
 0x757   :  { %v6536_v7 = vmul.f32 -1.442695, %v2776_v12  ;;  %v2780_v4 = vadd.f32 %v2728_v58, %v12678_v33  ;;  %v2782_v11 = vadd.f32 %v2771_v23, %v12679_v57  ;;  %v2730_v18 = vpop.f32.mrb[55].mxu0  ;;  %v2773_v42 = vpop.f32.mrb[55].mxu1  ;;  %v8508_v19 = vld [vmem:[%s12136_s2 + $0x164] ss:$16 sps:$4 sm:$0xff]  }
 0x758   :  { %7984 = vtanh.f32 %v11023_v48  ;;  %v6537_v14 = vmul.f32 -1.442695, %v2777_v37  ;;  %v2781_v8 = vadd.f32 %v2730_v18, %v12680_v40  ;;  %v2783_v44 = vadd.f32 %v2773_v42, %v12681_v50  ;;  %v7979_v31 = vpop.eup %7978  ;;  %v8510_v58 = vld [vmem:[%s12136_s2 + $0x160] ss:$16 sps:$4 sm:$0xff]   ;;  %v8511_v23 = vld [vmem:[%s12136_s2 + $0x168] ss:$16 sps:$4 sm:$0xff]  }
 0x759   :  { %7986 = vpow2.f32 %v6536_v7  ;;  %v6538_v61 = vmul.f32 -1.442695, %v2780_v4  ;;  %v6540_v43 = vmul.f32 -1.442695, %v2779_v29  ;;  %v8513_v4 = vld [vmem:[%s12136_s2 + $0x18c] ss:$16 sps:$4 sm:$0xff]  }
 0x75a   :  { %7988 = vpow2.f32 %v6537_v14  ;;  %v6539_v62 = vmul.f32 -1.442695, %v2781_v8  ;;  %v6541_v55 = vmul.f32 -1.442695, %v2783_v44  ;;  %v8514_v18 = vld [vmem:[%s12136_s2 + $0x180] ss:$16 sps:$4 sm:$0xff]  }
 0x75b   :  { %7990 = vpow2.f32 %v6538_v61  ;;  %v8515_v42 = vld [vmem:[%s12136_s2 + $0x188] ss:$16 sps:$4 sm:$0xff]   ;;  %v8517_v14 = vld [vmem:[%s12136_s2 + $0x1ac] ss:$16 sps:$4 sm:$0xff]   ;;  %v8518_v40 = vld [vmem:[%s12136_s2 + $0x1a0] ss:$16 sps:$4 sm:$0xff]  }
 0x75c   :  { %7992 = vpow2.f32 %v6539_v62  ;;  %v8519_v8 = vld [vmem:[%s12136_s2 + $0x1a8] ss:$16 sps:$4 sm:$0xff]   ;;  %v8520_v61 = vld [vmem:[%s12136_s2 + $0x1c4] ss:$16 sps:$4 sm:$0xff]   ;;  %v8521_v50 = vld [vmem:[%s12136_s2 + $0x1cc] ss:$16 sps:$4 sm:$0xff]  }
 0x75d   :  { %7994 = vtanh.f32 %v2778_v39  ;;  %v8509_v39 = vld [vmem:[%s12136_s2 + $0x16c] ss:$16 sps:$4 sm:$0xff]   ;;  %v8522_v44 = vld [vmem:[%s12136_s2 + $0x1c0] ss:$16 sps:$4 sm:$0xff]   ;;  %v8523_v62 = vld [vmem:[%s12136_s2 + $0x1c8] ss:$16 sps:$4 sm:$0xff]  }
 0x75e   :  { %7996 = vpow2.f32 %v6540_v43  ;;  %v8525_v43 = vld [vmem:[%s12136_s2 + $0x1ec] ss:$16 sps:$4 sm:$0xff]  }
 0x75f   :  { %v7981_v56 = vpop.eup %7980  ;;  %7998 = vtanh.f32 %v2782_v11 }
 0x760   :  { %v7983_v32 = vpop.eup %7982  ;;  %v2830_v22 = vmul.f32 %v7981_v56, %v7979_v31  ;;  %v8524_v56 = vld [vmem:[%s12136_s2 + $0x1e4] ss:$16 sps:$4 sm:$0xff]  }
 0x762   :  { %v7985_v20 = vpop.eup %7984 }
 0x763   :  { %v7987_v27 = vpop.eup %7986  ;;  %v2831_v53 = vmul.f32 %v7985_v20, %v7983_v32 }
 0x764   :  { %v7989_v60 = vpop.eup %7988  ;;  %v2844_v24 = vadd.f32 1.0, %v7987_v27 }
 0x765   :  { %v2845_v51 = vadd.f32 1.0, %v7989_v60  ;;  %v11032_v28 = vpack.c.bf16 %v2831_v53, %v2830_v22  ;;  %v7991_v13 = vpop.eup %7990  ;;  %v8526_v22 = vld [vmem:[%s12136_s2 + $0x1e0] ss:$16 sps:$4 sm:$0xff]   ;;  %v8527_v53 = vld [vmem:[%s12136_s2 + $0x1e8] ss:$16 sps:$4 sm:$0xff]  }
 0x766   :  { %8000 = vrcp.f32 %v2844_v24  ;;  %v2846_v3 = vadd.f32 1.0, %v7991_v13  ;;  %v7993_v10 = vpop.eup %7992  ;;  %v7335_v13 = vld [vmem:[#allocation2 + $0x10c] ss:$16 sps:$4 sm:$0xff]  }
 0x767   :  { %8002 = vrcp.f32 %v2845_v51  ;;  %2915 = vmatmul.mubr.bf16.vlgmr.msra.gmra.mrb[56].mxu0 %v11032_v28  ;;  %2958 = vmatmul.mubr.bf16.vlgmr.msra.gmra.mrb[56].mxu1 %v11032_v28  ;;  %v2847_v2 = vadd.f32 1.0, %v7993_v10  ;;  %v7995_v47 = vpop.eup %7994  ;;  %v7332_v51 = vld [vmem:[#allocation2 + $0x104] ss:$16 sps:$4 sm:$0xff]   ;;  %v7333_v10 = vld [vmem:[#allocation2 + $0x108] ss:$16 sps:$4 sm:$0xff]  }
 0x768   :  { %8004 = vpow2.f32 %v6541_v55  ;;  %2977 = vmatpush1.bf16.msra.mxu0 %v8498_v0  ;;  %3020 = vmatpush1.bf16.msra.mxu1 %v8499_v1  ;;  %v7997_v45 = vpop.eup %7996  ;;  %v7338_v0 = vld [vmem:[#allocation2 + $0x124] ss:$16 sps:$4 sm:$0xff]   ;;  %v7341_v1 = vld [vmem:[#allocation2 + $0x12c] ss:$16 sps:$4 sm:$0xff]  }
 0x769   :  { %8006 = vrcp.f32 %v2846_v3  ;;  %2978 = vmatprep.subr.bf16.mxu0 %v8500_v41  ;;  %3021 = vmatprep.subr.bf16.mxu1 %v8501_v26  ;;  %v7999_v52 = vpop.eup %7998  ;;  %v2864_v37 = vadd.f32 1.0, %v7997_v45  ;;  %v7330_v3 = vld [vmem:[#allocation2 + $0x100] ss:$16 sps:$4 sm:$0xff]   ;;  %v7339_v41 = vld [vmem:[#allocation2 + $0x128] ss:$16 sps:$4 sm:$0xff]  }
 0x76a   :  { %3008 = vmatprep.mubr.bf16.mxu0 %v12405_v15  ;;  %3051 = vmatprep.mubr.bf16.mxu1 %v12405_v15  ;;  %8008 = vrcp.f32 %v2847_v2  ;;  %v7336_v2 = vld [vmem:[#allocation2 + $0x120] ss:$16 sps:$4 sm:$0xff]   ;;  %v7344_v26 = vld [vmem:[#allocation2 + $0x144] ss:$16 sps:$4 sm:$0xff]  }
 0x76b   :  { %8010 = vrcp.f32 %v2864_v37  ;;  %v7348_v45 = vld [vmem:[#allocation2 + $0x160] ss:$16 sps:$4 sm:$0xff]  }
 0x76c   :  { %2979 = vmatpush1.bf16.msra.mxu0 %v8502_v34  ;;  %3022 = vmatpush1.bf16.msra.mxu1 %v8503_v35  ;;  %v7347_v34 = vld [vmem:[#allocation2 + $0x14c] ss:$16 sps:$4 sm:$0xff]   ;;  %v7342_v35 = vld [vmem:[#allocation2 + $0x140] ss:$16 sps:$4 sm:$0xff]  }
 0x76d   :  { %2980 = vmatprep.subr.bf16.mxu0 %v8504_v59  ;;  %3023 = vmatprep.subr.bf16.mxu1 %v8505_v5  ;;  %v7350_v59 = vld [vmem:[#allocation2 + $0x164] ss:$16 sps:$4 sm:$0xff]   ;;  %v7353_v5 = vld [vmem:[#allocation2 + $0x16c] ss:$16 sps:$4 sm:$0xff]   ;;  %v7366_v37 = vld [vmem:[#allocation2 + $0x1c0] ss:$16 sps:$4 sm:$0xff]  }
 0x770   :  { %v8001_v38 = vpop.eup %8000  ;;  %2981 = vmatpush1.bf16.msra.mxu0 %v8506_v9  ;;  %3024 = vmatpush1.bf16.msra.mxu1 %v8507_v36  ;;  %v7359_v9 = vld [vmem:[#allocation2 + $0x18c] ss:$16 sps:$4 sm:$0xff]   ;;  %v7354_v36 = vld [vmem:[#allocation2 + $0x180] ss:$16 sps:$4 sm:$0xff]  }
 0x771   :  { %v8003_v17 = vpop.eup %8002  ;;  %v2872_v12 = vmul.f32 %v8001_v38, %v7995_v47  ;;  %2982 = vmatprep.subr.bf16.mxu0 %v8508_v19  ;;  %3025 = vmatprep.subr.bf16.mxu1 %v8509_v39  ;;  %v7345_v47 = vld [vmem:[#allocation2 + $0x148] ss:$16 sps:$4 sm:$0xff]   ;;  %v7356_v38 = vld [vmem:[#allocation2 + $0x184] ss:$16 sps:$4 sm:$0xff]   ;;  %v7365_v19 = vld [vmem:[#allocation2 + $0x1ac] ss:$16 sps:$4 sm:$0xff]  }
 0x772   :  { %v8005_v30 = vpop.eup %8004  ;;  %v2870_v6 = vmul.f32 %v8003_v17, %v10943_v16  ;;  %v8512_v16 = vld [vmem:[%s12136_s2 + $0x184] ss:$16 sps:$4 sm:$0xff]   ;;  %v7357_v17 = vld [vmem:[#allocation2 + $0x188] ss:$16 sps:$4 sm:$0xff]   ;;  %v7360_v39 = vld [vmem:[#allocation2 + $0x1a0] ss:$16 sps:$4 sm:$0xff]  }
 0x773   :  { %v8007_v54 = vpop.eup %8006  ;;  %v2865_v33 = vadd.f32 1.0, %v8005_v30  ;;  %v7363_v30 = vld [vmem:[#allocation2 + $0x1a8] ss:$16 sps:$4 sm:$0xff]  }
 0x774   :  { %v11075_v46 = vadd.f32 %v2872_v12, %v2870_v6  ;;  %v2873_v29 = vmul.f32 %v8007_v54, %v7999_v52  ;;  %2983 = vmatpush1.bf16.msra.mxu0 %v8510_v58  ;;  %3026 = vmatpush1.bf16.msra.mxu1 %v8511_v23  ;;  %v8009_v7 = vpop.eup %8008  ;;  %v7351_v52 = vld [vmem:[#allocation2 + $0x168] ss:$16 sps:$4 sm:$0xff]   ;;  %v7362_v12 = vld [vmem:[#allocation2 + $0x1a4] ss:$16 sps:$4 sm:$0xff]   ;;  %v7371_v54 = vld [vmem:[#allocation2 + $0x1cc] ss:$16 sps:$4 sm:$0xff]  }
 0x775   :  { %2984 = vmatprep.subr.bf16.mxu0 %v8512_v16  ;;  %3027 = vmatprep.subr.bf16.mxu1 %v8513_v4  ;;  %v2871_v57 = vmul.f32 %v8009_v7, %v10951_v21  ;;  %v8516_v21 = vld [vmem:[%s12136_s2 + $0x1a4] ss:$16 sps:$4 sm:$0xff]   ;;  %v8011_v31 = vpop.eup %8010  ;;  %v7377_v23 = vld [vmem:[#allocation2 + $0x1ec] ss:$16 sps:$4 sm:$0xff]   ;;  %v7372_v7 = vld [vmem:[#allocation2 + $0x1e0] ss:$16 sps:$4 sm:$0xff]  }
 0x776   :  { %8012 = vtanh.f32 %v11075_v46  ;;  %v7368_v6 = vld [vmem:[#allocation2 + $0x1c4] ss:$16 sps:$4 sm:$0xff]   ;;  %v7386_v4 = vld [vmem:[#allocation2 + $0xc] ss:$16 sps:$4 sm:$0xff]  }
 0x777   :  { %v11091_v11 = vadd.f32 %v2873_v29, %v2871_v57  ;;  %8014 = vrcp.f32 %v2865_v33  ;;  %v7369_v29 = vld [vmem:[#allocation2 + $0x1c8] ss:$16 sps:$4 sm:$0xff]   ;;  %v7374_v58 = vld [vmem:[#allocation2 + $0x1e4] ss:$16 sps:$4 sm:$0xff]  }
 0x778   :  { %2985 = vmatpush1.bf16.msra.mxu0 %v8514_v18  ;;  %3028 = vmatpush1.bf16.msra.mxu1 %v8515_v42  ;;  %v7375_v33 = vld [vmem:[#allocation2 + $0x1e8] ss:$16 sps:$4 sm:$0xff]   ;;  %v7380_v16 = vld [vmem:[#allocation2 + $0x4] ss:$16 sps:$4 sm:$0xff]  }
 0x779   :  { %2986 = vmatprep.subr.bf16.mxu0 %v8516_v21  ;;  %3029 = vmatprep.subr.bf16.mxu1 %v8517_v14  ;;  %8016 = vtanh.f32 %v11091_v11  ;;  %v12682_v42 = vld [vmem:[#allocation95_spill] sm:$0xff]  ;;  %v12683_v14 = vld [vmem:[#allocation96_spill] sm:$0xff] }
 0x77c   :  { %2987 = vmatpush1.bf16.msra.mxu0 %v8518_v40  ;;  %3030 = vmatpush1.bf16.msra.mxu1 %v8519_v8 }
 0x77d   :  { %2988 = vmatprep.subr.bf16.mxu0 %v8520_v61  ;;  %3031 = vmatprep.subr.bf16.mxu1 %v8521_v50  ;;  %v12684_v50 = vld [vmem:[#allocation97_spill] sm:$0xff] }
 0x780   :  { %2989 = vmatpush1.bf16.msra.mxu0 %v8522_v44  ;;  %3032 = vmatpush1.bf16.msra.mxu1 %v8523_v62  ;;  %v8013_v32 = vpop.eup %8012  ;;  %v12685_v62 = vld [vmem:[#allocation98_spill] sm:$0xff] }
 0x781   :  { %2990 = vmatprep.subr.bf16.mxu0 %v8524_v56  ;;  %3033 = vmatprep.subr.bf16.mxu1 %v8525_v43  ;;  %v8015_v20 = vpop.eup %8014  ;;  %v2878_v60 = vmul.f32 %v8013_v32, %v8011_v31 }
 0x783   :  { %v8017_v27 = vpop.eup %8016 }
 0x784   :  { %2991 = vmatpush1.bf16.msra.mxu0 %v8526_v22  ;;  %3034 = vmatpush1.bf16.msra.mxu1 %v8527_v53  ;;  %v2879_v24 = vmul.f32 %v8017_v27, %v8015_v20  ;;  %v12686_v20 = vld [vmem:[#allocation103_spill] sm:$0xff]  ;;  %v12687_v22 = vld [vmem:[#allocation104_spill] sm:$0xff] }
 0x785   :  { %3392 = vmatprep.subr.bf16.mxu0 %v7332_v51  ;;  %3505 = vmatprep.subr.bf16.mxu1 %v7335_v13  ;;  %v12688_v13 = vld [vmem:[#allocation105_spill] sm:$0xff] }
 0x786   :  { %v11136_v55 = vpack.c.bf16 %v2879_v24, %v2878_v60 }
 0x788   :  { %3009 = vmatmul.mubr.bf16.vlgmr.msra.gmra.mrb[60].mxu0 %v11136_v55  ;;  %3052 = vmatmul.mubr.bf16.vlgmr.msra.gmra.mrb[60].mxu1 %v11136_v55 }
 0x789   :  { %3424 = vmatprep.mubr.bf16.mxu0 %v12405_v15  ;;  %3537 = vmatprep.mubr.bf16.mxu1 %v12405_v15 }
 0x78a   :  { %3393 = vmatpush1.bf16.msra.mxu0 %v7330_v3  ;;  %3506 = vmatpush1.bf16.msra.mxu1 %v7333_v10  ;;  %v12689_v10 = vld [vmem:[#allocation106_spill] sm:$0xff] }
 0x78b   :  { %3394 = vmatprep.subr.bf16.mxu0 %v7338_v0  ;;  %3507 = vmatprep.subr.bf16.mxu1 %v7341_v1 }
 0x78e   :  { %3395 = vmatpush1.bf16.msra.mxu0 %v7336_v2  ;;  %3508 = vmatpush1.bf16.msra.mxu1 %v7339_v41 }
 0x78f   :  { %3396 = vmatprep.subr.bf16.mxu0 %v7344_v26  ;;  %3509 = vmatprep.subr.bf16.mxu1 %v7347_v34 }
 0x792   :  { %3397 = vmatpush1.bf16.msra.mxu0 %v7342_v35  ;;  %3510 = vmatpush1.bf16.msra.mxu1 %v7345_v47 }
 0x793   :  { %3398 = vmatprep.subr.bf16.mxu0 %v7350_v59  ;;  %3511 = vmatprep.subr.bf16.mxu1 %v7353_v5 }
 0x796   :  { %3399 = vmatpush1.bf16.msra.mxu0 %v7348_v45  ;;  %3512 = vmatpush1.bf16.msra.mxu1 %v7351_v52 }
 0x797   :  { %3400 = vmatprep.subr.bf16.mxu0 %v7356_v38  ;;  %3513 = vmatprep.subr.bf16.mxu1 %v7359_v9 }
 0x79a   :  { %3401 = vmatpush1.bf16.msra.mxu0 %v7354_v36  ;;  %3514 = vmatpush1.bf16.msra.mxu1 %v7357_v17 }
 0x79b   :  { %3402 = vmatprep.subr.bf16.mxu0 %v7362_v12  ;;  %3515 = vmatprep.subr.bf16.mxu1 %v7365_v19 }
 0x79e   :  { %3403 = vmatpush1.bf16.msra.mxu0 %v7360_v39  ;;  %3516 = vmatpush1.bf16.msra.mxu1 %v7363_v30 }
 0x79f   :  { %3404 = vmatprep.subr.bf16.mxu0 %v7368_v6  ;;  %3517 = vmatprep.subr.bf16.mxu1 %v7371_v54 }
 0x7a2   :  { %3405 = vmatpush1.bf16.msra.mxu0 %v7366_v37  ;;  %3518 = vmatpush1.bf16.msra.mxu1 %v7369_v29 }
 0x7a3   :  { %3406 = vmatprep.subr.bf16.mxu0 %v7374_v58  ;;  %3519 = vmatprep.subr.bf16.mxu1 %v7377_v23 }
 0x7a6   :  { %3407 = vmatpush1.bf16.msra.mxu0 %v7372_v7  ;;  %3520 = vmatpush1.bf16.msra.mxu1 %v7375_v33 }
 0x7a7   :  { %3778 = vmatprep.subr.bf16.mxu0 %v7380_v16  ;;  %3891 = vmatprep.subr.bf16.mxu1 %v7386_v4 }
 0x83a   :  { %v2916_v57 = vpop.f32.mrb[56].mxu0  ;;  %v2959_v18 = vpop.f32.mrb[56].mxu1 }
 0x83b   :  { %v2968_v21 = vadd.f32 %v2916_v57, %v12682_v42  ;;  %v2970_v40 = vadd.f32 %v2959_v18, %v12683_v14  ;;  %v2918_v8 = vpop.f32.mrb[57].mxu0  ;;  %v2961_v61 = vpop.f32.mrb[57].mxu1  ;;  %v12690_v57 = vld [vmem:[#allocation99_spill] sm:$0xff]  ;;  %v12691_v42 = vld [vmem:[#allocation100_spill] sm:$0xff] }
 0x83c   :  { %v2969_v44 = vadd.f32 %v2918_v8, %v12684_v50  ;;  %v2971_v31 = vadd.f32 %v2961_v61, %v12685_v62  ;;  %v2920_v56 = vpop.f32.mrb[58].mxu0  ;;  %v2963_v43 = vpop.f32.mrb[58].mxu1  ;;  %v12692_v61 = vld [vmem:[#allocation101_spill] sm:$0xff]  ;;  %v12693_v50 = vld [vmem:[#allocation102_spill] sm:$0xff] }
 0x83d   :  { %v6542_v32 = vmul.f32 -1.442695, %v2968_v21  ;;  %v2972_v27 = vadd.f32 %v2920_v56, %v12686_v20  ;;  %v2974_v53 = vadd.f32 %v2963_v43, %v12687_v22  ;;  %v2922_v60 = vpop.f32.mrb[59].mxu0  ;;  %v2965_v24 = vpop.f32.mrb[59].mxu1  ;;  %v12694_v43 = vld [vmem:[#allocation107_spill] sm:$0xff] }
 0x83e   :  { %v6543_v51 = vmul.f32 -1.442695, %v2969_v44  ;;  %v2973_v3 = vadd.f32 %v2922_v60, %v12688_v13  ;;  %v2975_v0 = vadd.f32 %v2965_v24, %v12689_v10  ;;  %v6546_v41 = vmul.f32 -1.442695, %v2971_v31  ;;  %v12696_v60 = vld [vmem:[#allocation109_spill] sm:$0xff]  ;;  %v12697_v13 = vld [vmem:[#allocation110_spill] sm:$0xff] }
 0x83f   :  { %8018 = vpow2.f32 %v6542_v32  ;;  %v6544_v1 = vmul.f32 -1.442695, %v2972_v27 }
 0x840   :  { %8020 = vpow2.f32 %v6543_v51  ;;  %v6545_v2 = vmul.f32 -1.442695, %v2973_v3  ;;  %v6547_v47 = vmul.f32 -1.442695, %v2975_v0 }
 0x841   :  { %8022 = vpow2.f32 %v6544_v1 }
 0x842   :  { %8024 = vpow2.f32 %v6545_v2 }
 0x843   :  { %8026 = vtanh.f32 %v2970_v40 }
 0x844   :  { %8028 = vpow2.f32 %v6546_v41 }
 0x845   :  { %8030 = vtanh.f32 %v2974_v53 }
 0x849   :  { %v8019_v26 = vpop.eup %8018 }
 0x84a   :  { %v8021_v34 = vpop.eup %8020  ;;  %v3082_v35 = vadd.f32 1.0, %v8019_v26 }
 0x84b   :  { %v3083_v59 = vadd.f32 1.0, %v8021_v34  ;;  %v8023_v5 = vpop.eup %8022 }
 0x84c   :  { %8032 = vrcp.f32 %v3082_v35  ;;  %v3084_v45 = vadd.f32 1.0, %v8023_v5  ;;  %v8025_v52 = vpop.eup %8024 }
 0x84d   :  { %8034 = vrcp.f32 %v3083_v59  ;;  %v3085_v38 = vadd.f32 1.0, %v8025_v52  ;;  %v8027_v9 = vpop.eup %8026 }
 0x84e   :  { %8036 = vpow2.f32 %v6547_v47  ;;  %v8029_v36 = vpop.eup %8028 }
 0x84f   :  { %8038 = vrcp.f32 %v3084_v45  ;;  %v8031_v17 = vpop.eup %8030  ;;  %v3102_v30 = vadd.f32 1.0, %v8029_v36 }
 0x850   :  { %8040 = vrcp.f32 %v3085_v38 }
 0x851   :  { %8042 = vrcp.f32 %v3102_v30 }
 0x856   :  { %v8033_v12 = vpop.eup %8032 }
 0x857   :  { %v8035_v19 = vpop.eup %8034  ;;  %v3110_v39 = vmul.f32 %v8033_v12, %v8027_v9 }
 0x858   :  { %v8037_v6 = vpop.eup %8036  ;;  %v3108_v54 = vmul.f32 %v8035_v19, %v11017_v63 }
 0x859   :  { %v8039_v37 = vpop.eup %8038  ;;  %v3103_v7 = vadd.f32 1.0, %v8037_v6 }
 0x85a   :  { %v3112_v29 = vadd.f32 %v3110_v39, %v3108_v54  ;;  %v3111_v58 = vmul.f32 %v8039_v37, %v8031_v17  ;;  %v8041_v23 = vpop.eup %8040 }
 0x85b   :  { %v3109_v33 = vmul.f32 %v8041_v23, %v11023_v48  ;;  %v3010_v16 = vpop.f32.mrb[60].mxu0  ;;  %v3053_v4 = vpop.f32.mrb[60].mxu1  ;;  %v12695_v48 = vld [vmem:[#allocation108_spill] sm:$0xff] }
 0x85c   :  { %8044 = vtanh.f32 %v3112_v29  ;;  %v3062_v18 = vadd.f32 %v3010_v16, %v12690_v57  ;;  %v3064_v21 = vadd.f32 %v3053_v4, %v12691_v42  ;;  %v3012_v14 = vpop.f32.mrb[61].mxu0  ;;  %v3055_v40 = vpop.f32.mrb[61].mxu1 }
 0x85d   :  { %v3113_v8 = vadd.f32 %v3111_v58, %v3109_v33  ;;  %v3063_v63 = vadd.f32 %v3012_v14, %v12692_v61  ;;  %v3065_v44 = vadd.f32 %v3055_v40, %v12693_v50  ;;  %v3014_v62 = vpop.f32.mrb[62].mxu0  ;;  %v3057_v31 = vpop.f32.mrb[62].mxu1  ;;  %8046 = vrcp.f32 %v3103_v7  ;;  %v7378_v50 = vld [vmem:[#allocation2] ss:$16 sps:$4 sm:$0xff]  }
 0x85e   :  { %v6548_v56 = vmul.f32 -1.442695, %v3062_v18  ;;  %v3066_v32 = vadd.f32 %v3014_v62, %v12694_v43  ;;  %v3068_v20 = vadd.f32 %v3057_v31, %v12695_v48  ;;  %v3016_v27 = vpop.f32.mrb[63].mxu0  ;;  %v3059_v22 = vpop.f32.mrb[63].mxu1  ;;  %v7384_v62 = vld [vmem:[#allocation2 + $0x8] ss:$16 sps:$4 sm:$0xff]  }
 0x85f   :  { %8048 = vtanh.f32 %v3113_v8  ;;  %v6549_v53 = vmul.f32 -1.442695, %v3063_v63  ;;  %v3067_v24 = vadd.f32 %v3016_v27, %v12696_v60  ;;  %v3069_v3 = vadd.f32 %v3059_v22, %v12697_v13  ;;  %v8043_v0 = vpop.eup %8042  ;;  %v7392_v31 = vld [vmem:[#allocation2 + $0x2c] ss:$16 sps:$4 sm:$0xff]   ;;  %v7390_v43 = vld [vmem:[#allocation2 + $0x28] ss:$16 sps:$4 sm:$0xff]  }
 0x860   :  { %8050 = vpow2.f32 %v6548_v56  ;;  %v6550_v51 = vmul.f32 -1.442695, %v3066_v32  ;;  %v6552_v41 = vmul.f32 -1.442695, %v3065_v44  ;;  %v7383_v44 = vld [vmem:[#allocation2 + $0x24] ss:$16 sps:$4 sm:$0xff]  }
 0x861   :  { %8052 = vpow2.f32 %v6549_v53  ;;  %v6551_v10 = vmul.f32 -1.442695, %v3067_v24  ;;  %v6553_v45 = vmul.f32 -1.442695, %v3069_v3  ;;  %v7389_v56 = vld [vmem:[#allocation2 + $0x44] ss:$16 sps:$4 sm:$0xff]  }
 0x862   :  { %8054 = vpow2.f32 %v6550_v51  ;;  %v7387_v32 = vld [vmem:[#allocation2 + $0x40] ss:$16 sps:$4 sm:$0xff]   ;;  %v7398_v48 = vld [vmem:[#allocation2 + $0x4c] ss:$16 sps:$4 sm:$0xff]   ;;  %v7396_v27 = vld [vmem:[#allocation2 + $0x48] ss:$16 sps:$4 sm:$0xff]  }
 0x863   :  { %8056 = vpow2.f32 %v6551_v10  ;;  %v7404_v22 = vld [vmem:[#allocation2 + $0x6c] ss:$16 sps:$4 sm:$0xff]   ;;  %v7393_v53 = vld [vmem:[#allocation2 + $0x60] ss:$16 sps:$4 sm:$0xff]   ;;  %v7401_v60 = vld [vmem:[#allocation2 + $0x84] ss:$16 sps:$4 sm:$0xff]  }
 0x864   :  { %8058 = vtanh.f32 %v3064_v21  ;;  %v7402_v24 = vld [vmem:[#allocation2 + $0x68] ss:$16 sps:$4 sm:$0xff]   ;;  %v7399_v51 = vld [vmem:[#allocation2 + $0x80] ss:$16 sps:$4 sm:$0xff]   ;;  %v7410_v13 = vld [vmem:[#allocation2 + $0x8c] ss:$16 sps:$4 sm:$0xff]  }
 0x865   :  { %8060 = vpow2.f32 %v6552_v41  ;;  %v7407_v3 = vld [vmem:[#allocation2 + $0xa4] ss:$16 sps:$4 sm:$0xff]   ;;  %v7416_v10 = vld [vmem:[#allocation2 + $0xac] ss:$16 sps:$4 sm:$0xff]   ;;  %v7411_v41 = vld [vmem:[#allocation2 + $0xc0] ss:$16 sps:$4 sm:$0xff]  }
 0x866   :  { %v8045_v1 = vpop.eup %8044  ;;  %8062 = vtanh.f32 %v3068_v20  ;;  %v7395_v20 = vld [vmem:[#allocation2 + $0x64] ss:$16 sps:$4 sm:$0xff]  }
 0x867   :  { %v3116_v2 = vmul.f32 %v8045_v1, %v8043_v0  ;;  %v8047_v26 = vpop.eup %8046  ;;  %v7405_v0 = vld [vmem:[#allocation2 + $0xa0] ss:$16 sps:$4 sm:$0xff]   ;;  %v7413_v1 = vld [vmem:[#allocation2 + $0xc4] ss:$16 sps:$4 sm:$0xff]  }
 0x869   :  { %v8049_v34 = vpop.eup %8048 }
 0x86a   :  { %v8051_v35 = vpop.eup %8050  ;;  %v3117_v47 = vmul.f32 %v8049_v34, %v8047_v26  ;;  %v7422_v26 = vld [vmem:[#allocation2 + $0xcc] ss:$16 sps:$4 sm:$0xff]   ;;  %v7419_v34 = vld [vmem:[#allocation2 + $0xe4] ss:$16 sps:$4 sm:$0xff]  }
 0x86b   :  { %v8053_v59 = vpop.eup %8052  ;;  %v3130_v5 = vadd.f32 1.0, %v8051_v35  ;;  %v12698_v35 = vld [vmem:[#allocation128_spill] sm:$0xff] }
 0x86c   :  { %v3131_v52 = vadd.f32 1.0, %v8053_v59  ;;  %v11160_v38 = vpack.c.bf16 %v3117_v47, %v3116_v2  ;;  %v8055_v9 = vpop.eup %8054  ;;  %v7414_v2 = vld [vmem:[#allocation2 + $0xa8] ss:$16 sps:$4 sm:$0xff]   ;;  %v7425_v47 = vld [vmem:[#allocation2 + $0xec] ss:$16 sps:$4 sm:$0xff]  }
 0x86d   :  { %8064 = vrcp.f32 %v3130_v5  ;;  %v3132_v36 = vadd.f32 1.0, %v8055_v9  ;;  %v8057_v17 = vpop.eup %8056  ;;  %v7417_v59 = vld [vmem:[#allocation2 + $0xe0] ss:$16 sps:$4 sm:$0xff]   ;;  %v7423_v5 = vld [vmem:[#allocation2 + $0xe8] ss:$16 sps:$4 sm:$0xff]  }
 0x86e   :  { %8066 = vrcp.f32 %v3131_v52  ;;  %v3133_v12 = vadd.f32 1.0, %v8057_v17  ;;  %v8059_v19 = vpop.eup %8058  ;;  %v7434_v52 = vld [vmem:[#allocation2 + $0x30c] ss:$16 sps:$4 sm:$0xff]   ;;  %v12699_v9 = vld [vmem:[#allocation113_spill] sm:$0xff] }
 0x86f   :  { %8068 = vpow2.f32 %v6553_v45  ;;  %v8061_v39 = vpop.eup %8060  ;;  %v7428_v45 = vld [vmem:[#allocation2 + $0x304] ss:$16 sps:$4 sm:$0xff]   ;;  %v12701_v17 = vld [vmem:[#allocation10_spill] sm:$0xff] }
 0x870   :  { %8070 = vrcp.f32 %v3132_v36  ;;  %v8063_v30 = vpop.eup %8062  ;;  %v3150_v29 = vadd.f32 1.0, %v8061_v39  ;;  %v12700_v36 = vld [vmem:[#allocation13_spill] sm:$0xff] }
 0x871   :  { %8072 = vrcp.f32 %v3133_v12  ;;  %v12702_v12 = vld [vmem:[#allocation112_spill] sm:$0xff]  ;;  %v7431_v39 = vld [vmem:[#allocation2 + $0x324] ss:$16 sps:$4 sm:$0xff]  }
 0x872   :  { %8074 = vrcp.f32 %v3150_v29  ;;  %v7437_v29 = vld [vmem:[#allocation2 + $0x344] ss:$16 sps:$4 sm:$0xff]  }
 0x877   :  { %v8065_v6 = vpop.eup %8064 }
 0x878   :  { %v8067_v54 = vpop.eup %8066  ;;  %v3158_v37 = vmul.f32 %v8065_v6, %v8059_v19  ;;  %v7426_v19 = vld [vmem:[#allocation2 + $0x300] ss:$16 sps:$4 sm:$0xff]  }
 0x879   :  { %v8069_v58 = vpop.eup %8068  ;;  %v3156_v23 = vmul.f32 %v8067_v54, %v11075_v46  ;;  %v12703_v6 = vld [vmem:[#allocation111_spill] sm:$0xff]  ;;  %v7440_v54 = vld [vmem:[#allocation2 + $0x32c] ss:$16 sps:$4 sm:$0xff]  }
 0x87a   :  { %v8071_v7 = vpop.eup %8070  ;;  %v3151_v57 = vadd.f32 1.0, %v8069_v58  ;;  %v7438_v58 = vld [vmem:[#allocation2 + $0x328] ss:$16 sps:$4 sm:$0xff]  }
 0x87b   :  { %v3160_v33 = vadd.f32 %v3158_v37, %v3156_v23  ;;  %v3159_v16 = vmul.f32 %v8071_v7, %v8063_v30  ;;  %v8073_v4 = vpop.eup %8072  ;;  %v7432_v30 = vld [vmem:[#allocation2 + $0x308] ss:$16 sps:$4 sm:$0xff]   ;;  %v7429_v37 = vld [vmem:[#allocation2 + $0x320] ss:$16 sps:$4 sm:$0xff]   ;;  %v7446_v7 = vld [vmem:[#allocation2 + $0x34c] ss:$16 sps:$4 sm:$0xff]  }
 0x87c   :  { %v3157_v18 = vmul.f32 %v8073_v4, %v11091_v11  ;;  %v8075_v21 = vpop.eup %8074  ;;  %v7381_v11 = vld [vmem:[#allocation2 + $0x20] ss:$16 sps:$4 sm:$0xff]  }
 0x87d   :  { %8076 = vtanh.f32 %v3160_v33  ;;  %v7435_v23 = vld [vmem:[#allocation2 + $0x340] ss:$16 sps:$4 sm:$0xff]   ;;  %v7443_v33 = vld [vmem:[#allocation2 + $0x364] ss:$16 sps:$4 sm:$0xff]  }
 0x87e   :  { %v3161_v42 = vadd.f32 %v3159_v16, %v3157_v18  ;;  %8078 = vrcp.f32 %v3151_v57  ;;  %v7444_v16 = vld [vmem:[#allocation2 + $0x348] ss:$16 sps:$4 sm:$0xff]   ;;  %v12704_v4 = vld [vmem:[#allocation9_spill] sm:$0xff]  ;;  %v7452_v57 = vld [vmem:[#allocation2 + $0x36c] ss:$16 sps:$4 sm:$0xff]  }
 0x87f   :  { %v7441_v18 = vld [vmem:[#allocation2 + $0x360] ss:$16 sps:$4 sm:$0xff]  }
 0x880   :  { %8080 = vtanh.f32 %v3161_v42  ;;  %v7449_v42 = vld [vmem:[#allocation2 + $0x384] ss:$16 sps:$4 sm:$0xff]  }
 0x887   :  { %v8077_v14 = vpop.eup %8076 }
 0x888   :  { %v3164_v40 = vmul.f32 %v8077_v14, %v8075_v21  ;;  %v8079_v8 = vpop.eup %8078  ;;  %v7450_v21 = vld [vmem:[#allocation2 + $0x368] ss:$16 sps:$4 sm:$0xff]   ;;  %v7447_v14 = vld [vmem:[#allocation2 + $0x380] ss:$16 sps:$4 sm:$0xff]  }
 0x88a   :  { %v8081_v61 = vpop.eup %8080 }
 0x88b   :  { %v3165_v63 = vmul.f32 %v8081_v61, %v8079_v8  ;;  %v7455_v8 = vld [vmem:[#allocation2 + $0x3a4] ss:$16 sps:$4 sm:$0xff]   ;;  %v7456_v61 = vld [vmem:[#allocation2 + $0x388] ss:$16 sps:$4 sm:$0xff]  }
 0x88d   :  { %v3167_v46 = vpack.c.bf16 %v3165_v63, %v3164_v40  ;;  %v7458_v40 = vld [vmem:[#allocation2 + $0x38c] ss:$16 sps:$4 sm:$0xff]  }
 0x88e   :  { %v12705_v63 = vld [vmem:[#allocation12_spill] sm:$0xff] }
 0x88f   :  { %3425 = vmatmul.mubr.bf16.vlgmr.msra.gmra.mrb[64].mxu0 %v3167_v46  ;;  %3538 = vmatmul.mubr.bf16.vlgmr.msra.gmra.mrb[64].mxu1 %v3167_v46  ;;  %v7453_v46 = vld [vmem:[#allocation2 + $0x3a0] ss:$16 sps:$4 sm:$0xff]  }
 0x890   :  { %3779 = vmatpush1.bf16.msra.mxu0 %v7378_v50  ;;  %3434 = vmatprep.mubr.bf16.mxu0 %v12405_v15  ;;  %v7464_v50 = vld [vmem:[#allocation2 + $0x3ac] ss:$16 sps:$4 sm:$0xff]  }
 0x891   :  { %3547 = vmatprep.mubr.bf16.mxu1 %v12405_v15  ;;  %3780 = vmatprep.subr.bf16.mxu0 %v7383_v44  ;;  %v7461_v44 = vld [vmem:[#allocation2 + $0x3c4] ss:$16 sps:$4 sm:$0xff]  }
 0x892   :  { %3892 = vmatpush1.bf16.msra.mxu1 %v7384_v62  ;;  %v7462_v62 = vld [vmem:[#allocation2 + $0x3a8] ss:$16 sps:$4 sm:$0xff]  }
 0x893   :  { %3893 = vmatprep.subr.bf16.mxu1 %v7392_v31  ;;  %v7459_v31 = vld [vmem:[#allocation2 + $0x3c0] ss:$16 sps:$4 sm:$0xff]  }
 0x894   :  { %3781 = vmatpush1.bf16.msra.mxu0 %v7381_v11  ;;  %v7470_v11 = vld [vmem:[#allocation2 + $0x3cc] ss:$16 sps:$4 sm:$0xff]  }
 0x895   :  { %3782 = vmatprep.subr.bf16.mxu0 %v7389_v56  ;;  %v7467_v56 = vld [vmem:[#allocation2 + $0x3e4] ss:$16 sps:$4 sm:$0xff]  }
 0x896   :  { %3894 = vmatpush1.bf16.msra.mxu1 %v7390_v43  ;;  %v7468_v43 = vld [vmem:[#allocation2 + $0x3c8] ss:$16 sps:$4 sm:$0xff]  }
 0x897   :  { %3435 = vmatmul.mubr.bf16.gmra.mrb[68].mxu0 %v11136_v55  ;;  %3548 = vmatmul.mubr.bf16.gmra.mrb[68].mxu1 %v11136_v55  ;;  %v7408_v55 = vld [vmem:[#allocation2 + $0x88] ss:$16 sps:$4 sm:$0xff]  }
 0x898   :  { %3444 = vmatprep.mubr.bf16.mxu0 %v12405_v15  ;;  %3557 = vmatprep.mubr.bf16.mxu1 %v12405_v15 }
 0x899   :  { %3783 = vmatpush1.bf16.msra.mxu0 %v7387_v32  ;;  %3895 = vmatprep.subr.bf16.mxu1 %v7398_v48  ;;  %v12706_v32 = vld [vmem:[#allocation14_spill] sm:$0xff] }
 0x89a   :  { %3784 = vmatprep.subr.bf16.mxu0 %v7395_v20  ;;  %3896 = vmatpush1.bf16.msra.mxu1 %v7396_v27  ;;  %v7473_v48 = vld [vmem:[#allocation2 + $0x3ec] ss:$16 sps:$4 sm:$0xff]   ;;  %v7465_v20 = vld [vmem:[#allocation2 + $0x3e0] ss:$16 sps:$4 sm:$0xff]   ;;  %v7471_v27 = vld [vmem:[#allocation2 + $0x3e8] ss:$16 sps:$4 sm:$0xff]  }
 0x89b   :  { %3897 = vmatprep.subr.bf16.mxu1 %v7404_v22  ;;  %v7476_v22 = vld [vmem:[#allocation2 + $0x204] ss:$16 sps:$4 sm:$0xff]  }
 0x89d   :  { %3785 = vmatpush1.bf16.msra.mxu0 %v7393_v53  ;;  %v7479_v53 = vld [vmem:[#allocation2 + $0x20c] ss:$16 sps:$4 sm:$0xff]  }
 0x89e   :  { %3786 = vmatprep.subr.bf16.mxu0 %v7401_v60  ;;  %3898 = vmatpush1.bf16.msra.mxu1 %v7402_v24  ;;  %v12707_v60 = vld [vmem:[#allocation127_spill] sm:$0xff]  ;;  %v7477_v24 = vld [vmem:[#allocation2 + $0x208] ss:$16 sps:$4 sm:$0xff]  }
 0x89f   :  { %3445 = vmatmul.mubr.bf16.gmra.mrb[72].mxu0 %v10970_v25  ;;  %3558 = vmatmul.mubr.bf16.gmra.mrb[72].mxu1 %v10970_v25  ;;  %v7420_v25 = vld [vmem:[#allocation2 + $0xc8] ss:$16 sps:$4 sm:$0xff]  }
 0x8a0   :  { %3454 = vmatprep.mubr.bf16.mxu0 %v12405_v15  ;;  %3567 = vmatprep.mubr.bf16.mxu1 %v12405_v15 }
 0x8a1   :  { %3787 = vmatpush1.bf16.msra.mxu0 %v7399_v51  ;;  %3899 = vmatprep.subr.bf16.mxu1 %v7410_v13  ;;  %v7482_v51 = vld [vmem:[#allocation2 + $0x224] ss:$16 sps:$4 sm:$0xff]   ;;  %v7485_v13 = vld [vmem:[#allocation2 + $0x22c] ss:$16 sps:$4 sm:$0xff]  }
 0x8a2   :  { %3788 = vmatprep.subr.bf16.mxu0 %v7407_v3  ;;  %3900 = vmatpush1.bf16.msra.mxu1 %v7408_v55  ;;  %v7483_v3 = vld [vmem:[#allocation2 + $0x228] ss:$16 sps:$4 sm:$0xff]   ;;  %v7488_v55 = vld [vmem:[#allocation2 + $0x244] ss:$16 sps:$4 sm:$0xff]  }
 0x8a3   :  { %3901 = vmatprep.subr.bf16.mxu1 %v7416_v10  ;;  %v7491_v10 = vld [vmem:[#allocation2 + $0x24c] ss:$16 sps:$4 sm:$0xff]  }
 0x8a5   :  { %3789 = vmatpush1.bf16.msra.mxu0 %v7405_v0  ;;  %v7486_v0 = vld [vmem:[#allocation2 + $0x240] ss:$16 sps:$4 sm:$0xff]  }
 0x8a6   :  { %3790 = vmatprep.subr.bf16.mxu0 %v7413_v1  ;;  %3902 = vmatpush1.bf16.msra.mxu1 %v7414_v2  ;;  %v7489_v1 = vld [vmem:[#allocation2 + $0x248] ss:$16 sps:$4 sm:$0xff]   ;;  %v7494_v2 = vld [vmem:[#allocation2 + $0x264] ss:$16 sps:$4 sm:$0xff]  }
 0x8a7   :  { %3455 = vmatmul.mubr.bf16.gmra.mrb[76].mxu0 %v12698_v35  ;;  %3568 = vmatmul.mubr.bf16.gmra.mrb[76].mxu1 %v12698_v35  ;;  %v7503_v35 = vld [vmem:[#allocation2 + $0x28c] ss:$16 sps:$4 sm:$0xff]  }
 0x8a8   :  { %3464 = vmatprep.mubr.bf16.mxu0 %v12405_v15  ;;  %3577 = vmatprep.mubr.bf16.mxu1 %v12405_v15 }
 0x8a9   :  { %3791 = vmatpush1.bf16.msra.mxu0 %v7411_v41  ;;  %3903 = vmatprep.subr.bf16.mxu1 %v7422_v26  ;;  %v7497_v41 = vld [vmem:[#allocation2 + $0x26c] ss:$16 sps:$4 sm:$0xff]   ;;  %v7492_v26 = vld [vmem:[#allocation2 + $0x260] ss:$16 sps:$4 sm:$0xff]  }
 0x8aa   :  { %3792 = vmatprep.subr.bf16.mxu0 %v7419_v34  ;;  %3904 = vmatpush1.bf16.msra.mxu1 %v7420_v25  ;;  %v7495_v34 = vld [vmem:[#allocation2 + $0x268] ss:$16 sps:$4 sm:$0xff]   ;;  %v7500_v25 = vld [vmem:[#allocation2 + $0x284] ss:$16 sps:$4 sm:$0xff]  }
 0x8ab   :  { %3905 = vmatprep.subr.bf16.mxu1 %v7425_v47  ;;  %v7498_v47 = vld [vmem:[#allocation2 + $0x280] ss:$16 sps:$4 sm:$0xff]  }
 0x8ad   :  { %3793 = vmatpush1.bf16.msra.mxu0 %v7417_v59  ;;  %v7501_v59 = vld [vmem:[#allocation2 + $0x288] ss:$16 sps:$4 sm:$0xff]  }
 0x8ae   :  { %3906 = vmatpush1.bf16.msra.mxu1 %v7423_v5  ;;  %4315 = vmatprep.subr.bf16.mxu0 %v7428_v45  ;;  %v7506_v5 = vld [vmem:[#allocation2 + $0x2a4] ss:$16 sps:$4 sm:$0xff]   ;;  %v7509_v45 = vld [vmem:[#allocation2 + $0x2ac] ss:$16 sps:$4 sm:$0xff]  }
 0x8af   :  { %3465 = vmatmul.mubr.bf16.gmra.mrb[80].mxu0 %v12699_v9  ;;  %3578 = vmatmul.mubr.bf16.gmra.mrb[80].mxu1 %v12699_v9  ;;  %v7507_v9 = vld [vmem:[#allocation2 + $0x2a8] ss:$16 sps:$4 sm:$0xff]  }
 0x8b0   :  { %3474 = vmatprep.mubr.bf16.mxu0 %v12405_v15  ;;  %3587 = vmatprep.mubr.bf16.mxu1 %v12405_v15 }
 0x8b1   :  { %4358 = vmatprep.subr.bf16.mxu1 %v7434_v52  ;;  %v7504_v52 = vld [vmem:[#allocation2 + $0x2a0] ss:$16 sps:$4 sm:$0xff]  }
 0x8b7   :  { %3475 = vmatmul.mubr.bf16.gmra.mrb[84].mxu0 %v12700_v36  ;;  %3588 = vmatmul.mubr.bf16.gmra.mrb[84].mxu1 %v12700_v36  ;;  %v7512_v36 = vld [vmem:[#allocation2 + $0x2c4] ss:$16 sps:$4 sm:$0xff]  }
 0x8b8   :  { %3484 = vmatprep.mubr.bf16.mxu0 %v12405_v15  ;;  %3597 = vmatprep.mubr.bf16.mxu1 %v12405_v15 }
 0x8bf   :  { %3485 = vmatmul.mubr.bf16.gmra.mrb[88].mxu0 %v12701_v17  ;;  %3598 = vmatmul.mubr.bf16.gmra.mrb[88].mxu1 %v12701_v17  ;;  %v7515_v17 = vld [vmem:[#allocation2 + $0x2cc] ss:$16 sps:$4 sm:$0xff]  }
 0x8c0   :  { %3494 = vmatprep.mubr.bf16.mxu0 %v12405_v15  ;;  %3607 = vmatprep.mubr.bf16.mxu1 %v12405_v15 }
 0x8c7   :  { %3495 = vmatmul.mubr.bf16.gmra.mrb[92].mxu0 %v12702_v12  ;;  %3608 = vmatmul.mubr.bf16.gmra.mrb[92].mxu1 %v12702_v12 }
 0x8c8   :  { %3810 = vmatprep.mubr.bf16.mxu0 %v12405_v15  ;;  %3923 = vmatprep.mubr.bf16.mxu1 %v12405_v15 }
 0x8cf   :  { %3811 = vmatmul.mubr.bf16.vlgmr.msra.gmra.mrb[64].mxu0 %v12703_v6  ;;  %3924 = vmatmul.mubr.bf16.vlgmr.msra.gmra.mrb[64].mxu1 %v12703_v6  ;;  %v7516_v6 = vld [vmem:[#allocation2 + $0x2e0] ss:$16 sps:$4 sm:$0xff]  }
 0x8d0   :  { %4316 = vmatpush1.bf16.msra.mxu0 %v7426_v19  ;;  %3820 = vmatprep.mubr.bf16.mxu0 %v12405_v15  ;;  %v7513_v19 = vld [vmem:[#allocation2 + $0x2c8] ss:$16 sps:$4 sm:$0xff]  }
 0x8d1   :  { %3933 = vmatprep.mubr.bf16.mxu1 %v12405_v15  ;;  %4317 = vmatprep.subr.bf16.mxu0 %v7431_v39  ;;  %v7518_v39 = vld [vmem:[#allocation2 + $0x2e4] ss:$16 sps:$4 sm:$0xff]  }
 0x8d2   :  { %4359 = vmatpush1.bf16.msra.mxu1 %v7432_v30  ;;  %v7521_v30 = vld [vmem:[#allocation2 + $0x2ec] ss:$16 sps:$4 sm:$0xff]  }
 0x8d3   :  { %4360 = vmatprep.subr.bf16.mxu1 %v7440_v54  ;;  %v7519_v54 = vld [vmem:[#allocation2 + $0x2e8] ss:$16 sps:$4 sm:$0xff]  }
 0x8d4   :  { %4318 = vmatpush1.bf16.msra.mxu0 %v7429_v37  ;;  %v11233_v37 = vld [vmem:[%s12139_s5 + $0x4] ss:$16 sps:$4 sm:$0xff]  }
 0x8d5   :  { %4319 = vmatprep.subr.bf16.mxu0 %v7437_v29  ;;  %v11238_v29 = vld [vmem:[%s12139_s5 + $0xc] ss:$16 sps:$4 sm:$0xff]  }
 0x8d6   :  { %4361 = vmatpush1.bf16.msra.mxu1 %v7438_v58  ;;  %v11243_v58 = vld [vmem:[%s12139_s5] ss:$16 sps:$4 sm:$0xff]  }
 0x8d7   :  { %3821 = vmatmul.mubr.bf16.gmra.mrb[68].mxu0 %v12704_v4  ;;  %3934 = vmatmul.mubr.bf16.gmra.mrb[68].mxu1 %v12704_v4  ;;  %v11274_v4 = vld [vmem:[%s12139_s5 + $0x28] ss:$16 sps:$4 sm:$0xff]  }
 0x8d8   :  { %3830 = vmatprep.mubr.bf16.mxu0 %v12405_v15  ;;  %3943 = vmatprep.mubr.bf16.mxu1 %v12405_v15 }
 0x8d9   :  { %4320 = vmatpush1.bf16.msra.mxu0 %v7435_v23  ;;  %4362 = vmatprep.subr.bf16.mxu1 %v7446_v7  ;;  %v11248_v23 = vld [vmem:[%s12139_s5 + $0x8] ss:$16 sps:$4 sm:$0xff]   ;;  %v11255_v7 = vld [vmem:[%s12139_s5 + $0x24] ss:$16 sps:$4 sm:$0xff]  }
 0x8da   :  { %4321 = vmatprep.subr.bf16.mxu0 %v7443_v33  ;;  %4363 = vmatpush1.bf16.msra.mxu1 %v7444_v16  ;;  %v11260_v33 = vld [vmem:[%s12139_s5 + $0x2c] ss:$16 sps:$4 sm:$0xff]   ;;  %v11269_v16 = vld [vmem:[%s12139_s5 + $0x20] ss:$16 sps:$4 sm:$0xff]  }
 0x8db   :  { %4364 = vmatprep.subr.bf16.mxu1 %v7452_v57  ;;  %v11286_v57 = vld [vmem:[%s12139_s5 + $0x4c] ss:$16 sps:$4 sm:$0xff]  }
 0x8dd   :  { %4322 = vmatpush1.bf16.msra.mxu0 %v7441_v18  ;;  %v11295_v18 = vld [vmem:[%s12139_s5 + $0x40] ss:$16 sps:$4 sm:$0xff]  }
 0x8de   :  { %4323 = vmatprep.subr.bf16.mxu0 %v7449_v42  ;;  %4365 = vmatpush1.bf16.msra.mxu1 %v7450_v21  ;;  %v11300_v42 = vld [vmem:[%s12139_s5 + $0x48] ss:$16 sps:$4 sm:$0xff]   ;;  %v11307_v21 = vld [vmem:[%s12139_s5 + $0x64] ss:$16 sps:$4 sm:$0xff]  }
 0x8df   :  { %3831 = vmatmul.mubr.bf16.gmra.mrb[72].mxu0 %v12705_v63  ;;  %3944 = vmatmul.mubr.bf16.gmra.mrb[72].mxu1 %v12705_v63  ;;  %v11336_v63 = vld [vmem:[%s12139_s5 + $0x8c] ss:$16 sps:$4 sm:$0xff]  }
 0x8e0   :  { %3840 = vmatprep.mubr.bf16.mxu0 %v12405_v15  ;;  %3953 = vmatprep.mubr.bf16.mxu1 %v12405_v15 }
 0x8e1   :  { %4324 = vmatpush1.bf16.msra.mxu0 %v7447_v14  ;;  %4366 = vmatprep.subr.bf16.mxu1 %v7458_v40  ;;  %v11312_v14 = vld [vmem:[%s12139_s5 + $0x6c] ss:$16 sps:$4 sm:$0xff]   ;;  %v11319_v40 = vld [vmem:[%s12139_s5 + $0x60] ss:$16 sps:$4 sm:$0xff]  }
 0x8e2   :  { %4325 = vmatprep.subr.bf16.mxu0 %v7455_v8  ;;  %4367 = vmatpush1.bf16.msra.mxu1 %v7456_v61  ;;  %v11324_v8 = vld [vmem:[%s12139_s5 + $0x68] ss:$16 sps:$4 sm:$0xff]   ;;  %v11331_v61 = vld [vmem:[%s12139_s5 + $0x84] ss:$16 sps:$4 sm:$0xff]  }
 0x8e3   :  { %4368 = vmatprep.subr.bf16.mxu1 %v7464_v50  ;;  %v11343_v50 = vld [vmem:[%s12139_s5 + $0x80] ss:$16 sps:$4 sm:$0xff]  }
 0x8e5   :  { %4326 = vmatpush1.bf16.msra.mxu0 %v7453_v46  ;;  %v11348_v46 = vld [vmem:[%s12139_s5 + $0x88] ss:$16 sps:$4 sm:$0xff]  }
 0x8e6   :  { %4327 = vmatprep.subr.bf16.mxu0 %v7461_v44  ;;  %4369 = vmatpush1.bf16.msra.mxu1 %v7462_v62  ;;  %v11355_v44 = vld [vmem:[%s12139_s5 + $0xa4] ss:$16 sps:$4 sm:$0xff]   ;;  %v11360_v62 = vld [vmem:[%s12139_s5 + $0xac] ss:$16 sps:$4 sm:$0xff]  }
 0x8e7   :  { %3841 = vmatmul.mubr.bf16.gmra.mrb[76].mxu0 %v12706_v32  ;;  %3954 = vmatmul.mubr.bf16.gmra.mrb[76].mxu1 %v12706_v32  ;;  %v11391_v32 = vld [vmem:[%s12139_s5 + $0xc0] ss:$16 sps:$4 sm:$0xff]  }
 0x8e8   :  { %3850 = vmatprep.mubr.bf16.mxu0 %v12405_v15  ;;  %3963 = vmatprep.mubr.bf16.mxu1 %v12405_v15 }
 0x8e9   :  { %4328 = vmatpush1.bf16.msra.mxu0 %v7459_v31  ;;  %4370 = vmatprep.subr.bf16.mxu1 %v7470_v11  ;;  %v11367_v31 = vld [vmem:[%s12139_s5 + $0xa0] ss:$16 sps:$4 sm:$0xff]   ;;  %v11372_v11 = vld [vmem:[%s12139_s5 + $0xa8] ss:$16 sps:$4 sm:$0xff]  }
 0x8ea   :  { %4329 = vmatprep.subr.bf16.mxu0 %v7467_v56  ;;  %4371 = vmatpush1.bf16.msra.mxu1 %v7468_v43  ;;  %v11379_v56 = vld [vmem:[%s12139_s5 + $0xc4] ss:$16 sps:$4 sm:$0xff]   ;;  %v11384_v43 = vld [vmem:[%s12139_s5 + $0xcc] ss:$16 sps:$4 sm:$0xff]  }
 0x8eb   :  { %4372 = vmatprep.subr.bf16.mxu1 %v7473_v48  ;;  %v11396_v48 = vld [vmem:[%s12139_s5 + $0xc8] ss:$16 sps:$4 sm:$0xff]  }
 0x8ed   :  { %4330 = vmatpush1.bf16.msra.mxu0 %v7465_v20  ;;  %v11403_v20 = vld [vmem:[%s12139_s5 + $0xe4] ss:$16 sps:$4 sm:$0xff]  }
 0x8ee   :  { %4373 = vmatpush1.bf16.msra.mxu1 %v7471_v27  ;;  %4561 = vmatprep.subr.bf16.mxu0 %v7476_v22  ;;  %v11408_v27 = vld [vmem:[%s12139_s5 + $0xec] ss:$16 sps:$4 sm:$0xff]   ;;  %v11415_v22 = vld [vmem:[%s12139_s5 + $0xe0] ss:$16 sps:$4 sm:$0xff]  }
 0x8ef   :  { %3851 = vmatmul.mubr.bf16.gmra.mrb[80].mxu0 %v12707_v60  ;;  %3964 = vmatmul.mubr.bf16.gmra.mrb[80].mxu1 %v12707_v60  ;;  %v6682_v60 = vld [vmem:[%s12140_s6 + $0x4] sm:$0xf] }
 0x8f0   :  { %3860 = vmatprep.mubr.bf16.mxu0 %v12405_v15  ;;  %3973 = vmatprep.mubr.bf16.mxu1 %v12405_v15 }
 0x8f1   :  { %4604 = vmatprep.subr.bf16.mxu1 %v7479_v53  ;;  %v11420_v53 = vld [vmem:[%s12139_s5 + $0xe8] ss:$16 sps:$4 sm:$0xff]  }
 0x8f7   :  { %3861 = vmatmul.mubr.bf16.gmra.mrb[84].mxu0 %v10924_v49  ;;  %3974 = vmatmul.mubr.bf16.gmra.mrb[84].mxu1 %v10924_v49  ;;  %v7474_v49 = vld [vmem:[#allocation2 + $0x200] ss:$16 sps:$4 sm:$0xff]  }
 0x8f8   :  { %3870 = vmatprep.mubr.bf16.mxu0 %v12405_v15  ;;  %3983 = vmatprep.mubr.bf16.mxu1 %v12405_v15 }
 0x8ff   :  { %3871 = vmatmul.mubr.bf16.gmra.mrb[88].mxu0 %v11032_v28  ;;  %3984 = vmatmul.mubr.bf16.gmra.mrb[88].mxu1 %v11032_v28  ;;  %v7480_v28 = vld [vmem:[#allocation2 + $0x220] ss:$16 sps:$4 sm:$0xff]  }
 0x900   :  { %3880 = vmatprep.mubr.bf16.mxu0 %v12405_v15  ;;  %3993 = vmatprep.mubr.bf16.mxu1 %v12405_v15 }
 0x907   :  { %3881 = vmatmul.mubr.bf16.gmra.mrb[92].mxu0 %v11160_v38  ;;  %3994 = vmatmul.mubr.bf16.gmra.mrb[92].mxu1 %v11160_v38 }
 0x908   :  { %4347 = vmatprep.mubr.bf16.mxu0 %v12405_v15  ;;  %4390 = vmatprep.mubr.bf16.mxu1 %v12405_v15 }
 0x90f   :  { %4348 = vmatmul.mubr.bf16.vlgmr.msra.gmra.mrb[96].mxu0 %v12702_v12  ;;  %4391 = vmatmul.mubr.bf16.vlgmr.msra.gmra.mrb[96].mxu1 %v12702_v12  ;;  %v7510_v12 = vld [vmem:[#allocation2 + $0x2c0] ss:$16 sps:$4 sm:$0xff]  }
 0x910   :  { %4562 = vmatpush1.bf16.msra.mxu0 %v7474_v49  ;;  %4605 = vmatpush1.bf16.msra.mxu1 %v7477_v24  ;;  %v12708_v49 = vld [vmem:[#allocation5_spill] sm:$0xff] }
 0x911   :  { %4563 = vmatprep.subr.bf16.mxu0 %v7482_v51  ;;  %4606 = vmatprep.subr.bf16.mxu1 %v7485_v13  ;;  %v4653_v24 = vrot.slane %v6682_v60, %v12708_v49  ;;  %v12709_v51 = vld [vmem:[#allocation7_spill] sm:$0xff] }
 0x912   :  { %4593 = vmatprep.mubr.bf16.mxu0 %v12405_v15  ;;  %4636 = vmatprep.mubr.bf16.mxu1 %v12405_v15  ;;  %v4657_v13 = vrot.slane %v6682_v60, %v12709_v51 }
 0x914   :  { %4564 = vmatpush1.bf16.msra.mxu0 %v7480_v28  ;;  %4607 = vmatpush1.bf16.msra.mxu1 %v7483_v3 }
 0x915   :  { %4565 = vmatprep.subr.bf16.mxu0 %v7488_v55  ;;  %4608 = vmatprep.subr.bf16.mxu1 %v7491_v10 }
 0x918   :  { %4566 = vmatpush1.bf16.msra.mxu0 %v7486_v0  ;;  %4609 = vmatpush1.bf16.msra.mxu1 %v7489_v1 }
 0x919   :  { %4567 = vmatprep.subr.bf16.mxu0 %v7494_v2  ;;  %4610 = vmatprep.subr.bf16.mxu1 %v7497_v41 }
 0x91c   :  { %4568 = vmatpush1.bf16.msra.mxu0 %v7492_v26  ;;  %4611 = vmatpush1.bf16.msra.mxu1 %v7495_v34 }
 0x91d   :  { %4569 = vmatprep.subr.bf16.mxu0 %v7500_v25  ;;  %4612 = vmatprep.subr.bf16.mxu1 %v7503_v35 }
 0x920   :  { %4570 = vmatpush1.bf16.msra.mxu0 %v7498_v47  ;;  %4613 = vmatpush1.bf16.msra.mxu1 %v7501_v59  ;;  %v12710_v59 = vld [vmem:[#allocation8_spill] sm:$0xff] }
 0x921   :  { %4571 = vmatprep.subr.bf16.mxu0 %v7506_v5  ;;  %4614 = vmatprep.subr.bf16.mxu1 %v7509_v45  ;;  %v4665_v5 = vrot.slane %v6682_v60, %v12710_v59 }
 0x924   :  { %4572 = vmatpush1.bf16.msra.mxu0 %v7504_v52  ;;  %4615 = vmatpush1.bf16.msra.mxu1 %v7507_v9 }
 0x925   :  { %4573 = vmatprep.subr.bf16.mxu0 %v7512_v36  ;;  %4616 = vmatprep.subr.bf16.mxu1 %v7515_v17  ;;  %v12711_v36 = vld [vmem:[#allocation6_spill] sm:$0xff] }
 0x926   :  { %v4661_v17 = vrot.slane %v6682_v60, %v12711_v36 }
 0x928   :  { %4574 = vmatpush1.bf16.msra.mxu0 %v7510_v12  ;;  %4617 = vmatpush1.bf16.msra.mxu1 %v7513_v19 }
 0x929   :  { %4575 = vmatprep.subr.bf16.mxu0 %v7518_v39  ;;  %4618 = vmatprep.subr.bf16.mxu1 %v7521_v30 }
 0x92c   :  { %4576 = vmatpush1.bf16.msra.mxu0 %v7516_v6  ;;  %4619 = vmatpush1.bf16.msra.mxu1 %v7519_v54 }
 0x92d   :  { %4918 = vmatprep.subr.bf16.mxu0 %v11233_v37  ;;  %4961 = vmatprep.subr.bf16.mxu1 %v11238_v29 }
 0x92f   :  { %4594 = vmatmul.mubr.bf16.vlgmr.msra.gmra.mrb[96].mxu0 %v11160_v38  ;;  %4637 = vmatmul.mubr.bf16.vlgmr.msra.gmra.mrb[96].mxu1 %v11160_v38  ;;  %v11281_v38 = vld [vmem:[%s12139_s5 + $0x44] ss:$16 sps:$4 sm:$0xff]  }
 0x930   :  { %4919 = vmatpush1.bf16.msra.mxu0 %v11243_v58  ;;  %4962 = vmatpush1.bf16.msra.mxu1 %v11248_v23 }
 0x931   :  { %4920 = vmatprep.subr.bf16.mxu0 %v11255_v7  ;;  %4963 = vmatprep.subr.bf16.mxu1 %v11260_v33 }
 0x932   :  { %4950 = vmatprep.mubr.bf16.mxu0 %v12405_v15  ;;  %4993 = vmatprep.mubr.bf16.mxu1 %v12405_v15 }
 0x934   :  { %4921 = vmatpush1.bf16.msra.mxu0 %v11269_v16  ;;  %4964 = vmatpush1.bf16.msra.mxu1 %v11274_v4 }
 0x935   :  { %4922 = vmatprep.subr.bf16.mxu0 %v11281_v38  ;;  %4965 = vmatprep.subr.bf16.mxu1 %v11286_v57 }
 0x938   :  { %4923 = vmatpush1.bf16.msra.mxu0 %v11295_v18  ;;  %4966 = vmatpush1.bf16.msra.mxu1 %v11300_v42 }
 0x939   :  { %4924 = vmatprep.subr.bf16.mxu0 %v11307_v21  ;;  %4967 = vmatprep.subr.bf16.mxu1 %v11312_v14 }
 0x93c   :  { %4925 = vmatpush1.bf16.msra.mxu0 %v11319_v40  ;;  %4968 = vmatpush1.bf16.msra.mxu1 %v11324_v8 }
 0x93d   :  { %4926 = vmatprep.subr.bf16.mxu0 %v11331_v61  ;;  %4969 = vmatprep.subr.bf16.mxu1 %v11336_v63 }
 0x940   :  { %4927 = vmatpush1.bf16.msra.mxu0 %v11343_v50  ;;  %4970 = vmatpush1.bf16.msra.mxu1 %v11348_v46 }
 0x941   :  { %4928 = vmatprep.subr.bf16.mxu0 %v11355_v44  ;;  %4971 = vmatprep.subr.bf16.mxu1 %v11360_v62 }
 0x944   :  { %4929 = vmatpush1.bf16.msra.mxu0 %v11367_v31  ;;  %4972 = vmatpush1.bf16.msra.mxu1 %v11372_v11 }
 0x945   :  { %4930 = vmatprep.subr.bf16.mxu0 %v11379_v56  ;;  %4973 = vmatprep.subr.bf16.mxu1 %v11384_v43 }
 0x948   :  { %4931 = vmatpush1.bf16.msra.mxu0 %v11391_v32  ;;  %4974 = vmatpush1.bf16.msra.mxu1 %v11396_v48 }
 0x949   :  { %4932 = vmatprep.subr.bf16.mxu0 %v11403_v20  ;;  %4975 = vmatprep.subr.bf16.mxu1 %v11408_v27 }
 0x94c   :  { %4933 = vmatpush1.bf16.msra.mxu0 %v11415_v22  ;;  %4976 = vmatpush1.bf16.msra.mxu1 %v11420_v53 }
 0x94d   :  { %5061 = vmatprep.subr.bf16.mxu0 %v11233_v37  ;;  %5104 = vmatprep.subr.bf16.mxu1 %v11238_v29 }
 0x94f   :  { %4951 = vmatmul.mubr.bf16.vlgmr.msra.gmra.mrb[64].mxu0 %v12405_v15  ;;  %4994 = vmatmul.mubr.bf16.vlgmr.msra.gmra.mrb[64].mxu1 %v12405_v15 }
 0x950   :  { %5062 = vmatpush1.bf16.msra.mxu0 %v11243_v58  ;;  %5105 = vmatpush1.bf16.msra.mxu1 %v11248_v23 }
 0x951   :  { %5063 = vmatprep.subr.bf16.mxu0 %v11255_v7  ;;  %5106 = vmatprep.subr.bf16.mxu1 %v11260_v33 }
 0x952   :  { %5093 = vmatprep.mubr.bf16.mxu0 %v12405_v15  ;;  %5136 = vmatprep.mubr.bf16.mxu1 %v12405_v15 }
 0x954   :  { %5064 = vmatpush1.bf16.msra.mxu0 %v11269_v16  ;;  %5107 = vmatpush1.bf16.msra.mxu1 %v11274_v4 }
 0x955   :  { %5065 = vmatprep.subr.bf16.mxu0 %v11281_v38  ;;  %5108 = vmatprep.subr.bf16.mxu1 %v11286_v57 }
 0x958   :  { %5066 = vmatpush1.bf16.msra.mxu0 %v11295_v18  ;;  %5109 = vmatpush1.bf16.msra.mxu1 %v11300_v42 }
 0x959   :  { %5067 = vmatprep.subr.bf16.mxu0 %v11307_v21  ;;  %5110 = vmatprep.subr.bf16.mxu1 %v11312_v14 }
 0x95c   :  { %5068 = vmatpush1.bf16.msra.mxu0 %v11319_v40  ;;  %5111 = vmatpush1.bf16.msra.mxu1 %v11324_v8 }
 0x95d   :  { %5069 = vmatprep.subr.bf16.mxu0 %v11331_v61  ;;  %5112 = vmatprep.subr.bf16.mxu1 %v11336_v63 }
 0x960   :  { %5070 = vmatpush1.bf16.msra.mxu0 %v11343_v50  ;;  %5113 = vmatpush1.bf16.msra.mxu1 %v11348_v46 }
 0x961   :  { %5071 = vmatprep.subr.bf16.mxu0 %v11355_v44  ;;  %5114 = vmatprep.subr.bf16.mxu1 %v11360_v62 }
 0x964   :  { %5072 = vmatpush1.bf16.msra.mxu0 %v11367_v31  ;;  %5115 = vmatpush1.bf16.msra.mxu1 %v11372_v11 }
 0x965   :  { %5073 = vmatprep.subr.bf16.mxu0 %v11379_v56  ;;  %5116 = vmatprep.subr.bf16.mxu1 %v11384_v43 }
 0x968   :  { %5074 = vmatpush1.bf16.msra.mxu0 %v11391_v32  ;;  %5117 = vmatpush1.bf16.msra.mxu1 %v11396_v48 }
 0x969   :  { %5075 = vmatprep.subr.bf16.mxu0 %v11403_v20  ;;  %5118 = vmatprep.subr.bf16.mxu1 %v11408_v27 }
 0x96c   :  { %5076 = vmatpush1.bf16.msra.mxu0 %v11415_v22  ;;  %5119 = vmatpush1.bf16.msra.mxu1 %v11420_v53 }
 0x96d   :  { %5204 = vmatprep.subr.bf16.mxu0 %v11233_v37  ;;  %5247 = vmatprep.subr.bf16.mxu1 %v11238_v29 }
 0xa02   :  { %v4595_v28 = vpop.f32.mrb[96].mxu0  ;;  %v4638_v3 = vpop.f32.mrb[96].mxu1 }
 0xa03   :  { %v4670_v55 = vadd.f32 %v4653_v24, %v4595_v28  ;;  %v4597_v10 = vpop.f32.mrb[97].mxu0  ;;  %v4640_v0 = vpop.f32.mrb[97].mxu1  ;;  %v4672_v39 = vadd.f32 %v4661_v17, %v4638_v3 }
 0xa04   :  { %v4671_v1 = vadd.f32 %v4657_v13, %v4597_v10  ;;  %v4599_v2 = vpop.f32.mrb[98].mxu0  ;;  %v4642_v41 = vpop.f32.mrb[98].mxu1  ;;  %v4673_v12 = vadd.f32 %v4665_v5, %v4640_v0 }
 0xa05   :  { %v6683_v26 = vmul.f32 -1.442695, %v4670_v55  ;;  %v4674_v34 = vadd.f32 %v4653_v24, %v4599_v2  ;;  %v4601_v25 = vpop.f32.mrb[99].mxu0  ;;  %v4644_v35 = vpop.f32.mrb[99].mxu1  ;;  %v4676_v55 = vadd.f32 %v4661_v17, %v4642_v41 }
 0xa06   :  { %v6684_v47 = vmul.f32 -1.442695, %v4671_v1  ;;  %v4675_v45 = vadd.f32 %v4657_v13, %v4601_v25  ;;  %v4677_v19 = vadd.f32 %v4665_v5, %v4644_v35  ;;  %v6687_v30 = vmul.f32 -1.442695, %v4673_v12 }
 0xa07   :  { %8082 = vpow2.f32 %v6683_v26  ;;  %v6685_v52 = vmul.f32 -1.442695, %v4674_v34  ;;  %v4004_v26 = vld [vmem:[%s12140_s6] sm:$0xf] }
 0xa08   :  { %8084 = vpow2.f32 %v6684_v47  ;;  %v6686_v9 = vmul.f32 -1.442695, %v4675_v45  ;;  %v6688_v6 = vmul.f32 -1.442695, %v4677_v19  ;;  %v11475_v5 = vrot.slane %v4004_v26, %v12708_v49 }
 0xa09   :  { %8086 = vpow2.f32 %v6685_v52 }
 0xa0a   :  { %8088 = vpow2.f32 %v6686_v9  ;;  %v11478_v9 = vrot.slane %v4004_v26, %v12709_v51 }
 0xa0b   :  { %8090 = vtanh.f32 %v4672_v39 }
 0xa0c   :  { %8092 = vpow2.f32 %v6687_v30 }
 0xa0d   :  { %8094 = vpow2.f32 %v6688_v6 }
 0xa11   :  { %v8083_v54 = vpop.eup %8082 }
 0xa12   :  { %v8085_v24 = vpop.eup %8084  ;;  %v4690_v28 = vadd.f32 1.0, %v8083_v54 }
 0xa13   :  { %v4691_v13 = vadd.f32 1.0, %v8085_v24  ;;  %v8087_v10 = vpop.eup %8086 }
 0xa14   :  { %8096 = vrcp.f32 %v4690_v28  ;;  %v4692_v1 = vadd.f32 1.0, %v8087_v10  ;;  %v8089_v60 = vpop.eup %8088 }
 0xa15   :  { %8098 = vrcp.f32 %v4691_v13  ;;  %v4693_v0 = vadd.f32 1.0, %v8089_v60  ;;  %v8091_v3 = vpop.eup %8090 }
 0xa16   :  { %8100 = vtanh.f32 %v4676_v55  ;;  %v8093_v2 = vpop.eup %8092 }
 0xa17   :  { %8102 = vrcp.f32 %v4692_v1  ;;  %v8095_v34 = vpop.eup %8094  ;;  %v4710_v47 = vadd.f32 1.0, %v8093_v2 }
 0xa18   :  { %8104 = vrcp.f32 %v4693_v0  ;;  %v4711_v39 = vadd.f32 1.0, %v8095_v34 }
 0xa19   :  { %8106 = vrcp.f32 %v4710_v47 }
 0xa1e   :  { %v8097_v25 = vpop.eup %8096 }
 0xa1f   :  { %v8099_v41 = vpop.eup %8098  ;;  %v4718_v35 = vmul.f32 %v8097_v25, %v8091_v3 }
 0xa20   :  { %v8101_v45 = vpop.eup %8100  ;;  %v4716_v52 = vmul.f32 0.0, %v8099_v41  ;;  %v11485_v41 = vrot.slane %v4004_v26, %v12710_v59 }
 0xa21   :  { %v8103_v17 = vpop.eup %8102 }
 0xa22   :  { %v4720_v12 = vadd.f32 %v4718_v35, %v4716_v52  ;;  %v4719_v19 = vmul.f32 %v8103_v17, %v8101_v45  ;;  %v4952_v30 = vpop.f32.mrb[64].mxu0  ;;  %v4995_v6 = vpop.f32.mrb[64].mxu1  ;;  %v11488_v45 = vrot.slane %v4004_v26, %v12711_v36 }
 0xa23   :  { %v8105_v54 = vpop.eup %8104  ;;  %v7026_v24 = vadd.f32 %v4952_v30, %v11475_v5  ;;  %v4954_v28 = vpop.f32.mrb[65].mxu0 }
 0xa24   :  { %v4997_v55 = vpop.f32.mrb[65].mxu1  ;;  %8108 = vtanh.f32 %v4720_v12  ;;  %v4717_v49 = vmul.f32 0.0, %v8105_v54  ;;  %v7027_v13 = vadd.f32 %v4954_v28, %v11478_v9  ;;  %v4956_v10 = vpop.f32.mrb[66].mxu0 }
 0xa25   :  { %v4999_v1 = vpop.f32.mrb[66].mxu1  ;;  %v6721_v51 = vmul.f32 -1.442695, %v7026_v24  ;;  %v7028_v60 = vadd.f32 %v4956_v10, %v11475_v5  ;;  %v4958_v0 = vpop.f32.mrb[67].mxu0  ;;  %8110 = vrcp.f32 %v4711_v39  ;;  %v7059_v52 = vadd.f32 %v4997_v55, %v11485_v41 }
 0xa26   :  { %v5001_v3 = vpop.f32.mrb[67].mxu1  ;;  %v4721_v2 = vadd.f32 %v4719_v19, %v4717_v49  ;;  %v6722_v34 = vmul.f32 -1.442695, %v7027_v13  ;;  %v7029_v25 = vadd.f32 %v4958_v0, %v11478_v9  ;;  %v8107_v17 = vpop.eup %8106  ;;  %v7058_v19 = vadd.f32 %v4995_v6, %v11488_v45 }
 0xa27   :  { %8112 = vpow2.f32 %v6721_v51  ;;  %v6723_v35 = vmul.f32 -1.442695, %v7028_v60  ;;  %v6725_v39 = vmul.f32 -1.442695, %v7059_v52  ;;  %v7061_v30 = vadd.f32 %v5001_v3, %v11485_v41 }
 0xa28   :  { %8114 = vtanh.f32 %v4721_v2  ;;  %v6724_v47 = vmul.f32 -1.442695, %v7029_v25  ;;  %v7060_v28 = vadd.f32 %v4999_v1, %v11488_v45 }
 0xa29   :  { %8116 = vpow2.f32 %v6722_v34  ;;  %v6726_v55 = vmul.f32 -1.442695, %v7061_v30 }
 0xa2a   :  { %8118 = vpow2.f32 %v6723_v35 }
 0xa2b   :  { %8120 = vpow2.f32 %v6724_v47 }
 0xa2c   :  { %8122 = vtanh.f32 %v7058_v19 }
 0xa2d   :  { %8124 = vpow2.f32 %v6725_v39 }
 0xa2e   :  { %v8109_v12 = vpop.eup %8108 }
 0xa2f   :  { %v11493_v59 = vmul.f32 %v8109_v12, %v8107_v17  ;;  %v8111_v54 = vpop.eup %8110 }
 0xa31   :  { %v8113_v24 = vpop.eup %8112 }
 0xa32   :  { %v8115_v49 = vpop.eup %8114  ;;  %v5024_v36 = vadd.f32 1.0, %v8113_v24 }
 0xa33   :  { %v8117_v26 = vpop.eup %8116  ;;  %v11496_v13 = vmul.f32 %v8115_v49, %v8111_v54 }
 0xa34   :  { %8126 = vrcp.f32 %v5024_v36  ;;  %v5025_v10 = vadd.f32 1.0, %v8117_v26  ;;  %v8119_v6 = vpop.eup %8118 }
 0xa35   :  { %8128 = vtanh.f32 %v7060_v28  ;;  %v5026_v51 = vadd.f32 1.0, %v8119_v6  ;;  %v8121_v60 = vpop.eup %8120 }
 0xa36   :  { %8130 = vrcp.f32 %v5025_v10  ;;  %v5027_v0 = vadd.f32 1.0, %v8121_v60  ;;  %v8123_v1 = vpop.eup %8122 }
 0xa37   :  { %8132 = vpow2.f32 %v6726_v55  ;;  %v8125_v3 = vpop.eup %8124 }
 0xa38   :  { %8134 = vrcp.f32 %v5026_v51  ;;  %v5044_v12 = vadd.f32 1.0, %v8125_v3 }
 0xa39   :  { %8136 = vrcp.f32 %v5027_v0 }
 0xa3a   :  { %8138 = vrcp.f32 %v5044_v12 }
 0xa3e   :  { %v8127_v2 = vpop.eup %8126 }
 0xa3f   :  { %v8129_v34 = vpop.eup %8128  ;;  %v5052_v25 = vmul.f32 %v8127_v2, %v8123_v1 }
 0xa40   :  { %v8131_v35 = vpop.eup %8130 }
 0xa41   :  { %v8133_v47 = vpop.eup %8132  ;;  %v5050_v52 = vmul.f32 0.0, %v8131_v35 }
 0xa42   :  { %v8135_v17 = vpop.eup %8134  ;;  %v5045_v54 = vadd.f32 1.0, %v8133_v47 }
 0xa43   :  { %v11498_v19 = vadd.f32 %v5052_v25, %v5050_v52  ;;  %v5053_v39 = vmul.f32 %v8135_v17, %v8129_v34  ;;  %v8137_v30 = vpop.eup %8136 }
 0xa44   :  { %v5051_v24 = vmul.f32 0.0, %v8137_v30  ;;  %v8139_v49 = vpop.eup %8138 }
 0xa45   :  { %8140 = vtanh.f32 %v11498_v19 }
 0xa46   :  { %v11501_v28 = vadd.f32 %v5053_v39, %v5051_v24  ;;  %8142 = vrcp.f32 %v5045_v54 }
 0xa48   :  { %8144 = vtanh.f32 %v11501_v28 }
 0xa4f   :  { %v8141_v36 = vpop.eup %8140 }
 0xa50   :  { %v8143_v26 = vpop.eup %8142  ;;  %v5058_v10 = vmul.f32 %v8141_v36, %v8139_v49 }
 0xa52   :  { %v8145_v55 = vpop.eup %8144 }
 0xa53   :  { %v5059_v6 = vmul.f32 %v8145_v55, %v8143_v26 }
 0xa55   :  { %v5060_v51 = vpack.c.bf16 %v5059_v6, %v5058_v10 }
 0xa57   :  { %5094 = vmatmul.mubr.bf16.vlgmr.msra.gmra.mrb[68].mxu0 %v5060_v51  ;;  %5137 = vmatmul.mubr.bf16.vlgmr.msra.gmra.mrb[68].mxu1 %v5060_v51 }
 0xa58   :  { %5205 = vmatpush1.bf16.msra.mxu0 %v11243_v58  ;;  %5248 = vmatpush1.bf16.msra.mxu1 %v11248_v23 }
 0xa59   :  { %5206 = vmatprep.subr.bf16.mxu0 %v11255_v7  ;;  %5249 = vmatprep.subr.bf16.mxu1 %v11260_v33 }
 0xa5a   :  { %5236 = vmatprep.mubr.bf16.mxu0 %v12405_v15  ;;  %5279 = vmatprep.mubr.bf16.mxu1 %v12405_v15 }
 0xa5c   :  { %5207 = vmatpush1.bf16.msra.mxu0 %v11269_v16  ;;  %5250 = vmatpush1.bf16.msra.mxu1 %v11274_v4 }
 0xa5d   :  { %5208 = vmatprep.subr.bf16.mxu0 %v11281_v38  ;;  %5251 = vmatprep.subr.bf16.mxu1 %v11286_v57 }
 0xa60   :  { %5209 = vmatpush1.bf16.msra.mxu0 %v11295_v18  ;;  %5252 = vmatpush1.bf16.msra.mxu1 %v11300_v42 }
 0xa61   :  { %5210 = vmatprep.subr.bf16.mxu0 %v11307_v21  ;;  %5253 = vmatprep.subr.bf16.mxu1 %v11312_v14 }
 0xa64   :  { %5211 = vmatpush1.bf16.msra.mxu0 %v11319_v40  ;;  %5254 = vmatpush1.bf16.msra.mxu1 %v11324_v8 }
 0xa65   :  { %5212 = vmatprep.subr.bf16.mxu0 %v11331_v61  ;;  %5255 = vmatprep.subr.bf16.mxu1 %v11336_v63 }
 0xa68   :  { %5213 = vmatpush1.bf16.msra.mxu0 %v11343_v50  ;;  %5256 = vmatpush1.bf16.msra.mxu1 %v11348_v46 }
 0xa69   :  { %5214 = vmatprep.subr.bf16.mxu0 %v11355_v44  ;;  %5257 = vmatprep.subr.bf16.mxu1 %v11360_v62 }
 0xa6c   :  { %5215 = vmatpush1.bf16.msra.mxu0 %v11367_v31  ;;  %5258 = vmatpush1.bf16.msra.mxu1 %v11372_v11 }
 0xa6d   :  { %5216 = vmatprep.subr.bf16.mxu0 %v11379_v56  ;;  %5259 = vmatprep.subr.bf16.mxu1 %v11384_v43 }
 0xa70   :  { %5217 = vmatpush1.bf16.msra.mxu0 %v11391_v32  ;;  %5260 = vmatpush1.bf16.msra.mxu1 %v11396_v48 }
 0xa71   :  { %5218 = vmatprep.subr.bf16.mxu0 %v11403_v20  ;;  %5261 = vmatprep.subr.bf16.mxu1 %v11408_v27 }
 0xa74   :  { %5219 = vmatpush1.bf16.msra.mxu0 %v11415_v22  ;;  %5262 = vmatpush1.bf16.msra.mxu1 %v11420_v53 }
 0xa75   :  { %5347 = vmatprep.subr.bf16.mxu0 %v11233_v37  ;;  %5390 = vmatprep.subr.bf16.mxu1 %v11238_v29 }
 0xb2a   :  { %v5095_v60 = vpop.f32.mrb[68].mxu0  ;;  %v5138_v0 = vpop.f32.mrb[68].mxu1 }
 0xb2b   :  { %v7030_v1 = vadd.f32 %v5095_v60, %v11475_v5  ;;  %v5097_v3 = vpop.f32.mrb[69].mxu0  ;;  %v5140_v2 = vpop.f32.mrb[69].mxu1  ;;  %v7062_v36 = vadd.f32 %v5138_v0, %v11488_v45 }
 0xb2c   :  { %v7031_v34 = vadd.f32 %v5097_v3, %v11478_v9  ;;  %v5099_v25 = vpop.f32.mrb[70].mxu0  ;;  %v5142_v35 = vpop.f32.mrb[70].mxu1  ;;  %v7063_v49 = vadd.f32 %v5140_v2, %v11485_v41 }
 0xb2d   :  { %v6727_v47 = vmul.f32 -1.442695, %v7030_v1  ;;  %v7032_v52 = vadd.f32 %v5099_v25, %v11475_v5  ;;  %v5101_v17 = vpop.f32.mrb[71].mxu0  ;;  %v5144_v12 = vpop.f32.mrb[71].mxu1  ;;  %v7064_v10 = vadd.f32 %v5142_v35, %v11488_v45 }
 0xb2e   :  { %v6728_v39 = vmul.f32 -1.442695, %v7031_v34  ;;  %v7033_v30 = vadd.f32 %v5101_v17, %v11478_v9  ;;  %v6731_v26 = vmul.f32 -1.442695, %v7063_v49  ;;  %v7065_v55 = vadd.f32 %v5144_v12, %v11485_v41 }
 0xb2f   :  { %8146 = vpow2.f32 %v6727_v47  ;;  %v6729_v54 = vmul.f32 -1.442695, %v7032_v52 }
 0xb30   :  { %8148 = vpow2.f32 %v6728_v39  ;;  %v6730_v24 = vmul.f32 -1.442695, %v7033_v30  ;;  %v6732_v1 = vmul.f32 -1.442695, %v7065_v55 }
 0xb31   :  { %8150 = vpow2.f32 %v6729_v54 }
 0xb32   :  { %8152 = vpow2.f32 %v6730_v24 }
 0xb33   :  { %8154 = vtanh.f32 %v7062_v36 }
 0xb34   :  { %8156 = vpow2.f32 %v6731_v26 }
 0xb35   :  { %8158 = vtanh.f32 %v7064_v10 }
 0xb39   :  { %v8147_v6 = vpop.eup %8146 }
 0xb3a   :  { %v8149_v51 = vpop.eup %8148  ;;  %v5167_v60 = vadd.f32 1.0, %v8147_v6 }
 0xb3b   :  { %v5168_v3 = vadd.f32 1.0, %v8149_v51  ;;  %v8151_v34 = vpop.eup %8150 }
 0xb3c   :  { %8160 = vrcp.f32 %v5167_v60  ;;  %v5169_v2 = vadd.f32 1.0, %v8151_v34  ;;  %v8153_v25 = vpop.eup %8152 }
 0xb3d   :  { %8162 = vrcp.f32 %v5168_v3  ;;  %v5170_v0 = vadd.f32 1.0, %v8153_v25  ;;  %v8155_v47 = vpop.eup %8154 }
 0xb3e   :  { %8164 = vpow2.f32 %v6732_v1  ;;  %v8157_v52 = vpop.eup %8156 }
 0xb3f   :  { %8166 = vrcp.f32 %v5169_v2  ;;  %v8159_v35 = vpop.eup %8158  ;;  %v5187_v49 = vadd.f32 1.0, %v8157_v52 }
 0xb40   :  { %8168 = vrcp.f32 %v5170_v0 }
 0xb41   :  { %8170 = vrcp.f32 %v5187_v49 }
 0xb46   :  { %v8161_v17 = vpop.eup %8160 }
 0xb47   :  { %v8163_v12 = vpop.eup %8162  ;;  %v5195_v39 = vmul.f32 %v8161_v17, %v8155_v47 }
 0xb48   :  { %v8165_v30 = vpop.eup %8164  ;;  %v5193_v54 = vmul.f32 %v8163_v12, %v11498_v19 }
 0xb49   :  { %v8167_v24 = vpop.eup %8166  ;;  %v5188_v10 = vadd.f32 1.0, %v8165_v30 }
 0xb4a   :  { %v11547_v36 = vadd.f32 %v5195_v39, %v5193_v54  ;;  %v5196_v26 = vmul.f32 %v8167_v24, %v8159_v35  ;;  %v8169_v55 = vpop.eup %8168 }
 0xb4b   :  { %v5194_v6 = vmul.f32 %v8169_v55, %v11501_v28  ;;  %v8171_v60 = vpop.eup %8170 }
 0xb4c   :  { %8172 = vtanh.f32 %v11547_v36 }
 0xb4d   :  { %v11551_v51 = vadd.f32 %v5196_v26, %v5194_v6  ;;  %8174 = vrcp.f32 %v5188_v10 }
 0xb4f   :  { %8176 = vtanh.f32 %v11551_v51 }
 0xb56   :  { %v8173_v1 = vpop.eup %8172 }
 0xb57   :  { %v8175_v19 = vpop.eup %8174  ;;  %v5201_v34 = vmul.f32 %v8173_v1, %v8171_v60 }
 0xb59   :  { %v8177_v3 = vpop.eup %8176 }
 0xb5a   :  { %v5202_v2 = vmul.f32 %v8177_v3, %v8175_v19 }
 0xb5c   :  { %v5203_v25 = vpack.c.bf16 %v5202_v2, %v5201_v34 }
 0xb5e   :  { %5237 = vmatmul.mubr.bf16.vlgmr.msra.gmra.mrb[72].mxu0 %v5203_v25  ;;  %5280 = vmatmul.mubr.bf16.vlgmr.msra.gmra.mrb[72].mxu1 %v5203_v25 }
 0xb5f   :  { %5348 = vmatpush1.bf16.msra.mxu0 %v11243_v58  ;;  %5391 = vmatpush1.bf16.msra.mxu1 %v11248_v23 }
 0xb60   :  { %5349 = vmatprep.subr.bf16.mxu0 %v11255_v7  ;;  %5392 = vmatprep.subr.bf16.mxu1 %v11260_v33 }
 0xb61   :  { %5379 = vmatprep.mubr.bf16.mxu0 %v12405_v15  ;;  %5422 = vmatprep.mubr.bf16.mxu1 %v12405_v15 }
 0xb63   :  { %5350 = vmatpush1.bf16.msra.mxu0 %v11269_v16  ;;  %5393 = vmatpush1.bf16.msra.mxu1 %v11274_v4 }
 0xb64   :  { %5351 = vmatprep.subr.bf16.mxu0 %v11281_v38  ;;  %5394 = vmatprep.subr.bf16.mxu1 %v11286_v57 }
 0xb67   :  { %5352 = vmatpush1.bf16.msra.mxu0 %v11295_v18  ;;  %5395 = vmatpush1.bf16.msra.mxu1 %v11300_v42 }
 0xb68   :  { %5353 = vmatprep.subr.bf16.mxu0 %v11307_v21  ;;  %5396 = vmatprep.subr.bf16.mxu1 %v11312_v14 }
 0xb6b   :  { %5354 = vmatpush1.bf16.msra.mxu0 %v11319_v40  ;;  %5397 = vmatpush1.bf16.msra.mxu1 %v11324_v8 }
 0xb6c   :  { %5355 = vmatprep.subr.bf16.mxu0 %v11331_v61  ;;  %5398 = vmatprep.subr.bf16.mxu1 %v11336_v63 }
 0xb6f   :  { %5356 = vmatpush1.bf16.msra.mxu0 %v11343_v50  ;;  %5399 = vmatpush1.bf16.msra.mxu1 %v11348_v46 }
 0xb70   :  { %5357 = vmatprep.subr.bf16.mxu0 %v11355_v44  ;;  %5400 = vmatprep.subr.bf16.mxu1 %v11360_v62 }
 0xb73   :  { %5358 = vmatpush1.bf16.msra.mxu0 %v11367_v31  ;;  %5401 = vmatpush1.bf16.msra.mxu1 %v11372_v11 }
 0xb74   :  { %5359 = vmatprep.subr.bf16.mxu0 %v11379_v56  ;;  %5402 = vmatprep.subr.bf16.mxu1 %v11384_v43 }
 0xb77   :  { %5360 = vmatpush1.bf16.msra.mxu0 %v11391_v32  ;;  %5403 = vmatpush1.bf16.msra.mxu1 %v11396_v48 }
 0xb78   :  { %5361 = vmatprep.subr.bf16.mxu0 %v11403_v20  ;;  %5404 = vmatprep.subr.bf16.mxu1 %v11408_v27 }
 0xb7b   :  { %5362 = vmatpush1.bf16.msra.mxu0 %v11415_v22  ;;  %5405 = vmatpush1.bf16.msra.mxu1 %v11420_v53 }
 0xb7c   :  { %5490 = vmatprep.subr.bf16.mxu0 %v11233_v37  ;;  %5533 = vmatprep.subr.bf16.mxu1 %v11238_v29 }
 0xc31   :  { %v5238_v28 = vpop.f32.mrb[72].mxu0  ;;  %v5281_v0 = vpop.f32.mrb[72].mxu1 }
 0xc32   :  { %v7034_v47 = vadd.f32 %v5238_v28, %v11475_v5  ;;  %v5240_v52 = vpop.f32.mrb[73].mxu0  ;;  %v5283_v35 = vpop.f32.mrb[73].mxu1  ;;  %v7066_v1 = vadd.f32 %v5281_v0, %v11488_v45 }
 0xc33   :  { %v7035_v17 = vadd.f32 %v5240_v52, %v11478_v9  ;;  %v5242_v12 = vpop.f32.mrb[74].mxu0  ;;  %v5285_v39 = vpop.f32.mrb[74].mxu1  ;;  %v7067_v60 = vadd.f32 %v5283_v35, %v11485_v41 }
 0xc34   :  { %v6733_v30 = vmul.f32 -1.442695, %v7034_v47  ;;  %v7036_v54 = vadd.f32 %v5242_v12, %v11475_v5  ;;  %v5244_v24 = vpop.f32.mrb[75].mxu0  ;;  %v5287_v49 = vpop.f32.mrb[75].mxu1  ;;  %v7068_v34 = vadd.f32 %v5285_v39, %v11488_v45 }
 0xc35   :  { %v6734_v26 = vmul.f32 -1.442695, %v7035_v17  ;;  %v7037_v55 = vadd.f32 %v5244_v24, %v11478_v9  ;;  %v6737_v19 = vmul.f32 -1.442695, %v7067_v60  ;;  %v7069_v3 = vadd.f32 %v5287_v49, %v11485_v41 }
 0xc36   :  { %8178 = vpow2.f32 %v6733_v30  ;;  %v6735_v10 = vmul.f32 -1.442695, %v7036_v54 }
 0xc37   :  { %8180 = vpow2.f32 %v6734_v26  ;;  %v6736_v6 = vmul.f32 -1.442695, %v7037_v55  ;;  %v6738_v47 = vmul.f32 -1.442695, %v7069_v3 }
 0xc38   :  { %8182 = vpow2.f32 %v6735_v10 }
 0xc39   :  { %8184 = vpow2.f32 %v6736_v6 }
 0xc3a   :  { %8186 = vtanh.f32 %v7066_v1 }
 0xc3b   :  { %8188 = vpow2.f32 %v6737_v19 }
 0xc3c   :  { %8190 = vtanh.f32 %v7068_v34 }
 0xc40   :  { %v8179_v2 = vpop.eup %8178 }
 0xc41   :  { %v8181_v25 = vpop.eup %8180  ;;  %v5310_v28 = vadd.f32 1.0, %v8179_v2 }
 0xc42   :  { %v5311_v52 = vadd.f32 1.0, %v8181_v25  ;;  %v8183_v17 = vpop.eup %8182 }
 0xc43   :  { %8192 = vrcp.f32 %v5310_v28  ;;  %v5312_v35 = vadd.f32 1.0, %v8183_v17  ;;  %v8185_v12 = vpop.eup %8184 }
 0xc44   :  { %8194 = vrcp.f32 %v5311_v52  ;;  %v5313_v0 = vadd.f32 1.0, %v8185_v12  ;;  %v8187_v30 = vpop.eup %8186 }
 0xc45   :  { %8196 = vpow2.f32 %v6738_v47  ;;  %v8189_v54 = vpop.eup %8188 }
 0xc46   :  { %8198 = vrcp.f32 %v5312_v35  ;;  %v8191_v39 = vpop.eup %8190  ;;  %v5330_v60 = vadd.f32 1.0, %v8189_v54 }
 0xc47   :  { %8200 = vrcp.f32 %v5313_v0 }
 0xc48   :  { %8202 = vrcp.f32 %v5330_v60 }
 0xc4d   :  { %v8193_v24 = vpop.eup %8192 }
 0xc4e   :  { %v8195_v49 = vpop.eup %8194  ;;  %v5338_v26 = vmul.f32 %v8193_v24, %v8187_v30 }
 0xc4f   :  { %v8197_v55 = vpop.eup %8196  ;;  %v5336_v10 = vmul.f32 %v8195_v49, %v11547_v36 }
 0xc50   :  { %v8199_v6 = vpop.eup %8198  ;;  %v5331_v34 = vadd.f32 1.0, %v8197_v55 }
 0xc51   :  { %v11597_v1 = vadd.f32 %v5338_v26, %v5336_v10  ;;  %v5339_v19 = vmul.f32 %v8199_v6, %v8191_v39  ;;  %v8201_v3 = vpop.eup %8200 }
 0xc52   :  { %v5337_v2 = vmul.f32 %v8201_v3, %v11551_v51  ;;  %v8203_v28 = vpop.eup %8202 }
 0xc53   :  { %8204 = vtanh.f32 %v11597_v1 }
 0xc54   :  { %v11601_v25 = vadd.f32 %v5339_v19, %v5337_v2  ;;  %8206 = vrcp.f32 %v5331_v34 }
 0xc56   :  { %8208 = vtanh.f32 %v11601_v25 }
 0xc5d   :  { %v8205_v47 = vpop.eup %8204 }
 0xc5e   :  { %v8207_v36 = vpop.eup %8206  ;;  %v5344_v17 = vmul.f32 %v8205_v47, %v8203_v28 }
 0xc60   :  { %v8209_v52 = vpop.eup %8208 }
 0xc61   :  { %v5345_v35 = vmul.f32 %v8209_v52, %v8207_v36 }
 0xc63   :  { %v5346_v12 = vpack.c.bf16 %v5345_v35, %v5344_v17  ;;  %v11663_v17 = vld [vmem:[%s12139_s5 + $0x8] ss:$16 sps:$4 sm:$0xff]   ;;  %v11669_v35 = vld [vmem:[%s12139_s5 + $0x24] ss:$16 sps:$4 sm:$0xff]  }
 0xc65   :  { %5380 = vmatmul.mubr.bf16.vlgmr.msra.gmra.mrb[76].mxu0 %v5346_v12  ;;  %5423 = vmatmul.mubr.bf16.vlgmr.msra.gmra.mrb[76].mxu1 %v5346_v12  ;;  %v11675_v12 = vld [vmem:[%s12139_s5 + $0x2c] ss:$16 sps:$4 sm:$0xff]  }
 0xc66   :  { %5491 = vmatpush1.bf16.msra.mxu0 %v11243_v58  ;;  %5534 = vmatpush1.bf16.msra.mxu1 %v11248_v23 }
 0xc67   :  { %5492 = vmatprep.subr.bf16.mxu0 %v11255_v7  ;;  %5535 = vmatprep.subr.bf16.mxu1 %v11260_v33 }
 0xc68   :  { %5522 = vmatprep.mubr.bf16.mxu0 %v12405_v15  ;;  %5565 = vmatprep.mubr.bf16.mxu1 %v12405_v15 }
 0xc6a   :  { %5493 = vmatpush1.bf16.msra.mxu0 %v11269_v16  ;;  %5536 = vmatpush1.bf16.msra.mxu1 %v11274_v4 }
 0xc6b   :  { %5494 = vmatprep.subr.bf16.mxu0 %v11281_v38  ;;  %5537 = vmatprep.subr.bf16.mxu1 %v11286_v57 }
 0xc6e   :  { %5495 = vmatpush1.bf16.msra.mxu0 %v11295_v18  ;;  %5538 = vmatpush1.bf16.msra.mxu1 %v11300_v42 }
 0xc6f   :  { %5496 = vmatprep.subr.bf16.mxu0 %v11307_v21  ;;  %5539 = vmatprep.subr.bf16.mxu1 %v11312_v14 }
 0xc72   :  { %5497 = vmatpush1.bf16.msra.mxu0 %v11319_v40  ;;  %5540 = vmatpush1.bf16.msra.mxu1 %v11324_v8 }
 0xc73   :  { %5498 = vmatprep.subr.bf16.mxu0 %v11331_v61  ;;  %5541 = vmatprep.subr.bf16.mxu1 %v11336_v63 }
 0xc76   :  { %5499 = vmatpush1.bf16.msra.mxu0 %v11343_v50  ;;  %5542 = vmatpush1.bf16.msra.mxu1 %v11348_v46 }
 0xc77   :  { %5500 = vmatprep.subr.bf16.mxu0 %v11355_v44  ;;  %5543 = vmatprep.subr.bf16.mxu1 %v11360_v62 }
 0xc7a   :  { %5501 = vmatpush1.bf16.msra.mxu0 %v11367_v31  ;;  %5544 = vmatpush1.bf16.msra.mxu1 %v11372_v11 }
 0xc7b   :  { %5502 = vmatprep.subr.bf16.mxu0 %v11379_v56  ;;  %5545 = vmatprep.subr.bf16.mxu1 %v11384_v43 }
 0xc7e   :  { %5503 = vmatpush1.bf16.msra.mxu0 %v11391_v32  ;;  %5546 = vmatpush1.bf16.msra.mxu1 %v11396_v48 }
 0xc7f   :  { %5504 = vmatprep.subr.bf16.mxu0 %v11403_v20  ;;  %5547 = vmatprep.subr.bf16.mxu1 %v11408_v27 }
 0xc82   :  { %5505 = vmatpush1.bf16.msra.mxu0 %v11415_v22  ;;  %5548 = vmatpush1.bf16.msra.mxu1 %v11420_v53 }
 0xc83   :  { %5633 = vmatprep.subr.bf16.mxu0 %v11233_v37  ;;  %5676 = vmatprep.subr.bf16.mxu1 %v11238_v29 }
 0xd38   :  { %v5381_v58 = vpop.f32.mrb[76].mxu0  ;;  %v5424_v23 = vpop.f32.mrb[76].mxu1 }
 0xd39   :  { %v7038_v7 = vadd.f32 %v5381_v58, %v11475_v5  ;;  %v5383_v33 = vpop.f32.mrb[77].mxu0  ;;  %v5426_v16 = vpop.f32.mrb[77].mxu1  ;;  %v7070_v63 = vadd.f32 %v5424_v23, %v11488_v45  ;;  %v11683_v58 = vld [vmem:[%s12139_s5 + $0x20] ss:$16 sps:$4 sm:$0xff]   ;;  %v11689_v23 = vld [vmem:[%s12139_s5 + $0x28] ss:$16 sps:$4 sm:$0xff]  }
 0xd3a   :  { %v7039_v4 = vadd.f32 %v5383_v33, %v11478_v9  ;;  %v5385_v38 = vpop.f32.mrb[78].mxu0  ;;  %v5428_v57 = vpop.f32.mrb[78].mxu1  ;;  %v7071_v61 = vadd.f32 %v5426_v16, %v11485_v41  ;;  %v11701_v33 = vld [vmem:[%s12139_s5 + $0x4c] ss:$16 sps:$4 sm:$0xff]   ;;  %v11707_v16 = vld [vmem:[%s12139_s5 + $0x40] ss:$16 sps:$4 sm:$0xff]  }
 0xd3b   :  { %v6739_v18 = vmul.f32 -1.442695, %v7038_v7  ;;  %v7040_v42 = vadd.f32 %v5385_v38, %v11475_v5  ;;  %v5387_v21 = vpop.f32.mrb[79].mxu0  ;;  %v5430_v14 = vpop.f32.mrb[79].mxu1  ;;  %v7072_v44 = vadd.f32 %v5428_v57, %v11488_v45  ;;  %v11695_v7 = vld [vmem:[%s12139_s5 + $0x44] ss:$16 sps:$4 sm:$0xff]  }
 0xd3c   :  { %v6740_v40 = vmul.f32 -1.442695, %v7039_v4  ;;  %v7041_v37 = vadd.f32 %v5387_v21, %v11478_v9  ;;  %v6743_v50 = vmul.f32 -1.442695, %v7071_v61  ;;  %v7073_v46 = vadd.f32 %v5430_v14, %v11485_v41  ;;  %v11713_v4 = vld [vmem:[%s12139_s5 + $0x48] ss:$16 sps:$4 sm:$0xff]  }
 0xd3d   :  { %8210 = vpow2.f32 %v6739_v18  ;;  %v6741_v29 = vmul.f32 -1.442695, %v7040_v42  ;;  %v11719_v38 = vld [vmem:[%s12139_s5 + $0x64] ss:$16 sps:$4 sm:$0xff]   ;;  %v11725_v57 = vld [vmem:[%s12139_s5 + $0x6c] ss:$16 sps:$4 sm:$0xff]  }
 0xd3e   :  { %8212 = vpow2.f32 %v6740_v40  ;;  %v6742_v8 = vmul.f32 -1.442695, %v7041_v37  ;;  %v6744_v56 = vmul.f32 -1.442695, %v7073_v46  ;;  %v11731_v18 = vld [vmem:[%s12139_s5 + $0x60] ss:$16 sps:$4 sm:$0xff]  }
 0xd3f   :  { %8214 = vpow2.f32 %v6741_v29  ;;  %v11737_v42 = vld [vmem:[%s12139_s5 + $0x68] ss:$16 sps:$4 sm:$0xff]   ;;  %v11743_v21 = vld [vmem:[%s12139_s5 + $0x84] ss:$16 sps:$4 sm:$0xff]   ;;  %v11749_v14 = vld [vmem:[%s12139_s5 + $0x8c] ss:$16 sps:$4 sm:$0xff]  }
 0xd40   :  { %8216 = vpow2.f32 %v6742_v8  ;;  %v11755_v40 = vld [vmem:[%s12139_s5 + $0x80] ss:$16 sps:$4 sm:$0xff]   ;;  %v11761_v37 = vld [vmem:[%s12139_s5 + $0x88] ss:$16 sps:$4 sm:$0xff]   ;;  %v11767_v29 = vld [vmem:[%s12139_s5 + $0xa4] ss:$16 sps:$4 sm:$0xff]  }
 0xd41   :  { %8218 = vtanh.f32 %v7070_v63  ;;  %v11773_v8 = vld [vmem:[%s12139_s5 + $0xac] ss:$16 sps:$4 sm:$0xff]   ;;  %v11779_v61 = vld [vmem:[%s12139_s5 + $0xa0] ss:$16 sps:$4 sm:$0xff]   ;;  %v11785_v63 = vld [vmem:[%s12139_s5 + $0xa8] ss:$16 sps:$4 sm:$0xff]  }
 0xd42   :  { %8220 = vpow2.f32 %v6743_v50  ;;  %v11791_v50 = vld [vmem:[%s12139_s5 + $0xc4] ss:$16 sps:$4 sm:$0xff]   ;;  %v11797_v46 = vld [vmem:[%s12139_s5 + $0xcc] ss:$16 sps:$4 sm:$0xff]  }
 0xd43   :  { %8222 = vtanh.f32 %v7072_v44  ;;  %v11803_v44 = vld [vmem:[%s12139_s5 + $0xc0] ss:$16 sps:$4 sm:$0xff]  }
 0xd47   :  { %v8211_v62 = vpop.eup %8210 }
 0xd48   :  { %v8213_v31 = vpop.eup %8212  ;;  %v5453_v11 = vadd.f32 1.0, %v8211_v62  ;;  %v11809_v62 = vld [vmem:[%s12139_s5 + $0xc8] ss:$16 sps:$4 sm:$0xff]  }
 0xd49   :  { %v5454_v43 = vadd.f32 1.0, %v8213_v31  ;;  %v8215_v32 = vpop.eup %8214  ;;  %v11815_v31 = vld [vmem:[%s12139_s5 + $0xe4] ss:$16 sps:$4 sm:$0xff]  }
 0xd4a   :  { %8224 = vrcp.f32 %v5453_v11  ;;  %v5455_v48 = vadd.f32 1.0, %v8215_v32  ;;  %v8217_v20 = vpop.eup %8216  ;;  %v11821_v11 = vld [vmem:[%s12139_s5 + $0xec] ss:$16 sps:$4 sm:$0xff]   ;;  %v11839_v32 = vld [vmem:[%s12139_s5 + $0x4] ss:$16 sps:$4 sm:$0xff]  }
 0xd4b   :  { %8226 = vrcp.f32 %v5454_v43  ;;  %v5456_v27 = vadd.f32 1.0, %v8217_v20  ;;  %v8219_v22 = vpop.eup %8218  ;;  %v11833_v43 = vld [vmem:[%s12139_s5 + $0xe8] ss:$16 sps:$4 sm:$0xff]  }
 0xd4c   :  { %8228 = vpow2.f32 %v6744_v56  ;;  %v8221_v53 = vpop.eup %8220  ;;  %v11827_v56 = vld [vmem:[%s12139_s5 + $0xe0] ss:$16 sps:$4 sm:$0xff]  }
 0xd4d   :  { %8230 = vrcp.f32 %v5455_v48  ;;  %v8223_v51 = vpop.eup %8222  ;;  %v5473_v26 = vadd.f32 1.0, %v8221_v53  ;;  %v11845_v48 = vld [vmem:[%s12139_s5 + $0xc] ss:$16 sps:$4 sm:$0xff]  }
 0xd4e   :  { %8232 = vrcp.f32 %v5456_v27 }
 0xd4f   :  { %8234 = vrcp.f32 %v5473_v26 }
 0xd54   :  { %v8225_v0 = vpop.eup %8224 }
 0xd55   :  { %v8227_v30 = vpop.eup %8226  ;;  %v5481_v54 = vmul.f32 %v8225_v0, %v8219_v22 }
 0xd56   :  { %v8229_v39 = vpop.eup %8228  ;;  %v5479_v24 = vmul.f32 %v8227_v30, %v11597_v1 }
 0xd57   :  { %v8231_v49 = vpop.eup %8230  ;;  %v5474_v60 = vadd.f32 1.0, %v8229_v39 }
 0xd58   :  { %v11647_v55 = vadd.f32 %v5481_v54, %v5479_v24  ;;  %v5482_v10 = vmul.f32 %v8231_v49, %v8223_v51  ;;  %v8233_v6 = vpop.eup %8232 }
 0xd59   :  { %v5480_v19 = vmul.f32 %v8233_v6, %v11601_v25  ;;  %v8235_v34 = vpop.eup %8234  ;;  %v11657_v25 = vld [vmem:[%s12139_s5] ss:$16 sps:$4 sm:$0xff]  }
 0xd5a   :  { %8236 = vtanh.f32 %v11647_v55 }
 0xd5b   :  { %v11651_v3 = vadd.f32 %v5482_v10, %v5480_v19  ;;  %8238 = vrcp.f32 %v5474_v60 }
 0xd5d   :  { %8240 = vtanh.f32 %v11651_v3 }
 0xd64   :  { %v8237_v2 = vpop.eup %8236 }
 0xd65   :  { %v8239_v1 = vpop.eup %8238  ;;  %v5487_v47 = vmul.f32 %v8237_v2, %v8235_v34 }
 0xd67   :  { %v8241_v28 = vpop.eup %8240 }
 0xd68   :  { %v5488_v36 = vmul.f32 %v8241_v28, %v8239_v1 }
 0xd6a   :  { %v5489_v52 = vpack.c.bf16 %v5488_v36, %v5487_v47 }
 0xd6c   :  { %5523 = vmatmul.mubr.bf16.vlgmr.msra.gmra.mrb[80].mxu0 %v5489_v52  ;;  %5566 = vmatmul.mubr.bf16.vlgmr.msra.gmra.mrb[80].mxu1 %v5489_v52 }
 0xd6d   :  { %5634 = vmatpush1.bf16.msra.mxu0 %v11657_v25  ;;  %5677 = vmatpush1.bf16.msra.mxu1 %v11663_v17 }
 0xd6e   :  { %5635 = vmatprep.subr.bf16.mxu0 %v11669_v35  ;;  %5678 = vmatprep.subr.bf16.mxu1 %v11675_v12 }
 0xd6f   :  { %5665 = vmatprep.mubr.bf16.mxu0 %v12405_v15  ;;  %5708 = vmatprep.mubr.bf16.mxu1 %v12405_v15 }
 0xd71   :  { %5636 = vmatpush1.bf16.msra.mxu0 %v11683_v58  ;;  %5679 = vmatpush1.bf16.msra.mxu1 %v11689_v23 }
 0xd72   :  { %5637 = vmatprep.subr.bf16.mxu0 %v11695_v7  ;;  %5680 = vmatprep.subr.bf16.mxu1 %v11701_v33 }
 0xd75   :  { %5638 = vmatpush1.bf16.msra.mxu0 %v11707_v16  ;;  %5681 = vmatpush1.bf16.msra.mxu1 %v11713_v4 }
 0xd76   :  { %5639 = vmatprep.subr.bf16.mxu0 %v11719_v38  ;;  %5682 = vmatprep.subr.bf16.mxu1 %v11725_v57 }
 0xd79   :  { %5640 = vmatpush1.bf16.msra.mxu0 %v11731_v18  ;;  %5683 = vmatpush1.bf16.msra.mxu1 %v11737_v42 }
 0xd7a   :  { %5641 = vmatprep.subr.bf16.mxu0 %v11743_v21  ;;  %5684 = vmatprep.subr.bf16.mxu1 %v11749_v14 }
 0xd7d   :  { %5642 = vmatpush1.bf16.msra.mxu0 %v11755_v40  ;;  %5685 = vmatpush1.bf16.msra.mxu1 %v11761_v37 }
 0xd7e   :  { %5643 = vmatprep.subr.bf16.mxu0 %v11767_v29  ;;  %5686 = vmatprep.subr.bf16.mxu1 %v11773_v8 }
 0xd81   :  { %5644 = vmatpush1.bf16.msra.mxu0 %v11779_v61  ;;  %5687 = vmatpush1.bf16.msra.mxu1 %v11785_v63 }
 0xd82   :  { %5645 = vmatprep.subr.bf16.mxu0 %v11791_v50  ;;  %5688 = vmatprep.subr.bf16.mxu1 %v11797_v46 }
 0xd85   :  { %5646 = vmatpush1.bf16.msra.mxu0 %v11803_v44  ;;  %5689 = vmatpush1.bf16.msra.mxu1 %v11809_v62 }
 0xd86   :  { %5647 = vmatprep.subr.bf16.mxu0 %v11815_v31  ;;  %5690 = vmatprep.subr.bf16.mxu1 %v11821_v11 }
 0xd89   :  { %5648 = vmatpush1.bf16.msra.mxu0 %v11827_v56  ;;  %5691 = vmatpush1.bf16.msra.mxu1 %v11833_v43 }
 0xd8a   :  { %5776 = vmatprep.subr.bf16.mxu0 %v11839_v32  ;;  %5819 = vmatprep.subr.bf16.mxu1 %v11845_v48 }
 0xe3f   :  { %v5524_v20 = vpop.f32.mrb[80].mxu0  ;;  %v5567_v27 = vpop.f32.mrb[80].mxu1 }
 0xe40   :  { %v7042_v22 = vadd.f32 %v5524_v20, %v11475_v5  ;;  %v5526_v53 = vpop.f32.mrb[81].mxu0  ;;  %v5569_v51 = vpop.f32.mrb[81].mxu1  ;;  %v7074_v2 = vadd.f32 %v5567_v27, %v11488_v45 }
 0xe41   :  { %v7043_v0 = vadd.f32 %v5526_v53, %v11478_v9  ;;  %v5528_v30 = vpop.f32.mrb[82].mxu0  ;;  %v5571_v54 = vpop.f32.mrb[82].mxu1  ;;  %v7075_v34 = vadd.f32 %v5569_v51, %v11485_v41 }
 0xe42   :  { %v6745_v39 = vmul.f32 -1.442695, %v7042_v22  ;;  %v7044_v24 = vadd.f32 %v5528_v30, %v11475_v5  ;;  %v5530_v49 = vpop.f32.mrb[83].mxu0  ;;  %v5573_v26 = vpop.f32.mrb[83].mxu1  ;;  %v7076_v47 = vadd.f32 %v5571_v54, %v11488_v45 }
 0xe43   :  { %v6746_v10 = vmul.f32 -1.442695, %v7043_v0  ;;  %v7045_v6 = vadd.f32 %v5530_v49, %v11478_v9  ;;  %v6749_v1 = vmul.f32 -1.442695, %v7075_v34  ;;  %v7077_v28 = vadd.f32 %v5573_v26, %v11485_v41 }
 0xe44   :  { %8242 = vpow2.f32 %v6745_v39  ;;  %v6747_v60 = vmul.f32 -1.442695, %v7044_v24 }
 0xe45   :  { %8244 = vpow2.f32 %v6746_v10  ;;  %v6748_v19 = vmul.f32 -1.442695, %v7045_v6  ;;  %v6750_v22 = vmul.f32 -1.442695, %v7077_v28 }
 0xe46   :  { %8246 = vpow2.f32 %v6747_v60 }
 0xe47   :  { %8248 = vpow2.f32 %v6748_v19 }
 0xe48   :  { %8250 = vtanh.f32 %v7074_v2 }
 0xe49   :  { %8252 = vpow2.f32 %v6749_v1 }
 0xe4a   :  { %8254 = vtanh.f32 %v7076_v47 }
 0xe4e   :  { %v8243_v36 = vpop.eup %8242 }
 0xe4f   :  { %v8245_v52 = vpop.eup %8244  ;;  %v5596_v20 = vadd.f32 1.0, %v8243_v36 }
 0xe50   :  { %v5597_v53 = vadd.f32 1.0, %v8245_v52  ;;  %v8247_v0 = vpop.eup %8246 }
 0xe51   :  { %8256 = vrcp.f32 %v5596_v20  ;;  %v5598_v51 = vadd.f32 1.0, %v8247_v0  ;;  %v8249_v30 = vpop.eup %8248 }
 0xe52   :  { %8258 = vrcp.f32 %v5597_v53  ;;  %v5599_v27 = vadd.f32 1.0, %v8249_v30  ;;  %v8251_v39 = vpop.eup %8250 }
 0xe53   :  { %8260 = vpow2.f32 %v6750_v22  ;;  %v8253_v24 = vpop.eup %8252 }
 0xe54   :  { %8262 = vrcp.f32 %v5598_v51  ;;  %v8255_v54 = vpop.eup %8254  ;;  %v5616_v34 = vadd.f32 1.0, %v8253_v24 }
 0xe55   :  { %8264 = vrcp.f32 %v5599_v27 }
 0xe56   :  { %8266 = vrcp.f32 %v5616_v34 }
 0xe5b   :  { %v8257_v49 = vpop.eup %8256 }
 0xe5c   :  { %v8259_v26 = vpop.eup %8258  ;;  %v5624_v10 = vmul.f32 %v8257_v49, %v8251_v39 }
 0xe5d   :  { %v8261_v6 = vpop.eup %8260  ;;  %v5622_v60 = vmul.f32 %v8259_v26, %v11647_v55 }
 0xe5e   :  { %v8263_v19 = vpop.eup %8262  ;;  %v5617_v47 = vadd.f32 1.0, %v8261_v6 }
 0xe5f   :  { %v11857_v2 = vadd.f32 %v5624_v10, %v5622_v60  ;;  %v5625_v1 = vmul.f32 %v8263_v19, %v8255_v54  ;;  %v8265_v28 = vpop.eup %8264 }
 0xe60   :  { %v5623_v36 = vmul.f32 %v8265_v28, %v11651_v3  ;;  %v8267_v20 = vpop.eup %8266 }
 0xe61   :  { %8268 = vtanh.f32 %v11857_v2 }
 0xe62   :  { %v11861_v52 = vadd.f32 %v5625_v1, %v5623_v36  ;;  %8270 = vrcp.f32 %v5617_v47 }
 0xe64   :  { %8272 = vtanh.f32 %v11861_v52 }
 0xe6b   :  { %v8269_v22 = vpop.eup %8268 }
 0xe6c   :  { %v8271_v55 = vpop.eup %8270  ;;  %v5630_v0 = vmul.f32 %v8269_v22, %v8267_v20 }
 0xe6e   :  { %v8273_v53 = vpop.eup %8272 }
 0xe6f   :  { %v5631_v51 = vmul.f32 %v8273_v53, %v8271_v55 }
 0xe71   :  { %v5632_v30 = vpack.c.bf16 %v5631_v51, %v5630_v0 }
 0xe73   :  { %5666 = vmatmul.mubr.bf16.vlgmr.msra.gmra.mrb[84].mxu0 %v5632_v30  ;;  %5709 = vmatmul.mubr.bf16.vlgmr.msra.gmra.mrb[84].mxu1 %v5632_v30 }
 0xe74   :  { %5777 = vmatpush1.bf16.msra.mxu0 %v11657_v25  ;;  %5820 = vmatpush1.bf16.msra.mxu1 %v11663_v17 }
 0xe75   :  { %5778 = vmatprep.subr.bf16.mxu0 %v11669_v35  ;;  %5821 = vmatprep.subr.bf16.mxu1 %v11675_v12 }
 0xe76   :  { %5808 = vmatprep.mubr.bf16.mxu0 %v12405_v15  ;;  %5851 = vmatprep.mubr.bf16.mxu1 %v12405_v15 }
 0xe78   :  { %5779 = vmatpush1.bf16.msra.mxu0 %v11683_v58  ;;  %5822 = vmatpush1.bf16.msra.mxu1 %v11689_v23 }
 0xe79   :  { %5780 = vmatprep.subr.bf16.mxu0 %v11695_v7  ;;  %5823 = vmatprep.subr.bf16.mxu1 %v11701_v33 }
 0xe7c   :  { %5781 = vmatpush1.bf16.msra.mxu0 %v11707_v16  ;;  %5824 = vmatpush1.bf16.msra.mxu1 %v11713_v4 }
 0xe7d   :  { %5782 = vmatprep.subr.bf16.mxu0 %v11719_v38  ;;  %5825 = vmatprep.subr.bf16.mxu1 %v11725_v57 }
 0xe80   :  { %5783 = vmatpush1.bf16.msra.mxu0 %v11731_v18  ;;  %5826 = vmatpush1.bf16.msra.mxu1 %v11737_v42 }
 0xe81   :  { %5784 = vmatprep.subr.bf16.mxu0 %v11743_v21  ;;  %5827 = vmatprep.subr.bf16.mxu1 %v11749_v14 }
 0xe84   :  { %5785 = vmatpush1.bf16.msra.mxu0 %v11755_v40  ;;  %5828 = vmatpush1.bf16.msra.mxu1 %v11761_v37 }
 0xe85   :  { %5786 = vmatprep.subr.bf16.mxu0 %v11767_v29  ;;  %5829 = vmatprep.subr.bf16.mxu1 %v11773_v8 }
 0xe88   :  { %5787 = vmatpush1.bf16.msra.mxu0 %v11779_v61  ;;  %5830 = vmatpush1.bf16.msra.mxu1 %v11785_v63 }
 0xe89   :  { %5788 = vmatprep.subr.bf16.mxu0 %v11791_v50  ;;  %5831 = vmatprep.subr.bf16.mxu1 %v11797_v46 }
 0xe8c   :  { %5789 = vmatpush1.bf16.msra.mxu0 %v11803_v44  ;;  %5832 = vmatpush1.bf16.msra.mxu1 %v11809_v62 }
 0xe8d   :  { %5790 = vmatprep.subr.bf16.mxu0 %v11815_v31  ;;  %5833 = vmatprep.subr.bf16.mxu1 %v11821_v11 }
 0xe90   :  { %5791 = vmatpush1.bf16.msra.mxu0 %v11827_v56  ;;  %5834 = vmatpush1.bf16.msra.mxu1 %v11833_v43 }
 0xe91   :  { %5919 = vmatprep.subr.bf16.mxu0 %v11839_v32  ;;  %5962 = vmatprep.subr.bf16.mxu1 %v11845_v48 }
 0xf46   :  { %v5667_v3 = vpop.f32.mrb[84].mxu0  ;;  %v5710_v27 = vpop.f32.mrb[84].mxu1 }
 0xf47   :  { %v7046_v39 = vadd.f32 %v5667_v3, %v11475_v5  ;;  %v5669_v24 = vpop.f32.mrb[85].mxu0  ;;  %v5712_v54 = vpop.f32.mrb[85].mxu1  ;;  %v7078_v36 = vadd.f32 %v5710_v27, %v11488_v45 }
 0xf48   :  { %v7047_v49 = vadd.f32 %v5669_v24, %v11478_v9  ;;  %v5671_v26 = vpop.f32.mrb[86].mxu0  ;;  %v5714_v10 = vpop.f32.mrb[86].mxu1  ;;  %v7079_v47 = vadd.f32 %v5712_v54, %v11485_v41 }
 0xf49   :  { %v6751_v6 = vmul.f32 -1.442695, %v7046_v39  ;;  %v7048_v60 = vadd.f32 %v5671_v26, %v11475_v5  ;;  %v5673_v19 = vpop.f32.mrb[87].mxu0  ;;  %v5716_v34 = vpop.f32.mrb[87].mxu1  ;;  %v7080_v55 = vadd.f32 %v5714_v10, %v11488_v45 }
 0xf4a   :  { %v6752_v1 = vmul.f32 -1.442695, %v7047_v49  ;;  %v7049_v32 = vadd.f32 %v5673_v19, %v11478_v9  ;;  %v6755_v20 = vmul.f32 -1.442695, %v7079_v47  ;;  %v7081_v22 = vadd.f32 %v5716_v34, %v11485_v41 }
 0xf4b   :  { %8274 = vpow2.f32 %v6751_v6  ;;  %v6753_v48 = vmul.f32 -1.442695, %v7048_v60 }
 0xf4c   :  { %8276 = vpow2.f32 %v6752_v1  ;;  %v6754_v28 = vmul.f32 -1.442695, %v7049_v32  ;;  %v6756_v30 = vmul.f32 -1.442695, %v7081_v22 }
 0xf4d   :  { %8278 = vpow2.f32 %v6753_v48 }
 0xf4e   :  { %8280 = vpow2.f32 %v6754_v28 }
 0xf4f   :  { %8282 = vtanh.f32 %v7078_v36 }
 0xf50   :  { %8284 = vpow2.f32 %v6755_v20 }
 0xf51   :  { %8286 = vtanh.f32 %v7080_v55 }
 0xf55   :  { %v8275_v53 = vpop.eup %8274 }
 0xf56   :  { %v8277_v0 = vpop.eup %8276  ;;  %v5739_v51 = vadd.f32 1.0, %v8275_v53 }
 0xf57   :  { %v5740_v3 = vadd.f32 1.0, %v8277_v0  ;;  %v8279_v39 = vpop.eup %8278 }
 0xf58   :  { %8288 = vrcp.f32 %v5739_v51  ;;  %v5741_v24 = vadd.f32 1.0, %v8279_v39  ;;  %v8281_v54 = vpop.eup %8280 }
 0xf59   :  { %8290 = vrcp.f32 %v5740_v3  ;;  %v5742_v27 = vadd.f32 1.0, %v8281_v54  ;;  %v8283_v49 = vpop.eup %8282 }
 0xf5a   :  { %8292 = vpow2.f32 %v6756_v30  ;;  %v8285_v26 = vpop.eup %8284 }
 0xf5b   :  { %8294 = vrcp.f32 %v5741_v24  ;;  %v8287_v10 = vpop.eup %8286  ;;  %v5759_v48 = vadd.f32 1.0, %v8285_v26 }
 0xf5c   :  { %8296 = vrcp.f32 %v5742_v27 }
 0xf5d   :  { %8298 = vrcp.f32 %v5759_v48 }
 0xf62   :  { %v8289_v6 = vpop.eup %8288 }
 0xf63   :  { %v8291_v60 = vpop.eup %8290  ;;  %v5767_v19 = vmul.f32 %v8289_v6, %v8283_v49 }
 0xf64   :  { %v8293_v34 = vpop.eup %8292  ;;  %v5765_v1 = vmul.f32 %v8291_v60, %v11857_v2 }
 0xf65   :  { %v8295_v32 = vpop.eup %8294  ;;  %v5760_v20 = vadd.f32 1.0, %v8293_v34 }
 0xf66   :  { %v11907_v28 = vadd.f32 %v5767_v19, %v5765_v1  ;;  %v5768_v47 = vmul.f32 %v8295_v32, %v8287_v10  ;;  %v8297_v36 = vpop.eup %8296 }
 0xf67   :  { %v5766_v22 = vmul.f32 %v8297_v36, %v11861_v52  ;;  %v8299_v53 = vpop.eup %8298 }
 0xf68   :  { %8300 = vtanh.f32 %v11907_v28 }
 0xf69   :  { %v11911_v55 = vadd.f32 %v5768_v47, %v5766_v22  ;;  %8302 = vrcp.f32 %v5760_v20 }
 0xf6b   :  { %8304 = vtanh.f32 %v11911_v55 }
 0xf72   :  { %v8301_v0 = vpop.eup %8300 }
 0xf73   :  { %v8303_v2 = vpop.eup %8302  ;;  %v5773_v30 = vmul.f32 %v8301_v0, %v8299_v53 }
 0xf75   :  { %v8305_v51 = vpop.eup %8304 }
 0xf76   :  { %v5774_v3 = vmul.f32 %v8305_v51, %v8303_v2  ;;  %v6079_v51 = vld [vmem:[%s12141_s7 + $0x90] sm:$0xff] }
 0xf78   :  { %v5775_v39 = vpack.c.bf16 %v5774_v3, %v5773_v30 }
 0xf7a   :  { %5809 = vmatmul.mubr.bf16.vlgmr.msra.gmra.mrb[88].mxu0 %v5775_v39  ;;  %5852 = vmatmul.mubr.bf16.vlgmr.msra.gmra.mrb[88].mxu1 %v5775_v39 }
 0xf7b   :  { %5920 = vmatpush1.bf16.msra.mxu0 %v11657_v25  ;;  %5963 = vmatpush1.bf16.msra.mxu1 %v11663_v17  ;;  %v6078_v25 = vld [vmem:[%s12141_s7 + $0x88] sm:$0xff] }
 0xf7c   :  { %5921 = vmatprep.subr.bf16.mxu0 %v11669_v35  ;;  %5964 = vmatprep.subr.bf16.mxu1 %v11675_v12 }
 0xf7d   :  { %5951 = vmatprep.mubr.bf16.mxu0 %v12405_v15  ;;  %5994 = vmatprep.mubr.bf16.mxu1 %v12405_v15  ;;  %v6077_v15 = vld [vmem:[%s12141_s7 + $0x80] sm:$0xff] }
 0xf7e   :  { %v11952_v17 = vpack.c.bf16 %v6078_v25, %v6077_v15  ;;  %v6081_v25 = vld [vmem:[%s12141_s7 + $0xa0] sm:$0xff] }
 0xf7f   :  { %5922 = vmatpush1.bf16.msra.mxu0 %v11683_v58  ;;  %5965 = vmatpush1.bf16.msra.mxu1 %v11689_v23 }
 0xf80   :  { %5923 = vmatprep.subr.bf16.mxu0 %v11695_v7  ;;  %5966 = vmatprep.subr.bf16.mxu1 %v11701_v33 }
 0xf83   :  { %5924 = vmatpush1.bf16.msra.mxu0 %v11707_v16  ;;  %5967 = vmatpush1.bf16.msra.mxu1 %v11713_v4 }
 0xf84   :  { %5925 = vmatprep.subr.bf16.mxu0 %v11719_v38  ;;  %5968 = vmatprep.subr.bf16.mxu1 %v11725_v57 }
 0xf87   :  { %5926 = vmatpush1.bf16.msra.mxu0 %v11731_v18  ;;  %5969 = vmatpush1.bf16.msra.mxu1 %v11737_v42 }
 0xf88   :  { %5927 = vmatprep.subr.bf16.mxu0 %v11743_v21  ;;  %5970 = vmatprep.subr.bf16.mxu1 %v11749_v14 }
 0xf8b   :  { %5928 = vmatpush1.bf16.msra.mxu0 %v11755_v40  ;;  %5971 = vmatpush1.bf16.msra.mxu1 %v11761_v37 }
 0xf8c   :  { %5929 = vmatprep.subr.bf16.mxu0 %v11767_v29  ;;  %5972 = vmatprep.subr.bf16.mxu1 %v11773_v8 }
 0xf8f   :  { %5930 = vmatpush1.bf16.msra.mxu0 %v11779_v61  ;;  %5973 = vmatpush1.bf16.msra.mxu1 %v11785_v63 }
 0xf90   :  { %5931 = vmatprep.subr.bf16.mxu0 %v11791_v50  ;;  %5974 = vmatprep.subr.bf16.mxu1 %v11797_v46 }
 0xf93   :  { %5932 = vmatpush1.bf16.msra.mxu0 %v11803_v44  ;;  %5975 = vmatpush1.bf16.msra.mxu1 %v11809_v62 }
 0xf94   :  { %5933 = vmatprep.subr.bf16.mxu0 %v11815_v31  ;;  %5976 = vmatprep.subr.bf16.mxu1 %v11821_v11 }
 0xf97   :  { %5934 = vmatpush1.bf16.msra.mxu0 %v11827_v56  ;;  %5977 = vmatpush1.bf16.msra.mxu1 %v11833_v43 }
 0xf98   :  { %6931 = vmatprep.subr.bf16.mxu0 %v11952_v17 }
0x104d   :  { %v5810_v35 = vpop.f32.mrb[88].mxu0  ;;  %v5853_v12 = vpop.f32.mrb[88].mxu1 }
0x104e   :  { %v7050_v58 = vadd.f32 %v5810_v35, %v11475_v5  ;;  %v5812_v23 = vpop.f32.mrb[89].mxu0  ;;  %v5855_v7 = vpop.f32.mrb[89].mxu1  ;;  %v7082_v8 = vadd.f32 %v5853_v12, %v11488_v45  ;;  %v6082_v35 = vld [vmem:[%s12141_s7 + $0xa8] sm:$0xff] }
0x104f   :  { %v7051_v33 = vadd.f32 %v5812_v23, %v11478_v9  ;;  %v5814_v16 = vpop.f32.mrb[90].mxu0  ;;  %v5857_v4 = vpop.f32.mrb[90].mxu1  ;;  %v7083_v29 = vadd.f32 %v5855_v7, %v11485_v41  ;;  %v6938_v12 = vpack.c.bf16 %v6082_v35, %v6081_v25  ;;  %v6084_v23 = vld [vmem:[%s12141_s7 + $0xb8] sm:$0xff] }
0x1050   :  { %v6757_v38 = vmul.f32 -1.442695, %v7050_v58  ;;  %v7052_v57 = vadd.f32 %v5814_v16, %v11475_v5  ;;  %v5816_v18 = vpop.f32.mrb[91].mxu0  ;;  %v5859_v42 = vpop.f32.mrb[91].mxu1  ;;  %v7084_v50 = vadd.f32 %v5857_v4, %v11488_v45  ;;  %v6083_v58 = vld [vmem:[%s12141_s7 + $0xb0] sm:$0xff]  ;;  %v6088_v4 = vld [vmem:[%s12141_s7 + $0xd8] sm:$0xff] }
0x1051   :  { %v6758_v21 = vmul.f32 -1.442695, %v7051_v33  ;;  %v7053_v14 = vadd.f32 %v5816_v18, %v11478_v9  ;;  %v6761_v61 = vmul.f32 -1.442695, %v7083_v29  ;;  %v7085_v63 = vadd.f32 %v5859_v42, %v11485_v41  ;;  %v6085_v33 = vld [vmem:[%s12141_s7 + $0xc0] sm:$0xff]  ;;  %v6087_v16 = vld [vmem:[%s12141_s7 + $0xd0] sm:$0xff] }
0x1052   :  { %8306 = vpow2.f32 %v6757_v38  ;;  %v6759_v40 = vmul.f32 -1.442695, %v7052_v57  ;;  %v6942_v7 = vpack.c.bf16 %v6084_v23, %v6083_v58  ;;  %v6950_v38 = vpack.c.bf16 %v6088_v4, %v6087_v16  ;;  %v6089_v57 = vld [vmem:[%s12141_s7 + $0xe0] sm:$0xff]  ;;  %v6090_v18 = vld [vmem:[%s12141_s7 + $0xe8] sm:$0xff]  ;;  %v6265_v25 = vld [vmem:[%s12143_s9 + $0x58] sm:$0xff] }
0x1053   :  { %8308 = vpow2.f32 %v6758_v21  ;;  %v6760_v37 = vmul.f32 -1.442695, %v7053_v14  ;;  %v6762_v31 = vmul.f32 -1.442695, %v7085_v63  ;;  %v6954_v42 = vpack.c.bf16 %v6090_v18, %v6089_v57  ;;  %v6091_v21 = vld [vmem:[%s12141_s7 + $0xf0] sm:$0xff]  ;;  %v6092_v14 = vld [vmem:[%s12141_s7 + $0xf8] sm:$0xff] }
0x1054   :  { %8310 = vpow2.f32 %v6759_v40  ;;  %v6958_v40 = vpack.c.bf16 %v6092_v14, %v6091_v21  ;;  %v6062_v29 = vld [vmem:[%s12141_s7 + $0x8] sm:$0xff]  ;;  %v6064_v63 = vld [vmem:[%s12141_s7 + $0x18] sm:$0xff] }
0x1055   :  { %8312 = vpow2.f32 %v6760_v37  ;;  %v6061_v37 = vld [vmem:[%s12141_s7] sm:$0xff]  ;;  %v6267_v58 = vld [vmem:[%s12143_s9 + $0x68] sm:$0xff] }
0x1056   :  { %8314 = vtanh.f32 %v7082_v8  ;;  %v6962_v8 = vpack.c.bf16 %v6062_v29, %v6061_v37 }
0x1057   :  { %8316 = vpow2.f32 %v6761_v61  ;;  %v6063_v61 = vld [vmem:[%s12141_s7 + $0x10] sm:$0xff] }
0x1058   :  { %8318 = vtanh.f32 %v7084_v50  ;;  %v6065_v50 = vld [vmem:[%s12141_s7 + $0x20] sm:$0xff] }
0x105c   :  { %v8307_v46 = vpop.eup %8306 }
0x105d   :  { %v8309_v44 = vpop.eup %8308  ;;  %v5882_v62 = vadd.f32 1.0, %v8307_v46  ;;  %v6066_v46 = vld [vmem:[%s12141_s7 + $0x28] sm:$0xff] }
0x105e   :  { %v5883_v11 = vadd.f32 1.0, %v8309_v44  ;;  %v8311_v56 = vpop.eup %8310  ;;  %v6970_v44 = vpack.c.bf16 %v6066_v46, %v6065_v50 }
0x105f   :  { %8320 = vrcp.f32 %v5882_v62  ;;  %v5884_v43 = vadd.f32 1.0, %v8311_v56  ;;  %v8313_v52 = vpop.eup %8312  ;;  %v6067_v62 = vld [vmem:[%s12141_s7 + $0x30] sm:$0xff]  ;;  %v6069_v56 = vld [vmem:[%s12141_s7 + $0x40] sm:$0xff] }
0x1060   :  { %8322 = vrcp.f32 %v5883_v11  ;;  %v5885_v24 = vadd.f32 1.0, %v8313_v52  ;;  %v8315_v54 = vpop.eup %8314 }
0x1061   :  { %8324 = vpow2.f32 %v6762_v31  ;;  %v8317_v27 = vpop.eup %8316  ;;  %v6068_v31 = vld [vmem:[%s12141_s7 + $0x38] sm:$0xff] }
0x1062   :  { %8326 = vrcp.f32 %v5884_v43  ;;  %v8319_v49 = vpop.eup %8318  ;;  %v5902_v1 = vadd.f32 1.0, %v8317_v27  ;;  %v6974_v11 = vpack.c.bf16 %v6068_v31, %v6067_v62  ;;  %v6070_v43 = vld [vmem:[%s12141_s7 + $0x48] sm:$0xff]  ;;  %v6073_v27 = vld [vmem:[%s12141_s7 + $0x60] sm:$0xff] }
0x1063   :  { %8328 = vrcp.f32 %v5885_v24  ;;  %v6978_v52 = vpack.c.bf16 %v6070_v43, %v6069_v56  ;;  %v6071_v24 = vld [vmem:[%s12141_s7 + $0x50] sm:$0xff] }
0x1064   :  { %8330 = vrcp.f32 %v5902_v1  ;;  %v6255_v1 = vld [vmem:[%s12143_s9 + $0x8] sm:$0xff] }
0x1069   :  { %v8321_v26 = vpop.eup %8320 }
0x106a   :  { %v8323_v10 = vpop.eup %8322  ;;  %v5910_v6 = vmul.f32 %v8321_v26, %v8315_v54  ;;  %v6072_v54 = vld [vmem:[%s12141_s7 + $0x58] sm:$0xff]  ;;  %v6074_v26 = vld [vmem:[%s12141_s7 + $0x68] sm:$0xff] }
0x106b   :  { %v8325_v60 = vpop.eup %8324  ;;  %v5908_v19 = vmul.f32 %v8323_v10, %v11907_v28  ;;  %v6986_v10 = vpack.c.bf16 %v6074_v26, %v6073_v27 }
0x106c   :  { %v8327_v34 = vpop.eup %8326  ;;  %v5903_v36 = vadd.f32 1.0, %v8325_v60  ;;  %v6076_v60 = vld [vmem:[%s12141_s7 + $0x78] sm:$0xff] }
0x106d   :  { %v11964_v32 = vadd.f32 %v5910_v6, %v5908_v19  ;;  %v5911_v48 = vmul.f32 %v8327_v34, %v8319_v49  ;;  %v8329_v47 = vpop.eup %8328  ;;  %v6982_v49 = vpack.c.bf16 %v6072_v54, %v6071_v24  ;;  %v6075_v6 = vld [vmem:[%s12141_s7 + $0x70] sm:$0xff]  ;;  %v6254_v34 = vld [vmem:[%s12143_s9] sm:$0xff] }
0x106e   :  { %v5909_v20 = vmul.f32 %v8329_v47, %v11911_v55  ;;  %v8331_v53 = vpop.eup %8330  ;;  %v6080_v55 = vld [vmem:[%s12141_s7 + $0x98] sm:$0xff]  ;;  %v6990_v19 = vpack.c.bf16 %v6076_v60, %v6075_v6  ;;  %v6994_v47 = vpack.c.bf16 %v6255_v1, %v6254_v34 }
0x106f   :  { %8332 = vtanh.f32 %v11964_v32  ;;  %v6934_v15 = vpack.c.bf16 %v6080_v55, %v6079_v51  ;;  %v6261_v51 = vld [vmem:[%s12143_s9 + $0x38] sm:$0xff] }
0x1070   :  { %v11968_v22 = vadd.f32 %v5911_v48, %v5909_v20  ;;  %8334 = vrcp.f32 %v5903_v36  ;;  %v6256_v48 = vld [vmem:[%s12143_s9 + $0x10] sm:$0xff]  ;;  %v6257_v36 = vld [vmem:[%s12143_s9 + $0x18] sm:$0xff]  ;;  %6995 = vmatprep.subr.bf16.mxu1 %v6994_v47 }
0x1071   :  { %v6998_v20 = vpack.c.bf16 %v6257_v36, %v6256_v48 }
0x1072   :  { %8336 = vtanh.f32 %v11968_v22 }
0x1079   :  { %v8333_v0 = vpop.eup %8332 }
0x107a   :  { %v8335_v28 = vpop.eup %8334  ;;  %v5916_v30 = vmul.f32 %v8333_v0, %v8331_v53  ;;  %v6258_v53 = vld [vmem:[%s12143_s9 + $0x20] sm:$0xff]  ;;  %v6259_v0 = vld [vmem:[%s12143_s9 + $0x28] sm:$0xff] }
0x107c   :  { %v8337_v2 = vpop.eup %8336 }
0x107d   :  { %v5917_v3 = vmul.f32 %v8337_v2, %v8335_v28  ;;  %v7002_v28 = vpack.c.bf16 %v6259_v0, %v6258_v53  ;;  %v6260_v2 = vld [vmem:[%s12143_s9 + $0x30] sm:$0xff] }
0x107e   :  { %v7006_v55 = vpack.c.bf16 %v6261_v51, %v6260_v2 }
0x107f   :  { %v5918_v39 = vpack.c.bf16 %v5917_v3, %v5916_v30  ;;  %v6262_v30 = vld [vmem:[%s12143_s9 + $0x40] sm:$0xff]  ;;  %v6263_v3 = vld [vmem:[%s12143_s9 + $0x48] sm:$0xff] }
0x1081   :  { %5952 = vmatmul.mubr.bf16.vlgmr.msra.gmra.mrb[92].mxu0 %v5918_v39  ;;  %5995 = vmatmul.mubr.bf16.vlgmr.msra.gmra.mrb[92].mxu1 %v5918_v39  ;;  %v7010_v39 = vpack.c.bf16 %v6263_v3, %v6262_v30  ;;  %v6769_v30 = vld [vmem:[%s12142_s8] ss:$0 sm:$0xff] }
0x1082   :  { %6933 = vmatpush3.bf16.msra.mxu0 %v11952_v17  ;;  %6857 = vmatprep.mubr.f32.mxu0 %v11493_v59  ;;  %v6086_v59 = vld [vmem:[%s12141_s7 + $0xc8] sm:$0xff] }
0x1083   :  { %6935 = vmatprep.subr.bf16.mxu0 %v6934_v15  ;;  %v6946_v17 = vpack.c.bf16 %v6086_v59, %v6085_v33  ;;  %6997 = vmatpush3.bf16.msra.mxu1 %v6994_v47 }
0x1084   :  { %6999 = vmatprep.subr.bf16.mxu1 %v6998_v20 }
0x1086   :  { %6937 = vmatpush3.bf16.msra.mxu0 %v6934_v15  ;;  %v6264_v15 = vld [vmem:[%s12143_s9 + $0x50] sm:$0xff] }
0x1087   :  { %6939 = vmatprep.subr.bf16.mxu0 %v6938_v12  ;;  %7001 = vmatpush3.bf16.msra.mxu1 %v6998_v20  ;;  %v7014_v35 = vpack.c.bf16 %v6265_v25, %v6264_v15 }
0x1088   :  { %7003 = vmatprep.subr.bf16.mxu1 %v7002_v28 }
0x108a   :  { %6941 = vmatpush3.bf16.msra.mxu0 %v6938_v12  ;;  %v6266_v12 = vld [vmem:[%s12143_s9 + $0x60] sm:$0xff] }
0x108b   :  { %6943 = vmatprep.subr.bf16.mxu0 %v6942_v7  ;;  %7005 = vmatpush3.bf16.msra.mxu1 %v7002_v28  ;;  %v7018_v23 = vpack.c.bf16 %v6267_v58, %v6266_v12  ;;  %v6770_v58 = vld [vmem:[%s12144_s10] ss:$0 sm:$0xff] }
0x108c   :  { %7007 = vmatprep.subr.bf16.mxu1 %v7006_v55 }
0x108e   :  { %6945 = vmatpush3.bf16.msra.mxu0 %v6942_v7 }
0x108f   :  { %6947 = vmatprep.subr.bf16.mxu0 %v6946_v17  ;;  %7009 = vmatpush3.bf16.msra.mxu1 %v7006_v55 }
0x1090   :  { %7011 = vmatprep.subr.bf16.mxu1 %v7010_v39 }
0x1092   :  { %6949 = vmatpush3.bf16.msra.mxu0 %v6946_v17 }
0x1093   :  { %6951 = vmatprep.subr.bf16.mxu0 %v6950_v38  ;;  %7013 = vmatpush3.bf16.msra.mxu1 %v7010_v39 }
0x1094   :  { %7015 = vmatprep.subr.bf16.mxu1 %v7014_v35 }
0x1096   :  { %6953 = vmatpush3.bf16.msra.mxu0 %v6950_v38 }
0x1097   :  { %6955 = vmatprep.subr.bf16.mxu0 %v6954_v42  ;;  %7017 = vmatpush3.bf16.msra.mxu1 %v7014_v35 }
0x1098   :  { %7019 = vmatprep.subr.bf16.mxu1 %v7018_v23 }
0x109a   :  { %6957 = vmatpush3.bf16.msra.mxu0 %v6954_v42 }
0x109b   :  { %6959 = vmatprep.subr.bf16.mxu0 %v6958_v40  ;;  %7021 = vmatpush3.bf16.msra.mxu1 %v7018_v23 }
0x109e   :  { %6961 = vmatpush3.bf16.msra.mxu0 %v6958_v40 }
0x109f   :  { %6963 = vmatprep.subr.bf16.mxu0 %v6962_v8 }
0x10a1   :  { %6858 = vmatmul.mubr.f32.vlgmr.msra.gmra.mrb[100].mxu0 %v11496_v13  ;;  %v6966_v13 = vpack.c.bf16 %v6064_v63, %v6063_v61 }
0x10a2   :  { %6965 = vmatpush3.bf16.msra.mxu0 %v6962_v8 }
0x10a3   :  { %6967 = vmatprep.subr.bf16.mxu0 %v6966_v13 }
0x10a6   :  { %6969 = vmatpush3.bf16.msra.mxu0 %v6966_v13 }
0x10a7   :  { %6971 = vmatprep.subr.bf16.mxu0 %v6970_v44 }
0x10aa   :  { %6973 = vmatpush3.bf16.msra.mxu0 %v6970_v44 }
0x10ab   :  { %6975 = vmatprep.subr.bf16.mxu0 %v6974_v11 }
0x10ae   :  { %6977 = vmatpush3.bf16.msra.mxu0 %v6974_v11 }
0x10af   :  { %6979 = vmatprep.subr.bf16.mxu0 %v6978_v52 }
0x10b2   :  { %6981 = vmatpush3.bf16.msra.mxu0 %v6978_v52 }
0x10b3   :  { %6983 = vmatprep.subr.bf16.mxu0 %v6982_v49 }
0x10b6   :  { %6985 = vmatpush3.bf16.msra.mxu0 %v6982_v49 }
0x10b7   :  { %6987 = vmatprep.subr.bf16.mxu0 %v6986_v10 }
0x10ba   :  { %6989 = vmatpush3.bf16.msra.mxu0 %v6986_v10 }
0x10bb   :  { %6991 = vmatprep.subr.bf16.mxu0 %v6990_v19 }
0x10be   :  { %6993 = vmatpush3.bf16.msra.mxu0 %v6990_v19 }
0x1154   :  { %v5953_v7 = vpop.f32.mrb[92].mxu0  ;;  %v5996_v33 = vpop.f32.mrb[92].mxu1 }
0x1155   :  { %v7054_v59 = vadd.f32 %v5953_v7, %v11475_v5  ;;  %v5955_v17 = vpop.f32.mrb[93].mxu0  ;;  %v5998_v16 = vpop.f32.mrb[93].mxu1  ;;  %v7086_v63 = vadd.f32 %v5996_v33, %v11488_v45 }
0x1156   :  { %v7055_v4 = vadd.f32 %v5955_v17, %v11478_v9  ;;  %v5957_v38 = vpop.f32.mrb[94].mxu0  ;;  %v6000_v57 = vpop.f32.mrb[94].mxu1  ;;  %v7087_v61 = vadd.f32 %v5998_v16, %v11485_v41 }
0x1157   :  { %v6763_v18 = vmul.f32 -1.442695, %v7054_v59  ;;  %v7056_v42 = vadd.f32 %v5957_v38, %v11475_v5  ;;  %v5959_v21 = vpop.f32.mrb[95].mxu0  ;;  %v6002_v14 = vpop.f32.mrb[95].mxu1  ;;  %v7088_v5 = vadd.f32 %v6000_v57, %v11488_v45 }
0x1158   :  { %v6764_v40 = vmul.f32 -1.442695, %v7055_v4  ;;  %v7057_v37 = vadd.f32 %v5959_v21, %v11478_v9  ;;  %v6767_v13 = vmul.f32 -1.442695, %v7087_v61  ;;  %v7089_v50 = vadd.f32 %v6002_v14, %v11485_v41 }
0x1159   :  { %8338 = vpow2.f32 %v6763_v18  ;;  %v6765_v29 = vmul.f32 -1.442695, %v7056_v42 }
0x115a   :  { %8340 = vpow2.f32 %v6764_v40  ;;  %v6766_v8 = vmul.f32 -1.442695, %v7057_v37  ;;  %v6768_v9 = vmul.f32 -1.442695, %v7089_v50 }
0x115b   :  { %8342 = vpow2.f32 %v6765_v29 }
0x115c   :  { %8344 = vpow2.f32 %v6766_v8 }
0x115d   :  { %8346 = vtanh.f32 %v7086_v63 }
0x115e   :  { %8348 = vpow2.f32 %v6767_v13 }
0x115f   :  { %8350 = vtanh.f32 %v7088_v5 }
0x1163   :  { %v8339_v46 = vpop.eup %8338 }
0x1164   :  { %v8341_v44 = vpop.eup %8340  ;;  %v6025_v62 = vadd.f32 1.0, %v8339_v46 }
0x1165   :  { %v6026_v31 = vadd.f32 1.0, %v8341_v44  ;;  %v8343_v11 = vpop.eup %8342 }
0x1166   :  { %8352 = vrcp.f32 %v6025_v62  ;;  %v6027_v56 = vadd.f32 1.0, %v8343_v11  ;;  %v8345_v43 = vpop.eup %8344 }
0x1167   :  { %8354 = vrcp.f32 %v6026_v31  ;;  %v6028_v52 = vadd.f32 1.0, %v8345_v43  ;;  %v8347_v41 = vpop.eup %8346 }
0x1168   :  { %8356 = vpow2.f32 %v6768_v9  ;;  %v8349_v24 = vpop.eup %8348 }
0x1169   :  { %8358 = vrcp.f32 %v6027_v56  ;;  %v8351_v45 = vpop.eup %8350  ;;  %v6045_v26 = vadd.f32 1.0, %v8349_v24 }
0x116a   :  { %8360 = vrcp.f32 %v6028_v52 }
0x116b   :  { %8362 = vrcp.f32 %v6045_v26 }
0x1170   :  { %v8353_v54 = vpop.eup %8352 }
0x1171   :  { %v8355_v27 = vpop.eup %8354  ;;  %v6053_v49 = vmul.f32 %v8353_v54, %v8347_v41 }
0x1172   :  { %v8357_v10 = vpop.eup %8356  ;;  %v6051_v6 = vmul.f32 %v8355_v27, %v11964_v32  ;;  %v6268_v32 = vld [vmem:[%s12143_s9 + $0x70] sm:$0xff] }
0x1173   :  { %v8359_v60 = vpop.eup %8358  ;;  %v6046_v48 = vadd.f32 1.0, %v8357_v10 }
0x1174   :  { %v6054_v19 = vmul.f32 %v8359_v60, %v8351_v45  ;;  %v6055_v34 = vadd.f32 %v6053_v49, %v6051_v6  ;;  %v8361_v1 = vpop.eup %8360 }
0x1175   :  { %v6052_v47 = vmul.f32 %v8361_v1, %v11968_v22  ;;  %v8363_v20 = vpop.eup %8362  ;;  %v6269_v22 = vld [vmem:[%s12143_s9 + $0x78] sm:$0xff] }
0x1176   :  { %8364 = vtanh.f32 %v6055_v34  ;;  %v7022_v55 = vpack.c.bf16 %v6269_v22, %v6268_v32 }
0x1177   :  { %v6056_v36 = vadd.f32 %v6054_v19, %v6052_v47  ;;  %8366 = vrcp.f32 %v6046_v48 }
0x1178   :  { %7023 = vmatprep.subr.bf16.mxu1 %v7022_v55 }
0x1179   :  { %8368 = vtanh.f32 %v6056_v36  ;;  %7025 = vmatpush3.bf16.msra.mxu1 %v7022_v55 }
0x1180   :  { %v8365_v53 = vpop.eup %8364 }
0x1181   :  { %v6059_v0 = vmul.f32 %v8365_v53, %v8363_v20  ;;  %v8367_v28 = vpop.eup %8366 }
0x1183   :  { %6892 = vmatprep.mubr.f32.mxu0 %v6059_v0  ;;  %v8369_v2 = vpop.eup %8368 }
0x1184   :  { %v6060_v51 = vmul.f32 %v8369_v2, %v8367_v28 }
0x1186   :  { %6893 = vmatmul.mubr.f32.vlgmr.msra.gmra.mrb[100].mxu0 %v6060_v51 }
0x1259   :  { %v6894_v3 = vpop.f32.mrb[100].mxu0 }
0x125a   :  { %v6251_v39 = vadd.f32 %v6894_v3, %v6769_v30  ;;  %v6234_v15 = vpop.f32.mrb[101].mxu0 }
0x125b   :  { %v6250_v25 = vadd.f32 %v6769_v30, %v6234_v15 }
0x125c   :  { %v6253_v12 = vmax.f32 %v6251_v39, 0.0 }
0x125d   :  { %v6252_v35 = vmax.f32 %v6250_v25, 0.0 }
0x125f   :  { %6927 = vmatprep.mubr.f32.mxu1 %v6252_v35 }
0x1260   :  { %6928 = vmatmul.mubr.f32.vlgmr.msra.gmra.mrb[100].mxu1 %v6253_v12 }
0x1333   :  { %v6929_v23 = vpop.f32.mrb[100].mxu1 }
0x1334   :  { %v6349_v7 = vadd.f32 %v6929_v23, %v6770_v58  ;;  %v6343_v33 = vpop.f32.mrb[101].mxu1 }
0x1335   :  { %v6344_v59 = vadd.f32 %v6770_v58, %v6343_v33 }
0x1336   :  { %6354 = vst.msk [vmem:[%s12145_s11 + $0x8] sm:$0xff] %vm6352_vm0, %v6349_v7 }
0x1337   :  { %6353 = vst.msk [vmem:[%s12145_s11] sm:$0xff] %vm6352_vm0, %v6344_v59 }
0x1338   :  { %6359 = vsyncpa [#allocation3], 1 }

</bundles_post_ra>
